<compile_context>
chip_gen: v7x
topology: tpu7x:2x2x1
jax: 0.10.0
libtpu: 0.0.40
codegen_flags: <defaults>
</compile_context>

<pallas_src>
import functools

import jax
import jax.numpy as jnp
from jax.experimental import pallas as pl
from jax.experimental.pallas import tpu as pltpu


# ------------------------------ fused NMT kernel ------------------------------

def _nmt_kernel(x_ref, y_ref,
                e0_wih_ref, e0_whh_ref, e0_b_ref, e1_wcat_ref, e1_b_ref,
                d0_wih_ref, d0_whh_ref, d0_b_ref, d1_wcat_ref, d1_b_ref,
                wout_ref, bout_ref,
                out_ref,
                xg_sc, yg_sc, oy_sc,
                *, B, Tj, Te, K):
    """Whole MyNMT forward in one kernel invocation (no grid).

    x_ref:  (Tj*B, K) time-major encoder embeddings.
    y_ref:  (Te*B, K) time-major decoder embeddings.
    *_wih / *_whh: (4, K, K) per-gate weights (gate order i, f, g, o).
    *_wcat: (4, 2K, K) per-gate [W_ih^T ; W_hh^T] for the second layers.
    *_b:    (4, 1, K) per-gate bias.
    wout:   (K, EV), bout: (1, EV).
    out_ref: (Te*B, EV).
    Scratch: xg_sc (4, Tj*B, K), yg_sc (4, Te*B, K), oy_sc (Te*B, K).
    """
    f32 = jnp.float32

    # ---- Hoisted layer-0 input projections (off the serial recurrence path;
    #      one well-shaped (T*B, K) @ (K, K) matmul per gate, bias folded in).
    x_all = x_ref[...]                                     # (Tj*B, K)
    y_all = y_ref[...]                                     # (Te*B, K)
    for g in range(4):
        xg_sc[g] = (jnp.dot(x_all, e0_wih_ref[g], preferred_element_type=f32)
                    + e0_b_ref[g])
        yg_sc[g] = (jnp.dot(y_all, d0_wih_ref[g], preferred_element_type=f32)
                    + d0_b_ref[g])

    def cell_update(pre_i, pre_f, pre_g, pre_o, c_prev):
        i_g = jax.nn.sigmoid(pre_i)
        f_g = jax.nn.sigmoid(pre_f)
        g_g = jnp.tanh(pre_g)
        o_g = jax.nn.sigmoid(pre_o)
        c_new = f_g * c_prev + i_g * g_g
        h_new = o_g * jnp.tanh(c_new)
        return h_new, c_new

    def run_stack(T, ing_sc, whh0_ref, wcat1_ref, b1_ref, state, store_out):
        """Two stacked LSTM layers over T timesteps (statically unrolled)."""
        h0, c0, h1, c1 = state
        for t in range(T):                      # static unroll: T fixed, small
            r0, r1 = t * B, (t + 1) * B
            # Layer 0: hoisted input gates + per-gate hidden matmul.  Every
            # gate is a lane-aligned (B, K) tile -> no cross-lane slicing.
            pre0 = [ing_sc[g, r0:r1, :]
                    + jnp.dot(h0, whh0_ref[g], preferred_element_type=f32)
                    for g in range(4)]
            h0, c0 = cell_update(*pre0, c0)
            # Layer 1: fused [input ; hidden] @ [W_ih ; W_hh] per gate.
            xh = jnp.concatenate([h0, h1], axis=-1)          # (B, 2K)
            pre1 = [jnp.dot(xh, wcat1_ref[g], preferred_element_type=f32)
                    + b1_ref[g]
                    for g in range(4)]
            h1, c1 = cell_update(*pre1, c1)
            if store_out:
                oy_sc[r0:r1, :] = h1
        return h0, c0, h1, c1

    zeros = jnp.zeros((B, K), f32)
    # Encoder (zero initial state); its final per-layer (h, c) seed the decoder.
    enc_final = run_stack(Tj, xg_sc, e0_whh_ref, e1_wcat_ref, e1_b_ref,
                          (zeros, zeros, zeros, zeros), store_out=False)
    # Decoder.
    run_stack(Te, yg_sc, d0_whh_ref, d1_wcat_ref, d1_b_ref,
              enc_final, store_out=True)

    # Final Linear over all decoder timesteps: one matmul + one store.
    out_ref[...] = (jnp.dot(oy_sc[...], wout_ref[...],
                            preferred_element_type=f32)
                    + bout_ref[...]).astype(out_ref.dtype)


def _full_spec(shape):
    n = len(shape)
    return pl.BlockSpec(shape, lambda: (0,) * n)


def mynmt_pallas_call(x_tm, y_tm, w, *, B, Tj, Te, K, EV):
    inputs = (x_tm, y_tm,
              w["e0_wih"], w["e0_whh"], w["e0_b"], w["e1_wcat"], w["e1_b"],
              w["d0_wih"], w["d0_whh"], w["d0_b"], w["d1_wcat"], w["d1_b"],
              w["wout"], w["bout"])
    kernel = functools.partial(_nmt_kernel, B=B, Tj=Tj, Te=Te, K=K)
    return pl.pallas_call(
        kernel,
        out_shape=jax.ShapeDtypeStruct((Te * B, EV), jnp.float32),
        in_specs=[_full_spec(a.shape) for a in inputs],
        out_specs=_full_spec((Te * B, EV)),
        scratch_shapes=[
            pltpu.VMEM((4, Tj * B, K), jnp.float32),   # hoisted encoder gates
            pltpu.VMEM((4, Te * B, K), jnp.float32),   # hoisted decoder gates
            pltpu.VMEM((Te * B, K), jnp.float32),      # decoder layer-1 outputs
        ],
    )(*inputs)


# ------------------------------ weight preparation -----------------------------

def _per_gate(w_t, k):
    """(K_in, 4K) -> (4, K_in, K); PyTorch gate order (i, f, g, o) preserved."""
    k_in = w_t.shape[0]
    return jnp.transpose(w_t.reshape(k_in, 4, k), (1, 0, 2))


def prep_weights(params):
    k = params["jemb"].shape[1]

    def stack(layer_params):
        l0, l1 = layer_params
        return {
            "wih0": _per_gate(l0["w_ih_t"], k),
            "whh0": _per_gate(l0["w_hh_t"], k),
            "b0": l0["b"].reshape(4, 1, k),
            "wcat1": jnp.concatenate([_per_gate(l1["w_ih_t"], k),
                                      _per_gate(l1["w_hh_t"], k)], axis=1),
            "b1": l1["b"].reshape(4, 1, k),
        }

    enc = stack(params["lstm1"])
    dec = stack(params["lstm2"])
    return {
        "e0_wih": enc["wih0"], "e0_whh": enc["whh0"], "e0_b": enc["b0"],
        "e1_wcat": enc["wcat1"], "e1_b": enc["b1"],
        "d0_wih": dec["wih0"], "d0_whh": dec["whh0"], "d0_b": dec["b0"],
        "d1_wcat": dec["wcat1"], "d1_b": dec["b1"],
        "wout": params["W_t"],
        "bout": params["W_b"].reshape(1, -1),
    }


# ------------------------------- MyNMT forward ---------------------------------

def mynmt_forward(params, jline, eline):
    B, Tj = jline.shape
    _, Te = eline.shape
    K = params["jemb"].shape[1]
    EV = params["W_t"].shape[1]

    # Embedding lookups (token-id gather) -- plain-JAX glue feeding the kernel.
    x = params["jemb"][jline]                            # (B, Tj, K)
    y = params["eemb"][eline]                            # (B, Te, K)
    # Time-major flattened slabs; the only layout transforms in the whole net.
    x_tm = jnp.transpose(x, (1, 0, 2)).reshape(Tj * B, K)
    y_tm = jnp.transpose(y, (1, 0, 2)).reshape(Te * B, K)

    w = prep_weights(params)
    out2d = mynmt_pallas_call(x_tm, y_tm, w, B=B, Tj=Tj, Te=Te, K=K, EV=EV)
    return jnp.transpose(out2d.reshape(Te, B, EV), (1, 0, 2))   # (B, Te, EV)


# ----------------------------- reference (pure JAX) -----------------------------

def _ref_lstm_layer(x_btk, w_ih_t, w_hh_t, b, h0, c0):
    K = h0.shape[-1]

    def step(carry, x_t):
        h, c = carry
        g = x_t @ w_ih_t + h @ w_hh_t + b
        i = jax.nn.sigmoid(g[:, :K]); f = jax.nn.sigmoid(g[:, K:2 * K])
        gg = jnp.tanh(g[:, 2 * K:3 * K]); o = jax.nn.sigmoid(g[:, 3 * K:])
        c = f * c + i * gg
        h = o * jnp.tanh(c)
        return (h, c), h

    (h, c), ys = jax.lax.scan(step, (h0, c0), jnp.transpose(x_btk, (1, 0, 2)))
    return jnp.transpose(ys, (1, 0, 2)), h, c


def mynmt_reference(params, jline, eline):
    B = jline.shape[0]
    K = params["jemb"].shape[1]
    x = params["jemb"][jline]
    y = params["eemb"][eline]
    z = jnp.zeros((B, K), jnp.float32)
    h, hs, cs = x, [], []
    for p in params["lstm1"]:
        h, hn, cn = _ref_lstm_layer(h, p["w_ih_t"], p["w_hh_t"], p["b"], z, z)
        hs.append(hn); cs.append(cn)
    o = y
    for l, p in enumerate(params["lstm2"]):
        o, _, _ = _ref_lstm_layer(o, p["w_ih_t"], p["w_hh_t"], p["b"], hs[l], cs[l])
    return o @ params["W_t"] + params["W_b"]


# ------------------------------------ main ---------------------------------------

def init_params(key, jv, ev, k):
    ks = jax.random.split(key, 16)
    scale = 0.1

    def lstm_params(key_pair):
        k1, k2 = key_pair
        return [
            {"w_ih_t": scale * jax.random.normal(jax.random.fold_in(k1, i), (k, 4 * k), jnp.float32),
             "w_hh_t": scale * jax.random.normal(jax.random.fold_in(k2, i), (k, 4 * k), jnp.float32),
             "b": scale * jax.random.normal(jax.random.fold_in(k1, 100 + i), (4 * k,), jnp.float32)}
            for i in range(2)
        ]

    return {
        "jemb": scale * jax.random.normal(ks[0], (jv, k), jnp.float32),
        "eemb": scale * jax.random.normal(ks[1], (ev, k), jnp.float32),
        "lstm1": lstm_params((ks[2], ks[3])),
        "lstm2": lstm_params((ks[4], ks[5])),
        "W_t": scale * jax.random.normal(ks[6], (k, ev), jnp.float32),
        "W_b": scale * jax.random.normal(ks[7], (ev,), jnp.float32),
    }


if __name__ == "__main__":
    B, Tj, Te, K = 2, 8, 8, 32
    JV, EV = 32, 32

    key = jax.random.PRNGKey(0)
    params = init_params(key, JV, EV, K)
    jline = jax.random.randint(jax.random.fold_in(key, 1), (B, Tj), 0, JV, jnp.int32)
    eline = jax.random.randint(jax.random.fold_in(key, 2), (B, Te), 0, EV, jnp.int32)

    fwd = jax.jit(mynmt_forward)
    out = jax.block_until_ready(fwd(params, jline, eline))

    ref = jax.block_until_ready(mynmt_reference(params, jline, eline))
    assert out.shape == (B, Te, EV)
    assert jnp.allclose(out, ref, atol=1e-4, rtol=1e-4)

    print("KERNEL_OK")
</pallas_src>

<mosaic_0001>
module attributes {stable_mosaic.version = 11 : i64} {
  func.func @_nmt_kernel(%arg0: memref<16x32xf32, #tpu.memory_space<vmem>>, %arg1: memref<16x32xf32, #tpu.memory_space<vmem>>, %arg2: memref<4x32x32xf32, #tpu.memory_space<vmem>>, %arg3: memref<4x32x32xf32, #tpu.memory_space<vmem>>, %arg4: memref<4x1x32xf32, #tpu.memory_space<vmem>>, %arg5: memref<4x64x32xf32, #tpu.memory_space<vmem>>, %arg6: memref<4x1x32xf32, #tpu.memory_space<vmem>>, %arg7: memref<4x32x32xf32, #tpu.memory_space<vmem>>, %arg8: memref<4x32x32xf32, #tpu.memory_space<vmem>>, %arg9: memref<4x1x32xf32, #tpu.memory_space<vmem>>, %arg10: memref<4x64x32xf32, #tpu.memory_space<vmem>>, %arg11: memref<4x1x32xf32, #tpu.memory_space<vmem>>, %arg12: memref<32x32xf32, #tpu.memory_space<vmem>>, %arg13: memref<1x32xf32, #tpu.memory_space<vmem>>, %arg14: memref<16x32xf32, #tpu.memory_space<vmem>>, %arg15: memref<4x16x32xf32, #tpu.memory_space<vmem>>, %arg16: memref<4x16x32xf32, #tpu.memory_space<vmem>>, %arg17: memref<16x32xf32, #tpu.memory_space<vmem>>) attributes {dimension_semantics = [], scalar_prefetch = 0 : i64, scratch_operands = 3 : i64, tpu.core_type = #tpu.core_type<tc>} {
    %c0 = arith.constant 0 : index
    %c0_0 = arith.constant 0 : index
    %0 = vector.load %arg0[%c0, %c0_0] : memref<16x32xf32, #tpu.memory_space<vmem>>, vector<16x32xf32>
    %c0_1 = arith.constant 0 : index
    %c0_2 = arith.constant 0 : index
    %1 = vector.load %arg1[%c0_1, %c0_2] : memref<16x32xf32, #tpu.memory_space<vmem>>, vector<16x32xf32>
    %c0_3 = arith.constant 0 : index
    %c0_4 = arith.constant 0 : index
    %c0_5 = arith.constant 0 : index
    %2 = vector.load %arg2[%c0_3, %c0_4, %c0_5] : memref<4x32x32xf32, #tpu.memory_space<vmem>>, vector<1x32x32xf32>
    %3 = vector.shape_cast %2 : vector<1x32x32xf32> to vector<32x32xf32>
    %cst = arith.constant dense<0.000000e+00> : vector<16x32xf32>
    %4 = tpu.matmul %0, %3, %cst {dimension_numbers = #tpu.dot_dimension_numbers<[1], [0], [0], [1], [0, 0, 1, 1], [], []>} : vector<16x32xf32>, vector<32x32xf32>, vector<16x32xf32> -> vector<16x32xf32>
    %c0_6 = arith.constant 0 : index
    %c0_7 = arith.constant 0 : index
    %c0_8 = arith.constant 0 : index
    %5 = vector.load %arg4[%c0_6, %c0_7, %c0_8] : memref<4x1x32xf32, #tpu.memory_space<vmem>>, vector<1x1x32xf32>
    %6 = vector.shape_cast %5 : vector<1x1x32xf32> to vector<1x32xf32>
    %7 = vector.broadcast %6 : vector<1x32xf32> to vector<16x32xf32>
    %8 = arith.addf %4, %7 : vector<16x32xf32>
    %c0_9 = arith.constant 0 : index
    %c0_10 = arith.constant 0 : index
    %c0_11 = arith.constant 0 : index
    %9 = vector.load %arg15[%c0_9, %c0_10, %c0_11] : memref<4x16x32xf32, #tpu.memory_space<vmem>>, vector<1x16x32xf32>
    %10 = vector.shape_cast %9 : vector<1x16x32xf32> to vector<16x32xf32>
    %11 = vector.shape_cast %8 : vector<16x32xf32> to vector<1x16x32xf32>
    tpu.vector_store %arg15[%c0_9, %c0_10, %c0_11], %11 {strides = array<i32>} : memref<4x16x32xf32, #tpu.memory_space<vmem>>, vector<1x16x32xf32>,
    %c0_12 = arith.constant 0 : index
    %c0_13 = arith.constant 0 : index
    %c0_14 = arith.constant 0 : index
    %12 = vector.load %arg7[%c0_12, %c0_13, %c0_14] : memref<4x32x32xf32, #tpu.memory_space<vmem>>, vector<1x32x32xf32>
    %13 = vector.shape_cast %12 : vector<1x32x32xf32> to vector<32x32xf32>
    %cst_15 = arith.constant dense<0.000000e+00> : vector<16x32xf32>
    %14 = tpu.matmul %1, %13, %cst_15 {dimension_numbers = #tpu.dot_dimension_numbers<[1], [0], [0], [1], [0, 0, 1, 1], [], []>} : vector<16x32xf32>, vector<32x32xf32>, vector<16x32xf32> -> vector<16x32xf32>
    %c0_16 = arith.constant 0 : index
    %c0_17 = arith.constant 0 : index
    %c0_18 = arith.constant 0 : index
    %15 = vector.load %arg9[%c0_16, %c0_17, %c0_18] : memref<4x1x32xf32, #tpu.memory_space<vmem>>, vector<1x1x32xf32>
    %16 = vector.shape_cast %15 : vector<1x1x32xf32> to vector<1x32xf32>
    %17 = vector.broadcast %16 : vector<1x32xf32> to vector<16x32xf32>
    %18 = arith.addf %14, %17 : vector<16x32xf32>
    %c0_19 = arith.constant 0 : index
    %c0_20 = arith.constant 0 : index
    %c0_21 = arith.constant 0 : index
    %19 = vector.load %arg16[%c0_19, %c0_20, %c0_21] : memref<4x16x32xf32, #tpu.memory_space<vmem>>, vector<1x16x32xf32>
    %20 = vector.shape_cast %19 : vector<1x16x32xf32> to vector<16x32xf32>
    %21 = vector.shape_cast %18 : vector<16x32xf32> to vector<1x16x32xf32>
    tpu.vector_store %arg16[%c0_19, %c0_20, %c0_21], %21 {strides = array<i32>} : memref<4x16x32xf32, #tpu.memory_space<vmem>>, vector<1x16x32xf32>,
    %c1 = arith.constant 1 : index
    %c0_22 = arith.constant 0 : index
    %c0_23 = arith.constant 0 : index
    %22 = vector.load %arg2[%c1, %c0_22, %c0_23] : memref<4x32x32xf32, #tpu.memory_space<vmem>>, vector<1x32x32xf32>
    %23 = vector.shape_cast %22 : vector<1x32x32xf32> to vector<32x32xf32>
    %cst_24 = arith.constant dense<0.000000e+00> : vector<16x32xf32>
    %24 = tpu.matmul %0, %23, %cst_24 {dimension_numbers = #tpu.dot_dimension_numbers<[1], [0], [0], [1], [0, 0, 1, 1], [], []>} : vector<16x32xf32>, vector<32x32xf32>, vector<16x32xf32> -> vector<16x32xf32>
    %c1_25 = arith.constant 1 : index
    %c0_26 = arith.constant 0 : index
    %c0_27 = arith.constant 0 : index
    %25 = vector.load %arg4[%c1_25, %c0_26, %c0_27] : memref<4x1x32xf32, #tpu.memory_space<vmem>>, vector<1x1x32xf32>
    %26 = vector.shape_cast %25 : vector<1x1x32xf32> to vector<1x32xf32>
    %27 = vector.broadcast %26 : vector<1x32xf32> to vector<16x32xf32>
    %28 = arith.addf %24, %27 : vector<16x32xf32>
    %c1_28 = arith.constant 1 : index
    %c0_29 = arith.constant 0 : index
    %c0_30 = arith.constant 0 : index
    %29 = vector.load %arg15[%c1_28, %c0_29, %c0_30] : memref<4x16x32xf32, #tpu.memory_space<vmem>>, vector<1x16x32xf32>
    %30 = vector.shape_cast %29 : vector<1x16x32xf32> to vector<16x32xf32>
    %31 = vector.shape_cast %28 : vector<16x32xf32> to vector<1x16x32xf32>
    tpu.vector_store %arg15[%c1_28, %c0_29, %c0_30], %31 {strides = array<i32>} : memref<4x16x32xf32, #tpu.memory_space<vmem>>, vector<1x16x32xf32>,
    %c1_31 = arith.constant 1 : index
    %c0_32 = arith.constant 0 : index
    %c0_33 = arith.constant 0 : index
    %32 = vector.load %arg7[%c1_31, %c0_32, %c0_33] : memref<4x32x32xf32, #tpu.memory_space<vmem>>, vector<1x32x32xf32>
    %33 = vector.shape_cast %32 : vector<1x32x32xf32> to vector<32x32xf32>
    %cst_34 = arith.constant dense<0.000000e+00> : vector<16x32xf32>
    %34 = tpu.matmul %1, %33, %cst_34 {dimension_numbers = #tpu.dot_dimension_numbers<[1], [0], [0], [1], [0, 0, 1, 1], [], []>} : vector<16x32xf32>, vector<32x32xf32>, vector<16x32xf32> -> vector<16x32xf32>
    %c1_35 = arith.constant 1 : index
    %c0_36 = arith.constant 0 : index
    %c0_37 = arith.constant 0 : index
    %35 = vector.load %arg9[%c1_35, %c0_36, %c0_37] : memref<4x1x32xf32, #tpu.memory_space<vmem>>, vector<1x1x32xf32>
    %36 = vector.shape_cast %35 : vector<1x1x32xf32> to vector<1x32xf32>
    %37 = vector.broadcast %36 : vector<1x32xf32> to vector<16x32xf32>
    %38 = arith.addf %34, %37 : vector<16x32xf32>
    %c1_38 = arith.constant 1 : index
    %c0_39 = arith.constant 0 : index
    %c0_40 = arith.constant 0 : index
    %39 = vector.load %arg16[%c1_38, %c0_39, %c0_40] : memref<4x16x32xf32, #tpu.memory_space<vmem>>, vector<1x16x32xf32>
    %40 = vector.shape_cast %39 : vector<1x16x32xf32> to vector<16x32xf32>
    %41 = vector.shape_cast %38 : vector<16x32xf32> to vector<1x16x32xf32>
    tpu.vector_store %arg16[%c1_38, %c0_39, %c0_40], %41 {strides = array<i32>} : memref<4x16x32xf32, #tpu.memory_space<vmem>>, vector<1x16x32xf32>,
    %c2 = arith.constant 2 : index
    %c0_41 = arith.constant 0 : index
    %c0_42 = arith.constant 0 : index
    %42 = vector.load %arg2[%c2, %c0_41, %c0_42] : memref<4x32x32xf32, #tpu.memory_space<vmem>>, vector<1x32x32xf32>
    %43 = vector.shape_cast %42 : vector<1x32x32xf32> to vector<32x32xf32>
    %cst_43 = arith.constant dense<0.000000e+00> : vector<16x32xf32>
    %44 = tpu.matmul %0, %43, %cst_43 {dimension_numbers = #tpu.dot_dimension_numbers<[1], [0], [0], [1], [0, 0, 1, 1], [], []>} : vector<16x32xf32>, vector<32x32xf32>, vector<16x32xf32> -> vector<16x32xf32>
    %c2_44 = arith.constant 2 : index
    %c0_45 = arith.constant 0 : index
    %c0_46 = arith.constant 0 : index
    %45 = vector.load %arg4[%c2_44, %c0_45, %c0_46] : memref<4x1x32xf32, #tpu.memory_space<vmem>>, vector<1x1x32xf32>
    %46 = vector.shape_cast %45 : vector<1x1x32xf32> to vector<1x32xf32>
    %47 = vector.broadcast %46 : vector<1x32xf32> to vector<16x32xf32>
    %48 = arith.addf %44, %47 : vector<16x32xf32>
    %c2_47 = arith.constant 2 : index
    %c0_48 = arith.constant 0 : index
    %c0_49 = arith.constant 0 : index
    %49 = vector.load %arg15[%c2_47, %c0_48, %c0_49] : memref<4x16x32xf32, #tpu.memory_space<vmem>>, vector<1x16x32xf32>
    %50 = vector.shape_cast %49 : vector<1x16x32xf32> to vector<16x32xf32>
    %51 = vector.shape_cast %48 : vector<16x32xf32> to vector<1x16x32xf32>
    tpu.vector_store %arg15[%c2_47, %c0_48, %c0_49], %51 {strides = array<i32>} : memref<4x16x32xf32, #tpu.memory_space<vmem>>, vector<1x16x32xf32>,
    %c2_50 = arith.constant 2 : index
    %c0_51 = arith.constant 0 : index
    %c0_52 = arith.constant 0 : index
    %52 = vector.load %arg7[%c2_50, %c0_51, %c0_52] : memref<4x32x32xf32, #tpu.memory_space<vmem>>, vector<1x32x32xf32>
    %53 = vector.shape_cast %52 : vector<1x32x32xf32> to vector<32x32xf32>
    %cst_53 = arith.constant dense<0.000000e+00> : vector<16x32xf32>
    %54 = tpu.matmul %1, %53, %cst_53 {dimension_numbers = #tpu.dot_dimension_numbers<[1], [0], [0], [1], [0, 0, 1, 1], [], []>} : vector<16x32xf32>, vector<32x32xf32>, vector<16x32xf32> -> vector<16x32xf32>
    %c2_54 = arith.constant 2 : index
    %c0_55 = arith.constant 0 : index
    %c0_56 = arith.constant 0 : index
    %55 = vector.load %arg9[%c2_54, %c0_55, %c0_56] : memref<4x1x32xf32, #tpu.memory_space<vmem>>, vector<1x1x32xf32>
    %56 = vector.shape_cast %55 : vector<1x1x32xf32> to vector<1x32xf32>
    %57 = vector.broadcast %56 : vector<1x32xf32> to vector<16x32xf32>
    %58 = arith.addf %54, %57 : vector<16x32xf32>
    %c2_57 = arith.constant 2 : index
    %c0_58 = arith.constant 0 : index
    %c0_59 = arith.constant 0 : index
    %59 = vector.load %arg16[%c2_57, %c0_58, %c0_59] : memref<4x16x32xf32, #tpu.memory_space<vmem>>, vector<1x16x32xf32>
    %60 = vector.shape_cast %59 : vector<1x16x32xf32> to vector<16x32xf32>
    %61 = vector.shape_cast %58 : vector<16x32xf32> to vector<1x16x32xf32>
    tpu.vector_store %arg16[%c2_57, %c0_58, %c0_59], %61 {strides = array<i32>} : memref<4x16x32xf32, #tpu.memory_space<vmem>>, vector<1x16x32xf32>,
    %c3 = arith.constant 3 : index
    %c0_60 = arith.constant 0 : index
    %c0_61 = arith.constant 0 : index
    %62 = vector.load %arg2[%c3, %c0_60, %c0_61] : memref<4x32x32xf32, #tpu.memory_space<vmem>>, vector<1x32x32xf32>
    %63 = vector.shape_cast %62 : vector<1x32x32xf32> to vector<32x32xf32>
    %cst_62 = arith.constant dense<0.000000e+00> : vector<16x32xf32>
    %64 = tpu.matmul %0, %63, %cst_62 {dimension_numbers = #tpu.dot_dimension_numbers<[1], [0], [0], [1], [0, 0, 1, 1], [], []>} : vector<16x32xf32>, vector<32x32xf32>, vector<16x32xf32> -> vector<16x32xf32>
    %c3_63 = arith.constant 3 : index
    %c0_64 = arith.constant 0 : index
    %c0_65 = arith.constant 0 : index
    %65 = vector.load %arg4[%c3_63, %c0_64, %c0_65] : memref<4x1x32xf32, #tpu.memory_space<vmem>>, vector<1x1x32xf32>
    %66 = vector.shape_cast %65 : vector<1x1x32xf32> to vector<1x32xf32>
    %67 = vector.broadcast %66 : vector<1x32xf32> to vector<16x32xf32>
    %68 = arith.addf %64, %67 : vector<16x32xf32>
    %c3_66 = arith.constant 3 : index
    %c0_67 = arith.constant 0 : index
    %c0_68 = arith.constant 0 : index
    %69 = vector.load %arg15[%c3_66, %c0_67, %c0_68] : memref<4x16x32xf32, #tpu.memory_space<vmem>>, vector<1x16x32xf32>
    %70 = vector.shape_cast %69 : vector<1x16x32xf32> to vector<16x32xf32>
    %71 = vector.shape_cast %68 : vector<16x32xf32> to vector<1x16x32xf32>
    tpu.vector_store %arg15[%c3_66, %c0_67, %c0_68], %71 {strides = array<i32>} : memref<4x16x32xf32, #tpu.memory_space<vmem>>, vector<1x16x32xf32>,
    %c3_69 = arith.constant 3 : index
    %c0_70 = arith.constant 0 : index
    %c0_71 = arith.constant 0 : index
    %72 = vector.load %arg7[%c3_69, %c0_70, %c0_71] : memref<4x32x32xf32, #tpu.memory_space<vmem>>, vector<1x32x32xf32>
    %73 = vector.shape_cast %72 : vector<1x32x32xf32> to vector<32x32xf32>
    %cst_72 = arith.constant dense<0.000000e+00> : vector<16x32xf32>
    %74 = tpu.matmul %1, %73, %cst_72 {dimension_numbers = #tpu.dot_dimension_numbers<[1], [0], [0], [1], [0, 0, 1, 1], [], []>} : vector<16x32xf32>, vector<32x32xf32>, vector<16x32xf32> -> vector<16x32xf32>
    %c3_73 = arith.constant 3 : index
    %c0_74 = arith.constant 0 : index
    %c0_75 = arith.constant 0 : index
    %75 = vector.load %arg9[%c3_73, %c0_74, %c0_75] : memref<4x1x32xf32, #tpu.memory_space<vmem>>, vector<1x1x32xf32>
    %76 = vector.shape_cast %75 : vector<1x1x32xf32> to vector<1x32xf32>
    %77 = vector.broadcast %76 : vector<1x32xf32> to vector<16x32xf32>
    %78 = arith.addf %74, %77 : vector<16x32xf32>
    %c3_76 = arith.constant 3 : index
    %c0_77 = arith.constant 0 : index
    %c0_78 = arith.constant 0 : index
    %79 = vector.load %arg16[%c3_76, %c0_77, %c0_78] : memref<4x16x32xf32, #tpu.memory_space<vmem>>, vector<1x16x32xf32>
    %80 = vector.shape_cast %79 : vector<1x16x32xf32> to vector<16x32xf32>
    %81 = vector.shape_cast %78 : vector<16x32xf32> to vector<1x16x32xf32>
    tpu.vector_store %arg16[%c3_76, %c0_77, %c0_78], %81 {strides = array<i32>} : memref<4x16x32xf32, #tpu.memory_space<vmem>>, vector<1x16x32xf32>,
    %cst_79 = arith.constant 0.000000e+00 : f32
    %82 = vector.broadcast %cst_79 : f32 to vector<2x32xf32>
    %c0_80 = arith.constant 0 : index
    %c0_81 = arith.constant 0 : index
    %c0_82 = arith.constant 0 : index
    %83 = vector.load %arg15[%c0_80, %c0_81, %c0_82] : memref<4x16x32xf32, #tpu.memory_space<vmem>>, vector<1x2x32xf32>
    %84 = vector.shape_cast %83 : vector<1x2x32xf32> to vector<2x32xf32>
    %c0_83 = arith.constant 0 : index
    %c0_84 = arith.constant 0 : index
    %c0_85 = arith.constant 0 : index
    %85 = vector.load %arg3[%c0_83, %c0_84, %c0_85] : memref<4x32x32xf32, #tpu.memory_space<vmem>>, vector<1x32x32xf32>
    %86 = vector.shape_cast %85 : vector<1x32x32xf32> to vector<32x32xf32>
    %cst_86 = arith.constant dense<0.000000e+00> : vector<2x32xf32>
    %87 = tpu.matmul %82, %86, %cst_86 {dimension_numbers = #tpu.dot_dimension_numbers<[1], [0], [0], [1], [0, 0, 1, 1], [], []>} : vector<2x32xf32>, vector<32x32xf32>, vector<2x32xf32> -> vector<2x32xf32>
    %88 = arith.addf %84, %87 : vector<2x32xf32>
    %c1_87 = arith.constant 1 : index
    %c0_88 = arith.constant 0 : index
    %c0_89 = arith.constant 0 : index
    %89 = vector.load %arg15[%c1_87, %c0_88, %c0_89] : memref<4x16x32xf32, #tpu.memory_space<vmem>>, vector<1x2x32xf32>
    %90 = vector.shape_cast %89 : vector<1x2x32xf32> to vector<2x32xf32>
    %c1_90 = arith.constant 1 : index
    %c0_91 = arith.constant 0 : index
    %c0_92 = arith.constant 0 : index
    %91 = vector.load %arg3[%c1_90, %c0_91, %c0_92] : memref<4x32x32xf32, #tpu.memory_space<vmem>>, vector<1x32x32xf32>
    %92 = vector.shape_cast %91 : vector<1x32x32xf32> to vector<32x32xf32>
    %cst_93 = arith.constant dense<0.000000e+00> : vector<2x32xf32>
    %93 = tpu.matmul %82, %92, %cst_93 {dimension_numbers = #tpu.dot_dimension_numbers<[1], [0], [0], [1], [0, 0, 1, 1], [], []>} : vector<2x32xf32>, vector<32x32xf32>, vector<2x32xf32> -> vector<2x32xf32>
    %94 = arith.addf %90, %93 : vector<2x32xf32>
    %c2_94 = arith.constant 2 : index
    %c0_95 = arith.constant 0 : index
    %c0_96 = arith.constant 0 : index
    %95 = vector.load %arg15[%c2_94, %c0_95, %c0_96] : memref<4x16x32xf32, #tpu.memory_space<vmem>>, vector<1x2x32xf32>
    %96 = vector.shape_cast %95 : vector<1x2x32xf32> to vector<2x32xf32>
    %c2_97 = arith.constant 2 : index
    %c0_98 = arith.constant 0 : index
    %c0_99 = arith.constant 0 : index
    %97 = vector.load %arg3[%c2_97, %c0_98, %c0_99] : memref<4x32x32xf32, #tpu.memory_space<vmem>>, vector<1x32x32xf32>
    %98 = vector.shape_cast %97 : vector<1x32x32xf32> to vector<32x32xf32>
    %cst_100 = arith.constant dense<0.000000e+00> : vector<2x32xf32>
    %99 = tpu.matmul %82, %98, %cst_100 {dimension_numbers = #tpu.dot_dimension_numbers<[1], [0], [0], [1], [0, 0, 1, 1], [], []>} : vector<2x32xf32>, vector<32x32xf32>, vector<2x32xf32> -> vector<2x32xf32>
    %100 = arith.addf %96, %99 : vector<2x32xf32>
    %c3_101 = arith.constant 3 : index
    %c0_102 = arith.constant 0 : index
    %c0_103 = arith.constant 0 : index
    %101 = vector.load %arg15[%c3_101, %c0_102, %c0_103] : memref<4x16x32xf32, #tpu.memory_space<vmem>>, vector<1x2x32xf32>
    %102 = vector.shape_cast %101 : vector<1x2x32xf32> to vector<2x32xf32>
    %c3_104 = arith.constant 3 : index
    %c0_105 = arith.constant 0 : index
    %c0_106 = arith.constant 0 : index
    %103 = vector.load %arg3[%c3_104, %c0_105, %c0_106] : memref<4x32x32xf32, #tpu.memory_space<vmem>>, vector<1x32x32xf32>
    %104 = vector.shape_cast %103 : vector<1x32x32xf32> to vector<32x32xf32>
    %cst_107 = arith.constant dense<0.000000e+00> : vector<2x32xf32>
    %105 = tpu.matmul %82, %104, %cst_107 {dimension_numbers = #tpu.dot_dimension_numbers<[1], [0], [0], [1], [0, 0, 1, 1], [], []>} : vector<2x32xf32>, vector<32x32xf32>, vector<2x32xf32> -> vector<2x32xf32>
    %106 = arith.addf %102, %105 : vector<2x32xf32>
    %107 = arith.negf %88 : vector<2x32xf32>
    %108 = math.exp %107 : vector<2x32xf32>
    %cst_108 = arith.constant 1.000000e+00 : f32
    %109 = vector.broadcast %cst_108 : f32 to vector<2x32xf32>
    %110 = arith.addf %109, %108 : vector<2x32xf32>
    %111 = arith.divf %109, %110 : vector<2x32xf32>
    %112 = arith.negf %94 : vector<2x32xf32>
    %113 = math.exp %112 : vector<2x32xf32>
    %cst_109 = arith.constant 1.000000e+00 : f32
    %114 = vector.broadcast %cst_109 : f32 to vector<2x32xf32>
    %115 = arith.addf %114, %113 : vector<2x32xf32>
    %116 = arith.divf %114, %115 : vector<2x32xf32>
    %117 = math.tanh %100 : vector<2x32xf32>
    %118 = arith.negf %106 : vector<2x32xf32>
    %119 = math.exp %118 : vector<2x32xf32>
    %cst_110 = arith.constant 1.000000e+00 : f32
    %120 = vector.broadcast %cst_110 : f32 to vector<2x32xf32>
    %121 = arith.addf %120, %119 : vector<2x32xf32>
    %122 = arith.divf %120, %121 : vector<2x32xf32>
    %123 = arith.mulf %116, %82 : vector<2x32xf32>
    %124 = arith.mulf %111, %117 : vector<2x32xf32>
    %125 = arith.addf %123, %124 : vector<2x32xf32>
    %126 = math.tanh %125 : vector<2x32xf32>
    %127 = arith.mulf %122, %126 : vector<2x32xf32>
    %128 = tpu.concatenate %127, %82 in 1 : vector<2x32xf32>, vector<2x32xf32> -> vector<2x64xf32>
    %c0_111 = arith.constant 0 : index
    %c0_112 = arith.constant 0 : index
    %c0_113 = arith.constant 0 : index
    %129 = vector.load %arg5[%c0_111, %c0_112, %c0_113] : memref<4x64x32xf32, #tpu.memory_space<vmem>>, vector<1x64x32xf32>
    %130 = vector.shape_cast %129 : vector<1x64x32xf32> to vector<64x32xf32>
    %cst_114 = arith.constant dense<0.000000e+00> : vector<2x32xf32>
    %131 = tpu.matmul %128, %130, %cst_114 {dimension_numbers = #tpu.dot_dimension_numbers<[1], [0], [0], [1], [0, 0, 1, 1], [], []>} : vector<2x64xf32>, vector<64x32xf32>, vector<2x32xf32> -> vector<2x32xf32>
    %c0_115 = arith.constant 0 : index
    %c0_116 = arith.constant 0 : index
    %c0_117 = arith.constant 0 : index
    %132 = vector.load %arg6[%c0_115, %c0_116, %c0_117] : memref<4x1x32xf32, #tpu.memory_space<vmem>>, vector<1x1x32xf32>
    %133 = vector.shape_cast %132 : vector<1x1x32xf32> to vector<1x32xf32>
    %134 = vector.broadcast %133 : vector<1x32xf32> to vector<2x32xf32>
    %135 = arith.addf %131, %134 : vector<2x32xf32>
    %c1_118 = arith.constant 1 : index
    %c0_119 = arith.constant 0 : index
    %c0_120 = arith.constant 0 : index
    %136 = vector.load %arg5[%c1_118, %c0_119, %c0_120] : memref<4x64x32xf32, #tpu.memory_space<vmem>>, vector<1x64x32xf32>
    %137 = vector.shape_cast %136 : vector<1x64x32xf32> to vector<64x32xf32>
    %cst_121 = arith.constant dense<0.000000e+00> : vector<2x32xf32>
    %138 = tpu.matmul %128, %137, %cst_121 {dimension_numbers = #tpu.dot_dimension_numbers<[1], [0], [0], [1], [0, 0, 1, 1], [], []>} : vector<2x64xf32>, vector<64x32xf32>, vector<2x32xf32> -> vector<2x32xf32>
    %c1_122 = arith.constant 1 : index
    %c0_123 = arith.constant 0 : index
    %c0_124 = arith.constant 0 : index
    %139 = vector.load %arg6[%c1_122, %c0_123, %c0_124] : memref<4x1x32xf32, #tpu.memory_space<vmem>>, vector<1x1x32xf32>
    %140 = vector.shape_cast %139 : vector<1x1x32xf32> to vector<1x32xf32>
    %141 = vector.broadcast %140 : vector<1x32xf32> to vector<2x32xf32>
    %142 = arith.addf %138, %141 : vector<2x32xf32>
    %c2_125 = arith.constant 2 : index
    %c0_126 = arith.constant 0 : index
    %c0_127 = arith.constant 0 : index
    %143 = vector.load %arg5[%c2_125, %c0_126, %c0_127] : memref<4x64x32xf32, #tpu.memory_space<vmem>>, vector<1x64x32xf32>
    %144 = vector.shape_cast %143 : vector<1x64x32xf32> to vector<64x32xf32>
    %cst_128 = arith.constant dense<0.000000e+00> : vector<2x32xf32>
    %145 = tpu.matmul %128, %144, %cst_128 {dimension_numbers = #tpu.dot_dimension_numbers<[1], [0], [0], [1], [0, 0, 1, 1], [], []>} : vector<2x64xf32>, vector<64x32xf32>, vector<2x32xf32> -> vector<2x32xf32>
    %c2_129 = arith.constant 2 : index
    %c0_130 = arith.constant 0 : index
    %c0_131 = arith.constant 0 : index
    %146 = vector.load %arg6[%c2_129, %c0_130, %c0_131] : memref<4x1x32xf32, #tpu.memory_space<vmem>>, vector<1x1x32xf32>
    %147 = vector.shape_cast %146 : vector<1x1x32xf32> to vector<1x32xf32>
    %148 = vector.broadcast %147 : vector<1x32xf32> to vector<2x32xf32>
    %149 = arith.addf %145, %148 : vector<2x32xf32>
    %c3_132 = arith.constant 3 : index
    %c0_133 = arith.constant 0 : index
    %c0_134 = arith.constant 0 : index
    %150 = vector.load %arg5[%c3_132, %c0_133, %c0_134] : memref<4x64x32xf32, #tpu.memory_space<vmem>>, vector<1x64x32xf32>
    %151 = vector.shape_cast %150 : vector<1x64x32xf32> to vector<64x32xf32>
    %cst_135 = arith.constant dense<0.000000e+00> : vector<2x32xf32>
    %152 = tpu.matmul %128, %151, %cst_135 {dimension_numbers = #tpu.dot_dimension_numbers<[1], [0], [0], [1], [0, 0, 1, 1], [], []>} : vector<2x64xf32>, vector<64x32xf32>, vector<2x32xf32> -> vector<2x32xf32>
    %c3_136 = arith.constant 3 : index
    %c0_137 = arith.constant 0 : index
    %c0_138 = arith.constant 0 : index
    %153 = vector.load %arg6[%c3_136, %c0_137, %c0_138] : memref<4x1x32xf32, #tpu.memory_space<vmem>>, vector<1x1x32xf32>
    %154 = vector.shape_cast %153 : vector<1x1x32xf32> to vector<1x32xf32>
    %155 = vector.broadcast %154 : vector<1x32xf32> to vector<2x32xf32>
    %156 = arith.addf %152, %155 : vector<2x32xf32>
    %157 = arith.negf %135 : vector<2x32xf32>
    %158 = math.exp %157 : vector<2x32xf32>
    %cst_139 = arith.constant 1.000000e+00 : f32
    %159 = vector.broadcast %cst_139 : f32 to vector<2x32xf32>
    %160 = arith.addf %159, %158 : vector<2x32xf32>
    %161 = arith.divf %159, %160 : vector<2x32xf32>
    %162 = arith.negf %142 : vector<2x32xf32>
    %163 = math.exp %162 : vector<2x32xf32>
    %cst_140 = arith.constant 1.000000e+00 : f32
    %164 = vector.broadcast %cst_140 : f32 to vector<2x32xf32>
    %165 = arith.addf %164, %163 : vector<2x32xf32>
    %166 = arith.divf %164, %165 : vector<2x32xf32>
    %167 = math.tanh %149 : vector<2x32xf32>
    %168 = arith.negf %156 : vector<2x32xf32>
    %169 = math.exp %168 : vector<2x32xf32>
    %cst_141 = arith.constant 1.000000e+00 : f32
    %170 = vector.broadcast %cst_141 : f32 to vector<2x32xf32>
    %171 = arith.addf %170, %169 : vector<2x32xf32>
    %172 = arith.divf %170, %171 : vector<2x32xf32>
    %173 = arith.mulf %166, %82 : vector<2x32xf32>
    %174 = arith.mulf %161, %167 : vector<2x32xf32>
    %175 = arith.addf %173, %174 : vector<2x32xf32>
    %176 = math.tanh %175 : vector<2x32xf32>
    %177 = arith.mulf %172, %176 : vector<2x32xf32>
    %c0_142 = arith.constant 0 : index
    %c2_143 = arith.constant 2 : index
    %c0_144 = arith.constant 0 : index
    %178 = vector.load %arg15[%c0_142, %c2_143, %c0_144] : memref<4x16x32xf32, #tpu.memory_space<vmem>>, vector<1x2x32xf32>
    %179 = vector.shape_cast %178 : vector<1x2x32xf32> to vector<2x32xf32>
    %c0_145 = arith.constant 0 : index
    %c0_146 = arith.constant 0 : index
    %c0_147 = arith.constant 0 : index
    %180 = vector.load %arg3[%c0_145, %c0_146, %c0_147] : memref<4x32x32xf32, #tpu.memory_space<vmem>>, vector<1x32x32xf32>
    %181 = vector.shape_cast %180 : vector<1x32x32xf32> to vector<32x32xf32>
    %cst_148 = arith.constant dense<0.000000e+00> : vector<2x32xf32>
    %182 = tpu.matmul %127, %181, %cst_148 {dimension_numbers = #tpu.dot_dimension_numbers<[1], [0], [0], [1], [0, 0, 1, 1], [], []>} : vector<2x32xf32>, vector<32x32xf32>, vector<2x32xf32> -> vector<2x32xf32>
    %183 = arith.addf %179, %182 : vector<2x32xf32>
    %c1_149 = arith.constant 1 : index
    %c2_150 = arith.constant 2 : index
    %c0_151 = arith.constant 0 : index
    %184 = vector.load %arg15[%c1_149, %c2_150, %c0_151] : memref<4x16x32xf32, #tpu.memory_space<vmem>>, vector<1x2x32xf32>
    %185 = vector.shape_cast %184 : vector<1x2x32xf32> to vector<2x32xf32>
    %c1_152 = arith.constant 1 : index
    %c0_153 = arith.constant 0 : index
    %c0_154 = arith.constant 0 : index
    %186 = vector.load %arg3[%c1_152, %c0_153, %c0_154] : memref<4x32x32xf32, #tpu.memory_space<vmem>>, vector<1x32x32xf32>
    %187 = vector.shape_cast %186 : vector<1x32x32xf32> to vector<32x32xf32>
    %cst_155 = arith.constant dense<0.000000e+00> : vector<2x32xf32>
    %188 = tpu.matmul %127, %187, %cst_155 {dimension_numbers = #tpu.dot_dimension_numbers<[1], [0], [0], [1], [0, 0, 1, 1], [], []>} : vector<2x32xf32>, vector<32x32xf32>, vector<2x32xf32> -> vector<2x32xf32>
    %189 = arith.addf %185, %188 : vector<2x32xf32>
    %c2_156 = arith.constant 2 : index
    %c2_157 = arith.constant 2 : index
    %c0_158 = arith.constant 0 : index
    %190 = vector.load %arg15[%c2_156, %c2_157, %c0_158] : memref<4x16x32xf32, #tpu.memory_space<vmem>>, vector<1x2x32xf32>
    %191 = vector.shape_cast %190 : vector<1x2x32xf32> to vector<2x32xf32>
    %c2_159 = arith.constant 2 : index
    %c0_160 = arith.constant 0 : index
    %c0_161 = arith.constant 0 : index
    %192 = vector.load %arg3[%c2_159, %c0_160, %c0_161] : memref<4x32x32xf32, #tpu.memory_space<vmem>>, vector<1x32x32xf32>
    %193 = vector.shape_cast %192 : vector<1x32x32xf32> to vector<32x32xf32>
    %cst_162 = arith.constant dense<0.000000e+00> : vector<2x32xf32>
    %194 = tpu.matmul %127, %193, %cst_162 {dimension_numbers = #tpu.dot_dimension_numbers<[1], [0], [0], [1], [0, 0, 1, 1], [], []>} : vector<2x32xf32>, vector<32x32xf32>, vector<2x32xf32> -> vector<2x32xf32>
    %195 = arith.addf %191, %194 : vector<2x32xf32>
    %c3_163 = arith.constant 3 : index
    %c2_164 = arith.constant 2 : index
    %c0_165 = arith.constant 0 : index
    %196 = vector.load %arg15[%c3_163, %c2_164, %c0_165] : memref<4x16x32xf32, #tpu.memory_space<vmem>>, vector<1x2x32xf32>
    %197 = vector.shape_cast %196 : vector<1x2x32xf32> to vector<2x32xf32>
    %c3_166 = arith.constant 3 : index
    %c0_167 = arith.constant 0 : index
    %c0_168 = arith.constant 0 : index
    %198 = vector.load %arg3[%c3_166, %c0_167, %c0_168] : memref<4x32x32xf32, #tpu.memory_space<vmem>>, vector<1x32x32xf32>
    %199 = vector.shape_cast %198 : vector<1x32x32xf32> to vector<32x32xf32>
    %cst_169 = arith.constant dense<0.000000e+00> : vector<2x32xf32>
    %200 = tpu.matmul %127, %199, %cst_169 {dimension_numbers = #tpu.dot_dimension_numbers<[1], [0], [0], [1], [0, 0, 1, 1], [], []>} : vector<2x32xf32>, vector<32x32xf32>, vector<2x32xf32> -> vector<2x32xf32>
    %201 = arith.addf %197, %200 : vector<2x32xf32>
    %202 = arith.negf %183 : vector<2x32xf32>
    %203 = math.exp %202 : vector<2x32xf32>
    %cst_170 = arith.constant 1.000000e+00 : f32
    %204 = vector.broadcast %cst_170 : f32 to vector<2x32xf32>
    %205 = arith.addf %204, %203 : vector<2x32xf32>
    %206 = arith.divf %204, %205 : vector<2x32xf32>
    %207 = arith.negf %189 : vector<2x32xf32>
    %208 = math.exp %207 : vector<2x32xf32>
    %cst_171 = arith.constant 1.000000e+00 : f32
    %209 = vector.broadcast %cst_171 : f32 to vector<2x32xf32>
    %210 = arith.addf %209, %208 : vector<2x32xf32>
    %211 = arith.divf %209, %210 : vector<2x32xf32>
    %212 = math.tanh %195 : vector<2x32xf32>
    %213 = arith.negf %201 : vector<2x32xf32>
    %214 = math.exp %213 : vector<2x32xf32>
    %cst_172 = arith.constant 1.000000e+00 : f32
    %215 = vector.broadcast %cst_172 : f32 to vector<2x32xf32>
    %216 = arith.addf %215, %214 : vector<2x32xf32>
    %217 = arith.divf %215, %216 : vector<2x32xf32>
    %218 = arith.mulf %211, %125 : vector<2x32xf32>
    %219 = arith.mulf %206, %212 : vector<2x32xf32>
    %220 = arith.addf %218, %219 : vector<2x32xf32>
    %221 = math.tanh %220 : vector<2x32xf32>
    %222 = arith.mulf %217, %221 : vector<2x32xf32>
    %223 = tpu.concatenate %222, %177 in 1 : vector<2x32xf32>, vector<2x32xf32> -> vector<2x64xf32>
    %c0_173 = arith.constant 0 : index
    %c0_174 = arith.constant 0 : index
    %c0_175 = arith.constant 0 : index
    %224 = vector.load %arg5[%c0_173, %c0_174, %c0_175] : memref<4x64x32xf32, #tpu.memory_space<vmem>>, vector<1x64x32xf32>
    %225 = vector.shape_cast %224 : vector<1x64x32xf32> to vector<64x32xf32>
    %cst_176 = arith.constant dense<0.000000e+00> : vector<2x32xf32>
    %226 = tpu.matmul %223, %225, %cst_176 {dimension_numbers = #tpu.dot_dimension_numbers<[1], [0], [0], [1], [0, 0, 1, 1], [], []>} : vector<2x64xf32>, vector<64x32xf32>, vector<2x32xf32> -> vector<2x32xf32>
    %c0_177 = arith.constant 0 : index
    %c0_178 = arith.constant 0 : index
    %c0_179 = arith.constant 0 : index
    %227 = vector.load %arg6[%c0_177, %c0_178, %c0_179] : memref<4x1x32xf32, #tpu.memory_space<vmem>>, vector<1x1x32xf32>
    %228 = vector.shape_cast %227 : vector<1x1x32xf32> to vector<1x32xf32>
    %229 = vector.broadcast %228 : vector<1x32xf32> to vector<2x32xf32>
    %230 = arith.addf %226, %229 : vector<2x32xf32>
    %c1_180 = arith.constant 1 : index
    %c0_181 = arith.constant 0 : index
    %c0_182 = arith.constant 0 : index
    %231 = vector.load %arg5[%c1_180, %c0_181, %c0_182] : memref<4x64x32xf32, #tpu.memory_space<vmem>>, vector<1x64x32xf32>
    %232 = vector.shape_cast %231 : vector<1x64x32xf32> to vector<64x32xf32>
    %cst_183 = arith.constant dense<0.000000e+00> : vector<2x32xf32>
    %233 = tpu.matmul %223, %232, %cst_183 {dimension_numbers = #tpu.dot_dimension_numbers<[1], [0], [0], [1], [0, 0, 1, 1], [], []>} : vector<2x64xf32>, vector<64x32xf32>, vector<2x32xf32> -> vector<2x32xf32>
    %c1_184 = arith.constant 1 : index
    %c0_185 = arith.constant 0 : index
    %c0_186 = arith.constant 0 : index
    %234 = vector.load %arg6[%c1_184, %c0_185, %c0_186] : memref<4x1x32xf32, #tpu.memory_space<vmem>>, vector<1x1x32xf32>
    %235 = vector.shape_cast %234 : vector<1x1x32xf32> to vector<1x32xf32>
    %236 = vector.broadcast %235 : vector<1x32xf32> to vector<2x32xf32>
    %237 = arith.addf %233, %236 : vector<2x32xf32>
    %c2_187 = arith.constant 2 : index
    %c0_188 = arith.constant 0 : index
    %c0_189 = arith.constant 0 : index
    %238 = vector.load %arg5[%c2_187, %c0_188, %c0_189] : memref<4x64x32xf32, #tpu.memory_space<vmem>>, vector<1x64x32xf32>
    %239 = vector.shape_cast %238 : vector<1x64x32xf32> to vector<64x32xf32>
    %cst_190 = arith.constant dense<0.000000e+00> : vector<2x32xf32>
    %240 = tpu.matmul %223, %239, %cst_190 {dimension_numbers = #tpu.dot_dimension_numbers<[1], [0], [0], [1], [0, 0, 1, 1], [], []>} : vector<2x64xf32>, vector<64x32xf32>, vector<2x32xf32> -> vector<2x32xf32>
    %c2_191 = arith.constant 2 : index
    %c0_192 = arith.constant 0 : index
    %c0_193 = arith.constant 0 : index
    %241 = vector.load %arg6[%c2_191, %c0_192, %c0_193] : memref<4x1x32xf32, #tpu.memory_space<vmem>>, vector<1x1x32xf32>
    %242 = vector.shape_cast %241 : vector<1x1x32xf32> to vector<1x32xf32>
    %243 = vector.broadcast %242 : vector<1x32xf32> to vector<2x32xf32>
    %244 = arith.addf %240, %243 : vector<2x32xf32>
    %c3_194 = arith.constant 3 : index
    %c0_195 = arith.constant 0 : index
    %c0_196 = arith.constant 0 : index
    %245 = vector.load %arg5[%c3_194, %c0_195, %c0_196] : memref<4x64x32xf32, #tpu.memory_space<vmem>>, vector<1x64x32xf32>
    %246 = vector.shape_cast %245 : vector<1x64x32xf32> to vector<64x32xf32>
    %cst_197 = arith.constant dense<0.000000e+00> : vector<2x32xf32>
    %247 = tpu.matmul %223, %246, %cst_197 {dimension_numbers = #tpu.dot_dimension_numbers<[1], [0], [0], [1], [0, 0, 1, 1], [], []>} : vector<2x64xf32>, vector<64x32xf32>, vector<2x32xf32> -> vector<2x32xf32>
    %c3_198 = arith.constant 3 : index
    %c0_199 = arith.constant 0 : index
    %c0_200 = arith.constant 0 : index
    %248 = vector.load %arg6[%c3_198, %c0_199, %c0_200] : memref<4x1x32xf32, #tpu.memory_space<vmem>>, vector<1x1x32xf32>
    %249 = vector.shape_cast %248 : vector<1x1x32xf32> to vector<1x32xf32>
    %250 = vector.broadcast %249 : vector<1x32xf32> to vector<2x32xf32>
    %251 = arith.addf %247, %250 : vector<2x32xf32>
    %252 = arith.negf %230 : vector<2x32xf32>
    %253 = math.exp %252 : vector<2x32xf32>
    %cst_201 = arith.constant 1.000000e+00 : f32
    %254 = vector.broadcast %cst_201 : f32 to vector<2x32xf32>
    %255 = arith.addf %254, %253 : vector<2x32xf32>
    %256 = arith.divf %254, %255 : vector<2x32xf32>
    %257 = arith.negf %237 : vector<2x32xf32>
    %258 = math.exp %257 : vector<2x32xf32>
    %cst_202 = arith.constant 1.000000e+00 : f32
    %259 = vector.broadcast %cst_202 : f32 to vector<2x32xf32>
    %260 = arith.addf %259, %258 : vector<2x32xf32>
    %261 = arith.divf %259, %260 : vector<2x32xf32>
    %262 = math.tanh %244 : vector<2x32xf32>
    %263 = arith.negf %251 : vector<2x32xf32>
    %264 = math.exp %263 : vector<2x32xf32>
    %cst_203 = arith.constant 1.000000e+00 : f32
    %265 = vector.broadcast %cst_203 : f32 to vector<2x32xf32>
    %266 = arith.addf %265, %264 : vector<2x32xf32>
    %267 = arith.divf %265, %266 : vector<2x32xf32>
    %268 = arith.mulf %261, %175 : vector<2x32xf32>
    %269 = arith.mulf %256, %262 : vector<2x32xf32>
    %270 = arith.addf %268, %269 : vector<2x32xf32>
    %271 = math.tanh %270 : vector<2x32xf32>
    %272 = arith.mulf %267, %271 : vector<2x32xf32>
    %c0_204 = arith.constant 0 : index
    %c4 = arith.constant 4 : index
    %c0_205 = arith.constant 0 : index
    %273 = vector.load %arg15[%c0_204, %c4, %c0_205] : memref<4x16x32xf32, #tpu.memory_space<vmem>>, vector<1x2x32xf32>
    %274 = vector.shape_cast %273 : vector<1x2x32xf32> to vector<2x32xf32>
    %c0_206 = arith.constant 0 : index
    %c0_207 = arith.constant 0 : index
    %c0_208 = arith.constant 0 : index
    %275 = vector.load %arg3[%c0_206, %c0_207, %c0_208] : memref<4x32x32xf32, #tpu.memory_space<vmem>>, vector<1x32x32xf32>
    %276 = vector.shape_cast %275 : vector<1x32x32xf32> to vector<32x32xf32>
    %cst_209 = arith.constant dense<0.000000e+00> : vector<2x32xf32>
    %277 = tpu.matmul %222, %276, %cst_209 {dimension_numbers = #tpu.dot_dimension_numbers<[1], [0], [0], [1], [0, 0, 1, 1], [], []>} : vector<2x32xf32>, vector<32x32xf32>, vector<2x32xf32> -> vector<2x32xf32>
    %278 = arith.addf %274, %277 : vector<2x32xf32>
    %c1_210 = arith.constant 1 : index
    %c4_211 = arith.constant 4 : index
    %c0_212 = arith.constant 0 : index
    %279 = vector.load %arg15[%c1_210, %c4_211, %c0_212] : memref<4x16x32xf32, #tpu.memory_space<vmem>>, vector<1x2x32xf32>
    %280 = vector.shape_cast %279 : vector<1x2x32xf32> to vector<2x32xf32>
    %c1_213 = arith.constant 1 : index
    %c0_214 = arith.constant 0 : index
    %c0_215 = arith.constant 0 : index
    %281 = vector.load %arg3[%c1_213, %c0_214, %c0_215] : memref<4x32x32xf32, #tpu.memory_space<vmem>>, vector<1x32x32xf32>
    %282 = vector.shape_cast %281 : vector<1x32x32xf32> to vector<32x32xf32>
    %cst_216 = arith.constant dense<0.000000e+00> : vector<2x32xf32>
    %283 = tpu.matmul %222, %282, %cst_216 {dimension_numbers = #tpu.dot_dimension_numbers<[1], [0], [0], [1], [0, 0, 1, 1], [], []>} : vector<2x32xf32>, vector<32x32xf32>, vector<2x32xf32> -> vector<2x32xf32>
    %284 = arith.addf %280, %283 : vector<2x32xf32>
    %c2_217 = arith.constant 2 : index
    %c4_218 = arith.constant 4 : index
    %c0_219 = arith.constant 0 : index
    %285 = vector.load %arg15[%c2_217, %c4_218, %c0_219] : memref<4x16x32xf32, #tpu.memory_space<vmem>>, vector<1x2x32xf32>
    %286 = vector.shape_cast %285 : vector<1x2x32xf32> to vector<2x32xf32>
    %c2_220 = arith.constant 2 : index
    %c0_221 = arith.constant 0 : index
    %c0_222 = arith.constant 0 : index
    %287 = vector.load %arg3[%c2_220, %c0_221, %c0_222] : memref<4x32x32xf32, #tpu.memory_space<vmem>>, vector<1x32x32xf32>
    %288 = vector.shape_cast %287 : vector<1x32x32xf32> to vector<32x32xf32>
    %cst_223 = arith.constant dense<0.000000e+00> : vector<2x32xf32>
    %289 = tpu.matmul %222, %288, %cst_223 {dimension_numbers = #tpu.dot_dimension_numbers<[1], [0], [0], [1], [0, 0, 1, 1], [], []>} : vector<2x32xf32>, vector<32x32xf32>, vector<2x32xf32> -> vector<2x32xf32>
    %290 = arith.addf %286, %289 : vector<2x32xf32>
    %c3_224 = arith.constant 3 : index
    %c4_225 = arith.constant 4 : index
    %c0_226 = arith.constant 0 : index
    %291 = vector.load %arg15[%c3_224, %c4_225, %c0_226] : memref<4x16x32xf32, #tpu.memory_space<vmem>>, vector<1x2x32xf32>
    %292 = vector.shape_cast %291 : vector<1x2x32xf32> to vector<2x32xf32>
    %c3_227 = arith.constant 3 : index
    %c0_228 = arith.constant 0 : index
    %c0_229 = arith.constant 0 : index
    %293 = vector.load %arg3[%c3_227, %c0_228, %c0_229] : memref<4x32x32xf32, #tpu.memory_space<vmem>>, vector<1x32x32xf32>
    %294 = vector.shape_cast %293 : vector<1x32x32xf32> to vector<32x32xf32>
    %cst_230 = arith.constant dense<0.000000e+00> : vector<2x32xf32>
    %295 = tpu.matmul %222, %294, %cst_230 {dimension_numbers = #tpu.dot_dimension_numbers<[1], [0], [0], [1], [0, 0, 1, 1], [], []>} : vector<2x32xf32>, vector<32x32xf32>, vector<2x32xf32> -> vector<2x32xf32>
    %296 = arith.addf %292, %295 : vector<2x32xf32>
    %297 = arith.negf %278 : vector<2x32xf32>
    %298 = math.exp %297 : vector<2x32xf32>
    %cst_231 = arith.constant 1.000000e+00 : f32
    %299 = vector.broadcast %cst_231 : f32 to vector<2x32xf32>
    %300 = arith.addf %299, %298 : vector<2x32xf32>
    %301 = arith.divf %299, %300 : vector<2x32xf32>
    %302 = arith.negf %284 : vector<2x32xf32>
    %303 = math.exp %302 : vector<2x32xf32>
    %cst_232 = arith.constant 1.000000e+00 : f32
    %304 = vector.broadcast %cst_232 : f32 to vector<2x32xf32>
    %305 = arith.addf %304, %303 : vector<2x32xf32>
    %306 = arith.divf %304, %305 : vector<2x32xf32>
    %307 = math.tanh %290 : vector<2x32xf32>
    %308 = arith.negf %296 : vector<2x32xf32>
    %309 = math.exp %308 : vector<2x32xf32>
    %cst_233 = arith.constant 1.000000e+00 : f32
    %310 = vector.broadcast %cst_233 : f32 to vector<2x32xf32>
    %311 = arith.addf %310, %309 : vector<2x32xf32>
    %312 = arith.divf %310, %311 : vector<2x32xf32>
    %313 = arith.mulf %306, %220 : vector<2x32xf32>
    %314 = arith.mulf %301, %307 : vector<2x32xf32>
    %315 = arith.addf %313, %314 : vector<2x32xf32>
    %316 = math.tanh %315 : vector<2x32xf32>
    %317 = arith.mulf %312, %316 : vector<2x32xf32>
    %318 = tpu.concatenate %317, %272 in 1 : vector<2x32xf32>, vector<2x32xf32> -> vector<2x64xf32>
    %c0_234 = arith.constant 0 : index
    %c0_235 = arith.constant 0 : index
    %c0_236 = arith.constant 0 : index
    %319 = vector.load %arg5[%c0_234, %c0_235, %c0_236] : memref<4x64x32xf32, #tpu.memory_space<vmem>>, vector<1x64x32xf32>
    %320 = vector.shape_cast %319 : vector<1x64x32xf32> to vector<64x32xf32>
    %cst_237 = arith.constant dense<0.000000e+00> : vector<2x32xf32>
    %321 = tpu.matmul %318, %320, %cst_237 {dimension_numbers = #tpu.dot_dimension_numbers<[1], [0], [0], [1], [0, 0, 1, 1], [], []>} : vector<2x64xf32>, vector<64x32xf32>, vector<2x32xf32> -> vector<2x32xf32>
    %c0_238 = arith.constant 0 : index
    %c0_239 = arith.constant 0 : index
    %c0_240 = arith.constant 0 : index
    %322 = vector.load %arg6[%c0_238, %c0_239, %c0_240] : memref<4x1x32xf32, #tpu.memory_space<vmem>>, vector<1x1x32xf32>
    %323 = vector.shape_cast %322 : vector<1x1x32xf32> to vector<1x32xf32>
    %324 = vector.broadcast %323 : vector<1x32xf32> to vector<2x32xf32>
    %325 = arith.addf %321, %324 : vector<2x32xf32>
    %c1_241 = arith.constant 1 : index
    %c0_242 = arith.constant 0 : index
    %c0_243 = arith.constant 0 : index
    %326 = vector.load %arg5[%c1_241, %c0_242, %c0_243] : memref<4x64x32xf32, #tpu.memory_space<vmem>>, vector<1x64x32xf32>
    %327 = vector.shape_cast %326 : vector<1x64x32xf32> to vector<64x32xf32>
    %cst_244 = arith.constant dense<0.000000e+00> : vector<2x32xf32>
    %328 = tpu.matmul %318, %327, %cst_244 {dimension_numbers = #tpu.dot_dimension_numbers<[1], [0], [0], [1], [0, 0, 1, 1], [], []>} : vector<2x64xf32>, vector<64x32xf32>, vector<2x32xf32> -> vector<2x32xf32>
    %c1_245 = arith.constant 1 : index
    %c0_246 = arith.constant 0 : index
    %c0_247 = arith.constant 0 : index
    %329 = vector.load %arg6[%c1_245, %c0_246, %c0_247] : memref<4x1x32xf32, #tpu.memory_space<vmem>>, vector<1x1x32xf32>
    %330 = vector.shape_cast %329 : vector<1x1x32xf32> to vector<1x32xf32>
    %331 = vector.broadcast %330 : vector<1x32xf32> to vector<2x32xf32>
    %332 = arith.addf %328, %331 : vector<2x32xf32>
    %c2_248 = arith.constant 2 : index
    %c0_249 = arith.constant 0 : index
    %c0_250 = arith.constant 0 : index
    %333 = vector.load %arg5[%c2_248, %c0_249, %c0_250] : memref<4x64x32xf32, #tpu.memory_space<vmem>>, vector<1x64x32xf32>
    %334 = vector.shape_cast %333 : vector<1x64x32xf32> to vector<64x32xf32>
    %cst_251 = arith.constant dense<0.000000e+00> : vector<2x32xf32>
    %335 = tpu.matmul %318, %334, %cst_251 {dimension_numbers = #tpu.dot_dimension_numbers<[1], [0], [0], [1], [0, 0, 1, 1], [], []>} : vector<2x64xf32>, vector<64x32xf32>, vector<2x32xf32> -> vector<2x32xf32>
    %c2_252 = arith.constant 2 : index
    %c0_253 = arith.constant 0 : index
    %c0_254 = arith.constant 0 : index
    %336 = vector.load %arg6[%c2_252, %c0_253, %c0_254] : memref<4x1x32xf32, #tpu.memory_space<vmem>>, vector<1x1x32xf32>
    %337 = vector.shape_cast %336 : vector<1x1x32xf32> to vector<1x32xf32>
    %338 = vector.broadcast %337 : vector<1x32xf32> to vector<2x32xf32>
    %339 = arith.addf %335, %338 : vector<2x32xf32>
    %c3_255 = arith.constant 3 : index
    %c0_256 = arith.constant 0 : index
    %c0_257 = arith.constant 0 : index
    %340 = vector.load %arg5[%c3_255, %c0_256, %c0_257] : memref<4x64x32xf32, #tpu.memory_space<vmem>>, vector<1x64x32xf32>
    %341 = vector.shape_cast %340 : vector<1x64x32xf32> to vector<64x32xf32>
    %cst_258 = arith.constant dense<0.000000e+00> : vector<2x32xf32>
    %342 = tpu.matmul %318, %341, %cst_258 {dimension_numbers = #tpu.dot_dimension_numbers<[1], [0], [0], [1], [0, 0, 1, 1], [], []>} : vector<2x64xf32>, vector<64x32xf32>, vector<2x32xf32> -> vector<2x32xf32>
    %c3_259 = arith.constant 3 : index
    %c0_260 = arith.constant 0 : index
    %c0_261 = arith.constant 0 : index
    %343 = vector.load %arg6[%c3_259, %c0_260, %c0_261] : memref<4x1x32xf32, #tpu.memory_space<vmem>>, vector<1x1x32xf32>
    %344 = vector.shape_cast %343 : vector<1x1x32xf32> to vector<1x32xf32>
    %345 = vector.broadcast %344 : vector<1x32xf32> to vector<2x32xf32>
    %346 = arith.addf %342, %345 : vector<2x32xf32>
    %347 = arith.negf %325 : vector<2x32xf32>
    %348 = math.exp %347 : vector<2x32xf32>
    %cst_262 = arith.constant 1.000000e+00 : f32
    %349 = vector.broadcast %cst_262 : f32 to vector<2x32xf32>
    %350 = arith.addf %349, %348 : vector<2x32xf32>
    %351 = arith.divf %349, %350 : vector<2x32xf32>
    %352 = arith.negf %332 : vector<2x32xf32>
    %353 = math.exp %352 : vector<2x32xf32>
    %cst_263 = arith.constant 1.000000e+00 : f32
    %354 = vector.broadcast %cst_263 : f32 to vector<2x32xf32>
    %355 = arith.addf %354, %353 : vector<2x32xf32>
    %356 = arith.divf %354, %355 : vector<2x32xf32>
    %357 = math.tanh %339 : vector<2x32xf32>
    %358 = arith.negf %346 : vector<2x32xf32>
    %359 = math.exp %358 : vector<2x32xf32>
    %cst_264 = arith.constant 1.000000e+00 : f32
    %360 = vector.broadcast %cst_264 : f32 to vector<2x32xf32>
    %361 = arith.addf %360, %359 : vector<2x32xf32>
    %362 = arith.divf %360, %361 : vector<2x32xf32>
    %363 = arith.mulf %356, %270 : vector<2x32xf32>
    %364 = arith.mulf %351, %357 : vector<2x32xf32>
    %365 = arith.addf %363, %364 : vector<2x32xf32>
    %366 = math.tanh %365 : vector<2x32xf32>
    %367 = arith.mulf %362, %366 : vector<2x32xf32>
    %c0_265 = arith.constant 0 : index
    %c6 = arith.constant 6 : index
    %c0_266 = arith.constant 0 : index
    %368 = vector.load %arg15[%c0_265, %c6, %c0_266] : memref<4x16x32xf32, #tpu.memory_space<vmem>>, vector<1x2x32xf32>
    %369 = vector.shape_cast %368 : vector<1x2x32xf32> to vector<2x32xf32>
    %c0_267 = arith.constant 0 : index
    %c0_268 = arith.constant 0 : index
    %c0_269 = arith.constant 0 : index
    %370 = vector.load %arg3[%c0_267, %c0_268, %c0_269] : memref<4x32x32xf32, #tpu.memory_space<vmem>>, vector<1x32x32xf32>
    %371 = vector.shape_cast %370 : vector<1x32x32xf32> to vector<32x32xf32>
    %cst_270 = arith.constant dense<0.000000e+00> : vector<2x32xf32>
    %372 = tpu.matmul %317, %371, %cst_270 {dimension_numbers = #tpu.dot_dimension_numbers<[1], [0], [0], [1], [0, 0, 1, 1], [], []>} : vector<2x32xf32>, vector<32x32xf32>, vector<2x32xf32> -> vector<2x32xf32>
    %373 = arith.addf %369, %372 : vector<2x32xf32>
    %c1_271 = arith.constant 1 : index
    %c6_272 = arith.constant 6 : index
    %c0_273 = arith.constant 0 : index
    %374 = vector.load %arg15[%c1_271, %c6_272, %c0_273] : memref<4x16x32xf32, #tpu.memory_space<vmem>>, vector<1x2x32xf32>
    %375 = vector.shape_cast %374 : vector<1x2x32xf32> to vector<2x32xf32>
    %c1_274 = arith.constant 1 : index
    %c0_275 = arith.constant 0 : index
    %c0_276 = arith.constant 0 : index
    %376 = vector.load %arg3[%c1_274, %c0_275, %c0_276] : memref<4x32x32xf32, #tpu.memory_space<vmem>>, vector<1x32x32xf32>
    %377 = vector.shape_cast %376 : vector<1x32x32xf32> to vector<32x32xf32>
    %cst_277 = arith.constant dense<0.000000e+00> : vector<2x32xf32>
    %378 = tpu.matmul %317, %377, %cst_277 {dimension_numbers = #tpu.dot_dimension_numbers<[1], [0], [0], [1], [0, 0, 1, 1], [], []>} : vector<2x32xf32>, vector<32x32xf32>, vector<2x32xf32> -> vector<2x32xf32>
    %379 = arith.addf %375, %378 : vector<2x32xf32>
    %c2_278 = arith.constant 2 : index
    %c6_279 = arith.constant 6 : index
    %c0_280 = arith.constant 0 : index
    %380 = vector.load %arg15[%c2_278, %c6_279, %c0_280] : memref<4x16x32xf32, #tpu.memory_space<vmem>>, vector<1x2x32xf32>
    %381 = vector.shape_cast %380 : vector<1x2x32xf32> to vector<2x32xf32>
    %c2_281 = arith.constant 2 : index
    %c0_282 = arith.constant 0 : index
    %c0_283 = arith.constant 0 : index
    %382 = vector.load %arg3[%c2_281, %c0_282, %c0_283] : memref<4x32x32xf32, #tpu.memory_space<vmem>>, vector<1x32x32xf32>
    %383 = vector.shape_cast %382 : vector<1x32x32xf32> to vector<32x32xf32>
    %cst_284 = arith.constant dense<0.000000e+00> : vector<2x32xf32>
    %384 = tpu.matmul %317, %383, %cst_284 {dimension_numbers = #tpu.dot_dimension_numbers<[1], [0], [0], [1], [0, 0, 1, 1], [], []>} : vector<2x32xf32>, vector<32x32xf32>, vector<2x32xf32> -> vector<2x32xf32>
    %385 = arith.addf %381, %384 : vector<2x32xf32>
    %c3_285 = arith.constant 3 : index
    %c6_286 = arith.constant 6 : index
    %c0_287 = arith.constant 0 : index
    %386 = vector.load %arg15[%c3_285, %c6_286, %c0_287] : memref<4x16x32xf32, #tpu.memory_space<vmem>>, vector<1x2x32xf32>
    %387 = vector.shape_cast %386 : vector<1x2x32xf32> to vector<2x32xf32>
    %c3_288 = arith.constant 3 : index
    %c0_289 = arith.constant 0 : index
    %c0_290 = arith.constant 0 : index
    %388 = vector.load %arg3[%c3_288, %c0_289, %c0_290] : memref<4x32x32xf32, #tpu.memory_space<vmem>>, vector<1x32x32xf32>
    %389 = vector.shape_cast %388 : vector<1x32x32xf32> to vector<32x32xf32>
    %cst_291 = arith.constant dense<0.000000e+00> : vector<2x32xf32>
    %390 = tpu.matmul %317, %389, %cst_291 {dimension_numbers = #tpu.dot_dimension_numbers<[1], [0], [0], [1], [0, 0, 1, 1], [], []>} : vector<2x32xf32>, vector<32x32xf32>, vector<2x32xf32> -> vector<2x32xf32>
    %391 = arith.addf %387, %390 : vector<2x32xf32>
    %392 = arith.negf %373 : vector<2x32xf32>
    %393 = math.exp %392 : vector<2x32xf32>
    %cst_292 = arith.constant 1.000000e+00 : f32
    %394 = vector.broadcast %cst_292 : f32 to vector<2x32xf32>
    %395 = arith.addf %394, %393 : vector<2x32xf32>
    %396 = arith.divf %394, %395 : vector<2x32xf32>
    %397 = arith.negf %379 : vector<2x32xf32>
    %398 = math.exp %397 : vector<2x32xf32>
    %cst_293 = arith.constant 1.000000e+00 : f32
    %399 = vector.broadcast %cst_293 : f32 to vector<2x32xf32>
    %400 = arith.addf %399, %398 : vector<2x32xf32>
    %401 = arith.divf %399, %400 : vector<2x32xf32>
    %402 = math.tanh %385 : vector<2x32xf32>
    %403 = arith.negf %391 : vector<2x32xf32>
    %404 = math.exp %403 : vector<2x32xf32>
    %cst_294 = arith.constant 1.000000e+00 : f32
    %405 = vector.broadcast %cst_294 : f32 to vector<2x32xf32>
    %406 = arith.addf %405, %404 : vector<2x32xf32>
    %407 = arith.divf %405, %406 : vector<2x32xf32>
    %408 = arith.mulf %401, %315 : vector<2x32xf32>
    %409 = arith.mulf %396, %402 : vector<2x32xf32>
    %410 = arith.addf %408, %409 : vector<2x32xf32>
    %411 = math.tanh %410 : vector<2x32xf32>
    %412 = arith.mulf %407, %411 : vector<2x32xf32>
    %413 = tpu.concatenate %412, %367 in 1 : vector<2x32xf32>, vector<2x32xf32> -> vector<2x64xf32>
    %c0_295 = arith.constant 0 : index
    %c0_296 = arith.constant 0 : index
    %c0_297 = arith.constant 0 : index
    %414 = vector.load %arg5[%c0_295, %c0_296, %c0_297] : memref<4x64x32xf32, #tpu.memory_space<vmem>>, vector<1x64x32xf32>
    %415 = vector.shape_cast %414 : vector<1x64x32xf32> to vector<64x32xf32>
    %cst_298 = arith.constant dense<0.000000e+00> : vector<2x32xf32>
    %416 = tpu.matmul %413, %415, %cst_298 {dimension_numbers = #tpu.dot_dimension_numbers<[1], [0], [0], [1], [0, 0, 1, 1], [], []>} : vector<2x64xf32>, vector<64x32xf32>, vector<2x32xf32> -> vector<2x32xf32>
    %c0_299 = arith.constant 0 : index
    %c0_300 = arith.constant 0 : index
    %c0_301 = arith.constant 0 : index
    %417 = vector.load %arg6[%c0_299, %c0_300, %c0_301] : memref<4x1x32xf32, #tpu.memory_space<vmem>>, vector<1x1x32xf32>
    %418 = vector.shape_cast %417 : vector<1x1x32xf32> to vector<1x32xf32>
    %419 = vector.broadcast %418 : vector<1x32xf32> to vector<2x32xf32>
    %420 = arith.addf %416, %419 : vector<2x32xf32>
    %c1_302 = arith.constant 1 : index
    %c0_303 = arith.constant 0 : index
    %c0_304 = arith.constant 0 : index
    %421 = vector.load %arg5[%c1_302, %c0_303, %c0_304] : memref<4x64x32xf32, #tpu.memory_space<vmem>>, vector<1x64x32xf32>
    %422 = vector.shape_cast %421 : vector<1x64x32xf32> to vector<64x32xf32>
    %cst_305 = arith.constant dense<0.000000e+00> : vector<2x32xf32>
    %423 = tpu.matmul %413, %422, %cst_305 {dimension_numbers = #tpu.dot_dimension_numbers<[1], [0], [0], [1], [0, 0, 1, 1], [], []>} : vector<2x64xf32>, vector<64x32xf32>, vector<2x32xf32> -> vector<2x32xf32>
    %c1_306 = arith.constant 1 : index
    %c0_307 = arith.constant 0 : index
    %c0_308 = arith.constant 0 : index
    %424 = vector.load %arg6[%c1_306, %c0_307, %c0_308] : memref<4x1x32xf32, #tpu.memory_space<vmem>>, vector<1x1x32xf32>
    %425 = vector.shape_cast %424 : vector<1x1x32xf32> to vector<1x32xf32>
    %426 = vector.broadcast %425 : vector<1x32xf32> to vector<2x32xf32>
    %427 = arith.addf %423, %426 : vector<2x32xf32>
    %c2_309 = arith.constant 2 : index
    %c0_310 = arith.constant 0 : index
    %c0_311 = arith.constant 0 : index
    %428 = vector.load %arg5[%c2_309, %c0_310, %c0_311] : memref<4x64x32xf32, #tpu.memory_space<vmem>>, vector<1x64x32xf32>
    %429 = vector.shape_cast %428 : vector<1x64x32xf32> to vector<64x32xf32>
    %cst_312 = arith.constant dense<0.000000e+00> : vector<2x32xf32>
    %430 = tpu.matmul %413, %429, %cst_312 {dimension_numbers = #tpu.dot_dimension_numbers<[1], [0], [0], [1], [0, 0, 1, 1], [], []>} : vector<2x64xf32>, vector<64x32xf32>, vector<2x32xf32> -> vector<2x32xf32>
    %c2_313 = arith.constant 2 : index
    %c0_314 = arith.constant 0 : index
    %c0_315 = arith.constant 0 : index
    %431 = vector.load %arg6[%c2_313, %c0_314, %c0_315] : memref<4x1x32xf32, #tpu.memory_space<vmem>>, vector<1x1x32xf32>
    %432 = vector.shape_cast %431 : vector<1x1x32xf32> to vector<1x32xf32>
    %433 = vector.broadcast %432 : vector<1x32xf32> to vector<2x32xf32>
    %434 = arith.addf %430, %433 : vector<2x32xf32>
    %c3_316 = arith.constant 3 : index
    %c0_317 = arith.constant 0 : index
    %c0_318 = arith.constant 0 : index
    %435 = vector.load %arg5[%c3_316, %c0_317, %c0_318] : memref<4x64x32xf32, #tpu.memory_space<vmem>>, vector<1x64x32xf32>
    %436 = vector.shape_cast %435 : vector<1x64x32xf32> to vector<64x32xf32>
    %cst_319 = arith.constant dense<0.000000e+00> : vector<2x32xf32>
    %437 = tpu.matmul %413, %436, %cst_319 {dimension_numbers = #tpu.dot_dimension_numbers<[1], [0], [0], [1], [0, 0, 1, 1], [], []>} : vector<2x64xf32>, vector<64x32xf32>, vector<2x32xf32> -> vector<2x32xf32>
    %c3_320 = arith.constant 3 : index
    %c0_321 = arith.constant 0 : index
    %c0_322 = arith.constant 0 : index
    %438 = vector.load %arg6[%c3_320, %c0_321, %c0_322] : memref<4x1x32xf32, #tpu.memory_space<vmem>>, vector<1x1x32xf32>
    %439 = vector.shape_cast %438 : vector<1x1x32xf32> to vector<1x32xf32>
    %440 = vector.broadcast %439 : vector<1x32xf32> to vector<2x32xf32>
    %441 = arith.addf %437, %440 : vector<2x32xf32>
    %442 = arith.negf %420 : vector<2x32xf32>
    %443 = math.exp %442 : vector<2x32xf32>
    %cst_323 = arith.constant 1.000000e+00 : f32
    %444 = vector.broadcast %cst_323 : f32 to vector<2x32xf32>
    %445 = arith.addf %444, %443 : vector<2x32xf32>
    %446 = arith.divf %444, %445 : vector<2x32xf32>
    %447 = arith.negf %427 : vector<2x32xf32>
    %448 = math.exp %447 : vector<2x32xf32>
    %cst_324 = arith.constant 1.000000e+00 : f32
    %449 = vector.broadcast %cst_324 : f32 to vector<2x32xf32>
    %450 = arith.addf %449, %448 : vector<2x32xf32>
    %451 = arith.divf %449, %450 : vector<2x32xf32>
    %452 = math.tanh %434 : vector<2x32xf32>
    %453 = arith.negf %441 : vector<2x32xf32>
    %454 = math.exp %453 : vector<2x32xf32>
    %cst_325 = arith.constant 1.000000e+00 : f32
    %455 = vector.broadcast %cst_325 : f32 to vector<2x32xf32>
    %456 = arith.addf %455, %454 : vector<2x32xf32>
    %457 = arith.divf %455, %456 : vector<2x32xf32>
    %458 = arith.mulf %451, %365 : vector<2x32xf32>
    %459 = arith.mulf %446, %452 : vector<2x32xf32>
    %460 = arith.addf %458, %459 : vector<2x32xf32>
    %461 = math.tanh %460 : vector<2x32xf32>
    %462 = arith.mulf %457, %461 : vector<2x32xf32>
    %c0_326 = arith.constant 0 : index
    %c8 = arith.constant 8 : index
    %c0_327 = arith.constant 0 : index
    %463 = vector.load %arg15[%c0_326, %c8, %c0_327] : memref<4x16x32xf32, #tpu.memory_space<vmem>>, vector<1x2x32xf32>
    %464 = vector.shape_cast %463 : vector<1x2x32xf32> to vector<2x32xf32>
    %c0_328 = arith.constant 0 : index
    %c0_329 = arith.constant 0 : index
    %c0_330 = arith.constant 0 : index
    %465 = vector.load %arg3[%c0_328, %c0_329, %c0_330] : memref<4x32x32xf32, #tpu.memory_space<vmem>>, vector<1x32x32xf32>
    %466 = vector.shape_cast %465 : vector<1x32x32xf32> to vector<32x32xf32>
    %cst_331 = arith.constant dense<0.000000e+00> : vector<2x32xf32>
    %467 = tpu.matmul %412, %466, %cst_331 {dimension_numbers = #tpu.dot_dimension_numbers<[1], [0], [0], [1], [0, 0, 1, 1], [], []>} : vector<2x32xf32>, vector<32x32xf32>, vector<2x32xf32> -> vector<2x32xf32>
    %468 = arith.addf %464, %467 : vector<2x32xf32>
    %c1_332 = arith.constant 1 : index
    %c8_333 = arith.constant 8 : index
    %c0_334 = arith.constant 0 : index
    %469 = vector.load %arg15[%c1_332, %c8_333, %c0_334] : memref<4x16x32xf32, #tpu.memory_space<vmem>>, vector<1x2x32xf32>
    %470 = vector.shape_cast %469 : vector<1x2x32xf32> to vector<2x32xf32>
    %c1_335 = arith.constant 1 : index
    %c0_336 = arith.constant 0 : index
    %c0_337 = arith.constant 0 : index
    %471 = vector.load %arg3[%c1_335, %c0_336, %c0_337] : memref<4x32x32xf32, #tpu.memory_space<vmem>>, vector<1x32x32xf32>
    %472 = vector.shape_cast %471 : vector<1x32x32xf32> to vector<32x32xf32>
    %cst_338 = arith.constant dense<0.000000e+00> : vector<2x32xf32>
    %473 = tpu.matmul %412, %472, %cst_338 {dimension_numbers = #tpu.dot_dimension_numbers<[1], [0], [0], [1], [0, 0, 1, 1], [], []>} : vector<2x32xf32>, vector<32x32xf32>, vector<2x32xf32> -> vector<2x32xf32>
    %474 = arith.addf %470, %473 : vector<2x32xf32>
    %c2_339 = arith.constant 2 : index
    %c8_340 = arith.constant 8 : index
    %c0_341 = arith.constant 0 : index
    %475 = vector.load %arg15[%c2_339, %c8_340, %c0_341] : memref<4x16x32xf32, #tpu.memory_space<vmem>>, vector<1x2x32xf32>
    %476 = vector.shape_cast %475 : vector<1x2x32xf32> to vector<2x32xf32>
    %c2_342 = arith.constant 2 : index
    %c0_343 = arith.constant 0 : index
    %c0_344 = arith.constant 0 : index
    %477 = vector.load %arg3[%c2_342, %c0_343, %c0_344] : memref<4x32x32xf32, #tpu.memory_space<vmem>>, vector<1x32x32xf32>
    %478 = vector.shape_cast %477 : vector<1x32x32xf32> to vector<32x32xf32>
    %cst_345 = arith.constant dense<0.000000e+00> : vector<2x32xf32>
    %479 = tpu.matmul %412, %478, %cst_345 {dimension_numbers = #tpu.dot_dimension_numbers<[1], [0], [0], [1], [0, 0, 1, 1], [], []>} : vector<2x32xf32>, vector<32x32xf32>, vector<2x32xf32> -> vector<2x32xf32>
    %480 = arith.addf %476, %479 : vector<2x32xf32>
    %c3_346 = arith.constant 3 : index
    %c8_347 = arith.constant 8 : index
    %c0_348 = arith.constant 0 : index
    %481 = vector.load %arg15[%c3_346, %c8_347, %c0_348] : memref<4x16x32xf32, #tpu.memory_space<vmem>>, vector<1x2x32xf32>
    %482 = vector.shape_cast %481 : vector<1x2x32xf32> to vector<2x32xf32>
    %c3_349 = arith.constant 3 : index
    %c0_350 = arith.constant 0 : index
    %c0_351 = arith.constant 0 : index
    %483 = vector.load %arg3[%c3_349, %c0_350, %c0_351] : memref<4x32x32xf32, #tpu.memory_space<vmem>>, vector<1x32x32xf32>
    %484 = vector.shape_cast %483 : vector<1x32x32xf32> to vector<32x32xf32>
    %cst_352 = arith.constant dense<0.000000e+00> : vector<2x32xf32>
    %485 = tpu.matmul %412, %484, %cst_352 {dimension_numbers = #tpu.dot_dimension_numbers<[1], [0], [0], [1], [0, 0, 1, 1], [], []>} : vector<2x32xf32>, vector<32x32xf32>, vector<2x32xf32> -> vector<2x32xf32>
    %486 = arith.addf %482, %485 : vector<2x32xf32>
    %487 = arith.negf %468 : vector<2x32xf32>
    %488 = math.exp %487 : vector<2x32xf32>
    %cst_353 = arith.constant 1.000000e+00 : f32
    %489 = vector.broadcast %cst_353 : f32 to vector<2x32xf32>
    %490 = arith.addf %489, %488 : vector<2x32xf32>
    %491 = arith.divf %489, %490 : vector<2x32xf32>
    %492 = arith.negf %474 : vector<2x32xf32>
    %493 = math.exp %492 : vector<2x32xf32>
    %cst_354 = arith.constant 1.000000e+00 : f32
    %494 = vector.broadcast %cst_354 : f32 to vector<2x32xf32>
    %495 = arith.addf %494, %493 : vector<2x32xf32>
    %496 = arith.divf %494, %495 : vector<2x32xf32>
    %497 = math.tanh %480 : vector<2x32xf32>
    %498 = arith.negf %486 : vector<2x32xf32>
    %499 = math.exp %498 : vector<2x32xf32>
    %cst_355 = arith.constant 1.000000e+00 : f32
    %500 = vector.broadcast %cst_355 : f32 to vector<2x32xf32>
    %501 = arith.addf %500, %499 : vector<2x32xf32>
    %502 = arith.divf %500, %501 : vector<2x32xf32>
    %503 = arith.mulf %496, %410 : vector<2x32xf32>
    %504 = arith.mulf %491, %497 : vector<2x32xf32>
    %505 = arith.addf %503, %504 : vector<2x32xf32>
    %506 = math.tanh %505 : vector<2x32xf32>
    %507 = arith.mulf %502, %506 : vector<2x32xf32>
    %508 = tpu.concatenate %507, %462 in 1 : vector<2x32xf32>, vector<2x32xf32> -> vector<2x64xf32>
    %c0_356 = arith.constant 0 : index
    %c0_357 = arith.constant 0 : index
    %c0_358 = arith.constant 0 : index
    %509 = vector.load %arg5[%c0_356, %c0_357, %c0_358] : memref<4x64x32xf32, #tpu.memory_space<vmem>>, vector<1x64x32xf32>
    %510 = vector.shape_cast %509 : vector<1x64x32xf32> to vector<64x32xf32>
    %cst_359 = arith.constant dense<0.000000e+00> : vector<2x32xf32>
    %511 = tpu.matmul %508, %510, %cst_359 {dimension_numbers = #tpu.dot_dimension_numbers<[1], [0], [0], [1], [0, 0, 1, 1], [], []>} : vector<2x64xf32>, vector<64x32xf32>, vector<2x32xf32> -> vector<2x32xf32>
    %c0_360 = arith.constant 0 : index
    %c0_361 = arith.constant 0 : index
    %c0_362 = arith.constant 0 : index
    %512 = vector.load %arg6[%c0_360, %c0_361, %c0_362] : memref<4x1x32xf32, #tpu.memory_space<vmem>>, vector<1x1x32xf32>
    %513 = vector.shape_cast %512 : vector<1x1x32xf32> to vector<1x32xf32>
    %514 = vector.broadcast %513 : vector<1x32xf32> to vector<2x32xf32>
    %515 = arith.addf %511, %514 : vector<2x32xf32>
    %c1_363 = arith.constant 1 : index
    %c0_364 = arith.constant 0 : index
    %c0_365 = arith.constant 0 : index
    %516 = vector.load %arg5[%c1_363, %c0_364, %c0_365] : memref<4x64x32xf32, #tpu.memory_space<vmem>>, vector<1x64x32xf32>
    %517 = vector.shape_cast %516 : vector<1x64x32xf32> to vector<64x32xf32>
    %cst_366 = arith.constant dense<0.000000e+00> : vector<2x32xf32>
    %518 = tpu.matmul %508, %517, %cst_366 {dimension_numbers = #tpu.dot_dimension_numbers<[1], [0], [0], [1], [0, 0, 1, 1], [], []>} : vector<2x64xf32>, vector<64x32xf32>, vector<2x32xf32> -> vector<2x32xf32>
    %c1_367 = arith.constant 1 : index
    %c0_368 = arith.constant 0 : index
    %c0_369 = arith.constant 0 : index
    %519 = vector.load %arg6[%c1_367, %c0_368, %c0_369] : memref<4x1x32xf32, #tpu.memory_space<vmem>>, vector<1x1x32xf32>
    %520 = vector.shape_cast %519 : vector<1x1x32xf32> to vector<1x32xf32>
    %521 = vector.broadcast %520 : vector<1x32xf32> to vector<2x32xf32>
    %522 = arith.addf %518, %521 : vector<2x32xf32>
    %c2_370 = arith.constant 2 : index
    %c0_371 = arith.constant 0 : index
    %c0_372 = arith.constant 0 : index
    %523 = vector.load %arg5[%c2_370, %c0_371, %c0_372] : memref<4x64x32xf32, #tpu.memory_space<vmem>>, vector<1x64x32xf32>
    %524 = vector.shape_cast %523 : vector<1x64x32xf32> to vector<64x32xf32>
    %cst_373 = arith.constant dense<0.000000e+00> : vector<2x32xf32>
    %525 = tpu.matmul %508, %524, %cst_373 {dimension_numbers = #tpu.dot_dimension_numbers<[1], [0], [0], [1], [0, 0, 1, 1], [], []>} : vector<2x64xf32>, vector<64x32xf32>, vector<2x32xf32> -> vector<2x32xf32>
    %c2_374 = arith.constant 2 : index
    %c0_375 = arith.constant 0 : index
    %c0_376 = arith.constant 0 : index
    %526 = vector.load %arg6[%c2_374, %c0_375, %c0_376] : memref<4x1x32xf32, #tpu.memory_space<vmem>>, vector<1x1x32xf32>
    %527 = vector.shape_cast %526 : vector<1x1x32xf32> to vector<1x32xf32>
    %528 = vector.broadcast %527 : vector<1x32xf32> to vector<2x32xf32>
    %529 = arith.addf %525, %528 : vector<2x32xf32>
    %c3_377 = arith.constant 3 : index
    %c0_378 = arith.constant 0 : index
    %c0_379 = arith.constant 0 : index
    %530 = vector.load %arg5[%c3_377, %c0_378, %c0_379] : memref<4x64x32xf32, #tpu.memory_space<vmem>>, vector<1x64x32xf32>
    %531 = vector.shape_cast %530 : vector<1x64x32xf32> to vector<64x32xf32>
    %cst_380 = arith.constant dense<0.000000e+00> : vector<2x32xf32>
    %532 = tpu.matmul %508, %531, %cst_380 {dimension_numbers = #tpu.dot_dimension_numbers<[1], [0], [0], [1], [0, 0, 1, 1], [], []>} : vector<2x64xf32>, vector<64x32xf32>, vector<2x32xf32> -> vector<2x32xf32>
    %c3_381 = arith.constant 3 : index
    %c0_382 = arith.constant 0 : index
    %c0_383 = arith.constant 0 : index
    %533 = vector.load %arg6[%c3_381, %c0_382, %c0_383] : memref<4x1x32xf32, #tpu.memory_space<vmem>>, vector<1x1x32xf32>
    %534 = vector.shape_cast %533 : vector<1x1x32xf32> to vector<1x32xf32>
    %535 = vector.broadcast %534 : vector<1x32xf32> to vector<2x32xf32>
    %536 = arith.addf %532, %535 : vector<2x32xf32>
    %537 = arith.negf %515 : vector<2x32xf32>
    %538 = math.exp %537 : vector<2x32xf32>
    %cst_384 = arith.constant 1.000000e+00 : f32
    %539 = vector.broadcast %cst_384 : f32 to vector<2x32xf32>
    %540 = arith.addf %539, %538 : vector<2x32xf32>
    %541 = arith.divf %539, %540 : vector<2x32xf32>
    %542 = arith.negf %522 : vector<2x32xf32>
    %543 = math.exp %542 : vector<2x32xf32>
    %cst_385 = arith.constant 1.000000e+00 : f32
    %544 = vector.broadcast %cst_385 : f32 to vector<2x32xf32>
    %545 = arith.addf %544, %543 : vector<2x32xf32>
    %546 = arith.divf %544, %545 : vector<2x32xf32>
    %547 = math.tanh %529 : vector<2x32xf32>
    %548 = arith.negf %536 : vector<2x32xf32>
    %549 = math.exp %548 : vector<2x32xf32>
    %cst_386 = arith.constant 1.000000e+00 : f32
    %550 = vector.broadcast %cst_386 : f32 to vector<2x32xf32>
    %551 = arith.addf %550, %549 : vector<2x32xf32>
    %552 = arith.divf %550, %551 : vector<2x32xf32>
    %553 = arith.mulf %546, %460 : vector<2x32xf32>
    %554 = arith.mulf %541, %547 : vector<2x32xf32>
    %555 = arith.addf %553, %554 : vector<2x32xf32>
    %556 = math.tanh %555 : vector<2x32xf32>
    %557 = arith.mulf %552, %556 : vector<2x32xf32>
    %c0_387 = arith.constant 0 : index
    %c10 = arith.constant 10 : index
    %c0_388 = arith.constant 0 : index
    %558 = vector.load %arg15[%c0_387, %c10, %c0_388] : memref<4x16x32xf32, #tpu.memory_space<vmem>>, vector<1x2x32xf32>
    %559 = vector.shape_cast %558 : vector<1x2x32xf32> to vector<2x32xf32>
    %c0_389 = arith.constant 0 : index
    %c0_390 = arith.constant 0 : index
    %c0_391 = arith.constant 0 : index
    %560 = vector.load %arg3[%c0_389, %c0_390, %c0_391] : memref<4x32x32xf32, #tpu.memory_space<vmem>>, vector<1x32x32xf32>
    %561 = vector.shape_cast %560 : vector<1x32x32xf32> to vector<32x32xf32>
    %cst_392 = arith.constant dense<0.000000e+00> : vector<2x32xf32>
    %562 = tpu.matmul %507, %561, %cst_392 {dimension_numbers = #tpu.dot_dimension_numbers<[1], [0], [0], [1], [0, 0, 1, 1], [], []>} : vector<2x32xf32>, vector<32x32xf32>, vector<2x32xf32> -> vector<2x32xf32>
    %563 = arith.addf %559, %562 : vector<2x32xf32>
    %c1_393 = arith.constant 1 : index
    %c10_394 = arith.constant 10 : index
    %c0_395 = arith.constant 0 : index
    %564 = vector.load %arg15[%c1_393, %c10_394, %c0_395] : memref<4x16x32xf32, #tpu.memory_space<vmem>>, vector<1x2x32xf32>
    %565 = vector.shape_cast %564 : vector<1x2x32xf32> to vector<2x32xf32>
    %c1_396 = arith.constant 1 : index
    %c0_397 = arith.constant 0 : index
    %c0_398 = arith.constant 0 : index
    %566 = vector.load %arg3[%c1_396, %c0_397, %c0_398] : memref<4x32x32xf32, #tpu.memory_space<vmem>>, vector<1x32x32xf32>
    %567 = vector.shape_cast %566 : vector<1x32x32xf32> to vector<32x32xf32>
    %cst_399 = arith.constant dense<0.000000e+00> : vector<2x32xf32>
    %568 = tpu.matmul %507, %567, %cst_399 {dimension_numbers = #tpu.dot_dimension_numbers<[1], [0], [0], [1], [0, 0, 1, 1], [], []>} : vector<2x32xf32>, vector<32x32xf32>, vector<2x32xf32> -> vector<2x32xf32>
    %569 = arith.addf %565, %568 : vector<2x32xf32>
    %c2_400 = arith.constant 2 : index
    %c10_401 = arith.constant 10 : index
    %c0_402 = arith.constant 0 : index
    %570 = vector.load %arg15[%c2_400, %c10_401, %c0_402] : memref<4x16x32xf32, #tpu.memory_space<vmem>>, vector<1x2x32xf32>
    %571 = vector.shape_cast %570 : vector<1x2x32xf32> to vector<2x32xf32>
    %c2_403 = arith.constant 2 : index
    %c0_404 = arith.constant 0 : index
    %c0_405 = arith.constant 0 : index
    %572 = vector.load %arg3[%c2_403, %c0_404, %c0_405] : memref<4x32x32xf32, #tpu.memory_space<vmem>>, vector<1x32x32xf32>
    %573 = vector.shape_cast %572 : vector<1x32x32xf32> to vector<32x32xf32>
    %cst_406 = arith.constant dense<0.000000e+00> : vector<2x32xf32>
    %574 = tpu.matmul %507, %573, %cst_406 {dimension_numbers = #tpu.dot_dimension_numbers<[1], [0], [0], [1], [0, 0, 1, 1], [], []>} : vector<2x32xf32>, vector<32x32xf32>, vector<2x32xf32> -> vector<2x32xf32>
    %575 = arith.addf %571, %574 : vector<2x32xf32>
    %c3_407 = arith.constant 3 : index
    %c10_408 = arith.constant 10 : index
    %c0_409 = arith.constant 0 : index
    %576 = vector.load %arg15[%c3_407, %c10_408, %c0_409] : memref<4x16x32xf32, #tpu.memory_space<vmem>>, vector<1x2x32xf32>
    %577 = vector.shape_cast %576 : vector<1x2x32xf32> to vector<2x32xf32>
    %c3_410 = arith.constant 3 : index
    %c0_411 = arith.constant 0 : index
    %c0_412 = arith.constant 0 : index
    %578 = vector.load %arg3[%c3_410, %c0_411, %c0_412] : memref<4x32x32xf32, #tpu.memory_space<vmem>>, vector<1x32x32xf32>
    %579 = vector.shape_cast %578 : vector<1x32x32xf32> to vector<32x32xf32>
    %cst_413 = arith.constant dense<0.000000e+00> : vector<2x32xf32>
    %580 = tpu.matmul %507, %579, %cst_413 {dimension_numbers = #tpu.dot_dimension_numbers<[1], [0], [0], [1], [0, 0, 1, 1], [], []>} : vector<2x32xf32>, vector<32x32xf32>, vector<2x32xf32> -> vector<2x32xf32>
    %581 = arith.addf %577, %580 : vector<2x32xf32>
    %582 = arith.negf %563 : vector<2x32xf32>
    %583 = math.exp %582 : vector<2x32xf32>
    %cst_414 = arith.constant 1.000000e+00 : f32
    %584 = vector.broadcast %cst_414 : f32 to vector<2x32xf32>
    %585 = arith.addf %584, %583 : vector<2x32xf32>
    %586 = arith.divf %584, %585 : vector<2x32xf32>
    %587 = arith.negf %569 : vector<2x32xf32>
    %588 = math.exp %587 : vector<2x32xf32>
    %cst_415 = arith.constant 1.000000e+00 : f32
    %589 = vector.broadcast %cst_415 : f32 to vector<2x32xf32>
    %590 = arith.addf %589, %588 : vector<2x32xf32>
    %591 = arith.divf %589, %590 : vector<2x32xf32>
    %592 = math.tanh %575 : vector<2x32xf32>
    %593 = arith.negf %581 : vector<2x32xf32>
    %594 = math.exp %593 : vector<2x32xf32>
    %cst_416 = arith.constant 1.000000e+00 : f32
    %595 = vector.broadcast %cst_416 : f32 to vector<2x32xf32>
    %596 = arith.addf %595, %594 : vector<2x32xf32>
    %597 = arith.divf %595, %596 : vector<2x32xf32>
    %598 = arith.mulf %591, %505 : vector<2x32xf32>
    %599 = arith.mulf %586, %592 : vector<2x32xf32>
    %600 = arith.addf %598, %599 : vector<2x32xf32>
    %601 = math.tanh %600 : vector<2x32xf32>
    %602 = arith.mulf %597, %601 : vector<2x32xf32>
    %603 = tpu.concatenate %602, %557 in 1 : vector<2x32xf32>, vector<2x32xf32> -> vector<2x64xf32>
    %c0_417 = arith.constant 0 : index
    %c0_418 = arith.constant 0 : index
    %c0_419 = arith.constant 0 : index
    %604 = vector.load %arg5[%c0_417, %c0_418, %c0_419] : memref<4x64x32xf32, #tpu.memory_space<vmem>>, vector<1x64x32xf32>
    %605 = vector.shape_cast %604 : vector<1x64x32xf32> to vector<64x32xf32>
    %cst_420 = arith.constant dense<0.000000e+00> : vector<2x32xf32>
    %606 = tpu.matmul %603, %605, %cst_420 {dimension_numbers = #tpu.dot_dimension_numbers<[1], [0], [0], [1], [0, 0, 1, 1], [], []>} : vector<2x64xf32>, vector<64x32xf32>, vector<2x32xf32> -> vector<2x32xf32>
    %c0_421 = arith.constant 0 : index
    %c0_422 = arith.constant 0 : index
    %c0_423 = arith.constant 0 : index
    %607 = vector.load %arg6[%c0_421, %c0_422, %c0_423] : memref<4x1x32xf32, #tpu.memory_space<vmem>>, vector<1x1x32xf32>
    %608 = vector.shape_cast %607 : vector<1x1x32xf32> to vector<1x32xf32>
    %609 = vector.broadcast %608 : vector<1x32xf32> to vector<2x32xf32>
    %610 = arith.addf %606, %609 : vector<2x32xf32>
    %c1_424 = arith.constant 1 : index
    %c0_425 = arith.constant 0 : index
    %c0_426 = arith.constant 0 : index
    %611 = vector.load %arg5[%c1_424, %c0_425, %c0_426] : memref<4x64x32xf32, #tpu.memory_space<vmem>>, vector<1x64x32xf32>
    %612 = vector.shape_cast %611 : vector<1x64x32xf32> to vector<64x32xf32>
    %cst_427 = arith.constant dense<0.000000e+00> : vector<2x32xf32>
    %613 = tpu.matmul %603, %612, %cst_427 {dimension_numbers = #tpu.dot_dimension_numbers<[1], [0], [0], [1], [0, 0, 1, 1], [], []>} : vector<2x64xf32>, vector<64x32xf32>, vector<2x32xf32> -> vector<2x32xf32>
    %c1_428 = arith.constant 1 : index
    %c0_429 = arith.constant 0 : index
    %c0_430 = arith.constant 0 : index
    %614 = vector.load %arg6[%c1_428, %c0_429, %c0_430] : memref<4x1x32xf32, #tpu.memory_space<vmem>>, vector<1x1x32xf32>
    %615 = vector.shape_cast %614 : vector<1x1x32xf32> to vector<1x32xf32>
    %616 = vector.broadcast %615 : vector<1x32xf32> to vector<2x32xf32>
    %617 = arith.addf %613, %616 : vector<2x32xf32>
    %c2_431 = arith.constant 2 : index
    %c0_432 = arith.constant 0 : index
    %c0_433 = arith.constant 0 : index
    %618 = vector.load %arg5[%c2_431, %c0_432, %c0_433] : memref<4x64x32xf32, #tpu.memory_space<vmem>>, vector<1x64x32xf32>
    %619 = vector.shape_cast %618 : vector<1x64x32xf32> to vector<64x32xf32>
    %cst_434 = arith.constant dense<0.000000e+00> : vector<2x32xf32>
    %620 = tpu.matmul %603, %619, %cst_434 {dimension_numbers = #tpu.dot_dimension_numbers<[1], [0], [0], [1], [0, 0, 1, 1], [], []>} : vector<2x64xf32>, vector<64x32xf32>, vector<2x32xf32> -> vector<2x32xf32>
    %c2_435 = arith.constant 2 : index
    %c0_436 = arith.constant 0 : index
    %c0_437 = arith.constant 0 : index
    %621 = vector.load %arg6[%c2_435, %c0_436, %c0_437] : memref<4x1x32xf32, #tpu.memory_space<vmem>>, vector<1x1x32xf32>
    %622 = vector.shape_cast %621 : vector<1x1x32xf32> to vector<1x32xf32>
    %623 = vector.broadcast %622 : vector<1x32xf32> to vector<2x32xf32>
    %624 = arith.addf %620, %623 : vector<2x32xf32>
    %c3_438 = arith.constant 3 : index
    %c0_439 = arith.constant 0 : index
    %c0_440 = arith.constant 0 : index
    %625 = vector.load %arg5[%c3_438, %c0_439, %c0_440] : memref<4x64x32xf32, #tpu.memory_space<vmem>>, vector<1x64x32xf32>
    %626 = vector.shape_cast %625 : vector<1x64x32xf32> to vector<64x32xf32>
    %cst_441 = arith.constant dense<0.000000e+00> : vector<2x32xf32>
    %627 = tpu.matmul %603, %626, %cst_441 {dimension_numbers = #tpu.dot_dimension_numbers<[1], [0], [0], [1], [0, 0, 1, 1], [], []>} : vector<2x64xf32>, vector<64x32xf32>, vector<2x32xf32> -> vector<2x32xf32>
    %c3_442 = arith.constant 3 : index
    %c0_443 = arith.constant 0 : index
    %c0_444 = arith.constant 0 : index
    %628 = vector.load %arg6[%c3_442, %c0_443, %c0_444] : memref<4x1x32xf32, #tpu.memory_space<vmem>>, vector<1x1x32xf32>
    %629 = vector.shape_cast %628 : vector<1x1x32xf32> to vector<1x32xf32>
    %630 = vector.broadcast %629 : vector<1x32xf32> to vector<2x32xf32>
    %631 = arith.addf %627, %630 : vector<2x32xf32>
    %632 = arith.negf %610 : vector<2x32xf32>
    %633 = math.exp %632 : vector<2x32xf32>
    %cst_445 = arith.constant 1.000000e+00 : f32
    %634 = vector.broadcast %cst_445 : f32 to vector<2x32xf32>
    %635 = arith.addf %634, %633 : vector<2x32xf32>
    %636 = arith.divf %634, %635 : vector<2x32xf32>
    %637 = arith.negf %617 : vector<2x32xf32>
    %638 = math.exp %637 : vector<2x32xf32>
    %cst_446 = arith.constant 1.000000e+00 : f32
    %639 = vector.broadcast %cst_446 : f32 to vector<2x32xf32>
    %640 = arith.addf %639, %638 : vector<2x32xf32>
    %641 = arith.divf %639, %640 : vector<2x32xf32>
    %642 = math.tanh %624 : vector<2x32xf32>
    %643 = arith.negf %631 : vector<2x32xf32>
    %644 = math.exp %643 : vector<2x32xf32>
    %cst_447 = arith.constant 1.000000e+00 : f32
    %645 = vector.broadcast %cst_447 : f32 to vector<2x32xf32>
    %646 = arith.addf %645, %644 : vector<2x32xf32>
    %647 = arith.divf %645, %646 : vector<2x32xf32>
    %648 = arith.mulf %641, %555 : vector<2x32xf32>
    %649 = arith.mulf %636, %642 : vector<2x32xf32>
    %650 = arith.addf %648, %649 : vector<2x32xf32>
    %651 = math.tanh %650 : vector<2x32xf32>
    %652 = arith.mulf %647, %651 : vector<2x32xf32>
    %c0_448 = arith.constant 0 : index
    %c12 = arith.constant 12 : index
    %c0_449 = arith.constant 0 : index
    %653 = vector.load %arg15[%c0_448, %c12, %c0_449] : memref<4x16x32xf32, #tpu.memory_space<vmem>>, vector<1x2x32xf32>
    %654 = vector.shape_cast %653 : vector<1x2x32xf32> to vector<2x32xf32>
    %c0_450 = arith.constant 0 : index
    %c0_451 = arith.constant 0 : index
    %c0_452 = arith.constant 0 : index
    %655 = vector.load %arg3[%c0_450, %c0_451, %c0_452] : memref<4x32x32xf32, #tpu.memory_space<vmem>>, vector<1x32x32xf32>
    %656 = vector.shape_cast %655 : vector<1x32x32xf32> to vector<32x32xf32>
    %cst_453 = arith.constant dense<0.000000e+00> : vector<2x32xf32>
    %657 = tpu.matmul %602, %656, %cst_453 {dimension_numbers = #tpu.dot_dimension_numbers<[1], [0], [0], [1], [0, 0, 1, 1], [], []>} : vector<2x32xf32>, vector<32x32xf32>, vector<2x32xf32> -> vector<2x32xf32>
    %658 = arith.addf %654, %657 : vector<2x32xf32>
    %c1_454 = arith.constant 1 : index
    %c12_455 = arith.constant 12 : index
    %c0_456 = arith.constant 0 : index
    %659 = vector.load %arg15[%c1_454, %c12_455, %c0_456] : memref<4x16x32xf32, #tpu.memory_space<vmem>>, vector<1x2x32xf32>
    %660 = vector.shape_cast %659 : vector<1x2x32xf32> to vector<2x32xf32>
    %c1_457 = arith.constant 1 : index
    %c0_458 = arith.constant 0 : index
    %c0_459 = arith.constant 0 : index
    %661 = vector.load %arg3[%c1_457, %c0_458, %c0_459] : memref<4x32x32xf32, #tpu.memory_space<vmem>>, vector<1x32x32xf32>
    %662 = vector.shape_cast %661 : vector<1x32x32xf32> to vector<32x32xf32>
    %cst_460 = arith.constant dense<0.000000e+00> : vector<2x32xf32>
    %663 = tpu.matmul %602, %662, %cst_460 {dimension_numbers = #tpu.dot_dimension_numbers<[1], [0], [0], [1], [0, 0, 1, 1], [], []>} : vector<2x32xf32>, vector<32x32xf32>, vector<2x32xf32> -> vector<2x32xf32>
    %664 = arith.addf %660, %663 : vector<2x32xf32>
    %c2_461 = arith.constant 2 : index
    %c12_462 = arith.constant 12 : index
    %c0_463 = arith.constant 0 : index
    %665 = vector.load %arg15[%c2_461, %c12_462, %c0_463] : memref<4x16x32xf32, #tpu.memory_space<vmem>>, vector<1x2x32xf32>
    %666 = vector.shape_cast %665 : vector<1x2x32xf32> to vector<2x32xf32>
    %c2_464 = arith.constant 2 : index
    %c0_465 = arith.constant 0 : index
    %c0_466 = arith.constant 0 : index
    %667 = vector.load %arg3[%c2_464, %c0_465, %c0_466] : memref<4x32x32xf32, #tpu.memory_space<vmem>>, vector<1x32x32xf32>
    %668 = vector.shape_cast %667 : vector<1x32x32xf32> to vector<32x32xf32>
    %cst_467 = arith.constant dense<0.000000e+00> : vector<2x32xf32>
    %669 = tpu.matmul %602, %668, %cst_467 {dimension_numbers = #tpu.dot_dimension_numbers<[1], [0], [0], [1], [0, 0, 1, 1], [], []>} : vector<2x32xf32>, vector<32x32xf32>, vector<2x32xf32> -> vector<2x32xf32>
    %670 = arith.addf %666, %669 : vector<2x32xf32>
    %c3_468 = arith.constant 3 : index
    %c12_469 = arith.constant 12 : index
    %c0_470 = arith.constant 0 : index
    %671 = vector.load %arg15[%c3_468, %c12_469, %c0_470] : memref<4x16x32xf32, #tpu.memory_space<vmem>>, vector<1x2x32xf32>
    %672 = vector.shape_cast %671 : vector<1x2x32xf32> to vector<2x32xf32>
    %c3_471 = arith.constant 3 : index
    %c0_472 = arith.constant 0 : index
    %c0_473 = arith.constant 0 : index
    %673 = vector.load %arg3[%c3_471, %c0_472, %c0_473] : memref<4x32x32xf32, #tpu.memory_space<vmem>>, vector<1x32x32xf32>
    %674 = vector.shape_cast %673 : vector<1x32x32xf32> to vector<32x32xf32>
    %cst_474 = arith.constant dense<0.000000e+00> : vector<2x32xf32>
    %675 = tpu.matmul %602, %674, %cst_474 {dimension_numbers = #tpu.dot_dimension_numbers<[1], [0], [0], [1], [0, 0, 1, 1], [], []>} : vector<2x32xf32>, vector<32x32xf32>, vector<2x32xf32> -> vector<2x32xf32>
    %676 = arith.addf %672, %675 : vector<2x32xf32>
    %677 = arith.negf %658 : vector<2x32xf32>
    %678 = math.exp %677 : vector<2x32xf32>
    %cst_475 = arith.constant 1.000000e+00 : f32
    %679 = vector.broadcast %cst_475 : f32 to vector<2x32xf32>
    %680 = arith.addf %679, %678 : vector<2x32xf32>
    %681 = arith.divf %679, %680 : vector<2x32xf32>
    %682 = arith.negf %664 : vector<2x32xf32>
    %683 = math.exp %682 : vector<2x32xf32>
    %cst_476 = arith.constant 1.000000e+00 : f32
    %684 = vector.broadcast %cst_476 : f32 to vector<2x32xf32>
    %685 = arith.addf %684, %683 : vector<2x32xf32>
    %686 = arith.divf %684, %685 : vector<2x32xf32>
    %687 = math.tanh %670 : vector<2x32xf32>
    %688 = arith.negf %676 : vector<2x32xf32>
    %689 = math.exp %688 : vector<2x32xf32>
    %cst_477 = arith.constant 1.000000e+00 : f32
    %690 = vector.broadcast %cst_477 : f32 to vector<2x32xf32>
    %691 = arith.addf %690, %689 : vector<2x32xf32>
    %692 = arith.divf %690, %691 : vector<2x32xf32>
    %693 = arith.mulf %686, %600 : vector<2x32xf32>
    %694 = arith.mulf %681, %687 : vector<2x32xf32>
    %695 = arith.addf %693, %694 : vector<2x32xf32>
    %696 = math.tanh %695 : vector<2x32xf32>
    %697 = arith.mulf %692, %696 : vector<2x32xf32>
    %698 = tpu.concatenate %697, %652 in 1 : vector<2x32xf32>, vector<2x32xf32> -> vector<2x64xf32>
    %c0_478 = arith.constant 0 : index
    %c0_479 = arith.constant 0 : index
    %c0_480 = arith.constant 0 : index
    %699 = vector.load %arg5[%c0_478, %c0_479, %c0_480] : memref<4x64x32xf32, #tpu.memory_space<vmem>>, vector<1x64x32xf32>
    %700 = vector.shape_cast %699 : vector<1x64x32xf32> to vector<64x32xf32>
    %cst_481 = arith.constant dense<0.000000e+00> : vector<2x32xf32>
    %701 = tpu.matmul %698, %700, %cst_481 {dimension_numbers = #tpu.dot_dimension_numbers<[1], [0], [0], [1], [0, 0, 1, 1], [], []>} : vector<2x64xf32>, vector<64x32xf32>, vector<2x32xf32> -> vector<2x32xf32>
    %c0_482 = arith.constant 0 : index
    %c0_483 = arith.constant 0 : index
    %c0_484 = arith.constant 0 : index
    %702 = vector.load %arg6[%c0_482, %c0_483, %c0_484] : memref<4x1x32xf32, #tpu.memory_space<vmem>>, vector<1x1x32xf32>
    %703 = vector.shape_cast %702 : vector<1x1x32xf32> to vector<1x32xf32>
    %704 = vector.broadcast %703 : vector<1x32xf32> to vector<2x32xf32>
    %705 = arith.addf %701, %704 : vector<2x32xf32>
    %c1_485 = arith.constant 1 : index
    %c0_486 = arith.constant 0 : index
    %c0_487 = arith.constant 0 : index
    %706 = vector.load %arg5[%c1_485, %c0_486, %c0_487] : memref<4x64x32xf32, #tpu.memory_space<vmem>>, vector<1x64x32xf32>
    %707 = vector.shape_cast %706 : vector<1x64x32xf32> to vector<64x32xf32>
    %cst_488 = arith.constant dense<0.000000e+00> : vector<2x32xf32>
    %708 = tpu.matmul %698, %707, %cst_488 {dimension_numbers = #tpu.dot_dimension_numbers<[1], [0], [0], [1], [0, 0, 1, 1], [], []>} : vector<2x64xf32>, vector<64x32xf32>, vector<2x32xf32> -> vector<2x32xf32>
    %c1_489 = arith.constant 1 : index
    %c0_490 = arith.constant 0 : index
    %c0_491 = arith.constant 0 : index
    %709 = vector.load %arg6[%c1_489, %c0_490, %c0_491] : memref<4x1x32xf32, #tpu.memory_space<vmem>>, vector<1x1x32xf32>
    %710 = vector.shape_cast %709 : vector<1x1x32xf32> to vector<1x32xf32>
    %711 = vector.broadcast %710 : vector<1x32xf32> to vector<2x32xf32>
    %712 = arith.addf %708, %711 : vector<2x32xf32>
    %c2_492 = arith.constant 2 : index
    %c0_493 = arith.constant 0 : index
    %c0_494 = arith.constant 0 : index
    %713 = vector.load %arg5[%c2_492, %c0_493, %c0_494] : memref<4x64x32xf32, #tpu.memory_space<vmem>>, vector<1x64x32xf32>
    %714 = vector.shape_cast %713 : vector<1x64x32xf32> to vector<64x32xf32>
    %cst_495 = arith.constant dense<0.000000e+00> : vector<2x32xf32>
    %715 = tpu.matmul %698, %714, %cst_495 {dimension_numbers = #tpu.dot_dimension_numbers<[1], [0], [0], [1], [0, 0, 1, 1], [], []>} : vector<2x64xf32>, vector<64x32xf32>, vector<2x32xf32> -> vector<2x32xf32>
    %c2_496 = arith.constant 2 : index
    %c0_497 = arith.constant 0 : index
    %c0_498 = arith.constant 0 : index
    %716 = vector.load %arg6[%c2_496, %c0_497, %c0_498] : memref<4x1x32xf32, #tpu.memory_space<vmem>>, vector<1x1x32xf32>
    %717 = vector.shape_cast %716 : vector<1x1x32xf32> to vector<1x32xf32>
    %718 = vector.broadcast %717 : vector<1x32xf32> to vector<2x32xf32>
    %719 = arith.addf %715, %718 : vector<2x32xf32>
    %c3_499 = arith.constant 3 : index
    %c0_500 = arith.constant 0 : index
    %c0_501 = arith.constant 0 : index
    %720 = vector.load %arg5[%c3_499, %c0_500, %c0_501] : memref<4x64x32xf32, #tpu.memory_space<vmem>>, vector<1x64x32xf32>
    %721 = vector.shape_cast %720 : vector<1x64x32xf32> to vector<64x32xf32>
    %cst_502 = arith.constant dense<0.000000e+00> : vector<2x32xf32>
    %722 = tpu.matmul %698, %721, %cst_502 {dimension_numbers = #tpu.dot_dimension_numbers<[1], [0], [0], [1], [0, 0, 1, 1], [], []>} : vector<2x64xf32>, vector<64x32xf32>, vector<2x32xf32> -> vector<2x32xf32>
    %c3_503 = arith.constant 3 : index
    %c0_504 = arith.constant 0 : index
    %c0_505 = arith.constant 0 : index
    %723 = vector.load %arg6[%c3_503, %c0_504, %c0_505] : memref<4x1x32xf32, #tpu.memory_space<vmem>>, vector<1x1x32xf32>
    %724 = vector.shape_cast %723 : vector<1x1x32xf32> to vector<1x32xf32>
    %725 = vector.broadcast %724 : vector<1x32xf32> to vector<2x32xf32>
    %726 = arith.addf %722, %725 : vector<2x32xf32>
    %727 = arith.negf %705 : vector<2x32xf32>
    %728 = math.exp %727 : vector<2x32xf32>
    %cst_506 = arith.constant 1.000000e+00 : f32
    %729 = vector.broadcast %cst_506 : f32 to vector<2x32xf32>
    %730 = arith.addf %729, %728 : vector<2x32xf32>
    %731 = arith.divf %729, %730 : vector<2x32xf32>
    %732 = arith.negf %712 : vector<2x32xf32>
    %733 = math.exp %732 : vector<2x32xf32>
    %cst_507 = arith.constant 1.000000e+00 : f32
    %734 = vector.broadcast %cst_507 : f32 to vector<2x32xf32>
    %735 = arith.addf %734, %733 : vector<2x32xf32>
    %736 = arith.divf %734, %735 : vector<2x32xf32>
    %737 = math.tanh %719 : vector<2x32xf32>
    %738 = arith.negf %726 : vector<2x32xf32>
    %739 = math.exp %738 : vector<2x32xf32>
    %cst_508 = arith.constant 1.000000e+00 : f32
    %740 = vector.broadcast %cst_508 : f32 to vector<2x32xf32>
    %741 = arith.addf %740, %739 : vector<2x32xf32>
    %742 = arith.divf %740, %741 : vector<2x32xf32>
    %743 = arith.mulf %736, %650 : vector<2x32xf32>
    %744 = arith.mulf %731, %737 : vector<2x32xf32>
    %745 = arith.addf %743, %744 : vector<2x32xf32>
    %746 = math.tanh %745 : vector<2x32xf32>
    %747 = arith.mulf %742, %746 : vector<2x32xf32>
    %c0_509 = arith.constant 0 : index
    %c14 = arith.constant 14 : index
    %c0_510 = arith.constant 0 : index
    %748 = vector.load %arg15[%c0_509, %c14, %c0_510] : memref<4x16x32xf32, #tpu.memory_space<vmem>>, vector<1x2x32xf32>
    %749 = vector.shape_cast %748 : vector<1x2x32xf32> to vector<2x32xf32>
    %c0_511 = arith.constant 0 : index
    %c0_512 = arith.constant 0 : index
    %c0_513 = arith.constant 0 : index
    %750 = vector.load %arg3[%c0_511, %c0_512, %c0_513] : memref<4x32x32xf32, #tpu.memory_space<vmem>>, vector<1x32x32xf32>
    %751 = vector.shape_cast %750 : vector<1x32x32xf32> to vector<32x32xf32>
    %cst_514 = arith.constant dense<0.000000e+00> : vector<2x32xf32>
    %752 = tpu.matmul %697, %751, %cst_514 {dimension_numbers = #tpu.dot_dimension_numbers<[1], [0], [0], [1], [0, 0, 1, 1], [], []>} : vector<2x32xf32>, vector<32x32xf32>, vector<2x32xf32> -> vector<2x32xf32>
    %753 = arith.addf %749, %752 : vector<2x32xf32>
    %c1_515 = arith.constant 1 : index
    %c14_516 = arith.constant 14 : index
    %c0_517 = arith.constant 0 : index
    %754 = vector.load %arg15[%c1_515, %c14_516, %c0_517] : memref<4x16x32xf32, #tpu.memory_space<vmem>>, vector<1x2x32xf32>
    %755 = vector.shape_cast %754 : vector<1x2x32xf32> to vector<2x32xf32>
    %c1_518 = arith.constant 1 : index
    %c0_519 = arith.constant 0 : index
    %c0_520 = arith.constant 0 : index
    %756 = vector.load %arg3[%c1_518, %c0_519, %c0_520] : memref<4x32x32xf32, #tpu.memory_space<vmem>>, vector<1x32x32xf32>
    %757 = vector.shape_cast %756 : vector<1x32x32xf32> to vector<32x32xf32>
    %cst_521 = arith.constant dense<0.000000e+00> : vector<2x32xf32>
    %758 = tpu.matmul %697, %757, %cst_521 {dimension_numbers = #tpu.dot_dimension_numbers<[1], [0], [0], [1], [0, 0, 1, 1], [], []>} : vector<2x32xf32>, vector<32x32xf32>, vector<2x32xf32> -> vector<2x32xf32>
    %759 = arith.addf %755, %758 : vector<2x32xf32>
    %c2_522 = arith.constant 2 : index
    %c14_523 = arith.constant 14 : index
    %c0_524 = arith.constant 0 : index
    %760 = vector.load %arg15[%c2_522, %c14_523, %c0_524] : memref<4x16x32xf32, #tpu.memory_space<vmem>>, vector<1x2x32xf32>
    %761 = vector.shape_cast %760 : vector<1x2x32xf32> to vector<2x32xf32>
    %c2_525 = arith.constant 2 : index
    %c0_526 = arith.constant 0 : index
    %c0_527 = arith.constant 0 : index
    %762 = vector.load %arg3[%c2_525, %c0_526, %c0_527] : memref<4x32x32xf32, #tpu.memory_space<vmem>>, vector<1x32x32xf32>
    %763 = vector.shape_cast %762 : vector<1x32x32xf32> to vector<32x32xf32>
    %cst_528 = arith.constant dense<0.000000e+00> : vector<2x32xf32>
    %764 = tpu.matmul %697, %763, %cst_528 {dimension_numbers = #tpu.dot_dimension_numbers<[1], [0], [0], [1], [0, 0, 1, 1], [], []>} : vector<2x32xf32>, vector<32x32xf32>, vector<2x32xf32> -> vector<2x32xf32>
    %765 = arith.addf %761, %764 : vector<2x32xf32>
    %c3_529 = arith.constant 3 : index
    %c14_530 = arith.constant 14 : index
    %c0_531 = arith.constant 0 : index
    %766 = vector.load %arg15[%c3_529, %c14_530, %c0_531] : memref<4x16x32xf32, #tpu.memory_space<vmem>>, vector<1x2x32xf32>
    %767 = vector.shape_cast %766 : vector<1x2x32xf32> to vector<2x32xf32>
    %c3_532 = arith.constant 3 : index
    %c0_533 = arith.constant 0 : index
    %c0_534 = arith.constant 0 : index
    %768 = vector.load %arg3[%c3_532, %c0_533, %c0_534] : memref<4x32x32xf32, #tpu.memory_space<vmem>>, vector<1x32x32xf32>
    %769 = vector.shape_cast %768 : vector<1x32x32xf32> to vector<32x32xf32>
    %cst_535 = arith.constant dense<0.000000e+00> : vector<2x32xf32>
    %770 = tpu.matmul %697, %769, %cst_535 {dimension_numbers = #tpu.dot_dimension_numbers<[1], [0], [0], [1], [0, 0, 1, 1], [], []>} : vector<2x32xf32>, vector<32x32xf32>, vector<2x32xf32> -> vector<2x32xf32>
    %771 = arith.addf %767, %770 : vector<2x32xf32>
    %772 = arith.negf %753 : vector<2x32xf32>
    %773 = math.exp %772 : vector<2x32xf32>
    %cst_536 = arith.constant 1.000000e+00 : f32
    %774 = vector.broadcast %cst_536 : f32 to vector<2x32xf32>
    %775 = arith.addf %774, %773 : vector<2x32xf32>
    %776 = arith.divf %774, %775 : vector<2x32xf32>
    %777 = arith.negf %759 : vector<2x32xf32>
    %778 = math.exp %777 : vector<2x32xf32>
    %cst_537 = arith.constant 1.000000e+00 : f32
    %779 = vector.broadcast %cst_537 : f32 to vector<2x32xf32>
    %780 = arith.addf %779, %778 : vector<2x32xf32>
    %781 = arith.divf %779, %780 : vector<2x32xf32>
    %782 = math.tanh %765 : vector<2x32xf32>
    %783 = arith.negf %771 : vector<2x32xf32>
    %784 = math.exp %783 : vector<2x32xf32>
    %cst_538 = arith.constant 1.000000e+00 : f32
    %785 = vector.broadcast %cst_538 : f32 to vector<2x32xf32>
    %786 = arith.addf %785, %784 : vector<2x32xf32>
    %787 = arith.divf %785, %786 : vector<2x32xf32>
    %788 = arith.mulf %781, %695 : vector<2x32xf32>
    %789 = arith.mulf %776, %782 : vector<2x32xf32>
    %790 = arith.addf %788, %789 : vector<2x32xf32>
    %791 = math.tanh %790 : vector<2x32xf32>
    %792 = arith.mulf %787, %791 : vector<2x32xf32>
    %793 = tpu.concatenate %792, %747 in 1 : vector<2x32xf32>, vector<2x32xf32> -> vector<2x64xf32>
    %c0_539 = arith.constant 0 : index
    %c0_540 = arith.constant 0 : index
    %c0_541 = arith.constant 0 : index
    %794 = vector.load %arg5[%c0_539, %c0_540, %c0_541] : memref<4x64x32xf32, #tpu.memory_space<vmem>>, vector<1x64x32xf32>
    %795 = vector.shape_cast %794 : vector<1x64x32xf32> to vector<64x32xf32>
    %cst_542 = arith.constant dense<0.000000e+00> : vector<2x32xf32>
    %796 = tpu.matmul %793, %795, %cst_542 {dimension_numbers = #tpu.dot_dimension_numbers<[1], [0], [0], [1], [0, 0, 1, 1], [], []>} : vector<2x64xf32>, vector<64x32xf32>, vector<2x32xf32> -> vector<2x32xf32>
    %c0_543 = arith.constant 0 : index
    %c0_544 = arith.constant 0 : index
    %c0_545 = arith.constant 0 : index
    %797 = vector.load %arg6[%c0_543, %c0_544, %c0_545] : memref<4x1x32xf32, #tpu.memory_space<vmem>>, vector<1x1x32xf32>
    %798 = vector.shape_cast %797 : vector<1x1x32xf32> to vector<1x32xf32>
    %799 = vector.broadcast %798 : vector<1x32xf32> to vector<2x32xf32>
    %800 = arith.addf %796, %799 : vector<2x32xf32>
    %c1_546 = arith.constant 1 : index
    %c0_547 = arith.constant 0 : index
    %c0_548 = arith.constant 0 : index
    %801 = vector.load %arg5[%c1_546, %c0_547, %c0_548] : memref<4x64x32xf32, #tpu.memory_space<vmem>>, vector<1x64x32xf32>
    %802 = vector.shape_cast %801 : vector<1x64x32xf32> to vector<64x32xf32>
    %cst_549 = arith.constant dense<0.000000e+00> : vector<2x32xf32>
    %803 = tpu.matmul %793, %802, %cst_549 {dimension_numbers = #tpu.dot_dimension_numbers<[1], [0], [0], [1], [0, 0, 1, 1], [], []>} : vector<2x64xf32>, vector<64x32xf32>, vector<2x32xf32> -> vector<2x32xf32>
    %c1_550 = arith.constant 1 : index
    %c0_551 = arith.constant 0 : index
    %c0_552 = arith.constant 0 : index
    %804 = vector.load %arg6[%c1_550, %c0_551, %c0_552] : memref<4x1x32xf32, #tpu.memory_space<vmem>>, vector<1x1x32xf32>
    %805 = vector.shape_cast %804 : vector<1x1x32xf32> to vector<1x32xf32>
    %806 = vector.broadcast %805 : vector<1x32xf32> to vector<2x32xf32>
    %807 = arith.addf %803, %806 : vector<2x32xf32>
    %c2_553 = arith.constant 2 : index
    %c0_554 = arith.constant 0 : index
    %c0_555 = arith.constant 0 : index
    %808 = vector.load %arg5[%c2_553, %c0_554, %c0_555] : memref<4x64x32xf32, #tpu.memory_space<vmem>>, vector<1x64x32xf32>
    %809 = vector.shape_cast %808 : vector<1x64x32xf32> to vector<64x32xf32>
    %cst_556 = arith.constant dense<0.000000e+00> : vector<2x32xf32>
    %810 = tpu.matmul %793, %809, %cst_556 {dimension_numbers = #tpu.dot_dimension_numbers<[1], [0], [0], [1], [0, 0, 1, 1], [], []>} : vector<2x64xf32>, vector<64x32xf32>, vector<2x32xf32> -> vector<2x32xf32>
    %c2_557 = arith.constant 2 : index
    %c0_558 = arith.constant 0 : index
    %c0_559 = arith.constant 0 : index
    %811 = vector.load %arg6[%c2_557, %c0_558, %c0_559] : memref<4x1x32xf32, #tpu.memory_space<vmem>>, vector<1x1x32xf32>
    %812 = vector.shape_cast %811 : vector<1x1x32xf32> to vector<1x32xf32>
    %813 = vector.broadcast %812 : vector<1x32xf32> to vector<2x32xf32>
    %814 = arith.addf %810, %813 : vector<2x32xf32>
    %c3_560 = arith.constant 3 : index
    %c0_561 = arith.constant 0 : index
    %c0_562 = arith.constant 0 : index
    %815 = vector.load %arg5[%c3_560, %c0_561, %c0_562] : memref<4x64x32xf32, #tpu.memory_space<vmem>>, vector<1x64x32xf32>
    %816 = vector.shape_cast %815 : vector<1x64x32xf32> to vector<64x32xf32>
    %cst_563 = arith.constant dense<0.000000e+00> : vector<2x32xf32>
    %817 = tpu.matmul %793, %816, %cst_563 {dimension_numbers = #tpu.dot_dimension_numbers<[1], [0], [0], [1], [0, 0, 1, 1], [], []>} : vector<2x64xf32>, vector<64x32xf32>, vector<2x32xf32> -> vector<2x32xf32>
    %c3_564 = arith.constant 3 : index
    %c0_565 = arith.constant 0 : index
    %c0_566 = arith.constant 0 : index
    %818 = vector.load %arg6[%c3_564, %c0_565, %c0_566] : memref<4x1x32xf32, #tpu.memory_space<vmem>>, vector<1x1x32xf32>
    %819 = vector.shape_cast %818 : vector<1x1x32xf32> to vector<1x32xf32>
    %820 = vector.broadcast %819 : vector<1x32xf32> to vector<2x32xf32>
    %821 = arith.addf %817, %820 : vector<2x32xf32>
    %822 = arith.negf %800 : vector<2x32xf32>
    %823 = math.exp %822 : vector<2x32xf32>
    %cst_567 = arith.constant 1.000000e+00 : f32
    %824 = vector.broadcast %cst_567 : f32 to vector<2x32xf32>
    %825 = arith.addf %824, %823 : vector<2x32xf32>
    %826 = arith.divf %824, %825 : vector<2x32xf32>
    %827 = arith.negf %807 : vector<2x32xf32>
    %828 = math.exp %827 : vector<2x32xf32>
    %cst_568 = arith.constant 1.000000e+00 : f32
    %829 = vector.broadcast %cst_568 : f32 to vector<2x32xf32>
    %830 = arith.addf %829, %828 : vector<2x32xf32>
    %831 = arith.divf %829, %830 : vector<2x32xf32>
    %832 = math.tanh %814 : vector<2x32xf32>
    %833 = arith.negf %821 : vector<2x32xf32>
    %834 = math.exp %833 : vector<2x32xf32>
    %cst_569 = arith.constant 1.000000e+00 : f32
    %835 = vector.broadcast %cst_569 : f32 to vector<2x32xf32>
    %836 = arith.addf %835, %834 : vector<2x32xf32>
    %837 = arith.divf %835, %836 : vector<2x32xf32>
    %838 = arith.mulf %831, %745 : vector<2x32xf32>
    %839 = arith.mulf %826, %832 : vector<2x32xf32>
    %840 = arith.addf %838, %839 : vector<2x32xf32>
    %841 = math.tanh %840 : vector<2x32xf32>
    %842 = arith.mulf %837, %841 : vector<2x32xf32>
    %c0_570 = arith.constant 0 : index
    %c0_571 = arith.constant 0 : index
    %c0_572 = arith.constant 0 : index
    %843 = vector.load %arg16[%c0_570, %c0_571, %c0_572] : memref<4x16x32xf32, #tpu.memory_space<vmem>>, vector<1x2x32xf32>
    %844 = vector.shape_cast %843 : vector<1x2x32xf32> to vector<2x32xf32>
    %c0_573 = arith.constant 0 : index
    %c0_574 = arith.constant 0 : index
    %c0_575 = arith.constant 0 : index
    %845 = vector.load %arg8[%c0_573, %c0_574, %c0_575] : memref<4x32x32xf32, #tpu.memory_space<vmem>>, vector<1x32x32xf32>
    %846 = vector.shape_cast %845 : vector<1x32x32xf32> to vector<32x32xf32>
    %cst_576 = arith.constant dense<0.000000e+00> : vector<2x32xf32>
    %847 = tpu.matmul %792, %846, %cst_576 {dimension_numbers = #tpu.dot_dimension_numbers<[1], [0], [0], [1], [0, 0, 1, 1], [], []>} : vector<2x32xf32>, vector<32x32xf32>, vector<2x32xf32> -> vector<2x32xf32>
    %848 = arith.addf %844, %847 : vector<2x32xf32>
    %c1_577 = arith.constant 1 : index
    %c0_578 = arith.constant 0 : index
    %c0_579 = arith.constant 0 : index
    %849 = vector.load %arg16[%c1_577, %c0_578, %c0_579] : memref<4x16x32xf32, #tpu.memory_space<vmem>>, vector<1x2x32xf32>
    %850 = vector.shape_cast %849 : vector<1x2x32xf32> to vector<2x32xf32>
    %c1_580 = arith.constant 1 : index
    %c0_581 = arith.constant 0 : index
    %c0_582 = arith.constant 0 : index
    %851 = vector.load %arg8[%c1_580, %c0_581, %c0_582] : memref<4x32x32xf32, #tpu.memory_space<vmem>>, vector<1x32x32xf32>
    %852 = vector.shape_cast %851 : vector<1x32x32xf32> to vector<32x32xf32>
    %cst_583 = arith.constant dense<0.000000e+00> : vector<2x32xf32>
    %853 = tpu.matmul %792, %852, %cst_583 {dimension_numbers = #tpu.dot_dimension_numbers<[1], [0], [0], [1], [0, 0, 1, 1], [], []>} : vector<2x32xf32>, vector<32x32xf32>, vector<2x32xf32> -> vector<2x32xf32>
    %854 = arith.addf %850, %853 : vector<2x32xf32>
    %c2_584 = arith.constant 2 : index
    %c0_585 = arith.constant 0 : index
    %c0_586 = arith.constant 0 : index
    %855 = vector.load %arg16[%c2_584, %c0_585, %c0_586] : memref<4x16x32xf32, #tpu.memory_space<vmem>>, vector<1x2x32xf32>
    %856 = vector.shape_cast %855 : vector<1x2x32xf32> to vector<2x32xf32>
    %c2_587 = arith.constant 2 : index
    %c0_588 = arith.constant 0 : index
    %c0_589 = arith.constant 0 : index
    %857 = vector.load %arg8[%c2_587, %c0_588, %c0_589] : memref<4x32x32xf32, #tpu.memory_space<vmem>>, vector<1x32x32xf32>
    %858 = vector.shape_cast %857 : vector<1x32x32xf32> to vector<32x32xf32>
    %cst_590 = arith.constant dense<0.000000e+00> : vector<2x32xf32>
    %859 = tpu.matmul %792, %858, %cst_590 {dimension_numbers = #tpu.dot_dimension_numbers<[1], [0], [0], [1], [0, 0, 1, 1], [], []>} : vector<2x32xf32>, vector<32x32xf32>, vector<2x32xf32> -> vector<2x32xf32>
    %860 = arith.addf %856, %859 : vector<2x32xf32>
    %c3_591 = arith.constant 3 : index
    %c0_592 = arith.constant 0 : index
    %c0_593 = arith.constant 0 : index
    %861 = vector.load %arg16[%c3_591, %c0_592, %c0_593] : memref<4x16x32xf32, #tpu.memory_space<vmem>>, vector<1x2x32xf32>
    %862 = vector.shape_cast %861 : vector<1x2x32xf32> to vector<2x32xf32>
    %c3_594 = arith.constant 3 : index
    %c0_595 = arith.constant 0 : index
    %c0_596 = arith.constant 0 : index
    %863 = vector.load %arg8[%c3_594, %c0_595, %c0_596] : memref<4x32x32xf32, #tpu.memory_space<vmem>>, vector<1x32x32xf32>
    %864 = vector.shape_cast %863 : vector<1x32x32xf32> to vector<32x32xf32>
    %cst_597 = arith.constant dense<0.000000e+00> : vector<2x32xf32>
    %865 = tpu.matmul %792, %864, %cst_597 {dimension_numbers = #tpu.dot_dimension_numbers<[1], [0], [0], [1], [0, 0, 1, 1], [], []>} : vector<2x32xf32>, vector<32x32xf32>, vector<2x32xf32> -> vector<2x32xf32>
    %866 = arith.addf %862, %865 : vector<2x32xf32>
    %867 = arith.negf %848 : vector<2x32xf32>
    %868 = math.exp %867 : vector<2x32xf32>
    %cst_598 = arith.constant 1.000000e+00 : f32
    %869 = vector.broadcast %cst_598 : f32 to vector<2x32xf32>
    %870 = arith.addf %869, %868 : vector<2x32xf32>
    %871 = arith.divf %869, %870 : vector<2x32xf32>
    %872 = arith.negf %854 : vector<2x32xf32>
    %873 = math.exp %872 : vector<2x32xf32>
    %cst_599 = arith.constant 1.000000e+00 : f32
    %874 = vector.broadcast %cst_599 : f32 to vector<2x32xf32>
    %875 = arith.addf %874, %873 : vector<2x32xf32>
    %876 = arith.divf %874, %875 : vector<2x32xf32>
    %877 = math.tanh %860 : vector<2x32xf32>
    %878 = arith.negf %866 : vector<2x32xf32>
    %879 = math.exp %878 : vector<2x32xf32>
    %cst_600 = arith.constant 1.000000e+00 : f32
    %880 = vector.broadcast %cst_600 : f32 to vector<2x32xf32>
    %881 = arith.addf %880, %879 : vector<2x32xf32>
    %882 = arith.divf %880, %881 : vector<2x32xf32>
    %883 = arith.mulf %876, %790 : vector<2x32xf32>
    %884 = arith.mulf %871, %877 : vector<2x32xf32>
    %885 = arith.addf %883, %884 : vector<2x32xf32>
    %886 = math.tanh %885 : vector<2x32xf32>
    %887 = arith.mulf %882, %886 : vector<2x32xf32>
    %888 = tpu.concatenate %887, %842 in 1 : vector<2x32xf32>, vector<2x32xf32> -> vector<2x64xf32>
    %c0_601 = arith.constant 0 : index
    %c0_602 = arith.constant 0 : index
    %c0_603 = arith.constant 0 : index
    %889 = vector.load %arg10[%c0_601, %c0_602, %c0_603] : memref<4x64x32xf32, #tpu.memory_space<vmem>>, vector<1x64x32xf32>
    %890 = vector.shape_cast %889 : vector<1x64x32xf32> to vector<64x32xf32>
    %cst_604 = arith.constant dense<0.000000e+00> : vector<2x32xf32>
    %891 = tpu.matmul %888, %890, %cst_604 {dimension_numbers = #tpu.dot_dimension_numbers<[1], [0], [0], [1], [0, 0, 1, 1], [], []>} : vector<2x64xf32>, vector<64x32xf32>, vector<2x32xf32> -> vector<2x32xf32>
    %c0_605 = arith.constant 0 : index
    %c0_606 = arith.constant 0 : index
    %c0_607 = arith.constant 0 : index
    %892 = vector.load %arg11[%c0_605, %c0_606, %c0_607] : memref<4x1x32xf32, #tpu.memory_space<vmem>>, vector<1x1x32xf32>
    %893 = vector.shape_cast %892 : vector<1x1x32xf32> to vector<1x32xf32>
    %894 = vector.broadcast %893 : vector<1x32xf32> to vector<2x32xf32>
    %895 = arith.addf %891, %894 : vector<2x32xf32>
    %c1_608 = arith.constant 1 : index
    %c0_609 = arith.constant 0 : index
    %c0_610 = arith.constant 0 : index
    %896 = vector.load %arg10[%c1_608, %c0_609, %c0_610] : memref<4x64x32xf32, #tpu.memory_space<vmem>>, vector<1x64x32xf32>
    %897 = vector.shape_cast %896 : vector<1x64x32xf32> to vector<64x32xf32>
    %cst_611 = arith.constant dense<0.000000e+00> : vector<2x32xf32>
    %898 = tpu.matmul %888, %897, %cst_611 {dimension_numbers = #tpu.dot_dimension_numbers<[1], [0], [0], [1], [0, 0, 1, 1], [], []>} : vector<2x64xf32>, vector<64x32xf32>, vector<2x32xf32> -> vector<2x32xf32>
    %c1_612 = arith.constant 1 : index
    %c0_613 = arith.constant 0 : index
    %c0_614 = arith.constant 0 : index
    %899 = vector.load %arg11[%c1_612, %c0_613, %c0_614] : memref<4x1x32xf32, #tpu.memory_space<vmem>>, vector<1x1x32xf32>
    %900 = vector.shape_cast %899 : vector<1x1x32xf32> to vector<1x32xf32>
    %901 = vector.broadcast %900 : vector<1x32xf32> to vector<2x32xf32>
    %902 = arith.addf %898, %901 : vector<2x32xf32>
    %c2_615 = arith.constant 2 : index
    %c0_616 = arith.constant 0 : index
    %c0_617 = arith.constant 0 : index
    %903 = vector.load %arg10[%c2_615, %c0_616, %c0_617] : memref<4x64x32xf32, #tpu.memory_space<vmem>>, vector<1x64x32xf32>
    %904 = vector.shape_cast %903 : vector<1x64x32xf32> to vector<64x32xf32>
    %cst_618 = arith.constant dense<0.000000e+00> : vector<2x32xf32>
    %905 = tpu.matmul %888, %904, %cst_618 {dimension_numbers = #tpu.dot_dimension_numbers<[1], [0], [0], [1], [0, 0, 1, 1], [], []>} : vector<2x64xf32>, vector<64x32xf32>, vector<2x32xf32> -> vector<2x32xf32>
    %c2_619 = arith.constant 2 : index
    %c0_620 = arith.constant 0 : index
    %c0_621 = arith.constant 0 : index
    %906 = vector.load %arg11[%c2_619, %c0_620, %c0_621] : memref<4x1x32xf32, #tpu.memory_space<vmem>>, vector<1x1x32xf32>
    %907 = vector.shape_cast %906 : vector<1x1x32xf32> to vector<1x32xf32>
    %908 = vector.broadcast %907 : vector<1x32xf32> to vector<2x32xf32>
    %909 = arith.addf %905, %908 : vector<2x32xf32>
    %c3_622 = arith.constant 3 : index
    %c0_623 = arith.constant 0 : index
    %c0_624 = arith.constant 0 : index
    %910 = vector.load %arg10[%c3_622, %c0_623, %c0_624] : memref<4x64x32xf32, #tpu.memory_space<vmem>>, vector<1x64x32xf32>
    %911 = vector.shape_cast %910 : vector<1x64x32xf32> to vector<64x32xf32>
    %cst_625 = arith.constant dense<0.000000e+00> : vector<2x32xf32>
    %912 = tpu.matmul %888, %911, %cst_625 {dimension_numbers = #tpu.dot_dimension_numbers<[1], [0], [0], [1], [0, 0, 1, 1], [], []>} : vector<2x64xf32>, vector<64x32xf32>, vector<2x32xf32> -> vector<2x32xf32>
    %c3_626 = arith.constant 3 : index
    %c0_627 = arith.constant 0 : index
    %c0_628 = arith.constant 0 : index
    %913 = vector.load %arg11[%c3_626, %c0_627, %c0_628] : memref<4x1x32xf32, #tpu.memory_space<vmem>>, vector<1x1x32xf32>
    %914 = vector.shape_cast %913 : vector<1x1x32xf32> to vector<1x32xf32>
    %915 = vector.broadcast %914 : vector<1x32xf32> to vector<2x32xf32>
    %916 = arith.addf %912, %915 : vector<2x32xf32>
    %917 = arith.negf %895 : vector<2x32xf32>
    %918 = math.exp %917 : vector<2x32xf32>
    %cst_629 = arith.constant 1.000000e+00 : f32
    %919 = vector.broadcast %cst_629 : f32 to vector<2x32xf32>
    %920 = arith.addf %919, %918 : vector<2x32xf32>
    %921 = arith.divf %919, %920 : vector<2x32xf32>
    %922 = arith.negf %902 : vector<2x32xf32>
    %923 = math.exp %922 : vector<2x32xf32>
    %cst_630 = arith.constant 1.000000e+00 : f32
    %924 = vector.broadcast %cst_630 : f32 to vector<2x32xf32>
    %925 = arith.addf %924, %923 : vector<2x32xf32>
    %926 = arith.divf %924, %925 : vector<2x32xf32>
    %927 = math.tanh %909 : vector<2x32xf32>
    %928 = arith.negf %916 : vector<2x32xf32>
    %929 = math.exp %928 : vector<2x32xf32>
    %cst_631 = arith.constant 1.000000e+00 : f32
    %930 = vector.broadcast %cst_631 : f32 to vector<2x32xf32>
    %931 = arith.addf %930, %929 : vector<2x32xf32>
    %932 = arith.divf %930, %931 : vector<2x32xf32>
    %933 = arith.mulf %926, %840 : vector<2x32xf32>
    %934 = arith.mulf %921, %927 : vector<2x32xf32>
    %935 = arith.addf %933, %934 : vector<2x32xf32>
    %936 = math.tanh %935 : vector<2x32xf32>
    %937 = arith.mulf %932, %936 : vector<2x32xf32>
    %c0_632 = arith.constant 0 : index
    %c0_633 = arith.constant 0 : index
    %938 = vector.load %arg17[%c0_632, %c0_633] : memref<16x32xf32, #tpu.memory_space<vmem>>, vector<2x32xf32>
    tpu.vector_store %arg17[%c0_632, %c0_633], %937 {strides = array<i32>} : memref<16x32xf32, #tpu.memory_space<vmem>>, vector<2x32xf32>,
    %c0_634 = arith.constant 0 : index
    %c2_635 = arith.constant 2 : index
    %c0_636 = arith.constant 0 : index
    %939 = vector.load %arg16[%c0_634, %c2_635, %c0_636] : memref<4x16x32xf32, #tpu.memory_space<vmem>>, vector<1x2x32xf32>
    %940 = vector.shape_cast %939 : vector<1x2x32xf32> to vector<2x32xf32>
    %c0_637 = arith.constant 0 : index
    %c0_638 = arith.constant 0 : index
    %c0_639 = arith.constant 0 : index
    %941 = vector.load %arg8[%c0_637, %c0_638, %c0_639] : memref<4x32x32xf32, #tpu.memory_space<vmem>>, vector<1x32x32xf32>
    %942 = vector.shape_cast %941 : vector<1x32x32xf32> to vector<32x32xf32>
    %cst_640 = arith.constant dense<0.000000e+00> : vector<2x32xf32>
    %943 = tpu.matmul %887, %942, %cst_640 {dimension_numbers = #tpu.dot_dimension_numbers<[1], [0], [0], [1], [0, 0, 1, 1], [], []>} : vector<2x32xf32>, vector<32x32xf32>, vector<2x32xf32> -> vector<2x32xf32>
    %944 = arith.addf %940, %943 : vector<2x32xf32>
    %c1_641 = arith.constant 1 : index
    %c2_642 = arith.constant 2 : index
    %c0_643 = arith.constant 0 : index
    %945 = vector.load %arg16[%c1_641, %c2_642, %c0_643] : memref<4x16x32xf32, #tpu.memory_space<vmem>>, vector<1x2x32xf32>
    %946 = vector.shape_cast %945 : vector<1x2x32xf32> to vector<2x32xf32>
    %c1_644 = arith.constant 1 : index
    %c0_645 = arith.constant 0 : index
    %c0_646 = arith.constant 0 : index
    %947 = vector.load %arg8[%c1_644, %c0_645, %c0_646] : memref<4x32x32xf32, #tpu.memory_space<vmem>>, vector<1x32x32xf32>
    %948 = vector.shape_cast %947 : vector<1x32x32xf32> to vector<32x32xf32>
    %cst_647 = arith.constant dense<0.000000e+00> : vector<2x32xf32>
    %949 = tpu.matmul %887, %948, %cst_647 {dimension_numbers = #tpu.dot_dimension_numbers<[1], [0], [0], [1], [0, 0, 1, 1], [], []>} : vector<2x32xf32>, vector<32x32xf32>, vector<2x32xf32> -> vector<2x32xf32>
    %950 = arith.addf %946, %949 : vector<2x32xf32>
    %c2_648 = arith.constant 2 : index
    %c2_649 = arith.constant 2 : index
    %c0_650 = arith.constant 0 : index
    %951 = vector.load %arg16[%c2_648, %c2_649, %c0_650] : memref<4x16x32xf32, #tpu.memory_space<vmem>>, vector<1x2x32xf32>
    %952 = vector.shape_cast %951 : vector<1x2x32xf32> to vector<2x32xf32>
    %c2_651 = arith.constant 2 : index
    %c0_652 = arith.constant 0 : index
    %c0_653 = arith.constant 0 : index
    %953 = vector.load %arg8[%c2_651, %c0_652, %c0_653] : memref<4x32x32xf32, #tpu.memory_space<vmem>>, vector<1x32x32xf32>
    %954 = vector.shape_cast %953 : vector<1x32x32xf32> to vector<32x32xf32>
    %cst_654 = arith.constant dense<0.000000e+00> : vector<2x32xf32>
    %955 = tpu.matmul %887, %954, %cst_654 {dimension_numbers = #tpu.dot_dimension_numbers<[1], [0], [0], [1], [0, 0, 1, 1], [], []>} : vector<2x32xf32>, vector<32x32xf32>, vector<2x32xf32> -> vector<2x32xf32>
    %956 = arith.addf %952, %955 : vector<2x32xf32>
    %c3_655 = arith.constant 3 : index
    %c2_656 = arith.constant 2 : index
    %c0_657 = arith.constant 0 : index
    %957 = vector.load %arg16[%c3_655, %c2_656, %c0_657] : memref<4x16x32xf32, #tpu.memory_space<vmem>>, vector<1x2x32xf32>
    %958 = vector.shape_cast %957 : vector<1x2x32xf32> to vector<2x32xf32>
    %c3_658 = arith.constant 3 : index
    %c0_659 = arith.constant 0 : index
    %c0_660 = arith.constant 0 : index
    %959 = vector.load %arg8[%c3_658, %c0_659, %c0_660] : memref<4x32x32xf32, #tpu.memory_space<vmem>>, vector<1x32x32xf32>
    %960 = vector.shape_cast %959 : vector<1x32x32xf32> to vector<32x32xf32>
    %cst_661 = arith.constant dense<0.000000e+00> : vector<2x32xf32>
    %961 = tpu.matmul %887, %960, %cst_661 {dimension_numbers = #tpu.dot_dimension_numbers<[1], [0], [0], [1], [0, 0, 1, 1], [], []>} : vector<2x32xf32>, vector<32x32xf32>, vector<2x32xf32> -> vector<2x32xf32>
    %962 = arith.addf %958, %961 : vector<2x32xf32>
    %963 = arith.negf %944 : vector<2x32xf32>
    %964 = math.exp %963 : vector<2x32xf32>
    %cst_662 = arith.constant 1.000000e+00 : f32
    %965 = vector.broadcast %cst_662 : f32 to vector<2x32xf32>
    %966 = arith.addf %965, %964 : vector<2x32xf32>
    %967 = arith.divf %965, %966 : vector<2x32xf32>
    %968 = arith.negf %950 : vector<2x32xf32>
    %969 = math.exp %968 : vector<2x32xf32>
    %cst_663 = arith.constant 1.000000e+00 : f32
    %970 = vector.broadcast %cst_663 : f32 to vector<2x32xf32>
    %971 = arith.addf %970, %969 : vector<2x32xf32>
    %972 = arith.divf %970, %971 : vector<2x32xf32>
    %973 = math.tanh %956 : vector<2x32xf32>
    %974 = arith.negf %962 : vector<2x32xf32>
    %975 = math.exp %974 : vector<2x32xf32>
    %cst_664 = arith.constant 1.000000e+00 : f32
    %976 = vector.broadcast %cst_664 : f32 to vector<2x32xf32>
    %977 = arith.addf %976, %975 : vector<2x32xf32>
    %978 = arith.divf %976, %977 : vector<2x32xf32>
    %979 = arith.mulf %972, %885 : vector<2x32xf32>
    %980 = arith.mulf %967, %973 : vector<2x32xf32>
    %981 = arith.addf %979, %980 : vector<2x32xf32>
    %982 = math.tanh %981 : vector<2x32xf32>
    %983 = arith.mulf %978, %982 : vector<2x32xf32>
    %984 = tpu.concatenate %983, %937 in 1 : vector<2x32xf32>, vector<2x32xf32> -> vector<2x64xf32>
    %c0_665 = arith.constant 0 : index
    %c0_666 = arith.constant 0 : index
    %c0_667 = arith.constant 0 : index
    %985 = vector.load %arg10[%c0_665, %c0_666, %c0_667] : memref<4x64x32xf32, #tpu.memory_space<vmem>>, vector<1x64x32xf32>
    %986 = vector.shape_cast %985 : vector<1x64x32xf32> to vector<64x32xf32>
    %cst_668 = arith.constant dense<0.000000e+00> : vector<2x32xf32>
    %987 = tpu.matmul %984, %986, %cst_668 {dimension_numbers = #tpu.dot_dimension_numbers<[1], [0], [0], [1], [0, 0, 1, 1], [], []>} : vector<2x64xf32>, vector<64x32xf32>, vector<2x32xf32> -> vector<2x32xf32>
    %c0_669 = arith.constant 0 : index
    %c0_670 = arith.constant 0 : index
    %c0_671 = arith.constant 0 : index
    %988 = vector.load %arg11[%c0_669, %c0_670, %c0_671] : memref<4x1x32xf32, #tpu.memory_space<vmem>>, vector<1x1x32xf32>
    %989 = vector.shape_cast %988 : vector<1x1x32xf32> to vector<1x32xf32>
    %990 = vector.broadcast %989 : vector<1x32xf32> to vector<2x32xf32>
    %991 = arith.addf %987, %990 : vector<2x32xf32>
    %c1_672 = arith.constant 1 : index
    %c0_673 = arith.constant 0 : index
    %c0_674 = arith.constant 0 : index
    %992 = vector.load %arg10[%c1_672, %c0_673, %c0_674] : memref<4x64x32xf32, #tpu.memory_space<vmem>>, vector<1x64x32xf32>
    %993 = vector.shape_cast %992 : vector<1x64x32xf32> to vector<64x32xf32>
    %cst_675 = arith.constant dense<0.000000e+00> : vector<2x32xf32>
    %994 = tpu.matmul %984, %993, %cst_675 {dimension_numbers = #tpu.dot_dimension_numbers<[1], [0], [0], [1], [0, 0, 1, 1], [], []>} : vector<2x64xf32>, vector<64x32xf32>, vector<2x32xf32> -> vector<2x32xf32>
    %c1_676 = arith.constant 1 : index
    %c0_677 = arith.constant 0 : index
    %c0_678 = arith.constant 0 : index
    %995 = vector.load %arg11[%c1_676, %c0_677, %c0_678] : memref<4x1x32xf32, #tpu.memory_space<vmem>>, vector<1x1x32xf32>
    %996 = vector.shape_cast %995 : vector<1x1x32xf32> to vector<1x32xf32>
    %997 = vector.broadcast %996 : vector<1x32xf32> to vector<2x32xf32>
    %998 = arith.addf %994, %997 : vector<2x32xf32>
    %c2_679 = arith.constant 2 : index
    %c0_680 = arith.constant 0 : index
    %c0_681 = arith.constant 0 : index
    %999 = vector.load %arg10[%c2_679, %c0_680, %c0_681] : memref<4x64x32xf32, #tpu.memory_space<vmem>>, vector<1x64x32xf32>
    %1000 = vector.shape_cast %999 : vector<1x64x32xf32> to vector<64x32xf32>
    %cst_682 = arith.constant dense<0.000000e+00> : vector<2x32xf32>
    %1001 = tpu.matmul %984, %1000, %cst_682 {dimension_numbers = #tpu.dot_dimension_numbers<[1], [0], [0], [1], [0, 0, 1, 1], [], []>} : vector<2x64xf32>, vector<64x32xf32>, vector<2x32xf32> -> vector<2x32xf32>
    %c2_683 = arith.constant 2 : index
    %c0_684 = arith.constant 0 : index
    %c0_685 = arith.constant 0 : index
    %1002 = vector.load %arg11[%c2_683, %c0_684, %c0_685] : memref<4x1x32xf32, #tpu.memory_space<vmem>>, vector<1x1x32xf32>
    %1003 = vector.shape_cast %1002 : vector<1x1x32xf32> to vector<1x32xf32>
    %1004 = vector.broadcast %1003 : vector<1x32xf32> to vector<2x32xf32>
    %1005 = arith.addf %1001, %1004 : vector<2x32xf32>
    %c3_686 = arith.constant 3 : index
    %c0_687 = arith.constant 0 : index
    %c0_688 = arith.constant 0 : index
    %1006 = vector.load %arg10[%c3_686, %c0_687, %c0_688] : memref<4x64x32xf32, #tpu.memory_space<vmem>>, vector<1x64x32xf32>
    %1007 = vector.shape_cast %1006 : vector<1x64x32xf32> to vector<64x32xf32>
    %cst_689 = arith.constant dense<0.000000e+00> : vector<2x32xf32>
    %1008 = tpu.matmul %984, %1007, %cst_689 {dimension_numbers = #tpu.dot_dimension_numbers<[1], [0], [0], [1], [0, 0, 1, 1], [], []>} : vector<2x64xf32>, vector<64x32xf32>, vector<2x32xf32> -> vector<2x32xf32>
    %c3_690 = arith.constant 3 : index
    %c0_691 = arith.constant 0 : index
    %c0_692 = arith.constant 0 : index
    %1009 = vector.load %arg11[%c3_690, %c0_691, %c0_692] : memref<4x1x32xf32, #tpu.memory_space<vmem>>, vector<1x1x32xf32>
    %1010 = vector.shape_cast %1009 : vector<1x1x32xf32> to vector<1x32xf32>
    %1011 = vector.broadcast %1010 : vector<1x32xf32> to vector<2x32xf32>
    %1012 = arith.addf %1008, %1011 : vector<2x32xf32>
    %1013 = arith.negf %991 : vector<2x32xf32>
    %1014 = math.exp %1013 : vector<2x32xf32>
    %cst_693 = arith.constant 1.000000e+00 : f32
    %1015 = vector.broadcast %cst_693 : f32 to vector<2x32xf32>
    %1016 = arith.addf %1015, %1014 : vector<2x32xf32>
    %1017 = arith.divf %1015, %1016 : vector<2x32xf32>
    %1018 = arith.negf %998 : vector<2x32xf32>
    %1019 = math.exp %1018 : vector<2x32xf32>
    %cst_694 = arith.constant 1.000000e+00 : f32
    %1020 = vector.broadcast %cst_694 : f32 to vector<2x32xf32>
    %1021 = arith.addf %1020, %1019 : vector<2x32xf32>
    %1022 = arith.divf %1020, %1021 : vector<2x32xf32>
    %1023 = math.tanh %1005 : vector<2x32xf32>
    %1024 = arith.negf %1012 : vector<2x32xf32>
    %1025 = math.exp %1024 : vector<2x32xf32>
    %cst_695 = arith.constant 1.000000e+00 : f32
    %1026 = vector.broadcast %cst_695 : f32 to vector<2x32xf32>
    %1027 = arith.addf %1026, %1025 : vector<2x32xf32>
    %1028 = arith.divf %1026, %1027 : vector<2x32xf32>
    %1029 = arith.mulf %1022, %935 : vector<2x32xf32>
    %1030 = arith.mulf %1017, %1023 : vector<2x32xf32>
    %1031 = arith.addf %1029, %1030 : vector<2x32xf32>
    %1032 = math.tanh %1031 : vector<2x32xf32>
    %1033 = arith.mulf %1028, %1032 : vector<2x32xf32>
    %c2_696 = arith.constant 2 : index
    %c0_697 = arith.constant 0 : index
    %1034 = vector.load %arg17[%c2_696, %c0_697] : memref<16x32xf32, #tpu.memory_space<vmem>>, vector<2x32xf32>
    tpu.vector_store %arg17[%c2_696, %c0_697], %1033 {strides = array<i32>} : memref<16x32xf32, #tpu.memory_space<vmem>>, vector<2x32xf32>,
    %c0_698 = arith.constant 0 : index
    %c4_699 = arith.constant 4 : index
    %c0_700 = arith.constant 0 : index
    %1035 = vector.load %arg16[%c0_698, %c4_699, %c0_700] : memref<4x16x32xf32, #tpu.memory_space<vmem>>, vector<1x2x32xf32>
    %1036 = vector.shape_cast %1035 : vector<1x2x32xf32> to vector<2x32xf32>
    %c0_701 = arith.constant 0 : index
    %c0_702 = arith.constant 0 : index
    %c0_703 = arith.constant 0 : index
    %1037 = vector.load %arg8[%c0_701, %c0_702, %c0_703] : memref<4x32x32xf32, #tpu.memory_space<vmem>>, vector<1x32x32xf32>
    %1038 = vector.shape_cast %1037 : vector<1x32x32xf32> to vector<32x32xf32>
    %cst_704 = arith.constant dense<0.000000e+00> : vector<2x32xf32>
    %1039 = tpu.matmul %983, %1038, %cst_704 {dimension_numbers = #tpu.dot_dimension_numbers<[1], [0], [0], [1], [0, 0, 1, 1], [], []>} : vector<2x32xf32>, vector<32x32xf32>, vector<2x32xf32> -> vector<2x32xf32>
    %1040 = arith.addf %1036, %1039 : vector<2x32xf32>
    %c1_705 = arith.constant 1 : index
    %c4_706 = arith.constant 4 : index
    %c0_707 = arith.constant 0 : index
    %1041 = vector.load %arg16[%c1_705, %c4_706, %c0_707] : memref<4x16x32xf32, #tpu.memory_space<vmem>>, vector<1x2x32xf32>
    %1042 = vector.shape_cast %1041 : vector<1x2x32xf32> to vector<2x32xf32>
    %c1_708 = arith.constant 1 : index
    %c0_709 = arith.constant 0 : index
    %c0_710 = arith.constant 0 : index
    %1043 = vector.load %arg8[%c1_708, %c0_709, %c0_710] : memref<4x32x32xf32, #tpu.memory_space<vmem>>, vector<1x32x32xf32>
    %1044 = vector.shape_cast %1043 : vector<1x32x32xf32> to vector<32x32xf32>
    %cst_711 = arith.constant dense<0.000000e+00> : vector<2x32xf32>
    %1045 = tpu.matmul %983, %1044, %cst_711 {dimension_numbers = #tpu.dot_dimension_numbers<[1], [0], [0], [1], [0, 0, 1, 1], [], []>} : vector<2x32xf32>, vector<32x32xf32>, vector<2x32xf32> -> vector<2x32xf32>
    %1046 = arith.addf %1042, %1045 : vector<2x32xf32>
    %c2_712 = arith.constant 2 : index
    %c4_713 = arith.constant 4 : index
    %c0_714 = arith.constant 0 : index
    %1047 = vector.load %arg16[%c2_712, %c4_713, %c0_714] : memref<4x16x32xf32, #tpu.memory_space<vmem>>, vector<1x2x32xf32>
    %1048 = vector.shape_cast %1047 : vector<1x2x32xf32> to vector<2x32xf32>
    %c2_715 = arith.constant 2 : index
    %c0_716 = arith.constant 0 : index
    %c0_717 = arith.constant 0 : index
    %1049 = vector.load %arg8[%c2_715, %c0_716, %c0_717] : memref<4x32x32xf32, #tpu.memory_space<vmem>>, vector<1x32x32xf32>
    %1050 = vector.shape_cast %1049 : vector<1x32x32xf32> to vector<32x32xf32>
    %cst_718 = arith.constant dense<0.000000e+00> : vector<2x32xf32>
    %1051 = tpu.matmul %983, %1050, %cst_718 {dimension_numbers = #tpu.dot_dimension_numbers<[1], [0], [0], [1], [0, 0, 1, 1], [], []>} : vector<2x32xf32>, vector<32x32xf32>, vector<2x32xf32> -> vector<2x32xf32>
    %1052 = arith.addf %1048, %1051 : vector<2x32xf32>
    %c3_719 = arith.constant 3 : index
    %c4_720 = arith.constant 4 : index
    %c0_721 = arith.constant 0 : index
    %1053 = vector.load %arg16[%c3_719, %c4_720, %c0_721] : memref<4x16x32xf32, #tpu.memory_space<vmem>>, vector<1x2x32xf32>
    %1054 = vector.shape_cast %1053 : vector<1x2x32xf32> to vector<2x32xf32>
    %c3_722 = arith.constant 3 : index
    %c0_723 = arith.constant 0 : index
    %c0_724 = arith.constant 0 : index
    %1055 = vector.load %arg8[%c3_722, %c0_723, %c0_724] : memref<4x32x32xf32, #tpu.memory_space<vmem>>, vector<1x32x32xf32>
    %1056 = vector.shape_cast %1055 : vector<1x32x32xf32> to vector<32x32xf32>
    %cst_725 = arith.constant dense<0.000000e+00> : vector<2x32xf32>
    %1057 = tpu.matmul %983, %1056, %cst_725 {dimension_numbers = #tpu.dot_dimension_numbers<[1], [0], [0], [1], [0, 0, 1, 1], [], []>} : vector<2x32xf32>, vector<32x32xf32>, vector<2x32xf32> -> vector<2x32xf32>
    %1058 = arith.addf %1054, %1057 : vector<2x32xf32>
    %1059 = arith.negf %1040 : vector<2x32xf32>
    %1060 = math.exp %1059 : vector<2x32xf32>
    %cst_726 = arith.constant 1.000000e+00 : f32
    %1061 = vector.broadcast %cst_726 : f32 to vector<2x32xf32>
    %1062 = arith.addf %1061, %1060 : vector<2x32xf32>
    %1063 = arith.divf %1061, %1062 : vector<2x32xf32>
    %1064 = arith.negf %1046 : vector<2x32xf32>
    %1065 = math.exp %1064 : vector<2x32xf32>
    %cst_727 = arith.constant 1.000000e+00 : f32
    %1066 = vector.broadcast %cst_727 : f32 to vector<2x32xf32>
    %1067 = arith.addf %1066, %1065 : vector<2x32xf32>
    %1068 = arith.divf %1066, %1067 : vector<2x32xf32>
    %1069 = math.tanh %1052 : vector<2x32xf32>
    %1070 = arith.negf %1058 : vector<2x32xf32>
    %1071 = math.exp %1070 : vector<2x32xf32>
    %cst_728 = arith.constant 1.000000e+00 : f32
    %1072 = vector.broadcast %cst_728 : f32 to vector<2x32xf32>
    %1073 = arith.addf %1072, %1071 : vector<2x32xf32>
    %1074 = arith.divf %1072, %1073 : vector<2x32xf32>
    %1075 = arith.mulf %1068, %981 : vector<2x32xf32>
    %1076 = arith.mulf %1063, %1069 : vector<2x32xf32>
    %1077 = arith.addf %1075, %1076 : vector<2x32xf32>
    %1078 = math.tanh %1077 : vector<2x32xf32>
    %1079 = arith.mulf %1074, %1078 : vector<2x32xf32>
    %1080 = tpu.concatenate %1079, %1033 in 1 : vector<2x32xf32>, vector<2x32xf32> -> vector<2x64xf32>
    %c0_729 = arith.constant 0 : index
    %c0_730 = arith.constant 0 : index
    %c0_731 = arith.constant 0 : index
    %1081 = vector.load %arg10[%c0_729, %c0_730, %c0_731] : memref<4x64x32xf32, #tpu.memory_space<vmem>>, vector<1x64x32xf32>
    %1082 = vector.shape_cast %1081 : vector<1x64x32xf32> to vector<64x32xf32>
    %cst_732 = arith.constant dense<0.000000e+00> : vector<2x32xf32>
    %1083 = tpu.matmul %1080, %1082, %cst_732 {dimension_numbers = #tpu.dot_dimension_numbers<[1], [0], [0], [1], [0, 0, 1, 1], [], []>} : vector<2x64xf32>, vector<64x32xf32>, vector<2x32xf32> -> vector<2x32xf32>
    %c0_733 = arith.constant 0 : index
    %c0_734 = arith.constant 0 : index
    %c0_735 = arith.constant 0 : index
    %1084 = vector.load %arg11[%c0_733, %c0_734, %c0_735] : memref<4x1x32xf32, #tpu.memory_space<vmem>>, vector<1x1x32xf32>
    %1085 = vector.shape_cast %1084 : vector<1x1x32xf32> to vector<1x32xf32>
    %1086 = vector.broadcast %1085 : vector<1x32xf32> to vector<2x32xf32>
    %1087 = arith.addf %1083, %1086 : vector<2x32xf32>
    %c1_736 = arith.constant 1 : index
    %c0_737 = arith.constant 0 : index
    %c0_738 = arith.constant 0 : index
    %1088 = vector.load %arg10[%c1_736, %c0_737, %c0_738] : memref<4x64x32xf32, #tpu.memory_space<vmem>>, vector<1x64x32xf32>
    %1089 = vector.shape_cast %1088 : vector<1x64x32xf32> to vector<64x32xf32>
    %cst_739 = arith.constant dense<0.000000e+00> : vector<2x32xf32>
    %1090 = tpu.matmul %1080, %1089, %cst_739 {dimension_numbers = #tpu.dot_dimension_numbers<[1], [0], [0], [1], [0, 0, 1, 1], [], []>} : vector<2x64xf32>, vector<64x32xf32>, vector<2x32xf32> -> vector<2x32xf32>
    %c1_740 = arith.constant 1 : index
    %c0_741 = arith.constant 0 : index
    %c0_742 = arith.constant 0 : index
    %1091 = vector.load %arg11[%c1_740, %c0_741, %c0_742] : memref<4x1x32xf32, #tpu.memory_space<vmem>>, vector<1x1x32xf32>
    %1092 = vector.shape_cast %1091 : vector<1x1x32xf32> to vector<1x32xf32>
    %1093 = vector.broadcast %1092 : vector<1x32xf32> to vector<2x32xf32>
    %1094 = arith.addf %1090, %1093 : vector<2x32xf32>
    %c2_743 = arith.constant 2 : index
    %c0_744 = arith.constant 0 : index
    %c0_745 = arith.constant 0 : index
    %1095 = vector.load %arg10[%c2_743, %c0_744, %c0_745] : memref<4x64x32xf32, #tpu.memory_space<vmem>>, vector<1x64x32xf32>
    %1096 = vector.shape_cast %1095 : vector<1x64x32xf32> to vector<64x32xf32>
    %cst_746 = arith.constant dense<0.000000e+00> : vector<2x32xf32>
    %1097 = tpu.matmul %1080, %1096, %cst_746 {dimension_numbers = #tpu.dot_dimension_numbers<[1], [0], [0], [1], [0, 0, 1, 1], [], []>} : vector<2x64xf32>, vector<64x32xf32>, vector<2x32xf32> -> vector<2x32xf32>
    %c2_747 = arith.constant 2 : index
    %c0_748 = arith.constant 0 : index
    %c0_749 = arith.constant 0 : index
    %1098 = vector.load %arg11[%c2_747, %c0_748, %c0_749] : memref<4x1x32xf32, #tpu.memory_space<vmem>>, vector<1x1x32xf32>
    %1099 = vector.shape_cast %1098 : vector<1x1x32xf32> to vector<1x32xf32>
    %1100 = vector.broadcast %1099 : vector<1x32xf32> to vector<2x32xf32>
    %1101 = arith.addf %1097, %1100 : vector<2x32xf32>
    %c3_750 = arith.constant 3 : index
    %c0_751 = arith.constant 0 : index
    %c0_752 = arith.constant 0 : index
    %1102 = vector.load %arg10[%c3_750, %c0_751, %c0_752] : memref<4x64x32xf32, #tpu.memory_space<vmem>>, vector<1x64x32xf32>
    %1103 = vector.shape_cast %1102 : vector<1x64x32xf32> to vector<64x32xf32>
    %cst_753 = arith.constant dense<0.000000e+00> : vector<2x32xf32>
    %1104 = tpu.matmul %1080, %1103, %cst_753 {dimension_numbers = #tpu.dot_dimension_numbers<[1], [0], [0], [1], [0, 0, 1, 1], [], []>} : vector<2x64xf32>, vector<64x32xf32>, vector<2x32xf32> -> vector<2x32xf32>
    %c3_754 = arith.constant 3 : index
    %c0_755 = arith.constant 0 : index
    %c0_756 = arith.constant 0 : index
    %1105 = vector.load %arg11[%c3_754, %c0_755, %c0_756] : memref<4x1x32xf32, #tpu.memory_space<vmem>>, vector<1x1x32xf32>
    %1106 = vector.shape_cast %1105 : vector<1x1x32xf32> to vector<1x32xf32>
    %1107 = vector.broadcast %1106 : vector<1x32xf32> to vector<2x32xf32>
    %1108 = arith.addf %1104, %1107 : vector<2x32xf32>
    %1109 = arith.negf %1087 : vector<2x32xf32>
    %1110 = math.exp %1109 : vector<2x32xf32>
    %cst_757 = arith.constant 1.000000e+00 : f32
    %1111 = vector.broadcast %cst_757 : f32 to vector<2x32xf32>
    %1112 = arith.addf %1111, %1110 : vector<2x32xf32>
    %1113 = arith.divf %1111, %1112 : vector<2x32xf32>
    %1114 = arith.negf %1094 : vector<2x32xf32>
    %1115 = math.exp %1114 : vector<2x32xf32>
    %cst_758 = arith.constant 1.000000e+00 : f32
    %1116 = vector.broadcast %cst_758 : f32 to vector<2x32xf32>
    %1117 = arith.addf %1116, %1115 : vector<2x32xf32>
    %1118 = arith.divf %1116, %1117 : vector<2x32xf32>
    %1119 = math.tanh %1101 : vector<2x32xf32>
    %1120 = arith.negf %1108 : vector<2x32xf32>
    %1121 = math.exp %1120 : vector<2x32xf32>
    %cst_759 = arith.constant 1.000000e+00 : f32
    %1122 = vector.broadcast %cst_759 : f32 to vector<2x32xf32>
    %1123 = arith.addf %1122, %1121 : vector<2x32xf32>
    %1124 = arith.divf %1122, %1123 : vector<2x32xf32>
    %1125 = arith.mulf %1118, %1031 : vector<2x32xf32>
    %1126 = arith.mulf %1113, %1119 : vector<2x32xf32>
    %1127 = arith.addf %1125, %1126 : vector<2x32xf32>
    %1128 = math.tanh %1127 : vector<2x32xf32>
    %1129 = arith.mulf %1124, %1128 : vector<2x32xf32>
    %c4_760 = arith.constant 4 : index
    %c0_761 = arith.constant 0 : index
    %1130 = vector.load %arg17[%c4_760, %c0_761] : memref<16x32xf32, #tpu.memory_space<vmem>>, vector<2x32xf32>
    tpu.vector_store %arg17[%c4_760, %c0_761], %1129 {strides = array<i32>} : memref<16x32xf32, #tpu.memory_space<vmem>>, vector<2x32xf32>,
    %c0_762 = arith.constant 0 : index
    %c6_763 = arith.constant 6 : index
    %c0_764 = arith.constant 0 : index
    %1131 = vector.load %arg16[%c0_762, %c6_763, %c0_764] : memref<4x16x32xf32, #tpu.memory_space<vmem>>, vector<1x2x32xf32>
    %1132 = vector.shape_cast %1131 : vector<1x2x32xf32> to vector<2x32xf32>
    %c0_765 = arith.constant 0 : index
    %c0_766 = arith.constant 0 : index
    %c0_767 = arith.constant 0 : index
    %1133 = vector.load %arg8[%c0_765, %c0_766, %c0_767] : memref<4x32x32xf32, #tpu.memory_space<vmem>>, vector<1x32x32xf32>
    %1134 = vector.shape_cast %1133 : vector<1x32x32xf32> to vector<32x32xf32>
    %cst_768 = arith.constant dense<0.000000e+00> : vector<2x32xf32>
    %1135 = tpu.matmul %1079, %1134, %cst_768 {dimension_numbers = #tpu.dot_dimension_numbers<[1], [0], [0], [1], [0, 0, 1, 1], [], []>} : vector<2x32xf32>, vector<32x32xf32>, vector<2x32xf32> -> vector<2x32xf32>
    %1136 = arith.addf %1132, %1135 : vector<2x32xf32>
    %c1_769 = arith.constant 1 : index
    %c6_770 = arith.constant 6 : index
    %c0_771 = arith.constant 0 : index
    %1137 = vector.load %arg16[%c1_769, %c6_770, %c0_771] : memref<4x16x32xf32, #tpu.memory_space<vmem>>, vector<1x2x32xf32>
    %1138 = vector.shape_cast %1137 : vector<1x2x32xf32> to vector<2x32xf32>
    %c1_772 = arith.constant 1 : index
    %c0_773 = arith.constant 0 : index
    %c0_774 = arith.constant 0 : index
    %1139 = vector.load %arg8[%c1_772, %c0_773, %c0_774] : memref<4x32x32xf32, #tpu.memory_space<vmem>>, vector<1x32x32xf32>
    %1140 = vector.shape_cast %1139 : vector<1x32x32xf32> to vector<32x32xf32>
    %cst_775 = arith.constant dense<0.000000e+00> : vector<2x32xf32>
    %1141 = tpu.matmul %1079, %1140, %cst_775 {dimension_numbers = #tpu.dot_dimension_numbers<[1], [0], [0], [1], [0, 0, 1, 1], [], []>} : vector<2x32xf32>, vector<32x32xf32>, vector<2x32xf32> -> vector<2x32xf32>
    %1142 = arith.addf %1138, %1141 : vector<2x32xf32>
    %c2_776 = arith.constant 2 : index
    %c6_777 = arith.constant 6 : index
    %c0_778 = arith.constant 0 : index
    %1143 = vector.load %arg16[%c2_776, %c6_777, %c0_778] : memref<4x16x32xf32, #tpu.memory_space<vmem>>, vector<1x2x32xf32>
    %1144 = vector.shape_cast %1143 : vector<1x2x32xf32> to vector<2x32xf32>
    %c2_779 = arith.constant 2 : index
    %c0_780 = arith.constant 0 : index
    %c0_781 = arith.constant 0 : index
    %1145 = vector.load %arg8[%c2_779, %c0_780, %c0_781] : memref<4x32x32xf32, #tpu.memory_space<vmem>>, vector<1x32x32xf32>
    %1146 = vector.shape_cast %1145 : vector<1x32x32xf32> to vector<32x32xf32>
    %cst_782 = arith.constant dense<0.000000e+00> : vector<2x32xf32>
    %1147 = tpu.matmul %1079, %1146, %cst_782 {dimension_numbers = #tpu.dot_dimension_numbers<[1], [0], [0], [1], [0, 0, 1, 1], [], []>} : vector<2x32xf32>, vector<32x32xf32>, vector<2x32xf32> -> vector<2x32xf32>
    %1148 = arith.addf %1144, %1147 : vector<2x32xf32>
    %c3_783 = arith.constant 3 : index
    %c6_784 = arith.constant 6 : index
    %c0_785 = arith.constant 0 : index
    %1149 = vector.load %arg16[%c3_783, %c6_784, %c0_785] : memref<4x16x32xf32, #tpu.memory_space<vmem>>, vector<1x2x32xf32>
    %1150 = vector.shape_cast %1149 : vector<1x2x32xf32> to vector<2x32xf32>
    %c3_786 = arith.constant 3 : index
    %c0_787 = arith.constant 0 : index
    %c0_788 = arith.constant 0 : index
    %1151 = vector.load %arg8[%c3_786, %c0_787, %c0_788] : memref<4x32x32xf32, #tpu.memory_space<vmem>>, vector<1x32x32xf32>
    %1152 = vector.shape_cast %1151 : vector<1x32x32xf32> to vector<32x32xf32>
    %cst_789 = arith.constant dense<0.000000e+00> : vector<2x32xf32>
    %1153 = tpu.matmul %1079, %1152, %cst_789 {dimension_numbers = #tpu.dot_dimension_numbers<[1], [0], [0], [1], [0, 0, 1, 1], [], []>} : vector<2x32xf32>, vector<32x32xf32>, vector<2x32xf32> -> vector<2x32xf32>
    %1154 = arith.addf %1150, %1153 : vector<2x32xf32>
    %1155 = arith.negf %1136 : vector<2x32xf32>
    %1156 = math.exp %1155 : vector<2x32xf32>
    %cst_790 = arith.constant 1.000000e+00 : f32
    %1157 = vector.broadcast %cst_790 : f32 to vector<2x32xf32>
    %1158 = arith.addf %1157, %1156 : vector<2x32xf32>
    %1159 = arith.divf %1157, %1158 : vector<2x32xf32>
    %1160 = arith.negf %1142 : vector<2x32xf32>
    %1161 = math.exp %1160 : vector<2x32xf32>
    %cst_791 = arith.constant 1.000000e+00 : f32
    %1162 = vector.broadcast %cst_791 : f32 to vector<2x32xf32>
    %1163 = arith.addf %1162, %1161 : vector<2x32xf32>
    %1164 = arith.divf %1162, %1163 : vector<2x32xf32>
    %1165 = math.tanh %1148 : vector<2x32xf32>
    %1166 = arith.negf %1154 : vector<2x32xf32>
    %1167 = math.exp %1166 : vector<2x32xf32>
    %cst_792 = arith.constant 1.000000e+00 : f32
    %1168 = vector.broadcast %cst_792 : f32 to vector<2x32xf32>
    %1169 = arith.addf %1168, %1167 : vector<2x32xf32>
    %1170 = arith.divf %1168, %1169 : vector<2x32xf32>
    %1171 = arith.mulf %1164, %1077 : vector<2x32xf32>
    %1172 = arith.mulf %1159, %1165 : vector<2x32xf32>
    %1173 = arith.addf %1171, %1172 : vector<2x32xf32>
    %1174 = math.tanh %1173 : vector<2x32xf32>
    %1175 = arith.mulf %1170, %1174 : vector<2x32xf32>
    %1176 = tpu.concatenate %1175, %1129 in 1 : vector<2x32xf32>, vector<2x32xf32> -> vector<2x64xf32>
    %c0_793 = arith.constant 0 : index
    %c0_794 = arith.constant 0 : index
    %c0_795 = arith.constant 0 : index
    %1177 = vector.load %arg10[%c0_793, %c0_794, %c0_795] : memref<4x64x32xf32, #tpu.memory_space<vmem>>, vector<1x64x32xf32>
    %1178 = vector.shape_cast %1177 : vector<1x64x32xf32> to vector<64x32xf32>
    %cst_796 = arith.constant dense<0.000000e+00> : vector<2x32xf32>
    %1179 = tpu.matmul %1176, %1178, %cst_796 {dimension_numbers = #tpu.dot_dimension_numbers<[1], [0], [0], [1], [0, 0, 1, 1], [], []>} : vector<2x64xf32>, vector<64x32xf32>, vector<2x32xf32> -> vector<2x32xf32>
    %c0_797 = arith.constant 0 : index
    %c0_798 = arith.constant 0 : index
    %c0_799 = arith.constant 0 : index
    %1180 = vector.load %arg11[%c0_797, %c0_798, %c0_799] : memref<4x1x32xf32, #tpu.memory_space<vmem>>, vector<1x1x32xf32>
    %1181 = vector.shape_cast %1180 : vector<1x1x32xf32> to vector<1x32xf32>
    %1182 = vector.broadcast %1181 : vector<1x32xf32> to vector<2x32xf32>
    %1183 = arith.addf %1179, %1182 : vector<2x32xf32>
    %c1_800 = arith.constant 1 : index
    %c0_801 = arith.constant 0 : index
    %c0_802 = arith.constant 0 : index
    %1184 = vector.load %arg10[%c1_800, %c0_801, %c0_802] : memref<4x64x32xf32, #tpu.memory_space<vmem>>, vector<1x64x32xf32>
    %1185 = vector.shape_cast %1184 : vector<1x64x32xf32> to vector<64x32xf32>
    %cst_803 = arith.constant dense<0.000000e+00> : vector<2x32xf32>
    %1186 = tpu.matmul %1176, %1185, %cst_803 {dimension_numbers = #tpu.dot_dimension_numbers<[1], [0], [0], [1], [0, 0, 1, 1], [], []>} : vector<2x64xf32>, vector<64x32xf32>, vector<2x32xf32> -> vector<2x32xf32>
    %c1_804 = arith.constant 1 : index
    %c0_805 = arith.constant 0 : index
    %c0_806 = arith.constant 0 : index
    %1187 = vector.load %arg11[%c1_804, %c0_805, %c0_806] : memref<4x1x32xf32, #tpu.memory_space<vmem>>, vector<1x1x32xf32>
    %1188 = vector.shape_cast %1187 : vector<1x1x32xf32> to vector<1x32xf32>
    %1189 = vector.broadcast %1188 : vector<1x32xf32> to vector<2x32xf32>
    %1190 = arith.addf %1186, %1189 : vector<2x32xf32>
    %c2_807 = arith.constant 2 : index
    %c0_808 = arith.constant 0 : index
    %c0_809 = arith.constant 0 : index
    %1191 = vector.load %arg10[%c2_807, %c0_808, %c0_809] : memref<4x64x32xf32, #tpu.memory_space<vmem>>, vector<1x64x32xf32>
    %1192 = vector.shape_cast %1191 : vector<1x64x32xf32> to vector<64x32xf32>
    %cst_810 = arith.constant dense<0.000000e+00> : vector<2x32xf32>
    %1193 = tpu.matmul %1176, %1192, %cst_810 {dimension_numbers = #tpu.dot_dimension_numbers<[1], [0], [0], [1], [0, 0, 1, 1], [], []>} : vector<2x64xf32>, vector<64x32xf32>, vector<2x32xf32> -> vector<2x32xf32>
    %c2_811 = arith.constant 2 : index
    %c0_812 = arith.constant 0 : index
    %c0_813 = arith.constant 0 : index
    %1194 = vector.load %arg11[%c2_811, %c0_812, %c0_813] : memref<4x1x32xf32, #tpu.memory_space<vmem>>, vector<1x1x32xf32>
    %1195 = vector.shape_cast %1194 : vector<1x1x32xf32> to vector<1x32xf32>
    %1196 = vector.broadcast %1195 : vector<1x32xf32> to vector<2x32xf32>
    %1197 = arith.addf %1193, %1196 : vector<2x32xf32>
    %c3_814 = arith.constant 3 : index
    %c0_815 = arith.constant 0 : index
    %c0_816 = arith.constant 0 : index
    %1198 = vector.load %arg10[%c3_814, %c0_815, %c0_816] : memref<4x64x32xf32, #tpu.memory_space<vmem>>, vector<1x64x32xf32>
    %1199 = vector.shape_cast %1198 : vector<1x64x32xf32> to vector<64x32xf32>
    %cst_817 = arith.constant dense<0.000000e+00> : vector<2x32xf32>
    %1200 = tpu.matmul %1176, %1199, %cst_817 {dimension_numbers = #tpu.dot_dimension_numbers<[1], [0], [0], [1], [0, 0, 1, 1], [], []>} : vector<2x64xf32>, vector<64x32xf32>, vector<2x32xf32> -> vector<2x32xf32>
    %c3_818 = arith.constant 3 : index
    %c0_819 = arith.constant 0 : index
    %c0_820 = arith.constant 0 : index
    %1201 = vector.load %arg11[%c3_818, %c0_819, %c0_820] : memref<4x1x32xf32, #tpu.memory_space<vmem>>, vector<1x1x32xf32>
    %1202 = vector.shape_cast %1201 : vector<1x1x32xf32> to vector<1x32xf32>
    %1203 = vector.broadcast %1202 : vector<1x32xf32> to vector<2x32xf32>
    %1204 = arith.addf %1200, %1203 : vector<2x32xf32>
    %1205 = arith.negf %1183 : vector<2x32xf32>
    %1206 = math.exp %1205 : vector<2x32xf32>
    %cst_821 = arith.constant 1.000000e+00 : f32
    %1207 = vector.broadcast %cst_821 : f32 to vector<2x32xf32>
    %1208 = arith.addf %1207, %1206 : vector<2x32xf32>
    %1209 = arith.divf %1207, %1208 : vector<2x32xf32>
    %1210 = arith.negf %1190 : vector<2x32xf32>
    %1211 = math.exp %1210 : vector<2x32xf32>
    %cst_822 = arith.constant 1.000000e+00 : f32
    %1212 = vector.broadcast %cst_822 : f32 to vector<2x32xf32>
    %1213 = arith.addf %1212, %1211 : vector<2x32xf32>
    %1214 = arith.divf %1212, %1213 : vector<2x32xf32>
    %1215 = math.tanh %1197 : vector<2x32xf32>
    %1216 = arith.negf %1204 : vector<2x32xf32>
    %1217 = math.exp %1216 : vector<2x32xf32>
    %cst_823 = arith.constant 1.000000e+00 : f32
    %1218 = vector.broadcast %cst_823 : f32 to vector<2x32xf32>
    %1219 = arith.addf %1218, %1217 : vector<2x32xf32>
    %1220 = arith.divf %1218, %1219 : vector<2x32xf32>
    %1221 = arith.mulf %1214, %1127 : vector<2x32xf32>
    %1222 = arith.mulf %1209, %1215 : vector<2x32xf32>
    %1223 = arith.addf %1221, %1222 : vector<2x32xf32>
    %1224 = math.tanh %1223 : vector<2x32xf32>
    %1225 = arith.mulf %1220, %1224 : vector<2x32xf32>
    %c6_824 = arith.constant 6 : index
    %c0_825 = arith.constant 0 : index
    %1226 = vector.load %arg17[%c6_824, %c0_825] : memref<16x32xf32, #tpu.memory_space<vmem>>, vector<2x32xf32>
    tpu.vector_store %arg17[%c6_824, %c0_825], %1225 {strides = array<i32>} : memref<16x32xf32, #tpu.memory_space<vmem>>, vector<2x32xf32>,
    %c0_826 = arith.constant 0 : index
    %c8_827 = arith.constant 8 : index
    %c0_828 = arith.constant 0 : index
    %1227 = vector.load %arg16[%c0_826, %c8_827, %c0_828] : memref<4x16x32xf32, #tpu.memory_space<vmem>>, vector<1x2x32xf32>
    %1228 = vector.shape_cast %1227 : vector<1x2x32xf32> to vector<2x32xf32>
    %c0_829 = arith.constant 0 : index
    %c0_830 = arith.constant 0 : index
    %c0_831 = arith.constant 0 : index
    %1229 = vector.load %arg8[%c0_829, %c0_830, %c0_831] : memref<4x32x32xf32, #tpu.memory_space<vmem>>, vector<1x32x32xf32>
    %1230 = vector.shape_cast %1229 : vector<1x32x32xf32> to vector<32x32xf32>
    %cst_832 = arith.constant dense<0.000000e+00> : vector<2x32xf32>
    %1231 = tpu.matmul %1175, %1230, %cst_832 {dimension_numbers = #tpu.dot_dimension_numbers<[1], [0], [0], [1], [0, 0, 1, 1], [], []>} : vector<2x32xf32>, vector<32x32xf32>, vector<2x32xf32> -> vector<2x32xf32>
    %1232 = arith.addf %1228, %1231 : vector<2x32xf32>
    %c1_833 = arith.constant 1 : index
    %c8_834 = arith.constant 8 : index
    %c0_835 = arith.constant 0 : index
    %1233 = vector.load %arg16[%c1_833, %c8_834, %c0_835] : memref<4x16x32xf32, #tpu.memory_space<vmem>>, vector<1x2x32xf32>
    %1234 = vector.shape_cast %1233 : vector<1x2x32xf32> to vector<2x32xf32>
    %c1_836 = arith.constant 1 : index
    %c0_837 = arith.constant 0 : index
    %c0_838 = arith.constant 0 : index
    %1235 = vector.load %arg8[%c1_836, %c0_837, %c0_838] : memref<4x32x32xf32, #tpu.memory_space<vmem>>, vector<1x32x32xf32>
    %1236 = vector.shape_cast %1235 : vector<1x32x32xf32> to vector<32x32xf32>
    %cst_839 = arith.constant dense<0.000000e+00> : vector<2x32xf32>
    %1237 = tpu.matmul %1175, %1236, %cst_839 {dimension_numbers = #tpu.dot_dimension_numbers<[1], [0], [0], [1], [0, 0, 1, 1], [], []>} : vector<2x32xf32>, vector<32x32xf32>, vector<2x32xf32> -> vector<2x32xf32>
    %1238 = arith.addf %1234, %1237 : vector<2x32xf32>
    %c2_840 = arith.constant 2 : index
    %c8_841 = arith.constant 8 : index
    %c0_842 = arith.constant 0 : index
    %1239 = vector.load %arg16[%c2_840, %c8_841, %c0_842] : memref<4x16x32xf32, #tpu.memory_space<vmem>>, vector<1x2x32xf32>
    %1240 = vector.shape_cast %1239 : vector<1x2x32xf32> to vector<2x32xf32>
    %c2_843 = arith.constant 2 : index
    %c0_844 = arith.constant 0 : index
    %c0_845 = arith.constant 0 : index
    %1241 = vector.load %arg8[%c2_843, %c0_844, %c0_845] : memref<4x32x32xf32, #tpu.memory_space<vmem>>, vector<1x32x32xf32>
    %1242 = vector.shape_cast %1241 : vector<1x32x32xf32> to vector<32x32xf32>
    %cst_846 = arith.constant dense<0.000000e+00> : vector<2x32xf32>
    %1243 = tpu.matmul %1175, %1242, %cst_846 {dimension_numbers = #tpu.dot_dimension_numbers<[1], [0], [0], [1], [0, 0, 1, 1], [], []>} : vector<2x32xf32>, vector<32x32xf32>, vector<2x32xf32> -> vector<2x32xf32>
    %1244 = arith.addf %1240, %1243 : vector<2x32xf32>
    %c3_847 = arith.constant 3 : index
    %c8_848 = arith.constant 8 : index
    %c0_849 = arith.constant 0 : index
    %1245 = vector.load %arg16[%c3_847, %c8_848, %c0_849] : memref<4x16x32xf32, #tpu.memory_space<vmem>>, vector<1x2x32xf32>
    %1246 = vector.shape_cast %1245 : vector<1x2x32xf32> to vector<2x32xf32>
    %c3_850 = arith.constant 3 : index
    %c0_851 = arith.constant 0 : index
    %c0_852 = arith.constant 0 : index
    %1247 = vector.load %arg8[%c3_850, %c0_851, %c0_852] : memref<4x32x32xf32, #tpu.memory_space<vmem>>, vector<1x32x32xf32>
    %1248 = vector.shape_cast %1247 : vector<1x32x32xf32> to vector<32x32xf32>
    %cst_853 = arith.constant dense<0.000000e+00> : vector<2x32xf32>
    %1249 = tpu.matmul %1175, %1248, %cst_853 {dimension_numbers = #tpu.dot_dimension_numbers<[1], [0], [0], [1], [0, 0, 1, 1], [], []>} : vector<2x32xf32>, vector<32x32xf32>, vector<2x32xf32> -> vector<2x32xf32>
    %1250 = arith.addf %1246, %1249 : vector<2x32xf32>
    %1251 = arith.negf %1232 : vector<2x32xf32>
    %1252 = math.exp %1251 : vector<2x32xf32>
    %cst_854 = arith.constant 1.000000e+00 : f32
    %1253 = vector.broadcast %cst_854 : f32 to vector<2x32xf32>
    %1254 = arith.addf %1253, %1252 : vector<2x32xf32>
    %1255 = arith.divf %1253, %1254 : vector<2x32xf32>
    %1256 = arith.negf %1238 : vector<2x32xf32>
    %1257 = math.exp %1256 : vector<2x32xf32>
    %cst_855 = arith.constant 1.000000e+00 : f32
    %1258 = vector.broadcast %cst_855 : f32 to vector<2x32xf32>
    %1259 = arith.addf %1258, %1257 : vector<2x32xf32>
    %1260 = arith.divf %1258, %1259 : vector<2x32xf32>
    %1261 = math.tanh %1244 : vector<2x32xf32>
    %1262 = arith.negf %1250 : vector<2x32xf32>
    %1263 = math.exp %1262 : vector<2x32xf32>
    %cst_856 = arith.constant 1.000000e+00 : f32
    %1264 = vector.broadcast %cst_856 : f32 to vector<2x32xf32>
    %1265 = arith.addf %1264, %1263 : vector<2x32xf32>
    %1266 = arith.divf %1264, %1265 : vector<2x32xf32>
    %1267 = arith.mulf %1260, %1173 : vector<2x32xf32>
    %1268 = arith.mulf %1255, %1261 : vector<2x32xf32>
    %1269 = arith.addf %1267, %1268 : vector<2x32xf32>
    %1270 = math.tanh %1269 : vector<2x32xf32>
    %1271 = arith.mulf %1266, %1270 : vector<2x32xf32>
    %1272 = tpu.concatenate %1271, %1225 in 1 : vector<2x32xf32>, vector<2x32xf32> -> vector<2x64xf32>
    %c0_857 = arith.constant 0 : index
    %c0_858 = arith.constant 0 : index
    %c0_859 = arith.constant 0 : index
    %1273 = vector.load %arg10[%c0_857, %c0_858, %c0_859] : memref<4x64x32xf32, #tpu.memory_space<vmem>>, vector<1x64x32xf32>
    %1274 = vector.shape_cast %1273 : vector<1x64x32xf32> to vector<64x32xf32>
    %cst_860 = arith.constant dense<0.000000e+00> : vector<2x32xf32>
    %1275 = tpu.matmul %1272, %1274, %cst_860 {dimension_numbers = #tpu.dot_dimension_numbers<[1], [0], [0], [1], [0, 0, 1, 1], [], []>} : vector<2x64xf32>, vector<64x32xf32>, vector<2x32xf32> -> vector<2x32xf32>
    %c0_861 = arith.constant 0 : index
    %c0_862 = arith.constant 0 : index
    %c0_863 = arith.constant 0 : index
    %1276 = vector.load %arg11[%c0_861, %c0_862, %c0_863] : memref<4x1x32xf32, #tpu.memory_space<vmem>>, vector<1x1x32xf32>
    %1277 = vector.shape_cast %1276 : vector<1x1x32xf32> to vector<1x32xf32>
    %1278 = vector.broadcast %1277 : vector<1x32xf32> to vector<2x32xf32>
    %1279 = arith.addf %1275, %1278 : vector<2x32xf32>
    %c1_864 = arith.constant 1 : index
    %c0_865 = arith.constant 0 : index
    %c0_866 = arith.constant 0 : index
    %1280 = vector.load %arg10[%c1_864, %c0_865, %c0_866] : memref<4x64x32xf32, #tpu.memory_space<vmem>>, vector<1x64x32xf32>
    %1281 = vector.shape_cast %1280 : vector<1x64x32xf32> to vector<64x32xf32>
    %cst_867 = arith.constant dense<0.000000e+00> : vector<2x32xf32>
    %1282 = tpu.matmul %1272, %1281, %cst_867 {dimension_numbers = #tpu.dot_dimension_numbers<[1], [0], [0], [1], [0, 0, 1, 1], [], []>} : vector<2x64xf32>, vector<64x32xf32>, vector<2x32xf32> -> vector<2x32xf32>
    %c1_868 = arith.constant 1 : index
    %c0_869 = arith.constant 0 : index
    %c0_870 = arith.constant 0 : index
    %1283 = vector.load %arg11[%c1_868, %c0_869, %c0_870] : memref<4x1x32xf32, #tpu.memory_space<vmem>>, vector<1x1x32xf32>
    %1284 = vector.shape_cast %1283 : vector<1x1x32xf32> to vector<1x32xf32>
    %1285 = vector.broadcast %1284 : vector<1x32xf32> to vector<2x32xf32>
    %1286 = arith.addf %1282, %1285 : vector<2x32xf32>
    %c2_871 = arith.constant 2 : index
    %c0_872 = arith.constant 0 : index
    %c0_873 = arith.constant 0 : index
    %1287 = vector.load %arg10[%c2_871, %c0_872, %c0_873] : memref<4x64x32xf32, #tpu.memory_space<vmem>>, vector<1x64x32xf32>
    %1288 = vector.shape_cast %1287 : vector<1x64x32xf32> to vector<64x32xf32>
    %cst_874 = arith.constant dense<0.000000e+00> : vector<2x32xf32>
    %1289 = tpu.matmul %1272, %1288, %cst_874 {dimension_numbers = #tpu.dot_dimension_numbers<[1], [0], [0], [1], [0, 0, 1, 1], [], []>} : vector<2x64xf32>, vector<64x32xf32>, vector<2x32xf32> -> vector<2x32xf32>
    %c2_875 = arith.constant 2 : index
    %c0_876 = arith.constant 0 : index
    %c0_877 = arith.constant 0 : index
    %1290 = vector.load %arg11[%c2_875, %c0_876, %c0_877] : memref<4x1x32xf32, #tpu.memory_space<vmem>>, vector<1x1x32xf32>
    %1291 = vector.shape_cast %1290 : vector<1x1x32xf32> to vector<1x32xf32>
    %1292 = vector.broadcast %1291 : vector<1x32xf32> to vector<2x32xf32>
    %1293 = arith.addf %1289, %1292 : vector<2x32xf32>
    %c3_878 = arith.constant 3 : index
    %c0_879 = arith.constant 0 : index
    %c0_880 = arith.constant 0 : index
    %1294 = vector.load %arg10[%c3_878, %c0_879, %c0_880] : memref<4x64x32xf32, #tpu.memory_space<vmem>>, vector<1x64x32xf32>
    %1295 = vector.shape_cast %1294 : vector<1x64x32xf32> to vector<64x32xf32>
    %cst_881 = arith.constant dense<0.000000e+00> : vector<2x32xf32>
    %1296 = tpu.matmul %1272, %1295, %cst_881 {dimension_numbers = #tpu.dot_dimension_numbers<[1], [0], [0], [1], [0, 0, 1, 1], [], []>} : vector<2x64xf32>, vector<64x32xf32>, vector<2x32xf32> -> vector<2x32xf32>
    %c3_882 = arith.constant 3 : index
    %c0_883 = arith.constant 0 : index
    %c0_884 = arith.constant 0 : index
    %1297 = vector.load %arg11[%c3_882, %c0_883, %c0_884] : memref<4x1x32xf32, #tpu.memory_space<vmem>>, vector<1x1x32xf32>
    %1298 = vector.shape_cast %1297 : vector<1x1x32xf32> to vector<1x32xf32>
    %1299 = vector.broadcast %1298 : vector<1x32xf32> to vector<2x32xf32>
    %1300 = arith.addf %1296, %1299 : vector<2x32xf32>
    %1301 = arith.negf %1279 : vector<2x32xf32>
    %1302 = math.exp %1301 : vector<2x32xf32>
    %cst_885 = arith.constant 1.000000e+00 : f32
    %1303 = vector.broadcast %cst_885 : f32 to vector<2x32xf32>
    %1304 = arith.addf %1303, %1302 : vector<2x32xf32>
    %1305 = arith.divf %1303, %1304 : vector<2x32xf32>
    %1306 = arith.negf %1286 : vector<2x32xf32>
    %1307 = math.exp %1306 : vector<2x32xf32>
    %cst_886 = arith.constant 1.000000e+00 : f32
    %1308 = vector.broadcast %cst_886 : f32 to vector<2x32xf32>
    %1309 = arith.addf %1308, %1307 : vector<2x32xf32>
    %1310 = arith.divf %1308, %1309 : vector<2x32xf32>
    %1311 = math.tanh %1293 : vector<2x32xf32>
    %1312 = arith.negf %1300 : vector<2x32xf32>
    %1313 = math.exp %1312 : vector<2x32xf32>
    %cst_887 = arith.constant 1.000000e+00 : f32
    %1314 = vector.broadcast %cst_887 : f32 to vector<2x32xf32>
    %1315 = arith.addf %1314, %1313 : vector<2x32xf32>
    %1316 = arith.divf %1314, %1315 : vector<2x32xf32>
    %1317 = arith.mulf %1310, %1223 : vector<2x32xf32>
    %1318 = arith.mulf %1305, %1311 : vector<2x32xf32>
    %1319 = arith.addf %1317, %1318 : vector<2x32xf32>
    %1320 = math.tanh %1319 : vector<2x32xf32>
    %1321 = arith.mulf %1316, %1320 : vector<2x32xf32>
    %c8_888 = arith.constant 8 : index
    %c0_889 = arith.constant 0 : index
    %1322 = vector.load %arg17[%c8_888, %c0_889] : memref<16x32xf32, #tpu.memory_space<vmem>>, vector<2x32xf32>
    tpu.vector_store %arg17[%c8_888, %c0_889], %1321 {strides = array<i32>} : memref<16x32xf32, #tpu.memory_space<vmem>>, vector<2x32xf32>,
    %c0_890 = arith.constant 0 : index
    %c10_891 = arith.constant 10 : index
    %c0_892 = arith.constant 0 : index
    %1323 = vector.load %arg16[%c0_890, %c10_891, %c0_892] : memref<4x16x32xf32, #tpu.memory_space<vmem>>, vector<1x2x32xf32>
    %1324 = vector.shape_cast %1323 : vector<1x2x32xf32> to vector<2x32xf32>
    %c0_893 = arith.constant 0 : index
    %c0_894 = arith.constant 0 : index
    %c0_895 = arith.constant 0 : index
    %1325 = vector.load %arg8[%c0_893, %c0_894, %c0_895] : memref<4x32x32xf32, #tpu.memory_space<vmem>>, vector<1x32x32xf32>
    %1326 = vector.shape_cast %1325 : vector<1x32x32xf32> to vector<32x32xf32>
    %cst_896 = arith.constant dense<0.000000e+00> : vector<2x32xf32>
    %1327 = tpu.matmul %1271, %1326, %cst_896 {dimension_numbers = #tpu.dot_dimension_numbers<[1], [0], [0], [1], [0, 0, 1, 1], [], []>} : vector<2x32xf32>, vector<32x32xf32>, vector<2x32xf32> -> vector<2x32xf32>
    %1328 = arith.addf %1324, %1327 : vector<2x32xf32>
    %c1_897 = arith.constant 1 : index
    %c10_898 = arith.constant 10 : index
    %c0_899 = arith.constant 0 : index
    %1329 = vector.load %arg16[%c1_897, %c10_898, %c0_899] : memref<4x16x32xf32, #tpu.memory_space<vmem>>, vector<1x2x32xf32>
    %1330 = vector.shape_cast %1329 : vector<1x2x32xf32> to vector<2x32xf32>
    %c1_900 = arith.constant 1 : index
    %c0_901 = arith.constant 0 : index
    %c0_902 = arith.constant 0 : index
    %1331 = vector.load %arg8[%c1_900, %c0_901, %c0_902] : memref<4x32x32xf32, #tpu.memory_space<vmem>>, vector<1x32x32xf32>
    %1332 = vector.shape_cast %1331 : vector<1x32x32xf32> to vector<32x32xf32>
    %cst_903 = arith.constant dense<0.000000e+00> : vector<2x32xf32>
    %1333 = tpu.matmul %1271, %1332, %cst_903 {dimension_numbers = #tpu.dot_dimension_numbers<[1], [0], [0], [1], [0, 0, 1, 1], [], []>} : vector<2x32xf32>, vector<32x32xf32>, vector<2x32xf32> -> vector<2x32xf32>
    %1334 = arith.addf %1330, %1333 : vector<2x32xf32>
    %c2_904 = arith.constant 2 : index
    %c10_905 = arith.constant 10 : index
    %c0_906 = arith.constant 0 : index
    %1335 = vector.load %arg16[%c2_904, %c10_905, %c0_906] : memref<4x16x32xf32, #tpu.memory_space<vmem>>, vector<1x2x32xf32>
    %1336 = vector.shape_cast %1335 : vector<1x2x32xf32> to vector<2x32xf32>
    %c2_907 = arith.constant 2 : index
    %c0_908 = arith.constant 0 : index
    %c0_909 = arith.constant 0 : index
    %1337 = vector.load %arg8[%c2_907, %c0_908, %c0_909] : memref<4x32x32xf32, #tpu.memory_space<vmem>>, vector<1x32x32xf32>
    %1338 = vector.shape_cast %1337 : vector<1x32x32xf32> to vector<32x32xf32>
    %cst_910 = arith.constant dense<0.000000e+00> : vector<2x32xf32>
    %1339 = tpu.matmul %1271, %1338, %cst_910 {dimension_numbers = #tpu.dot_dimension_numbers<[1], [0], [0], [1], [0, 0, 1, 1], [], []>} : vector<2x32xf32>, vector<32x32xf32>, vector<2x32xf32> -> vector<2x32xf32>
    %1340 = arith.addf %1336, %1339 : vector<2x32xf32>
    %c3_911 = arith.constant 3 : index
    %c10_912 = arith.constant 10 : index
    %c0_913 = arith.constant 0 : index
    %1341 = vector.load %arg16[%c3_911, %c10_912, %c0_913] : memref<4x16x32xf32, #tpu.memory_space<vmem>>, vector<1x2x32xf32>
    %1342 = vector.shape_cast %1341 : vector<1x2x32xf32> to vector<2x32xf32>
    %c3_914 = arith.constant 3 : index
    %c0_915 = arith.constant 0 : index
    %c0_916 = arith.constant 0 : index
    %1343 = vector.load %arg8[%c3_914, %c0_915, %c0_916] : memref<4x32x32xf32, #tpu.memory_space<vmem>>, vector<1x32x32xf32>
    %1344 = vector.shape_cast %1343 : vector<1x32x32xf32> to vector<32x32xf32>
    %cst_917 = arith.constant dense<0.000000e+00> : vector<2x32xf32>
    %1345 = tpu.matmul %1271, %1344, %cst_917 {dimension_numbers = #tpu.dot_dimension_numbers<[1], [0], [0], [1], [0, 0, 1, 1], [], []>} : vector<2x32xf32>, vector<32x32xf32>, vector<2x32xf32> -> vector<2x32xf32>
    %1346 = arith.addf %1342, %1345 : vector<2x32xf32>
    %1347 = arith.negf %1328 : vector<2x32xf32>
    %1348 = math.exp %1347 : vector<2x32xf32>
    %cst_918 = arith.constant 1.000000e+00 : f32
    %1349 = vector.broadcast %cst_918 : f32 to vector<2x32xf32>
    %1350 = arith.addf %1349, %1348 : vector<2x32xf32>
    %1351 = arith.divf %1349, %1350 : vector<2x32xf32>
    %1352 = arith.negf %1334 : vector<2x32xf32>
    %1353 = math.exp %1352 : vector<2x32xf32>
    %cst_919 = arith.constant 1.000000e+00 : f32
    %1354 = vector.broadcast %cst_919 : f32 to vector<2x32xf32>
    %1355 = arith.addf %1354, %1353 : vector<2x32xf32>
    %1356 = arith.divf %1354, %1355 : vector<2x32xf32>
    %1357 = math.tanh %1340 : vector<2x32xf32>
    %1358 = arith.negf %1346 : vector<2x32xf32>
    %1359 = math.exp %1358 : vector<2x32xf32>
    %cst_920 = arith.constant 1.000000e+00 : f32
    %1360 = vector.broadcast %cst_920 : f32 to vector<2x32xf32>
    %1361 = arith.addf %1360, %1359 : vector<2x32xf32>
    %1362 = arith.divf %1360, %1361 : vector<2x32xf32>
    %1363 = arith.mulf %1356, %1269 : vector<2x32xf32>
    %1364 = arith.mulf %1351, %1357 : vector<2x32xf32>
    %1365 = arith.addf %1363, %1364 : vector<2x32xf32>
    %1366 = math.tanh %1365 : vector<2x32xf32>
    %1367 = arith.mulf %1362, %1366 : vector<2x32xf32>
    %1368 = tpu.concatenate %1367, %1321 in 1 : vector<2x32xf32>, vector<2x32xf32> -> vector<2x64xf32>
    %c0_921 = arith.constant 0 : index
    %c0_922 = arith.constant 0 : index
    %c0_923 = arith.constant 0 : index
    %1369 = vector.load %arg10[%c0_921, %c0_922, %c0_923] : memref<4x64x32xf32, #tpu.memory_space<vmem>>, vector<1x64x32xf32>
    %1370 = vector.shape_cast %1369 : vector<1x64x32xf32> to vector<64x32xf32>
    %cst_924 = arith.constant dense<0.000000e+00> : vector<2x32xf32>
    %1371 = tpu.matmul %1368, %1370, %cst_924 {dimension_numbers = #tpu.dot_dimension_numbers<[1], [0], [0], [1], [0, 0, 1, 1], [], []>} : vector<2x64xf32>, vector<64x32xf32>, vector<2x32xf32> -> vector<2x32xf32>
    %c0_925 = arith.constant 0 : index
    %c0_926 = arith.constant 0 : index
    %c0_927 = arith.constant 0 : index
    %1372 = vector.load %arg11[%c0_925, %c0_926, %c0_927] : memref<4x1x32xf32, #tpu.memory_space<vmem>>, vector<1x1x32xf32>
    %1373 = vector.shape_cast %1372 : vector<1x1x32xf32> to vector<1x32xf32>
    %1374 = vector.broadcast %1373 : vector<1x32xf32> to vector<2x32xf32>
    %1375 = arith.addf %1371, %1374 : vector<2x32xf32>
    %c1_928 = arith.constant 1 : index
    %c0_929 = arith.constant 0 : index
    %c0_930 = arith.constant 0 : index
    %1376 = vector.load %arg10[%c1_928, %c0_929, %c0_930] : memref<4x64x32xf32, #tpu.memory_space<vmem>>, vector<1x64x32xf32>
    %1377 = vector.shape_cast %1376 : vector<1x64x32xf32> to vector<64x32xf32>
    %cst_931 = arith.constant dense<0.000000e+00> : vector<2x32xf32>
    %1378 = tpu.matmul %1368, %1377, %cst_931 {dimension_numbers = #tpu.dot_dimension_numbers<[1], [0], [0], [1], [0, 0, 1, 1], [], []>} : vector<2x64xf32>, vector<64x32xf32>, vector<2x32xf32> -> vector<2x32xf32>
    %c1_932 = arith.constant 1 : index
    %c0_933 = arith.constant 0 : index
    %c0_934 = arith.constant 0 : index
    %1379 = vector.load %arg11[%c1_932, %c0_933, %c0_934] : memref<4x1x32xf32, #tpu.memory_space<vmem>>, vector<1x1x32xf32>
    %1380 = vector.shape_cast %1379 : vector<1x1x32xf32> to vector<1x32xf32>
    %1381 = vector.broadcast %1380 : vector<1x32xf32> to vector<2x32xf32>
    %1382 = arith.addf %1378, %1381 : vector<2x32xf32>
    %c2_935 = arith.constant 2 : index
    %c0_936 = arith.constant 0 : index
    %c0_937 = arith.constant 0 : index
    %1383 = vector.load %arg10[%c2_935, %c0_936, %c0_937] : memref<4x64x32xf32, #tpu.memory_space<vmem>>, vector<1x64x32xf32>
    %1384 = vector.shape_cast %1383 : vector<1x64x32xf32> to vector<64x32xf32>
    %cst_938 = arith.constant dense<0.000000e+00> : vector<2x32xf32>
    %1385 = tpu.matmul %1368, %1384, %cst_938 {dimension_numbers = #tpu.dot_dimension_numbers<[1], [0], [0], [1], [0, 0, 1, 1], [], []>} : vector<2x64xf32>, vector<64x32xf32>, vector<2x32xf32> -> vector<2x32xf32>
    %c2_939 = arith.constant 2 : index
    %c0_940 = arith.constant 0 : index
    %c0_941 = arith.constant 0 : index
    %1386 = vector.load %arg11[%c2_939, %c0_940, %c0_941] : memref<4x1x32xf32, #tpu.memory_space<vmem>>, vector<1x1x32xf32>
    %1387 = vector.shape_cast %1386 : vector<1x1x32xf32> to vector<1x32xf32>
    %1388 = vector.broadcast %1387 : vector<1x32xf32> to vector<2x32xf32>
    %1389 = arith.addf %1385, %1388 : vector<2x32xf32>
    %c3_942 = arith.constant 3 : index
    %c0_943 = arith.constant 0 : index
    %c0_944 = arith.constant 0 : index
    %1390 = vector.load %arg10[%c3_942, %c0_943, %c0_944] : memref<4x64x32xf32, #tpu.memory_space<vmem>>, vector<1x64x32xf32>
    %1391 = vector.shape_cast %1390 : vector<1x64x32xf32> to vector<64x32xf32>
    %cst_945 = arith.constant dense<0.000000e+00> : vector<2x32xf32>
    %1392 = tpu.matmul %1368, %1391, %cst_945 {dimension_numbers = #tpu.dot_dimension_numbers<[1], [0], [0], [1], [0, 0, 1, 1], [], []>} : vector<2x64xf32>, vector<64x32xf32>, vector<2x32xf32> -> vector<2x32xf32>
    %c3_946 = arith.constant 3 : index
    %c0_947 = arith.constant 0 : index
    %c0_948 = arith.constant 0 : index
    %1393 = vector.load %arg11[%c3_946, %c0_947, %c0_948] : memref<4x1x32xf32, #tpu.memory_space<vmem>>, vector<1x1x32xf32>
    %1394 = vector.shape_cast %1393 : vector<1x1x32xf32> to vector<1x32xf32>
    %1395 = vector.broadcast %1394 : vector<1x32xf32> to vector<2x32xf32>
    %1396 = arith.addf %1392, %1395 : vector<2x32xf32>
    %1397 = arith.negf %1375 : vector<2x32xf32>
    %1398 = math.exp %1397 : vector<2x32xf32>
    %cst_949 = arith.constant 1.000000e+00 : f32
    %1399 = vector.broadcast %cst_949 : f32 to vector<2x32xf32>
    %1400 = arith.addf %1399, %1398 : vector<2x32xf32>
    %1401 = arith.divf %1399, %1400 : vector<2x32xf32>
    %1402 = arith.negf %1382 : vector<2x32xf32>
    %1403 = math.exp %1402 : vector<2x32xf32>
    %cst_950 = arith.constant 1.000000e+00 : f32
    %1404 = vector.broadcast %cst_950 : f32 to vector<2x32xf32>
    %1405 = arith.addf %1404, %1403 : vector<2x32xf32>
    %1406 = arith.divf %1404, %1405 : vector<2x32xf32>
    %1407 = math.tanh %1389 : vector<2x32xf32>
    %1408 = arith.negf %1396 : vector<2x32xf32>
    %1409 = math.exp %1408 : vector<2x32xf32>
    %cst_951 = arith.constant 1.000000e+00 : f32
    %1410 = vector.broadcast %cst_951 : f32 to vector<2x32xf32>
    %1411 = arith.addf %1410, %1409 : vector<2x32xf32>
    %1412 = arith.divf %1410, %1411 : vector<2x32xf32>
    %1413 = arith.mulf %1406, %1319 : vector<2x32xf32>
    %1414 = arith.mulf %1401, %1407 : vector<2x32xf32>
    %1415 = arith.addf %1413, %1414 : vector<2x32xf32>
    %1416 = math.tanh %1415 : vector<2x32xf32>
    %1417 = arith.mulf %1412, %1416 : vector<2x32xf32>
    %c10_952 = arith.constant 10 : index
    %c0_953 = arith.constant 0 : index
    %1418 = vector.load %arg17[%c10_952, %c0_953] : memref<16x32xf32, #tpu.memory_space<vmem>>, vector<2x32xf32>
    tpu.vector_store %arg17[%c10_952, %c0_953], %1417 {strides = array<i32>} : memref<16x32xf32, #tpu.memory_space<vmem>>, vector<2x32xf32>,
    %c0_954 = arith.constant 0 : index
    %c12_955 = arith.constant 12 : index
    %c0_956 = arith.constant 0 : index
    %1419 = vector.load %arg16[%c0_954, %c12_955, %c0_956] : memref<4x16x32xf32, #tpu.memory_space<vmem>>, vector<1x2x32xf32>
    %1420 = vector.shape_cast %1419 : vector<1x2x32xf32> to vector<2x32xf32>
    %c0_957 = arith.constant 0 : index
    %c0_958 = arith.constant 0 : index
    %c0_959 = arith.constant 0 : index
    %1421 = vector.load %arg8[%c0_957, %c0_958, %c0_959] : memref<4x32x32xf32, #tpu.memory_space<vmem>>, vector<1x32x32xf32>
    %1422 = vector.shape_cast %1421 : vector<1x32x32xf32> to vector<32x32xf32>
    %cst_960 = arith.constant dense<0.000000e+00> : vector<2x32xf32>
    %1423 = tpu.matmul %1367, %1422, %cst_960 {dimension_numbers = #tpu.dot_dimension_numbers<[1], [0], [0], [1], [0, 0, 1, 1], [], []>} : vector<2x32xf32>, vector<32x32xf32>, vector<2x32xf32> -> vector<2x32xf32>
    %1424 = arith.addf %1420, %1423 : vector<2x32xf32>
    %c1_961 = arith.constant 1 : index
    %c12_962 = arith.constant 12 : index
    %c0_963 = arith.constant 0 : index
    %1425 = vector.load %arg16[%c1_961, %c12_962, %c0_963] : memref<4x16x32xf32, #tpu.memory_space<vmem>>, vector<1x2x32xf32>
    %1426 = vector.shape_cast %1425 : vector<1x2x32xf32> to vector<2x32xf32>
    %c1_964 = arith.constant 1 : index
    %c0_965 = arith.constant 0 : index
    %c0_966 = arith.constant 0 : index
    %1427 = vector.load %arg8[%c1_964, %c0_965, %c0_966] : memref<4x32x32xf32, #tpu.memory_space<vmem>>, vector<1x32x32xf32>
    %1428 = vector.shape_cast %1427 : vector<1x32x32xf32> to vector<32x32xf32>
    %cst_967 = arith.constant dense<0.000000e+00> : vector<2x32xf32>
    %1429 = tpu.matmul %1367, %1428, %cst_967 {dimension_numbers = #tpu.dot_dimension_numbers<[1], [0], [0], [1], [0, 0, 1, 1], [], []>} : vector<2x32xf32>, vector<32x32xf32>, vector<2x32xf32> -> vector<2x32xf32>
    %1430 = arith.addf %1426, %1429 : vector<2x32xf32>
    %c2_968 = arith.constant 2 : index
    %c12_969 = arith.constant 12 : index
    %c0_970 = arith.constant 0 : index
    %1431 = vector.load %arg16[%c2_968, %c12_969, %c0_970] : memref<4x16x32xf32, #tpu.memory_space<vmem>>, vector<1x2x32xf32>
    %1432 = vector.shape_cast %1431 : vector<1x2x32xf32> to vector<2x32xf32>
    %c2_971 = arith.constant 2 : index
    %c0_972 = arith.constant 0 : index
    %c0_973 = arith.constant 0 : index
    %1433 = vector.load %arg8[%c2_971, %c0_972, %c0_973] : memref<4x32x32xf32, #tpu.memory_space<vmem>>, vector<1x32x32xf32>
    %1434 = vector.shape_cast %1433 : vector<1x32x32xf32> to vector<32x32xf32>
    %cst_974 = arith.constant dense<0.000000e+00> : vector<2x32xf32>
    %1435 = tpu.matmul %1367, %1434, %cst_974 {dimension_numbers = #tpu.dot_dimension_numbers<[1], [0], [0], [1], [0, 0, 1, 1], [], []>} : vector<2x32xf32>, vector<32x32xf32>, vector<2x32xf32> -> vector<2x32xf32>
    %1436 = arith.addf %1432, %1435 : vector<2x32xf32>
    %c3_975 = arith.constant 3 : index
    %c12_976 = arith.constant 12 : index
    %c0_977 = arith.constant 0 : index
    %1437 = vector.load %arg16[%c3_975, %c12_976, %c0_977] : memref<4x16x32xf32, #tpu.memory_space<vmem>>, vector<1x2x32xf32>
    %1438 = vector.shape_cast %1437 : vector<1x2x32xf32> to vector<2x32xf32>
    %c3_978 = arith.constant 3 : index
    %c0_979 = arith.constant 0 : index
    %c0_980 = arith.constant 0 : index
    %1439 = vector.load %arg8[%c3_978, %c0_979, %c0_980] : memref<4x32x32xf32, #tpu.memory_space<vmem>>, vector<1x32x32xf32>
    %1440 = vector.shape_cast %1439 : vector<1x32x32xf32> to vector<32x32xf32>
    %cst_981 = arith.constant dense<0.000000e+00> : vector<2x32xf32>
    %1441 = tpu.matmul %1367, %1440, %cst_981 {dimension_numbers = #tpu.dot_dimension_numbers<[1], [0], [0], [1], [0, 0, 1, 1], [], []>} : vector<2x32xf32>, vector<32x32xf32>, vector<2x32xf32> -> vector<2x32xf32>
    %1442 = arith.addf %1438, %1441 : vector<2x32xf32>
    %1443 = arith.negf %1424 : vector<2x32xf32>
    %1444 = math.exp %1443 : vector<2x32xf32>
    %cst_982 = arith.constant 1.000000e+00 : f32
    %1445 = vector.broadcast %cst_982 : f32 to vector<2x32xf32>
    %1446 = arith.addf %1445, %1444 : vector<2x32xf32>
    %1447 = arith.divf %1445, %1446 : vector<2x32xf32>
    %1448 = arith.negf %1430 : vector<2x32xf32>
    %1449 = math.exp %1448 : vector<2x32xf32>
    %cst_983 = arith.constant 1.000000e+00 : f32
    %1450 = vector.broadcast %cst_983 : f32 to vector<2x32xf32>
    %1451 = arith.addf %1450, %1449 : vector<2x32xf32>
    %1452 = arith.divf %1450, %1451 : vector<2x32xf32>
    %1453 = math.tanh %1436 : vector<2x32xf32>
    %1454 = arith.negf %1442 : vector<2x32xf32>
    %1455 = math.exp %1454 : vector<2x32xf32>
    %cst_984 = arith.constant 1.000000e+00 : f32
    %1456 = vector.broadcast %cst_984 : f32 to vector<2x32xf32>
    %1457 = arith.addf %1456, %1455 : vector<2x32xf32>
    %1458 = arith.divf %1456, %1457 : vector<2x32xf32>
    %1459 = arith.mulf %1452, %1365 : vector<2x32xf32>
    %1460 = arith.mulf %1447, %1453 : vector<2x32xf32>
    %1461 = arith.addf %1459, %1460 : vector<2x32xf32>
    %1462 = math.tanh %1461 : vector<2x32xf32>
    %1463 = arith.mulf %1458, %1462 : vector<2x32xf32>
    %1464 = tpu.concatenate %1463, %1417 in 1 : vector<2x32xf32>, vector<2x32xf32> -> vector<2x64xf32>
    %c0_985 = arith.constant 0 : index
    %c0_986 = arith.constant 0 : index
    %c0_987 = arith.constant 0 : index
    %1465 = vector.load %arg10[%c0_985, %c0_986, %c0_987] : memref<4x64x32xf32, #tpu.memory_space<vmem>>, vector<1x64x32xf32>
    %1466 = vector.shape_cast %1465 : vector<1x64x32xf32> to vector<64x32xf32>
    %cst_988 = arith.constant dense<0.000000e+00> : vector<2x32xf32>
    %1467 = tpu.matmul %1464, %1466, %cst_988 {dimension_numbers = #tpu.dot_dimension_numbers<[1], [0], [0], [1], [0, 0, 1, 1], [], []>} : vector<2x64xf32>, vector<64x32xf32>, vector<2x32xf32> -> vector<2x32xf32>
    %c0_989 = arith.constant 0 : index
    %c0_990 = arith.constant 0 : index
    %c0_991 = arith.constant 0 : index
    %1468 = vector.load %arg11[%c0_989, %c0_990, %c0_991] : memref<4x1x32xf32, #tpu.memory_space<vmem>>, vector<1x1x32xf32>
    %1469 = vector.shape_cast %1468 : vector<1x1x32xf32> to vector<1x32xf32>
    %1470 = vector.broadcast %1469 : vector<1x32xf32> to vector<2x32xf32>
    %1471 = arith.addf %1467, %1470 : vector<2x32xf32>
    %c1_992 = arith.constant 1 : index
    %c0_993 = arith.constant 0 : index
    %c0_994 = arith.constant 0 : index
    %1472 = vector.load %arg10[%c1_992, %c0_993, %c0_994] : memref<4x64x32xf32, #tpu.memory_space<vmem>>, vector<1x64x32xf32>
    %1473 = vector.shape_cast %1472 : vector<1x64x32xf32> to vector<64x32xf32>
    %cst_995 = arith.constant dense<0.000000e+00> : vector<2x32xf32>
    %1474 = tpu.matmul %1464, %1473, %cst_995 {dimension_numbers = #tpu.dot_dimension_numbers<[1], [0], [0], [1], [0, 0, 1, 1], [], []>} : vector<2x64xf32>, vector<64x32xf32>, vector<2x32xf32> -> vector<2x32xf32>
    %c1_996 = arith.constant 1 : index
    %c0_997 = arith.constant 0 : index
    %c0_998 = arith.constant 0 : index
    %1475 = vector.load %arg11[%c1_996, %c0_997, %c0_998] : memref<4x1x32xf32, #tpu.memory_space<vmem>>, vector<1x1x32xf32>
    %1476 = vector.shape_cast %1475 : vector<1x1x32xf32> to vector<1x32xf32>
    %1477 = vector.broadcast %1476 : vector<1x32xf32> to vector<2x32xf32>
    %1478 = arith.addf %1474, %1477 : vector<2x32xf32>
    %c2_999 = arith.constant 2 : index
    %c0_1000 = arith.constant 0 : index
    %c0_1001 = arith.constant 0 : index
    %1479 = vector.load %arg10[%c2_999, %c0_1000, %c0_1001] : memref<4x64x32xf32, #tpu.memory_space<vmem>>, vector<1x64x32xf32>
    %1480 = vector.shape_cast %1479 : vector<1x64x32xf32> to vector<64x32xf32>
    %cst_1002 = arith.constant dense<0.000000e+00> : vector<2x32xf32>
    %1481 = tpu.matmul %1464, %1480, %cst_1002 {dimension_numbers = #tpu.dot_dimension_numbers<[1], [0], [0], [1], [0, 0, 1, 1], [], []>} : vector<2x64xf32>, vector<64x32xf32>, vector<2x32xf32> -> vector<2x32xf32>
    %c2_1003 = arith.constant 2 : index
    %c0_1004 = arith.constant 0 : index
    %c0_1005 = arith.constant 0 : index
    %1482 = vector.load %arg11[%c2_1003, %c0_1004, %c0_1005] : memref<4x1x32xf32, #tpu.memory_space<vmem>>, vector<1x1x32xf32>
    %1483 = vector.shape_cast %1482 : vector<1x1x32xf32> to vector<1x32xf32>
    %1484 = vector.broadcast %1483 : vector<1x32xf32> to vector<2x32xf32>
    %1485 = arith.addf %1481, %1484 : vector<2x32xf32>
    %c3_1006 = arith.constant 3 : index
    %c0_1007 = arith.constant 0 : index
    %c0_1008 = arith.constant 0 : index
    %1486 = vector.load %arg10[%c3_1006, %c0_1007, %c0_1008] : memref<4x64x32xf32, #tpu.memory_space<vmem>>, vector<1x64x32xf32>
    %1487 = vector.shape_cast %1486 : vector<1x64x32xf32> to vector<64x32xf32>
    %cst_1009 = arith.constant dense<0.000000e+00> : vector<2x32xf32>
    %1488 = tpu.matmul %1464, %1487, %cst_1009 {dimension_numbers = #tpu.dot_dimension_numbers<[1], [0], [0], [1], [0, 0, 1, 1], [], []>} : vector<2x64xf32>, vector<64x32xf32>, vector<2x32xf32> -> vector<2x32xf32>
    %c3_1010 = arith.constant 3 : index
    %c0_1011 = arith.constant 0 : index
    %c0_1012 = arith.constant 0 : index
    %1489 = vector.load %arg11[%c3_1010, %c0_1011, %c0_1012] : memref<4x1x32xf32, #tpu.memory_space<vmem>>, vector<1x1x32xf32>
    %1490 = vector.shape_cast %1489 : vector<1x1x32xf32> to vector<1x32xf32>
    %1491 = vector.broadcast %1490 : vector<1x32xf32> to vector<2x32xf32>
    %1492 = arith.addf %1488, %1491 : vector<2x32xf32>
    %1493 = arith.negf %1471 : vector<2x32xf32>
    %1494 = math.exp %1493 : vector<2x32xf32>
    %cst_1013 = arith.constant 1.000000e+00 : f32
    %1495 = vector.broadcast %cst_1013 : f32 to vector<2x32xf32>
    %1496 = arith.addf %1495, %1494 : vector<2x32xf32>
    %1497 = arith.divf %1495, %1496 : vector<2x32xf32>
    %1498 = arith.negf %1478 : vector<2x32xf32>
    %1499 = math.exp %1498 : vector<2x32xf32>
    %cst_1014 = arith.constant 1.000000e+00 : f32
    %1500 = vector.broadcast %cst_1014 : f32 to vector<2x32xf32>
    %1501 = arith.addf %1500, %1499 : vector<2x32xf32>
    %1502 = arith.divf %1500, %1501 : vector<2x32xf32>
    %1503 = math.tanh %1485 : vector<2x32xf32>
    %1504 = arith.negf %1492 : vector<2x32xf32>
    %1505 = math.exp %1504 : vector<2x32xf32>
    %cst_1015 = arith.constant 1.000000e+00 : f32
    %1506 = vector.broadcast %cst_1015 : f32 to vector<2x32xf32>
    %1507 = arith.addf %1506, %1505 : vector<2x32xf32>
    %1508 = arith.divf %1506, %1507 : vector<2x32xf32>
    %1509 = arith.mulf %1502, %1415 : vector<2x32xf32>
    %1510 = arith.mulf %1497, %1503 : vector<2x32xf32>
    %1511 = arith.addf %1509, %1510 : vector<2x32xf32>
    %1512 = math.tanh %1511 : vector<2x32xf32>
    %1513 = arith.mulf %1508, %1512 : vector<2x32xf32>
    %c12_1016 = arith.constant 12 : index
    %c0_1017 = arith.constant 0 : index
    %1514 = vector.load %arg17[%c12_1016, %c0_1017] : memref<16x32xf32, #tpu.memory_space<vmem>>, vector<2x32xf32>
    tpu.vector_store %arg17[%c12_1016, %c0_1017], %1513 {strides = array<i32>} : memref<16x32xf32, #tpu.memory_space<vmem>>, vector<2x32xf32>,
    %c0_1018 = arith.constant 0 : index
    %c14_1019 = arith.constant 14 : index
    %c0_1020 = arith.constant 0 : index
    %1515 = vector.load %arg16[%c0_1018, %c14_1019, %c0_1020] : memref<4x16x32xf32, #tpu.memory_space<vmem>>, vector<1x2x32xf32>
    %1516 = vector.shape_cast %1515 : vector<1x2x32xf32> to vector<2x32xf32>
    %c0_1021 = arith.constant 0 : index
    %c0_1022 = arith.constant 0 : index
    %c0_1023 = arith.constant 0 : index
    %1517 = vector.load %arg8[%c0_1021, %c0_1022, %c0_1023] : memref<4x32x32xf32, #tpu.memory_space<vmem>>, vector<1x32x32xf32>
    %1518 = vector.shape_cast %1517 : vector<1x32x32xf32> to vector<32x32xf32>
    %cst_1024 = arith.constant dense<0.000000e+00> : vector<2x32xf32>
    %1519 = tpu.matmul %1463, %1518, %cst_1024 {dimension_numbers = #tpu.dot_dimension_numbers<[1], [0], [0], [1], [0, 0, 1, 1], [], []>} : vector<2x32xf32>, vector<32x32xf32>, vector<2x32xf32> -> vector<2x32xf32>
    %1520 = arith.addf %1516, %1519 : vector<2x32xf32>
    %c1_1025 = arith.constant 1 : index
    %c14_1026 = arith.constant 14 : index
    %c0_1027 = arith.constant 0 : index
    %1521 = vector.load %arg16[%c1_1025, %c14_1026, %c0_1027] : memref<4x16x32xf32, #tpu.memory_space<vmem>>, vector<1x2x32xf32>
    %1522 = vector.shape_cast %1521 : vector<1x2x32xf32> to vector<2x32xf32>
    %c1_1028 = arith.constant 1 : index
    %c0_1029 = arith.constant 0 : index
    %c0_1030 = arith.constant 0 : index
    %1523 = vector.load %arg8[%c1_1028, %c0_1029, %c0_1030] : memref<4x32x32xf32, #tpu.memory_space<vmem>>, vector<1x32x32xf32>
    %1524 = vector.shape_cast %1523 : vector<1x32x32xf32> to vector<32x32xf32>
    %cst_1031 = arith.constant dense<0.000000e+00> : vector<2x32xf32>
    %1525 = tpu.matmul %1463, %1524, %cst_1031 {dimension_numbers = #tpu.dot_dimension_numbers<[1], [0], [0], [1], [0, 0, 1, 1], [], []>} : vector<2x32xf32>, vector<32x32xf32>, vector<2x32xf32> -> vector<2x32xf32>
    %1526 = arith.addf %1522, %1525 : vector<2x32xf32>
    %c2_1032 = arith.constant 2 : index
    %c14_1033 = arith.constant 14 : index
    %c0_1034 = arith.constant 0 : index
    %1527 = vector.load %arg16[%c2_1032, %c14_1033, %c0_1034] : memref<4x16x32xf32, #tpu.memory_space<vmem>>, vector<1x2x32xf32>
    %1528 = vector.shape_cast %1527 : vector<1x2x32xf32> to vector<2x32xf32>
    %c2_1035 = arith.constant 2 : index
    %c0_1036 = arith.constant 0 : index
    %c0_1037 = arith.constant 0 : index
    %1529 = vector.load %arg8[%c2_1035, %c0_1036, %c0_1037] : memref<4x32x32xf32, #tpu.memory_space<vmem>>, vector<1x32x32xf32>
    %1530 = vector.shape_cast %1529 : vector<1x32x32xf32> to vector<32x32xf32>
    %cst_1038 = arith.constant dense<0.000000e+00> : vector<2x32xf32>
    %1531 = tpu.matmul %1463, %1530, %cst_1038 {dimension_numbers = #tpu.dot_dimension_numbers<[1], [0], [0], [1], [0, 0, 1, 1], [], []>} : vector<2x32xf32>, vector<32x32xf32>, vector<2x32xf32> -> vector<2x32xf32>
    %1532 = arith.addf %1528, %1531 : vector<2x32xf32>
    %c3_1039 = arith.constant 3 : index
    %c14_1040 = arith.constant 14 : index
    %c0_1041 = arith.constant 0 : index
    %1533 = vector.load %arg16[%c3_1039, %c14_1040, %c0_1041] : memref<4x16x32xf32, #tpu.memory_space<vmem>>, vector<1x2x32xf32>
    %1534 = vector.shape_cast %1533 : vector<1x2x32xf32> to vector<2x32xf32>
    %c3_1042 = arith.constant 3 : index
    %c0_1043 = arith.constant 0 : index
    %c0_1044 = arith.constant 0 : index
    %1535 = vector.load %arg8[%c3_1042, %c0_1043, %c0_1044] : memref<4x32x32xf32, #tpu.memory_space<vmem>>, vector<1x32x32xf32>
    %1536 = vector.shape_cast %1535 : vector<1x32x32xf32> to vector<32x32xf32>
    %cst_1045 = arith.constant dense<0.000000e+00> : vector<2x32xf32>
    %1537 = tpu.matmul %1463, %1536, %cst_1045 {dimension_numbers = #tpu.dot_dimension_numbers<[1], [0], [0], [1], [0, 0, 1, 1], [], []>} : vector<2x32xf32>, vector<32x32xf32>, vector<2x32xf32> -> vector<2x32xf32>
    %1538 = arith.addf %1534, %1537 : vector<2x32xf32>
    %1539 = arith.negf %1520 : vector<2x32xf32>
    %1540 = math.exp %1539 : vector<2x32xf32>
    %cst_1046 = arith.constant 1.000000e+00 : f32
    %1541 = vector.broadcast %cst_1046 : f32 to vector<2x32xf32>
    %1542 = arith.addf %1541, %1540 : vector<2x32xf32>
    %1543 = arith.divf %1541, %1542 : vector<2x32xf32>
    %1544 = arith.negf %1526 : vector<2x32xf32>
    %1545 = math.exp %1544 : vector<2x32xf32>
    %cst_1047 = arith.constant 1.000000e+00 : f32
    %1546 = vector.broadcast %cst_1047 : f32 to vector<2x32xf32>
    %1547 = arith.addf %1546, %1545 : vector<2x32xf32>
    %1548 = arith.divf %1546, %1547 : vector<2x32xf32>
    %1549 = math.tanh %1532 : vector<2x32xf32>
    %1550 = arith.negf %1538 : vector<2x32xf32>
    %1551 = math.exp %1550 : vector<2x32xf32>
    %cst_1048 = arith.constant 1.000000e+00 : f32
    %1552 = vector.broadcast %cst_1048 : f32 to vector<2x32xf32>
    %1553 = arith.addf %1552, %1551 : vector<2x32xf32>
    %1554 = arith.divf %1552, %1553 : vector<2x32xf32>
    %1555 = arith.mulf %1548, %1461 : vector<2x32xf32>
    %1556 = arith.mulf %1543, %1549 : vector<2x32xf32>
    %1557 = arith.addf %1555, %1556 : vector<2x32xf32>
    %1558 = math.tanh %1557 : vector<2x32xf32>
    %1559 = arith.mulf %1554, %1558 : vector<2x32xf32>
    %1560 = tpu.concatenate %1559, %1513 in 1 : vector<2x32xf32>, vector<2x32xf32> -> vector<2x64xf32>
    %c0_1049 = arith.constant 0 : index
    %c0_1050 = arith.constant 0 : index
    %c0_1051 = arith.constant 0 : index
    %1561 = vector.load %arg10[%c0_1049, %c0_1050, %c0_1051] : memref<4x64x32xf32, #tpu.memory_space<vmem>>, vector<1x64x32xf32>
    %1562 = vector.shape_cast %1561 : vector<1x64x32xf32> to vector<64x32xf32>
    %cst_1052 = arith.constant dense<0.000000e+00> : vector<2x32xf32>
    %1563 = tpu.matmul %1560, %1562, %cst_1052 {dimension_numbers = #tpu.dot_dimension_numbers<[1], [0], [0], [1], [0, 0, 1, 1], [], []>} : vector<2x64xf32>, vector<64x32xf32>, vector<2x32xf32> -> vector<2x32xf32>
    %c0_1053 = arith.constant 0 : index
    %c0_1054 = arith.constant 0 : index
    %c0_1055 = arith.constant 0 : index
    %1564 = vector.load %arg11[%c0_1053, %c0_1054, %c0_1055] : memref<4x1x32xf32, #tpu.memory_space<vmem>>, vector<1x1x32xf32>
    %1565 = vector.shape_cast %1564 : vector<1x1x32xf32> to vector<1x32xf32>
    %1566 = vector.broadcast %1565 : vector<1x32xf32> to vector<2x32xf32>
    %1567 = arith.addf %1563, %1566 : vector<2x32xf32>
    %c1_1056 = arith.constant 1 : index
    %c0_1057 = arith.constant 0 : index
    %c0_1058 = arith.constant 0 : index
    %1568 = vector.load %arg10[%c1_1056, %c0_1057, %c0_1058] : memref<4x64x32xf32, #tpu.memory_space<vmem>>, vector<1x64x32xf32>
    %1569 = vector.shape_cast %1568 : vector<1x64x32xf32> to vector<64x32xf32>
    %cst_1059 = arith.constant dense<0.000000e+00> : vector<2x32xf32>
    %1570 = tpu.matmul %1560, %1569, %cst_1059 {dimension_numbers = #tpu.dot_dimension_numbers<[1], [0], [0], [1], [0, 0, 1, 1], [], []>} : vector<2x64xf32>, vector<64x32xf32>, vector<2x32xf32> -> vector<2x32xf32>
    %c1_1060 = arith.constant 1 : index
    %c0_1061 = arith.constant 0 : index
    %c0_1062 = arith.constant 0 : index
    %1571 = vector.load %arg11[%c1_1060, %c0_1061, %c0_1062] : memref<4x1x32xf32, #tpu.memory_space<vmem>>, vector<1x1x32xf32>
    %1572 = vector.shape_cast %1571 : vector<1x1x32xf32> to vector<1x32xf32>
    %1573 = vector.broadcast %1572 : vector<1x32xf32> to vector<2x32xf32>
    %1574 = arith.addf %1570, %1573 : vector<2x32xf32>
    %c2_1063 = arith.constant 2 : index
    %c0_1064 = arith.constant 0 : index
    %c0_1065 = arith.constant 0 : index
    %1575 = vector.load %arg10[%c2_1063, %c0_1064, %c0_1065] : memref<4x64x32xf32, #tpu.memory_space<vmem>>, vector<1x64x32xf32>
    %1576 = vector.shape_cast %1575 : vector<1x64x32xf32> to vector<64x32xf32>
    %cst_1066 = arith.constant dense<0.000000e+00> : vector<2x32xf32>
    %1577 = tpu.matmul %1560, %1576, %cst_1066 {dimension_numbers = #tpu.dot_dimension_numbers<[1], [0], [0], [1], [0, 0, 1, 1], [], []>} : vector<2x64xf32>, vector<64x32xf32>, vector<2x32xf32> -> vector<2x32xf32>
    %c2_1067 = arith.constant 2 : index
    %c0_1068 = arith.constant 0 : index
    %c0_1069 = arith.constant 0 : index
    %1578 = vector.load %arg11[%c2_1067, %c0_1068, %c0_1069] : memref<4x1x32xf32, #tpu.memory_space<vmem>>, vector<1x1x32xf32>
    %1579 = vector.shape_cast %1578 : vector<1x1x32xf32> to vector<1x32xf32>
    %1580 = vector.broadcast %1579 : vector<1x32xf32> to vector<2x32xf32>
    %1581 = arith.addf %1577, %1580 : vector<2x32xf32>
    %c3_1070 = arith.constant 3 : index
    %c0_1071 = arith.constant 0 : index
    %c0_1072 = arith.constant 0 : index
    %1582 = vector.load %arg10[%c3_1070, %c0_1071, %c0_1072] : memref<4x64x32xf32, #tpu.memory_space<vmem>>, vector<1x64x32xf32>
    %1583 = vector.shape_cast %1582 : vector<1x64x32xf32> to vector<64x32xf32>
    %cst_1073 = arith.constant dense<0.000000e+00> : vector<2x32xf32>
    %1584 = tpu.matmul %1560, %1583, %cst_1073 {dimension_numbers = #tpu.dot_dimension_numbers<[1], [0], [0], [1], [0, 0, 1, 1], [], []>} : vector<2x64xf32>, vector<64x32xf32>, vector<2x32xf32> -> vector<2x32xf32>
    %c3_1074 = arith.constant 3 : index
    %c0_1075 = arith.constant 0 : index
    %c0_1076 = arith.constant 0 : index
    %1585 = vector.load %arg11[%c3_1074, %c0_1075, %c0_1076] : memref<4x1x32xf32, #tpu.memory_space<vmem>>, vector<1x1x32xf32>
    %1586 = vector.shape_cast %1585 : vector<1x1x32xf32> to vector<1x32xf32>
    %1587 = vector.broadcast %1586 : vector<1x32xf32> to vector<2x32xf32>
    %1588 = arith.addf %1584, %1587 : vector<2x32xf32>
    %1589 = arith.negf %1567 : vector<2x32xf32>
    %1590 = math.exp %1589 : vector<2x32xf32>
    %cst_1077 = arith.constant 1.000000e+00 : f32
    %1591 = vector.broadcast %cst_1077 : f32 to vector<2x32xf32>
    %1592 = arith.addf %1591, %1590 : vector<2x32xf32>
    %1593 = arith.divf %1591, %1592 : vector<2x32xf32>
    %1594 = arith.negf %1574 : vector<2x32xf32>
    %1595 = math.exp %1594 : vector<2x32xf32>
    %cst_1078 = arith.constant 1.000000e+00 : f32
    %1596 = vector.broadcast %cst_1078 : f32 to vector<2x32xf32>
    %1597 = arith.addf %1596, %1595 : vector<2x32xf32>
    %1598 = arith.divf %1596, %1597 : vector<2x32xf32>
    %1599 = math.tanh %1581 : vector<2x32xf32>
    %1600 = arith.negf %1588 : vector<2x32xf32>
    %1601 = math.exp %1600 : vector<2x32xf32>
    %cst_1079 = arith.constant 1.000000e+00 : f32
    %1602 = vector.broadcast %cst_1079 : f32 to vector<2x32xf32>
    %1603 = arith.addf %1602, %1601 : vector<2x32xf32>
    %1604 = arith.divf %1602, %1603 : vector<2x32xf32>
    %1605 = arith.mulf %1598, %1511 : vector<2x32xf32>
    %1606 = arith.mulf %1593, %1599 : vector<2x32xf32>
    %1607 = arith.addf %1605, %1606 : vector<2x32xf32>
    %1608 = math.tanh %1607 : vector<2x32xf32>
    %1609 = arith.mulf %1604, %1608 : vector<2x32xf32>
    %c14_1080 = arith.constant 14 : index
    %c0_1081 = arith.constant 0 : index
    %1610 = vector.load %arg17[%c14_1080, %c0_1081] : memref<16x32xf32, #tpu.memory_space<vmem>>, vector<2x32xf32>
    tpu.vector_store %arg17[%c14_1080, %c0_1081], %1609 {strides = array<i32>} : memref<16x32xf32, #tpu.memory_space<vmem>>, vector<2x32xf32>,
    %c0_1082 = arith.constant 0 : index
    %c0_1083 = arith.constant 0 : index
    %1611 = vector.load %arg17[%c0_1082, %c0_1083] : memref<16x32xf32, #tpu.memory_space<vmem>>, vector<16x32xf32>
    %c0_1084 = arith.constant 0 : index
    %c0_1085 = arith.constant 0 : index
    %1612 = vector.load %arg12[%c0_1084, %c0_1085] : memref<32x32xf32, #tpu.memory_space<vmem>>, vector<32x32xf32>
    %cst_1086 = arith.constant dense<0.000000e+00> : vector<16x32xf32>
    %1613 = tpu.matmul %1611, %1612, %cst_1086 {dimension_numbers = #tpu.dot_dimension_numbers<[1], [0], [0], [1], [0, 0, 1, 1], [], []>} : vector<16x32xf32>, vector<32x32xf32>, vector<16x32xf32> -> vector<16x32xf32>
    %c0_1087 = arith.constant 0 : index
    %c0_1088 = arith.constant 0 : index
    %1614 = vector.load %arg13[%c0_1087, %c0_1088] : memref<1x32xf32, #tpu.memory_space<vmem>>, vector<1x32xf32>
    %1615 = vector.broadcast %1614 : vector<1x32xf32> to vector<16x32xf32>
    %1616 = arith.addf %1613, %1615 : vector<16x32xf32>
    %c0_1089 = arith.constant 0 : index
    %c0_1090 = arith.constant 0 : index
    %1617 = vector.load %arg14[%c0_1089, %c0_1090] : memref<16x32xf32, #tpu.memory_space<vmem>>, vector<16x32xf32>
    tpu.vector_store %arg14[%c0_1089, %c0_1090], %1616 {strides = array<i32>} : memref<16x32xf32, #tpu.memory_space<vmem>>, vector<16x32xf32>,
    return
  }
}

</mosaic_0001>

<bundles_post_ra>
// kernel: mynmt_forward.1
= control target key start
LH: loop header
LB: loop body
LE: loop exit
PB: predicated region body
PF: predicated region fallthrough
CT: control target
= control target key end

     0   :  { %vm62_vm0 = vcmask 261120   ;;  %v17003_v57 = vmov 0.0|0.0   ;;  %vm17004_vm1 = vmmov 0   ;;  %vm1136_vm2 = vcmask 523264   ;;  %s17006_s25 = smov 32   ;;  %s19587_s2 = inlined_call_operand.vmem [shape: f32[4,32,32], index: 2, kind: input, shape index: {}]   ;;  %s19588_s7 = inlined_call_operand.vmem [shape: f32[4,32,32], index: 7, kind: input, shape index: {}]   ;;  %s19589_s0 = inlined_call_operand.vmem [shape: f32[16,32], index: 0, kind: input, shape index: {}]   ;;  %s19590_s1 = inlined_call_operand.vmem [shape: f32[16,32], index: 1, kind: input, shape index: {}]   ;;  %s19591_s3 = inlined_call_operand.vmem [shape: f32[4,32,32], index: 3, kind: input, shape index: {}]   ;;  %s19592_s5 = inlined_call_operand.vmem [shape: f32[4,64,32], index: 5, kind: input, shape index: {}]   ;;  %s19593_s4 = inlined_call_operand.vmem [shape: f32[4,1,32], index: 4, kind: input, shape index: {}]   ;;  %s19594_s9 = inlined_call_operand.vmem [shape: f32[4,1,32], index: 9, kind: input, shape index: {}]   ;;  %s19595_s6 = inlined_call_operand.vmem [shape: f32[4,1,32], index: 6, kind: input, shape index: {}]   ;;  %s19596_s8 = inlined_call_operand.vmem [shape: f32[4,32,32], index: 8, kind: input, shape index: {}]   ;;  %s19597_s10 = inlined_call_operand.vmem [shape: f32[4,64,32], index: 10, kind: input, shape index: {}]   ;;  %s19598_s11 = inlined_call_operand.vmem [shape: f32[4,1,32], index: 11, kind: input, shape index: {}]   ;;  %s19599_s12 = inlined_call_operand.vmem [shape: f32[32,32], index: 12, kind: input, shape index: {}]   ;;  %s19600_s13 = inlined_call_operand.vmem [shape: f32[1,32], index: 13, kind: input, shape index: {}]   ;;  %s19601_s14 = inlined_call_operand.vmem [shape: f32[16,32], index: 14, kind: output, shape index: {}]  }
   0x1   :  { %v51_v0 = vld [vmem:[%s19587_s2] sm:$0xff]  ;;  %v52_v1 = vld [vmem:[%s19587_s2 + $0x8] sm:$0xff]  ;;  %v53_v5 = vld [vmem:[%s19587_s2 + $0x10] sm:$0xff]  ;;  %vm6596_vm3 = vcmask 254976  }
   0x2   :  { %v146_v2 = vld [vmem:[%s19588_s7] sm:$0xff]  ;;  %v15259_v3 = vpack.c.bf16 %v52_v1, %v51_v0  ;;  %v147_v4 = vld [vmem:[%s19588_s7 + $0x8] sm:$0xff]  ;;  %v54_v6 = vld [vmem:[%s19587_s2 + $0x18] sm:$0xff] }
   0x3   :  { %v15267_v7 = vpack.c.bf16 %v147_v4, %v146_v2  ;;  %v15263_v8 = vpack.c.bf16 %v54_v6, %v53_v5  ;;  %v148_v9 = vld [vmem:[%s19588_s7 + $0x10] sm:$0xff]  ;;  %v149_v10 = vld [vmem:[%s19588_s7 + $0x18] sm:$0xff]  ;;  %v17109_v11 = vld [vmem:[%s19589_s0] sm:$0xff] }
   0x4   :  { %15260 = vmatprep.subr.bf16.mxu0 %v15259_v3  ;;  %v15271_v12 = vpack.c.bf16 %v149_v10, %v148_v9  ;;  %13248 = vmatprep.mubr.msk.f32.mxu0 %vm62_vm0, %v17109_v11  ;;  %v17116_v13 = vld [vmem:[%s19590_s1] sm:$0xff]  ;;  %v11633_v15 = vld [vmem:[%s19587_s2 + $0x28] sm:$0xff]  ;;  %v11634_v20 = vld [vmem:[%s19587_s2 + $0x30] sm:$0xff] }
   0x5   :  { %15268 = vmatprep.subr.bf16.mxu1 %v15267_v7  ;;  %15262 = vmatpush3.bf16.msra.mxu0 %v15259_v3  ;;  %v11632_v14 = vld [vmem:[%s19587_s2 + $0x20] sm:$0xff]  ;;  %v11641_v18 = vld [vmem:[%s19588_s7 + $0x28] sm:$0xff]  ;;  %v11635_v21 = vld [vmem:[%s19587_s2 + $0x38] sm:$0xff]  ;;  %v17005_v3 = vmov 0.0  }
   0x6   :  { %v11640_v16 = vld [vmem:[%s19588_s7 + $0x20] sm:$0xff]  ;;  %15270 = vmatpush3.bf16.msra.mxu1 %v15267_v7  ;;  %15264 = vmatprep.subr.bf16.mxu0 %v15263_v8  ;;  %v15275_v17 = vpack.c.bf16 %v11633_v15, %v11632_v14  ;;  %v11642_v22 = vld [vmem:[%s19588_s7 + $0x30] sm:$0xff]  ;;  %v11643_v23 = vld [vmem:[%s19588_s7 + $0x38] sm:$0xff]  ;;  %v15279_v26 = vpack.c.bf16 %v11635_v21, %v11634_v20 }
   0x7   :  { %15272 = vmatprep.subr.bf16.mxu1 %v15271_v12  ;;  %13259 = vmatprep.mubr.msk.f32.mxu1 %vm62_vm0, %v17116_v13  ;;  %v15283_v19 = vpack.c.bf16 %v11641_v18, %v11640_v16  ;;  %v17147_v24 = vld [vmem:[%s19589_s0 + $0x8] sm:$0xff]  ;;  %v15287_v27 = vpack.c.bf16 %v11643_v23, %v11642_v22  ;;  %v11648_v28 = vld [vmem:[%s19587_s2 + $0x40] sm:$0xff]  ;;  %v11650_v34 = vld [vmem:[%s19587_s2 + $0x50] sm:$0xff] }
   0x8   :  { %v17152_v25 = vld [vmem:[%s19590_s1 + $0x8] sm:$0xff]  ;;  %v11656_v30 = vld [vmem:[%s19588_s7 + $0x40] sm:$0xff]  ;;  %v11651_v35 = vld [vmem:[%s19587_s2 + $0x58] sm:$0xff] }
   0x9   :  { %15266 = vmatpush3.bf16.msra.mxu0 %v15263_v8  ;;  %v11649_v29 = vld [vmem:[%s19587_s2 + $0x48] sm:$0xff]  ;;  %v11658_v36 = vld [vmem:[%s19588_s7 + $0x50] sm:$0xff]  ;;  %v11659_v37 = vld [vmem:[%s19588_s7 + $0x58] sm:$0xff]  ;;  %v15295_v38 = vpack.c.bf16 %v11651_v35, %v11650_v34 }
   0xa   :  { %15274 = vmatpush3.bf16.msra.mxu1 %v15271_v12  ;;  %15276 = vmatprep.subr.bf16.mxu0 %v15275_v17  ;;  %v11657_v31 = vld [vmem:[%s19588_s7 + $0x48] sm:$0xff]  ;;  %v15291_v32 = vpack.c.bf16 %v11649_v29, %v11648_v28  ;;  %v15303_v39 = vpack.c.bf16 %v11659_v37, %v11658_v36  ;;  %v11664_v40 = vld [vmem:[%s19587_s2 + $0x60] sm:$0xff]  ;;  %v11666_v46 = vld [vmem:[%s19587_s2 + $0x70] sm:$0xff] }
   0xb   :  { %15284 = vmatprep.subr.bf16.mxu1 %v15283_v19  ;;  %v15299_v33 = vpack.c.bf16 %v11657_v31, %v11656_v30  ;;  %v11665_v41 = vld [vmem:[%s19587_s2 + $0x68] sm:$0xff]  ;;  %v11672_v42 = vld [vmem:[%s19588_s7 + $0x60] sm:$0xff]  ;;  %v11667_v47 = vld [vmem:[%s19587_s2 + $0x78] sm:$0xff] }
   0xc   :  { %13249 = vmatmul.mubr.msk.f32.vlgmr.msra.gmra.mrb[0].mxu0 %vm62_vm0, %v17147_v24  ;;  %v11673_v43 = vld [vmem:[%s19588_s7 + $0x68] sm:$0xff]  ;;  %v15307_v44 = vpack.c.bf16 %v11665_v41, %v11664_v40  ;;  %v11674_v48 = vld [vmem:[%s19588_s7 + $0x70] sm:$0xff]  ;;  %v11675_v49 = vld [vmem:[%s19588_s7 + $0x78] sm:$0xff]  ;;  %v15311_v50 = vpack.c.bf16 %v11667_v47, %v11666_v46 }
   0xd   :  { %13260 = vmatmul.mubr.msk.f32.vlgmr.msra.gmra.mrb[0].mxu1 %vm62_vm0, %v17152_v25  ;;  %15278 = vmatpush3.bf16.msra.mxu0 %v15275_v17  ;;  %v15315_v45 = vpack.c.bf16 %v11673_v43, %v11672_v42  ;;  %v15319_v51 = vpack.c.bf16 %v11675_v49, %v11674_v48  ;;  %v787_v52 = vld [vmem:[%s19591_s3] sm:$0xff]  ;;  %v788_v53 = vld [vmem:[%s19591_s3 + $0x8] sm:$0xff]  ;;  %v789_v59 = vld [vmem:[%s19591_s3 + $0x10] sm:$0xff] }
   0xe   :  { %15286 = vmatpush3.bf16.msra.mxu1 %v15283_v19  ;;  %15280 = vmatprep.subr.bf16.mxu0 %v15279_v26  ;;  %v11680_v54 = vld [vmem:[%s19591_s3 + $0x20] sm:$0xff]  ;;  %v11681_v55 = vld [vmem:[%s19591_s3 + $0x28] sm:$0xff]  ;;  %v17238_v56 = vpack.c.bf16 %v788_v53, %v787_v52  ;;  %v790_v60 = vld [vmem:[%s19591_s3 + $0x18] sm:$0xff] }
   0xf   :  { %15288 = vmatprep.subr.bf16.mxu1 %v15287_v27  ;;  %13270 = vmatprep.mubr.msk.f32.mxu0 %vm62_vm0, %v17109_v11  ;;  %v17241_v58 = vpack.c.bf16 %v11681_v55, %v11680_v54  ;;  %v11682_v61 = vld [vmem:[%s19591_s3 + $0x30] sm:$0xff]  ;;  %v11683_v62 = vld [vmem:[%s19591_s3 + $0x38] sm:$0xff]  ;;  %v17261_v63 = vpack.c.bf16 %v790_v60, %v789_v59  ;;  %v11684_v1 = vld [vmem:[%s19591_s3 + $0x40] sm:$0xff] }
  0x10   :  { %13281 = vmatprep.mubr.msk.f32.mxu1 %vm62_vm0, %v17116_v13  ;;  %v17265_v0 = vpack.c.bf16 %v11683_v62, %v11682_v61  ;;  %v11685_v2 = vld [vmem:[%s19591_s3 + $0x48] sm:$0xff]  ;;  %v11688_v4 = vld [vmem:[%s19591_s3 + $0x60] sm:$0xff]  ;;  %v11686_v8 = vld [vmem:[%s19591_s3 + $0x50] sm:$0xff] }
  0x11   :  { %15282 = vmatpush3.bf16.msra.mxu0 %v15279_v26  ;;  %v11689_v5 = vld [vmem:[%s19591_s3 + $0x68] sm:$0xff]  ;;  %v17285_v6 = vpack.c.bf16 %v11685_v2, %v11684_v1  ;;  %v11687_v9 = vld [vmem:[%s19591_s3 + $0x58] sm:$0xff]  ;;  %v11690_v10 = vld [vmem:[%s19591_s3 + $0x70] sm:$0xff] }
  0x12   :  { %15290 = vmatpush3.bf16.msra.mxu1 %v15287_v27  ;;  %15292 = vmatprep.subr.bf16.mxu0 %v15291_v32  ;;  %v17289_v7 = vpack.c.bf16 %v11689_v5, %v11688_v4  ;;  %v17307_v12 = vpack.c.bf16 %v11687_v9, %v11686_v8  ;;  %v1121_v14 = vld [vmem:[%s19592_s5] sm:$0xff]  ;;  %v1122_v15 = vld [vmem:[%s19592_s5 + $0x8] sm:$0xff]  ;;  %v1123_v20 = vld [vmem:[%s19592_s5 + $0x10] sm:$0xff] }
  0x13   :  { %15300 = vmatprep.subr.bf16.mxu1 %v15299_v33  ;;  %v11697_v16 = vld [vmem:[%s19592_s5 + $0x40] sm:$0xff]  ;;  %v17337_v17 = vpack.c.bf16 %v1122_v15, %v1121_v14  ;;  %v11698_v18 = vld [vmem:[%s19592_s5 + $0x48] sm:$0xff]  ;;  %v1124_v21 = vld [vmem:[%s19592_s5 + $0x18] sm:$0xff] }
  0x14   :  { %13271 = vmatmul.mubr.msk.f32.vlgmr.msra.gmra.mrb[2].mxu0 %vm62_vm0, %v17147_v24  ;;  %v17342_v19 = vpack.c.bf16 %v11698_v18, %v11697_v16  ;;  %v11699_v22 = vld [vmem:[%s19592_s5 + $0x50] sm:$0xff]  ;;  %v17357_v23 = vpack.c.bf16 %v1124_v21, %v1123_v20  ;;  %v1125_v26 = vld [vmem:[%s19592_s5 + $0x20] sm:$0xff]  ;;  %v1126_v27 = vld [vmem:[%s19592_s5 + $0x28] sm:$0xff] }
  0x15   :  { %13282 = vmatmul.mubr.msk.f32.vlgmr.msra.gmra.mrb[2].mxu1 %vm62_vm0, %v17152_v25  ;;  %15294 = vmatpush3.bf16.msra.mxu0 %v15291_v32  ;;  %v11701_v28 = vld [vmem:[%s19592_s5 + $0x60] sm:$0xff]  ;;  %v17377_v29 = vpack.c.bf16 %v1126_v27, %v1125_v26  ;;  %v11702_v30 = vld [vmem:[%s19592_s5 + $0x68] sm:$0xff]  ;;  %v1127_v32 = vld [vmem:[%s19592_s5 + $0x30] sm:$0xff] }
  0x16   :  { %15302 = vmatpush3.bf16.msra.mxu1 %v15299_v33  ;;  %15296 = vmatprep.subr.bf16.mxu0 %v15295_v38  ;;  %v17382_v31 = vpack.c.bf16 %v11702_v30, %v11701_v28  ;;  %v1128_v33 = vld [vmem:[%s19592_s5 + $0x38] sm:$0xff]  ;;  %v11703_v34 = vld [vmem:[%s19592_s5 + $0x70] sm:$0xff]  ;;  %v11637_v48 = vld [vmem:[%s19593_s4 + $0x1] ss:$0 sm:$0xff] }
  0x17   :  { %15304 = vmatprep.subr.bf16.mxu1 %v15303_v39  ;;  %13292 = vmatprep.mubr.msk.f32.mxu0 %vm62_vm0, %v17109_v11  ;;  %v17397_v35 = vpack.c.bf16 %v1128_v33, %v1127_v32  ;;  %v11704_v36 = vld [vmem:[%s19592_s5 + $0x78] sm:$0xff]  ;;  %v11645_v49 = vld [vmem:[%s19594_s9 + $0x1] ss:$0 sm:$0xff]  ;;  %v11653_v61 = vld [vmem:[%s19593_s4 + $0x2] ss:$0 sm:$0xff] }
  0x18   :  { %13303 = vmatprep.mubr.msk.f32.mxu1 %vm62_vm0, %v17116_v13  ;;  %v17402_v37 = vpack.c.bf16 %v11704_v36, %v11703_v34  ;;  %v11661_v62 = vld [vmem:[%s19594_s9 + $0x2] ss:$0 sm:$0xff]  ;;  %v11669_v14 = vld [vmem:[%s19593_s4 + $0x3] ss:$0 sm:$0xff] }
  0x19   :  { %15298 = vmatpush3.bf16.msra.mxu0 %v15295_v38  ;;  %v11626_v38 = vld [vmem:[%s19593_s4] ss:$0 sm:$0xff]  ;;  %v11677_v15 = vld [vmem:[%s19594_s9 + $0x3] ss:$0 sm:$0xff] }
  0x1a   :  { %15306 = vmatpush3.bf16.msra.mxu1 %v15303_v39  ;;  %15308 = vmatprep.subr.bf16.mxu0 %v15307_v44  ;;  %v11629_v39 = vld [vmem:[%s19594_s9] ss:$0 sm:$0xff] }
  0x1b   :  { %15316 = vmatprep.subr.bf16.mxu1 %v15315_v45 }
  0x1c   :  { %13293 = vmatmul.mubr.msk.f32.vlgmr.msra.gmra.mrb[4].mxu0 %vm62_vm0, %v17147_v24 }
  0x1d   :  { %13304 = vmatmul.mubr.msk.f32.vlgmr.msra.gmra.mrb[4].mxu1 %vm62_vm0, %v17152_v25  ;;  %15310 = vmatpush3.bf16.msra.mxu0 %v15307_v44 }
  0x1e   :  { %15318 = vmatpush3.bf16.msra.mxu1 %v15315_v45  ;;  %15312 = vmatprep.subr.bf16.mxu0 %v15311_v50 }
  0x1f   :  { %15320 = vmatprep.subr.bf16.mxu1 %v15319_v51  ;;  %13314 = vmatprep.mubr.msk.f32.mxu0 %vm62_vm0, %v17109_v11  ;;  %v11691_v11 = vld [vmem:[%s19591_s3 + $0x78] sm:$0xff] }
  0x20   :  { %13325 = vmatprep.mubr.msk.f32.mxu1 %vm62_vm0, %v17116_v13  ;;  %v17311_v13 = vpack.c.bf16 %v11691_v11, %v11690_v10 }
  0x21   :  { %15314 = vmatpush3.bf16.msra.mxu0 %v15311_v50 }
  0x22   :  { %15322 = vmatpush3.bf16.msra.mxu1 %v15319_v51  ;;  %15323 = vmatprep.subr.bf16.mxu0 %v17003_v57 }
  0x23   :  { %15329 = vmatprep.subr.bf16.mxu1 %v17003_v57 }
  0x24   :  { %13315 = vmatmul.mubr.msk.f32.vlgmr.msra.gmra.mrb[6].mxu0 %vm62_vm0, %v17147_v24  ;;  %v11700_v24 = vld [vmem:[%s19592_s5 + $0x58] sm:$0xff] }
  0x25   :  { %13326 = vmatmul.mubr.msk.f32.vlgmr.msra.gmra.mrb[6].mxu1 %vm62_vm0, %v17152_v25  ;;  %15325 = vmatpush3.bf16.msra.mxu0 %v17238_v56  ;;  %v17362_v25 = vpack.c.bf16 %v11700_v24, %v11699_v22 }
  0x26   :  { %15331 = vmatpush3.bf16.msra.mxu1 %v17241_v58  ;;  %15326 = vmatprep.subr.bf16.mxu0 %v17003_v57 }
  0x27   :  { %15332 = vmatprep.subr.bf16.mxu1 %v17003_v57  ;;  %13336 = vmatprep.mubr.msk.f32.mxu0 %vm17004_vm1, %v17005_v3 }
  0x28   :  { %13347 = vmatprep.mubr.msk.f32.mxu1 %vm17004_vm1, %v17005_v3 }
  0x29   :  { %15328 = vmatpush3.bf16.msra.mxu0 %v17261_v63 }
  0x2a   :  { %15334 = vmatpush3.bf16.msra.mxu1 %v17265_v0  ;;  %15335 = vmatprep.subr.bf16.mxu0 %v17003_v57 }
  0x2b   :  { %15341 = vmatprep.subr.bf16.mxu1 %v17003_v57 }
  0x2c   :  { %13337 = vmatmul.mubr.f32.vlgmr.msra.gmra.mrb[8].mxu0 %v17005_v3 }
  0x2d   :  { %13348 = vmatmul.mubr.f32.vlgmr.msra.gmra.mrb[8].mxu1 %v17005_v3  ;;  %15337 = vmatpush3.bf16.msra.mxu0 %v17285_v6 }
  0x2e   :  { %15343 = vmatpush3.bf16.msra.mxu1 %v17289_v7  ;;  %15338 = vmatprep.subr.bf16.mxu0 %v17003_v57 }
  0x2f   :  { %15344 = vmatprep.subr.bf16.mxu1 %v17003_v57  ;;  %13358 = vmatprep.mubr.msk.f32.mxu0 %vm17004_vm1, %v17005_v3 }
  0x30   :  { %13369 = vmatprep.mubr.msk.f32.mxu1 %vm17004_vm1, %v17005_v3 }
  0x31   :  { %15340 = vmatpush3.bf16.msra.mxu0 %v17307_v12 }
  0x32   :  { %15346 = vmatpush3.bf16.msra.mxu1 %v17311_v13  ;;  %15347 = vmatprep.subr.bf16.mxu0 %v17003_v57 }
  0x33   :  { %15359 = vmatprep.subr.bf16.mxu1 %v17003_v57 }
  0x34   :  { %13359 = vmatmul.mubr.f32.vlgmr.msra.gmra.mrb[10].mxu0 %v17005_v3 }
  0x35   :  { %13370 = vmatmul.mubr.f32.vlgmr.msra.gmra.mrb[10].mxu1 %v17005_v3  ;;  %13388 = vmatprep.mubr.msk.f32.mxu0 %vm17004_vm1, %v17005_v3 }
  0x36   :  { %13407 = vmatprep.mubr.msk.f32.mxu1 %vm17004_vm1, %v17005_v3  ;;  %15349 = vmatpush3.bf16.msra.mxu0 %v17337_v17 }
  0x37   :  { %15361 = vmatpush3.bf16.msra.mxu1 %v17342_v19  ;;  %15350 = vmatprep.subr.bf16.mxu0 %v17003_v57 }
  0x38   :  { %15362 = vmatprep.subr.bf16.mxu1 %v17003_v57 }
  0x3a   :  { %15352 = vmatpush3.bf16.msra.mxu0 %v17357_v23 }
  0x3b   :  { %15364 = vmatpush3.bf16.msra.mxu1 %v17362_v25  ;;  %15353 = vmatprep.subr.bf16.mxu0 %v17003_v57 }
  0x3c   :  { %15365 = vmatprep.subr.bf16.mxu1 %v17003_v57 }
  0x3e   :  { %15355 = vmatpush3.bf16.msra.mxu0 %v17377_v29 }
  0x3f   :  { %15367 = vmatpush3.bf16.msra.mxu1 %v17382_v31  ;;  %15356 = vmatprep.subr.bf16.mxu0 %v17003_v57 }
  0x40   :  { %15368 = vmatprep.subr.bf16.mxu1 %v17003_v57 }
  0x42   :  { %15358 = vmatpush3.bf16.msra.mxu0 %v17397_v35 }
  0x43   :  { %15370 = vmatpush3.bf16.msra.mxu1 %v17402_v37  ;;  %15371 = vmatprep.subr.bf16.mxu0 %v17003_v57 }
  0x44   :  { %15383 = vmatprep.subr.bf16.mxu1 %v17003_v57 }
  0xdf   :  { %v13250_v40 = vpop.f32.mrb[0].mxu0 }
  0xe0   :  { %v141_v41 = vadd.f32 %v13250_v40, %v11626_v38  ;;  %v13261_v42 = vpop.f32.mrb[0].mxu1  ;;  %v135_v43 = vpop.f32.mrb[1].mxu0 }
  0xe1   :  { %v235_v44 = vadd.f32 %v13261_v42, %v11629_v39  ;;  %v136_v45 = vadd.f32 %v11626_v38, %v135_v43  ;;  %v229_v46 = vpop.f32.mrb[1].mxu1 }
  0xe2   :  { %145 = vst.msk [vmem:[#allocation2 + $0x8] sm:$0xff] %vm62_vm0, %v141_v41  ;;  %v230_v47 = vadd.f32 %v11629_v39, %v229_v46 }
  0xe3   :  { %239 = vst.msk [vmem:[#allocation3 + $0x8] sm:$0xff] %vm62_vm0, %v235_v44  ;;  %144 = vst.msk [vmem:[#allocation2] sm:$0xff] %vm62_vm0, %v136_v45 }
  0xe4   :  { %238 = vst.msk [vmem:[#allocation3] sm:$0xff] %vm62_vm0, %v230_v47 }
  0xe7   :  { %v13272_v50 = vpop.f32.mrb[2].mxu0 }
  0xe8   :  { %v325_v51 = vadd.f32 %v13272_v50, %v11637_v48  ;;  %v13283_v52 = vpop.f32.mrb[2].mxu1  ;;  %v319_v53 = vpop.f32.mrb[3].mxu0 }
  0xe9   :  { %v416_v54 = vadd.f32 %v13283_v52, %v11645_v49  ;;  %v320_v55 = vadd.f32 %v11637_v48, %v319_v53  ;;  %v410_v59 = vpop.f32.mrb[3].mxu1 }
  0xea   :  { %330 = vst.msk [vmem:[#allocation2 + $0x18] sm:$0xff] %vm62_vm0, %v325_v51  ;;  %v411_v60 = vadd.f32 %v11645_v49, %v410_v59  ;;  %v786_v28 = vld [vmem:[#allocation2] sm:$0x3] }
  0xeb   :  { %421 = vst.msk [vmem:[#allocation3 + $0x18] sm:$0xff] %vm62_vm0, %v416_v54  ;;  %329 = vst.msk [vmem:[#allocation2 + $0x10] sm:$0xff] %vm62_vm0, %v320_v55 }
  0xec   :  { %420 = vst.msk [vmem:[#allocation3 + $0x10] sm:$0xff] %vm62_vm0, %v411_v60 }
  0xef   :  { %v13294_v1 = vpop.f32.mrb[4].mxu0 }
  0xf0   :  { %v507_v2 = vadd.f32 %v13294_v1, %v11653_v61  ;;  %v13305_v4 = vpop.f32.mrb[4].mxu1  ;;  %v501_v5 = vpop.f32.mrb[5].mxu0 }
  0xf1   :  { %v598_v8 = vadd.f32 %v13305_v4, %v11661_v62  ;;  %v502_v9 = vadd.f32 %v11653_v61, %v501_v5  ;;  %v592_v10 = vpop.f32.mrb[5].mxu1  ;;  %v11708_v5 = vld [vmem:[%s19592_s5 + $0x80] sm:$0xff] }
  0xf2   :  { %512 = vst.msk [vmem:[#allocation2 + $0x28] sm:$0xff] %vm62_vm0, %v507_v2  ;;  %v593_v11 = vadd.f32 %v11661_v62, %v592_v10  ;;  %v865_v33 = vld [vmem:[#allocation2 + $0x10] sm:$0x3]  ;;  %v11720_v10 = vld [vmem:[%s19592_s5 + $0xc8] sm:$0xff] }
  0xf3   :  { %603 = vst.msk [vmem:[#allocation3 + $0x28] sm:$0xff] %vm62_vm0, %v598_v8  ;;  %511 = vst.msk [vmem:[#allocation2 + $0x20] sm:$0xff] %vm62_vm0, %v502_v9  ;;  %v11709_v8 = vld [vmem:[%s19592_s5 + $0x88] sm:$0xff]  ;;  %v11719_v9 = vld [vmem:[%s19592_s5 + $0xc0] sm:$0xff] }
  0xf4   :  { %602 = vst.msk [vmem:[#allocation3 + $0x20] sm:$0xff] %vm62_vm0, %v593_v11 }
  0xf7   :  { %v13316_v16 = vpop.f32.mrb[6].mxu0 }
  0xf8   :  { %v689_v18 = vadd.f32 %v13316_v16, %v11669_v14  ;;  %v13327_v20 = vpop.f32.mrb[6].mxu1  ;;  %v683_v21 = vpop.f32.mrb[7].mxu0  ;;  %v17465_v16 = vpack.c.bf16 %v11709_v8, %v11708_v5 }
  0xf9   :  { %v780_v22 = vadd.f32 %v13327_v20, %v11677_v15  ;;  %v684_v24 = vadd.f32 %v11669_v14, %v683_v21  ;;  %v774_v26 = vpop.f32.mrb[7].mxu1  ;;  %v11710_v20 = vld [vmem:[%s19592_s5 + $0x90] sm:$0xff]  ;;  %v11711_v21 = vld [vmem:[%s19592_s5 + $0x98] sm:$0xff] }
  0xfa   :  { %694 = vst.msk [vmem:[#allocation2 + $0x38] sm:$0xff] %vm62_vm0, %v689_v18  ;;  %v775_v27 = vadd.f32 %v11677_v15, %v774_v26  ;;  %v942_v48 = vld [vmem:[#allocation2 + $0x20] sm:$0x3]  ;;  %v17467_v18 = vpack.c.bf16 %v11720_v10, %v11719_v9 }
  0xfb   :  { %785 = vst.msk [vmem:[#allocation3 + $0x38] sm:$0xff] %vm62_vm0, %v780_v22  ;;  %693 = vst.msk [vmem:[#allocation2 + $0x30] sm:$0xff] %vm62_vm0, %v684_v24  ;;  %v11721_v22 = vld [vmem:[%s19592_s5 + $0xd0] sm:$0xff]  ;;  %v11722_v24 = vld [vmem:[%s19592_s5 + $0xd8] sm:$0xff] }
  0xfc   :  { %784 = vst.msk [vmem:[#allocation3 + $0x30] sm:$0xff] %vm62_vm0, %v775_v27  ;;  %v17487_v27 = vpack.c.bf16 %v11711_v21, %v11710_v20  ;;  %v1570_v21 = vld [vmem:[#allocation2 + $0x12] sm:$0x3] }
  0xff   :  { %v860_v30 = vpop.f32.mrb[8].mxu0 }
 0x100   :  { %v864_v32 = vadd.f32 %v860_v30, %v786_v28  ;;  %v937_v34 = vpop.f32.mrb[8].mxu1  ;;  %v13338_v36 = vpop.f32.mrb[9].mxu0  ;;  %v17489_v28 = vpack.c.bf16 %v11722_v24, %v11721_v22  ;;  %v11712_v30 = vld [vmem:[%s19592_s5 + $0xa0] sm:$0xff] }
 0x101   :  { %v941_v38 = vadd.f32 %v937_v34, %v865_v33  ;;  %v13349_v39 = vpop.f32.mrb[9].mxu1  ;;  %v11723_v33 = vld [vmem:[%s19592_s5 + $0xe0] sm:$0xff]  ;;  %v11724_v34 = vld [vmem:[%s19592_s5 + $0xe8] sm:$0xff] }
 0x102   :  { %v11692_v40 = vmul.f32 -1.442695, %v864_v32  ;;  %v1019_v43 = vld [vmem:[#allocation2 + $0x30] sm:$0x3]  ;;  %v11713_v32 = vld [vmem:[%s19592_s5 + $0xa8] sm:$0xff] }
 0x103   :  { %v11693_v41 = vmul.f32 -1.442695, %v941_v38  ;;  %v17511_v36 = vpack.c.bf16 %v11713_v32, %v11712_v30  ;;  %v17513_v38 = vpack.c.bf16 %v11724_v34, %v11723_v33  ;;  %v11714_v39 = vld [vmem:[%s19592_s5 + $0xb0] sm:$0xff] }
 0x104   :  { %16487 = vpow2.f32 %v11692_v40  ;;  %v11715_v40 = vld [vmem:[%s19592_s5 + $0xb8] sm:$0xff] }
 0x105   :  { %16489 = vpow2.f32 %v11693_v41  ;;  %v11725_v41 = vld [vmem:[%s19592_s5 + $0xf0] sm:$0xff] }
 0x107   :  { %v1014_v42 = vpop.f32.mrb[10].mxu0 }
 0x108   :  { %v1091_v44 = vpop.f32.mrb[10].mxu1  ;;  %v13360_v45 = vpop.f32.mrb[11].mxu0  ;;  %v1018_v50 = vadd.f32 %v1014_v42, %v942_v48  ;;  %v11726_v42 = vld [vmem:[%s19592_s5 + $0xf8] sm:$0xff] }
 0x109   :  { %v1095_v46 = vadd.f32 %v1091_v44, %v1019_v43  ;;  %v13371_v47 = vpop.f32.mrb[11].mxu1  ;;  %v17531_v43 = vpack.c.bf16 %v11715_v40, %v11714_v39  ;;  %v17533_v44 = vpack.c.bf16 %v11726_v42, %v11725_v41  ;;  %v17598_v45 = vld [vmem:[%s19595_s6] ss:$0 sm:$0xff] }
 0x10b   :  { %v11694_v49 = vmul.f32 -1.442695, %v1095_v46  ;;  %v17603_v46 = vld [vmem:[%s19595_s6 + $0x1] ss:$0 sm:$0xff] }
 0x10d   :  { %16491 = vpow2.f32 %v11694_v49 }
 0x10e   :  { %v16488_v51 = vpop.eup %16487  ;;  %16493 = vtanh.f32 %v1018_v50 }
 0x10f   :  { %v16490_v52 = vpop.eup %16489  ;;  %v1099_v53 = vadd.f32 1.0, %v16488_v51 }
 0x110   :  { %v1105_v54 = vadd.f32 1.0, %v16490_v52 }
 0x111   :  { %16495 = vrcp.f32 %v1099_v53 }
 0x112   :  { %16497 = vrcp.f32 %v1105_v54 }
 0x117   :  { %v16492_v55 = vpop.eup %16491 }
 0x118   :  { %v16494_v59 = vpop.eup %16493  ;;  %v1112_v1 = vadd.f32 1.0, %v16492_v55  ;;  %v17610_v55 = vld [vmem:[%s19595_s6 + $0x2] ss:$0 sm:$0xff] }
 0x11a   :  { %16499 = vrcp.f32 %v1112_v1 }
 0x11b   :  { %v16496_v60 = vpop.eup %16495 }
 0x11c   :  { %v16498_v61 = vpop.eup %16497  ;;  %v1116_v62 = vmul.f32 %v16496_v60, %v16494_v59  ;;  %v17615_v59 = vld [vmem:[%s19595_s6 + $0x3] ss:$0 sm:$0xff] }
 0x11d   :  { %v1115_v2 = vmul.f32 0.0, %v16498_v61 }
 0x11f   :  { %v17448_v4 = vadd.f32 %v1116_v62, %v1115_v2 }
 0x121   :  { %16501 = vtanh.f32 %v17448_v4 }
 0x124   :  { %v16500_v11 = vpop.eup %16499 }
 0x12b   :  { %v16502_v14 = vpop.eup %16501 }
 0x12c   :  { %v17463_v15 = vmul.f32 %v16502_v14, %v16500_v11 }
 0x12e   :  { %v1120_v26 = vsel %vm62_vm0, %v17463_v15, 0.0 }
 0x12f   :  { %13389 = vmatmul.mubr.msk.f32.vlgmr.msra.gmra.mrb[12].mxu0 %vm1136_vm2, %v1120_v26  ;;  %13408 = vmatmul.mubr.msk.f32.vlgmr.msra.gmra.mrb[12].mxu1 %vm1136_vm2, %v1120_v26 }
 0x130   :  { %15373 = vmatpush3.bf16.msra.mxu0 %v17465_v16  ;;  %15385 = vmatpush3.bf16.msra.mxu1 %v17467_v18 }
 0x131   :  { %15374 = vmatprep.subr.bf16.mxu0 %v17003_v57  ;;  %15386 = vmatprep.subr.bf16.mxu1 %v17003_v57 }
 0x132   :  { %13426 = vmatprep.mubr.msk.f32.mxu0 %vm17004_vm1, %v17005_v3  ;;  %13445 = vmatprep.mubr.msk.f32.mxu1 %vm17004_vm1, %v17005_v3 }
 0x134   :  { %15376 = vmatpush3.bf16.msra.mxu0 %v17487_v27  ;;  %15388 = vmatpush3.bf16.msra.mxu1 %v17489_v28 }
 0x135   :  { %15377 = vmatprep.subr.bf16.mxu0 %v17003_v57  ;;  %15389 = vmatprep.subr.bf16.mxu1 %v17003_v57 }
 0x138   :  { %15379 = vmatpush3.bf16.msra.mxu0 %v17511_v36  ;;  %15391 = vmatpush3.bf16.msra.mxu1 %v17513_v38 }
 0x139   :  { %15380 = vmatprep.subr.bf16.mxu0 %v17003_v57  ;;  %15392 = vmatprep.subr.bf16.mxu1 %v17003_v57 }
 0x13c   :  { %15382 = vmatpush3.bf16.msra.mxu0 %v17531_v43  ;;  %15394 = vmatpush3.bf16.msra.mxu1 %v17533_v44 }
 0x13d   :  { %15395 = vmatprep.subr.bf16.mxu0 %v17003_v57  ;;  %15401 = vmatprep.subr.bf16.mxu1 %v17003_v57 }
 0x13f   :  { %13427 = vmatmul.mubr.msk.f32.vlgmr.msra.gmra.mrb[14].mxu0 %vm1136_vm2, %v1120_v26  ;;  %13446 = vmatmul.mubr.msk.f32.vlgmr.msra.gmra.mrb[14].mxu1 %vm1136_vm2, %v1120_v26 }
 0x140   :  { %15397 = vmatpush3.bf16.msra.mxu0 %v17238_v56  ;;  %15403 = vmatpush3.bf16.msra.mxu1 %v17241_v58 }
 0x141   :  { %15398 = vmatprep.subr.bf16.mxu0 %v17003_v57  ;;  %15404 = vmatprep.subr.bf16.mxu1 %v17003_v57 }
 0x142   :  { %13456 = vmatprep.mubr.msk.f32.mxu0 %vm17004_vm1, %v17005_v3  ;;  %13467 = vmatprep.mubr.msk.f32.mxu1 %vm17004_vm1, %v17005_v3 }
 0x144   :  { %15400 = vmatpush3.bf16.msra.mxu0 %v17261_v63  ;;  %15406 = vmatpush3.bf16.msra.mxu1 %v17265_v0 }
 0x145   :  { %15407 = vmatprep.subr.bf16.mxu0 %v17003_v57  ;;  %15413 = vmatprep.subr.bf16.mxu1 %v17003_v57 }
 0x147   :  { %13457 = vmatmul.mubr.msk.f32.vlgmr.msra.gmra.mrb[16].mxu0 %vm62_vm0, %v17463_v15  ;;  %13468 = vmatmul.mubr.msk.f32.vlgmr.msra.gmra.mrb[16].mxu1 %vm62_vm0, %v17463_v15 }
 0x148   :  { %15409 = vmatpush3.bf16.msra.mxu0 %v17285_v6  ;;  %15415 = vmatpush3.bf16.msra.mxu1 %v17289_v7 }
 0x149   :  { %15410 = vmatprep.subr.bf16.mxu0 %v17003_v57  ;;  %15416 = vmatprep.subr.bf16.mxu1 %v17003_v57 }
 0x14a   :  { %13478 = vmatprep.mubr.msk.f32.mxu0 %vm17004_vm1, %v17005_v3  ;;  %13489 = vmatprep.mubr.msk.f32.mxu1 %vm17004_vm1, %v17005_v3 }
 0x14c   :  { %15412 = vmatpush3.bf16.msra.mxu0 %v17307_v12  ;;  %15418 = vmatpush3.bf16.msra.mxu1 %v17311_v13 }
 0x14d   :  { %15419 = vmatprep.subr.bf16.mxu0 %v17003_v57  ;;  %15431 = vmatprep.subr.bf16.mxu1 %v17003_v57 }
 0x14f   :  { %13479 = vmatmul.mubr.msk.f32.vlgmr.msra.gmra.mrb[18].mxu0 %vm62_vm0, %v17463_v15  ;;  %13490 = vmatmul.mubr.msk.f32.vlgmr.msra.gmra.mrb[18].mxu1 %vm62_vm0, %v17463_v15  ;;  %v1495_v15 = vld [vmem:[#allocation2 + $0x2] sm:$0x3] }
 0x150   :  { %15421 = vmatpush3.bf16.msra.mxu0 %v17337_v17  ;;  %15433 = vmatpush3.bf16.msra.mxu1 %v17342_v19 }
 0x151   :  { %15422 = vmatprep.subr.bf16.mxu0 %v17003_v57  ;;  %15434 = vmatprep.subr.bf16.mxu1 %v17003_v57 }
 0x152   :  { %13508 = vmatprep.mubr.msk.f32.mxu0 %vm17004_vm1, %v17005_v3  ;;  %13527 = vmatprep.mubr.msk.f32.mxu1 %vm17004_vm1, %v17005_v3 }
 0x154   :  { %15424 = vmatpush3.bf16.msra.mxu0 %v17357_v23  ;;  %15436 = vmatpush3.bf16.msra.mxu1 %v17362_v25 }
 0x155   :  { %15425 = vmatprep.subr.bf16.mxu0 %v17003_v57  ;;  %15437 = vmatprep.subr.bf16.mxu1 %v17003_v57 }
 0x158   :  { %15427 = vmatpush3.bf16.msra.mxu0 %v17377_v29  ;;  %15439 = vmatpush3.bf16.msra.mxu1 %v17382_v31 }
 0x159   :  { %15428 = vmatprep.subr.bf16.mxu0 %v17003_v57  ;;  %15440 = vmatprep.subr.bf16.mxu1 %v17003_v57 }
 0x15c   :  { %15430 = vmatpush3.bf16.msra.mxu0 %v17397_v35  ;;  %15442 = vmatpush3.bf16.msra.mxu1 %v17402_v37 }
 0x15d   :  { %15443 = vmatprep.subr.bf16.mxu0 %v17003_v57  ;;  %15455 = vmatprep.subr.bf16.mxu1 %v17003_v57 }
 0x202   :  { %v1206_v47 = vpop.f32.mrb[12].mxu0  ;;  %v1293_v48 = vpop.f32.mrb[12].mxu1 }
 0x203   :  { %v1207_v49 = vadd.f32 %v17598_v45, %v1206_v47  ;;  %v1294_v50 = vadd.f32 %v17603_v46, %v1293_v48  ;;  %v13390_v51 = vpop.f32.mrb[13].mxu0  ;;  %v13409_v52 = vpop.f32.mrb[13].mxu1 }
 0x205   :  { %v11730_v53 = vmul.f32 -1.442695, %v1207_v49  ;;  %v11731_v54 = vmul.f32 -1.442695, %v1294_v50 }
 0x207   :  { %16503 = vpow2.f32 %v11730_v53 }
 0x208   :  { %16505 = vpow2.f32 %v11731_v54 }
 0x211   :  { %v16504_v60 = vpop.eup %16503 }
 0x212   :  { %v16506_v61 = vpop.eup %16505  ;;  %v1474_v62 = vadd.f32 1.0, %v16504_v60  ;;  %v1380_v1 = vpop.f32.mrb[14].mxu0  ;;  %v1642_v60 = vld [vmem:[#allocation2 + $0x22] sm:$0x3] }
 0x213   :  { %v1467_v2 = vpop.f32.mrb[14].mxu1  ;;  %v1480_v5 = vadd.f32 1.0, %v16506_v61  ;;  %v1381_v8 = vadd.f32 %v17610_v55, %v1380_v1  ;;  %v13428_v10 = vpop.f32.mrb[15].mxu0 }
 0x214   :  { %v1468_v9 = vadd.f32 %v17615_v59, %v1467_v2  ;;  %v13447_v11 = vpop.f32.mrb[15].mxu1  ;;  %16507 = vrcp.f32 %v1474_v62 }
 0x215   :  { %16509 = vrcp.f32 %v1480_v5 }
 0x216   :  { %v11732_v14 = vmul.f32 -1.442695, %v1468_v9  ;;  %16511 = vtanh.f32 %v1381_v8 }
 0x218   :  { %16513 = vpow2.f32 %v11732_v14 }
 0x21a   :  { %v1565_v20 = vpop.f32.mrb[16].mxu0  ;;  %v1637_v22 = vpop.f32.mrb[16].mxu1 }
 0x21b   :  { %v1569_v24 = vadd.f32 %v1565_v20, %v1495_v15  ;;  %v1641_v26 = vadd.f32 %v1637_v22, %v1570_v21  ;;  %v13458_v30 = vpop.f32.mrb[17].mxu0  ;;  %v13469_v32 = vpop.f32.mrb[17].mxu1 }
 0x21d   :  { %v11737_v33 = vmul.f32 -1.442695, %v1569_v24  ;;  %v11738_v34 = vmul.f32 -1.442695, %v1641_v26  ;;  %v1714_v24 = vld [vmem:[#allocation2 + $0x32] sm:$0x3] }
 0x21e   :  { %v16508_v39 = vpop.eup %16507 }
 0x21f   :  { %v16510_v40 = vpop.eup %16509  ;;  %16515 = vpow2.f32 %v11737_v33 }
 0x220   :  { %v16512_v41 = vpop.eup %16511  ;;  %v1490_v42 = vmul.f32 0.0, %v16510_v40  ;;  %16517 = vpow2.f32 %v11738_v34 }
 0x221   :  { %v1491_v48 = vmul.f32 %v16512_v41, %v16508_v39 }
 0x222   :  { %v16514_v47 = vpop.eup %16513  ;;  %v1709_v50 = vpop.f32.mrb[18].mxu0 }
 0x223   :  { %v1487_v49 = vadd.f32 1.0, %v16514_v47  ;;  %v1781_v51 = vpop.f32.mrb[18].mxu1  ;;  %v17619_v52 = vadd.f32 %v1491_v48, %v1490_v42  ;;  %v13480_v53 = vpop.f32.mrb[19].mxu0  ;;  %v1713_v61 = vadd.f32 %v1709_v50, %v1642_v60 }
 0x224   :  { %v13491_v54 = vpop.f32.mrb[19].mxu1  ;;  %v1785_v26 = vadd.f32 %v1781_v51, %v1714_v24 }
 0x225   :  { %16519 = vrcp.f32 %v1487_v49 }
 0x226   :  { %16521 = vtanh.f32 %v17619_v52  ;;  %v11739_v30 = vmul.f32 -1.442695, %v1785_v26 }
 0x227   :  { %16523 = vtanh.f32 %v1713_v61 }
 0x229   :  { %v16516_v62 = vpop.eup %16515 }
 0x22a   :  { %v16518_v1 = vpop.eup %16517  ;;  %v1789_v2 = vadd.f32 1.0, %v16516_v62 }
 0x22b   :  { %v1795_v5 = vadd.f32 1.0, %v16518_v1 }
 0x22c   :  { %16525 = vrcp.f32 %v1789_v2 }
 0x22d   :  { %16527 = vrcp.f32 %v1795_v5 }
 0x22e   :  { %16529 = vpow2.f32 %v11739_v30 }
 0x22f   :  { %v16520_v8 = vpop.eup %16519 }
 0x230   :  { %v16522_v9 = vpop.eup %16521 }
 0x231   :  { %v1494_v10 = vmul.f32 %v16522_v9, %v16520_v8  ;;  %v16524_v11 = vpop.eup %16523 }
 0x233   :  { %1811 = vrot.lane.b32.xlu0 %v1494_v10, %s17006_s25 }
 0x236   :  { %v16526_v14 = vpop.eup %16525 }
 0x237   :  { %v16528_v15 = vpop.eup %16527  ;;  %v1806_v20 = vmul.f32 %v16526_v14, %v16524_v11 }
 0x238   :  { %v1805_v21 = vmul.f32 %v16528_v15, %v17448_v4  ;;  %v16530_v32 = vpop.eup %16529  ;;  %v2122_v15 = vld [vmem:[#allocation2 + $0x4] sm:$0x3] }
 0x239   :  { %v1802_v33 = vadd.f32 1.0, %v16530_v32 }
 0x23a   :  { %v17624_v22 = vadd.f32 %v1806_v20, %v1805_v21  ;;  %v2197_v21 = vld [vmem:[#allocation2 + $0x14] sm:$0x3] }
 0x23c   :  { %16531 = vtanh.f32 %v17624_v22 }
 0x23d   :  { %16533 = vrcp.f32 %v1802_v33 }
 0x246   :  { %v16532_v34 = vpop.eup %16531 }
 0x247   :  { %v16534_v39 = vpop.eup %16533 }
 0x248   :  { %v1809_v40 = vmul.f32 %v16534_v39, %v16532_v34 }
 0x2a5   :  { %v1812_v41 = vpop.permute.xlu0 %1811 }
 0x2a6   :  { %v1814_v42 = vsel %vm62_vm0, %v1809_v40, %v1812_v41 }
 0x2a7   :  { %13509 = vmatmul.mubr.msk.f32.vlgmr.msra.gmra.mrb[20].mxu0 %vm1136_vm2, %v1814_v42  ;;  %13528 = vmatmul.mubr.msk.f32.vlgmr.msra.gmra.mrb[20].mxu1 %vm1136_vm2, %v1814_v42 }
 0x2a8   :  { %15445 = vmatpush3.bf16.msra.mxu0 %v17465_v16  ;;  %15457 = vmatpush3.bf16.msra.mxu1 %v17467_v18 }
 0x2a9   :  { %15446 = vmatprep.subr.bf16.mxu0 %v17003_v57  ;;  %15458 = vmatprep.subr.bf16.mxu1 %v17003_v57 }
 0x2aa   :  { %13546 = vmatprep.mubr.msk.f32.mxu0 %vm17004_vm1, %v17005_v3  ;;  %13565 = vmatprep.mubr.msk.f32.mxu1 %vm17004_vm1, %v17005_v3 }
 0x2ac   :  { %15448 = vmatpush3.bf16.msra.mxu0 %v17487_v27  ;;  %15460 = vmatpush3.bf16.msra.mxu1 %v17489_v28 }
 0x2ad   :  { %15449 = vmatprep.subr.bf16.mxu0 %v17003_v57  ;;  %15461 = vmatprep.subr.bf16.mxu1 %v17003_v57 }
 0x2b0   :  { %15451 = vmatpush3.bf16.msra.mxu0 %v17511_v36  ;;  %15463 = vmatpush3.bf16.msra.mxu1 %v17513_v38 }
 0x2b1   :  { %15452 = vmatprep.subr.bf16.mxu0 %v17003_v57  ;;  %15464 = vmatprep.subr.bf16.mxu1 %v17003_v57 }
 0x2b4   :  { %15454 = vmatpush3.bf16.msra.mxu0 %v17531_v43  ;;  %15466 = vmatpush3.bf16.msra.mxu1 %v17533_v44 }
 0x2b5   :  { %15467 = vmatprep.subr.bf16.mxu0 %v17003_v57  ;;  %15473 = vmatprep.subr.bf16.mxu1 %v17003_v57 }
 0x2b7   :  { %13547 = vmatmul.mubr.msk.f32.vlgmr.msra.gmra.mrb[22].mxu0 %vm1136_vm2, %v1814_v42  ;;  %13566 = vmatmul.mubr.msk.f32.vlgmr.msra.gmra.mrb[22].mxu1 %vm1136_vm2, %v1814_v42 }
 0x2b8   :  { %15469 = vmatpush3.bf16.msra.mxu0 %v17238_v56  ;;  %15475 = vmatpush3.bf16.msra.mxu1 %v17241_v58 }
 0x2b9   :  { %15470 = vmatprep.subr.bf16.mxu0 %v17003_v57  ;;  %15476 = vmatprep.subr.bf16.mxu1 %v17003_v57 }
 0x2ba   :  { %13576 = vmatprep.mubr.msk.f32.mxu0 %vm17004_vm1, %v17005_v3  ;;  %13587 = vmatprep.mubr.msk.f32.mxu1 %vm17004_vm1, %v17005_v3 }
 0x2bc   :  { %15472 = vmatpush3.bf16.msra.mxu0 %v17261_v63  ;;  %15478 = vmatpush3.bf16.msra.mxu1 %v17265_v0 }
 0x2bd   :  { %15479 = vmatprep.subr.bf16.mxu0 %v17003_v57  ;;  %15485 = vmatprep.subr.bf16.mxu1 %v17003_v57 }
 0x2bf   :  { %13577 = vmatmul.mubr.msk.f32.vlgmr.msra.gmra.mrb[24].mxu0 %vm62_vm0, %v1809_v40  ;;  %13588 = vmatmul.mubr.msk.f32.vlgmr.msra.gmra.mrb[24].mxu1 %vm62_vm0, %v1809_v40 }
 0x2c0   :  { %15481 = vmatpush3.bf16.msra.mxu0 %v17285_v6  ;;  %15487 = vmatpush3.bf16.msra.mxu1 %v17289_v7 }
 0x2c1   :  { %15482 = vmatprep.subr.bf16.mxu0 %v17003_v57  ;;  %15488 = vmatprep.subr.bf16.mxu1 %v17003_v57 }
 0x2c2   :  { %13598 = vmatprep.mubr.msk.f32.mxu0 %vm17004_vm1, %v17005_v3  ;;  %13609 = vmatprep.mubr.msk.f32.mxu1 %vm17004_vm1, %v17005_v3 }
 0x2c4   :  { %15484 = vmatpush3.bf16.msra.mxu0 %v17307_v12  ;;  %15490 = vmatpush3.bf16.msra.mxu1 %v17311_v13 }
 0x2c5   :  { %15491 = vmatprep.subr.bf16.mxu0 %v17003_v57  ;;  %15503 = vmatprep.subr.bf16.mxu1 %v17003_v57 }
 0x2c7   :  { %13599 = vmatmul.mubr.msk.f32.vlgmr.msra.gmra.mrb[26].mxu0 %vm62_vm0, %v1809_v40  ;;  %13610 = vmatmul.mubr.msk.f32.vlgmr.msra.gmra.mrb[26].mxu1 %vm62_vm0, %v1809_v40 }
 0x2c8   :  { %15493 = vmatpush3.bf16.msra.mxu0 %v17337_v17  ;;  %15505 = vmatpush3.bf16.msra.mxu1 %v17342_v19 }
 0x2c9   :  { %15494 = vmatprep.subr.bf16.mxu0 %v17003_v57  ;;  %15506 = vmatprep.subr.bf16.mxu1 %v17003_v57 }
 0x2ca   :  { %13628 = vmatprep.mubr.msk.f32.mxu0 %vm17004_vm1, %v17005_v3  ;;  %13647 = vmatprep.mubr.msk.f32.mxu1 %vm17004_vm1, %v17005_v3 }
 0x2cc   :  { %15496 = vmatpush3.bf16.msra.mxu0 %v17357_v23  ;;  %15508 = vmatpush3.bf16.msra.mxu1 %v17362_v25 }
 0x2cd   :  { %15497 = vmatprep.subr.bf16.mxu0 %v17003_v57  ;;  %15509 = vmatprep.subr.bf16.mxu1 %v17003_v57 }
 0x2d0   :  { %15499 = vmatpush3.bf16.msra.mxu0 %v17377_v29  ;;  %15511 = vmatpush3.bf16.msra.mxu1 %v17382_v31 }
 0x2d1   :  { %15500 = vmatprep.subr.bf16.mxu0 %v17003_v57  ;;  %15512 = vmatprep.subr.bf16.mxu1 %v17003_v57 }
 0x2d4   :  { %15502 = vmatpush3.bf16.msra.mxu0 %v17397_v35  ;;  %15514 = vmatpush3.bf16.msra.mxu1 %v17402_v37 }
 0x2d5   :  { %15515 = vmatprep.subr.bf16.mxu0 %v17003_v57  ;;  %15527 = vmatprep.subr.bf16.mxu1 %v17003_v57 }
 0x37a   :  { %v1884_v4 = vpop.f32.mrb[20].mxu0  ;;  %v1954_v47 = vpop.f32.mrb[20].mxu1 }
 0x37b   :  { %v1885_v48 = vadd.f32 %v17598_v45, %v1884_v4  ;;  %v1955_v49 = vadd.f32 %v17603_v46, %v1954_v47  ;;  %v13510_v50 = vpop.f32.mrb[21].mxu0  ;;  %v13529_v51 = vpop.f32.mrb[21].mxu1 }
 0x37d   :  { %v11744_v53 = vmul.f32 -1.442695, %v1885_v48  ;;  %v11745_v54 = vmul.f32 -1.442695, %v1955_v49 }
 0x37f   :  { %16535 = vpow2.f32 %v11744_v53 }
 0x380   :  { %16537 = vpow2.f32 %v11745_v54 }
 0x389   :  { %v16536_v60 = vpop.eup %16535 }
 0x38a   :  { %v16538_v61 = vpop.eup %16537  ;;  %v2101_v62 = vadd.f32 1.0, %v16536_v60  ;;  %v2024_v1 = vpop.f32.mrb[22].mxu0 }
 0x38b   :  { %v2094_v2 = vpop.f32.mrb[22].mxu1  ;;  %v2107_v5 = vadd.f32 1.0, %v16538_v61  ;;  %v2025_v8 = vadd.f32 %v17610_v55, %v2024_v1  ;;  %v13548_v10 = vpop.f32.mrb[23].mxu0  ;;  %v2269_v61 = vld [vmem:[#allocation2 + $0x24] sm:$0x3] }
 0x38c   :  { %v2095_v9 = vadd.f32 %v17615_v59, %v2094_v2  ;;  %v13567_v11 = vpop.f32.mrb[23].mxu1  ;;  %16539 = vrcp.f32 %v2101_v62 }
 0x38d   :  { %16541 = vrcp.f32 %v2107_v5 }
 0x38e   :  { %v11746_v14 = vmul.f32 -1.442695, %v2095_v9  ;;  %16543 = vtanh.f32 %v2025_v8 }
 0x390   :  { %16545 = vpow2.f32 %v11746_v14 }
 0x392   :  { %v2192_v20 = vpop.f32.mrb[24].mxu0  ;;  %v2264_v24 = vpop.f32.mrb[24].mxu1 }
 0x393   :  { %v2196_v26 = vadd.f32 %v2192_v20, %v2122_v15  ;;  %v2268_v30 = vadd.f32 %v2264_v24, %v2197_v21  ;;  %v13578_v32 = vpop.f32.mrb[25].mxu0  ;;  %v13589_v33 = vpop.f32.mrb[25].mxu1 }
 0x395   :  { %v11751_v34 = vmul.f32 -1.442695, %v2196_v26  ;;  %v11752_v39 = vmul.f32 -1.442695, %v2268_v30  ;;  %v2341_v26 = vld [vmem:[#allocation2 + $0x34] sm:$0x3] }
 0x396   :  { %v16540_v40 = vpop.eup %16539 }
 0x397   :  { %v16542_v41 = vpop.eup %16541  ;;  %16547 = vpow2.f32 %v11751_v34 }
 0x398   :  { %v16544_v42 = vpop.eup %16543  ;;  %v2117_v4 = vmul.f32 %v16542_v41, %v17619_v52  ;;  %16549 = vpow2.f32 %v11752_v39 }
 0x399   :  { %v2118_v48 = vmul.f32 %v16544_v42, %v16540_v40 }
 0x39a   :  { %v16546_v47 = vpop.eup %16545  ;;  %v2336_v50 = vpop.f32.mrb[26].mxu0 }
 0x39b   :  { %v2114_v49 = vadd.f32 1.0, %v16546_v47  ;;  %v2408_v51 = vpop.f32.mrb[26].mxu1  ;;  %v17705_v53 = vadd.f32 %v2118_v48, %v2117_v4  ;;  %v13600_v54 = vpop.f32.mrb[27].mxu0  ;;  %v2340_v62 = vadd.f32 %v2336_v50, %v2269_v61 }
 0x39c   :  { %v13611_v60 = vpop.f32.mrb[27].mxu1  ;;  %v2412_v30 = vadd.f32 %v2408_v51, %v2341_v26 }
 0x39d   :  { %16551 = vrcp.f32 %v2114_v49 }
 0x39e   :  { %16553 = vtanh.f32 %v17705_v53  ;;  %v11753_v32 = vmul.f32 -1.442695, %v2412_v30 }
 0x39f   :  { %16555 = vtanh.f32 %v2340_v62 }
 0x3a1   :  { %v16548_v1 = vpop.eup %16547 }
 0x3a2   :  { %v16550_v2 = vpop.eup %16549  ;;  %v2416_v5 = vadd.f32 1.0, %v16548_v1 }
 0x3a3   :  { %v2422_v8 = vadd.f32 1.0, %v16550_v2 }
 0x3a4   :  { %16557 = vrcp.f32 %v2416_v5 }
 0x3a5   :  { %16559 = vrcp.f32 %v2422_v8 }
 0x3a6   :  { %16561 = vpow2.f32 %v11753_v32 }
 0x3a7   :  { %v16552_v52 = vpop.eup %16551 }
 0x3a8   :  { %v16554_v9 = vpop.eup %16553 }
 0x3a9   :  { %v2121_v10 = vmul.f32 %v16554_v9, %v16552_v52  ;;  %v16556_v11 = vpop.eup %16555 }
 0x3ab   :  { %2438 = vrot.lane.b32.xlu0 %v2121_v10, %s17006_s25 }
 0x3ae   :  { %v16558_v14 = vpop.eup %16557 }
 0x3af   :  { %v16560_v15 = vpop.eup %16559  ;;  %v2433_v20 = vmul.f32 %v16558_v14, %v16556_v11 }
 0x3b0   :  { %v2432_v21 = vmul.f32 %v16560_v15, %v17624_v22  ;;  %v16562_v33 = vpop.eup %16561  ;;  %v2749_v15 = vld [vmem:[#allocation2 + $0x6] sm:$0x3] }
 0x3b1   :  { %v2429_v34 = vadd.f32 1.0, %v16562_v33 }
 0x3b2   :  { %v17710_v24 = vadd.f32 %v2433_v20, %v2432_v21  ;;  %v2824_v21 = vld [vmem:[#allocation2 + $0x16] sm:$0x3] }
 0x3b4   :  { %16563 = vtanh.f32 %v17710_v24 }
 0x3b5   :  { %16565 = vrcp.f32 %v2429_v34 }
 0x3be   :  { %v16564_v39 = vpop.eup %16563 }
 0x3bf   :  { %v16566_v40 = vpop.eup %16565 }
 0x3c0   :  { %v2436_v41 = vmul.f32 %v16566_v40, %v16564_v39 }
 0x41d   :  { %v2439_v42 = vpop.permute.xlu0 %2438 }
 0x41e   :  { %v2441_v4 = vsel %vm62_vm0, %v2436_v41, %v2439_v42 }
 0x41f   :  { %13629 = vmatmul.mubr.msk.f32.vlgmr.msra.gmra.mrb[28].mxu0 %vm1136_vm2, %v2441_v4  ;;  %13648 = vmatmul.mubr.msk.f32.vlgmr.msra.gmra.mrb[28].mxu1 %vm1136_vm2, %v2441_v4 }
 0x420   :  { %15517 = vmatpush3.bf16.msra.mxu0 %v17465_v16  ;;  %15529 = vmatpush3.bf16.msra.mxu1 %v17467_v18 }
 0x421   :  { %15518 = vmatprep.subr.bf16.mxu0 %v17003_v57  ;;  %15530 = vmatprep.subr.bf16.mxu1 %v17003_v57 }
 0x422   :  { %13666 = vmatprep.mubr.msk.f32.mxu0 %vm17004_vm1, %v17005_v3  ;;  %13685 = vmatprep.mubr.msk.f32.mxu1 %vm17004_vm1, %v17005_v3 }
 0x424   :  { %15520 = vmatpush3.bf16.msra.mxu0 %v17487_v27  ;;  %15532 = vmatpush3.bf16.msra.mxu1 %v17489_v28 }
 0x425   :  { %15521 = vmatprep.subr.bf16.mxu0 %v17003_v57  ;;  %15533 = vmatprep.subr.bf16.mxu1 %v17003_v57 }
 0x428   :  { %15523 = vmatpush3.bf16.msra.mxu0 %v17511_v36  ;;  %15535 = vmatpush3.bf16.msra.mxu1 %v17513_v38 }
 0x429   :  { %15524 = vmatprep.subr.bf16.mxu0 %v17003_v57  ;;  %15536 = vmatprep.subr.bf16.mxu1 %v17003_v57 }
 0x42c   :  { %15526 = vmatpush3.bf16.msra.mxu0 %v17531_v43  ;;  %15538 = vmatpush3.bf16.msra.mxu1 %v17533_v44 }
 0x42d   :  { %15539 = vmatprep.subr.bf16.mxu0 %v17003_v57  ;;  %15545 = vmatprep.subr.bf16.mxu1 %v17003_v57 }
 0x42f   :  { %13667 = vmatmul.mubr.msk.f32.vlgmr.msra.gmra.mrb[30].mxu0 %vm1136_vm2, %v2441_v4  ;;  %13686 = vmatmul.mubr.msk.f32.vlgmr.msra.gmra.mrb[30].mxu1 %vm1136_vm2, %v2441_v4 }
 0x430   :  { %15541 = vmatpush3.bf16.msra.mxu0 %v17238_v56  ;;  %15547 = vmatpush3.bf16.msra.mxu1 %v17241_v58 }
 0x431   :  { %15542 = vmatprep.subr.bf16.mxu0 %v17003_v57  ;;  %15548 = vmatprep.subr.bf16.mxu1 %v17003_v57 }
 0x432   :  { %13696 = vmatprep.mubr.msk.f32.mxu0 %vm17004_vm1, %v17005_v3  ;;  %13707 = vmatprep.mubr.msk.f32.mxu1 %vm17004_vm1, %v17005_v3 }
 0x434   :  { %15544 = vmatpush3.bf16.msra.mxu0 %v17261_v63  ;;  %15550 = vmatpush3.bf16.msra.mxu1 %v17265_v0 }
 0x435   :  { %15551 = vmatprep.subr.bf16.mxu0 %v17003_v57  ;;  %15557 = vmatprep.subr.bf16.mxu1 %v17003_v57 }
 0x437   :  { %13697 = vmatmul.mubr.msk.f32.vlgmr.msra.gmra.mrb[32].mxu0 %vm62_vm0, %v2436_v41  ;;  %13708 = vmatmul.mubr.msk.f32.vlgmr.msra.gmra.mrb[32].mxu1 %vm62_vm0, %v2436_v41 }
 0x438   :  { %15553 = vmatpush3.bf16.msra.mxu0 %v17285_v6  ;;  %15559 = vmatpush3.bf16.msra.mxu1 %v17289_v7 }
 0x439   :  { %15554 = vmatprep.subr.bf16.mxu0 %v17003_v57  ;;  %15560 = vmatprep.subr.bf16.mxu1 %v17003_v57 }
 0x43a   :  { %13718 = vmatprep.mubr.msk.f32.mxu0 %vm17004_vm1, %v17005_v3  ;;  %13729 = vmatprep.mubr.msk.f32.mxu1 %vm17004_vm1, %v17005_v3 }
 0x43c   :  { %15556 = vmatpush3.bf16.msra.mxu0 %v17307_v12  ;;  %15562 = vmatpush3.bf16.msra.mxu1 %v17311_v13 }
 0x43d   :  { %15563 = vmatprep.subr.bf16.mxu0 %v17003_v57  ;;  %15575 = vmatprep.subr.bf16.mxu1 %v17003_v57 }
 0x43f   :  { %13719 = vmatmul.mubr.msk.f32.vlgmr.msra.gmra.mrb[34].mxu0 %vm62_vm0, %v2436_v41  ;;  %13730 = vmatmul.mubr.msk.f32.vlgmr.msra.gmra.mrb[34].mxu1 %vm62_vm0, %v2436_v41 }
 0x440   :  { %15565 = vmatpush3.bf16.msra.mxu0 %v17337_v17  ;;  %15577 = vmatpush3.bf16.msra.mxu1 %v17342_v19 }
 0x441   :  { %15566 = vmatprep.subr.bf16.mxu0 %v17003_v57  ;;  %15578 = vmatprep.subr.bf16.mxu1 %v17003_v57 }
 0x442   :  { %13748 = vmatprep.mubr.msk.f32.mxu0 %vm17004_vm1, %v17005_v3  ;;  %13767 = vmatprep.mubr.msk.f32.mxu1 %vm17004_vm1, %v17005_v3 }
 0x444   :  { %15568 = vmatpush3.bf16.msra.mxu0 %v17357_v23  ;;  %15580 = vmatpush3.bf16.msra.mxu1 %v17362_v25 }
 0x445   :  { %15569 = vmatprep.subr.bf16.mxu0 %v17003_v57  ;;  %15581 = vmatprep.subr.bf16.mxu1 %v17003_v57 }
 0x448   :  { %15571 = vmatpush3.bf16.msra.mxu0 %v17377_v29  ;;  %15583 = vmatpush3.bf16.msra.mxu1 %v17382_v31 }
 0x449   :  { %15572 = vmatprep.subr.bf16.mxu0 %v17003_v57  ;;  %15584 = vmatprep.subr.bf16.mxu1 %v17003_v57 }
 0x44c   :  { %15574 = vmatpush3.bf16.msra.mxu0 %v17397_v35  ;;  %15586 = vmatpush3.bf16.msra.mxu1 %v17402_v37 }
 0x44d   :  { %15587 = vmatprep.subr.bf16.mxu0 %v17003_v57  ;;  %15599 = vmatprep.subr.bf16.mxu1 %v17003_v57 }
 0x4f2   :  { %v2511_v22 = vpop.f32.mrb[28].mxu0  ;;  %v2581_v47 = vpop.f32.mrb[28].mxu1 }
 0x4f3   :  { %v2512_v48 = vadd.f32 %v17598_v45, %v2511_v22  ;;  %v2582_v49 = vadd.f32 %v17603_v46, %v2581_v47  ;;  %v13630_v50 = vpop.f32.mrb[29].mxu0  ;;  %v13649_v51 = vpop.f32.mrb[29].mxu1 }
 0x4f5   :  { %v11758_v54 = vmul.f32 -1.442695, %v2512_v48  ;;  %v11759_v60 = vmul.f32 -1.442695, %v2582_v49 }
 0x4f7   :  { %16567 = vpow2.f32 %v11758_v54 }
 0x4f8   :  { %16569 = vpow2.f32 %v11759_v60 }
 0x501   :  { %v16568_v61 = vpop.eup %16567 }
 0x502   :  { %v16570_v62 = vpop.eup %16569  ;;  %v2728_v1 = vadd.f32 1.0, %v16568_v61  ;;  %v2651_v2 = vpop.f32.mrb[30].mxu0 }
 0x503   :  { %v2721_v5 = vpop.f32.mrb[30].mxu1  ;;  %v2734_v8 = vadd.f32 1.0, %v16570_v62  ;;  %v2652_v52 = vadd.f32 %v17610_v55, %v2651_v2  ;;  %v13668_v10 = vpop.f32.mrb[31].mxu0  ;;  %v2896_v62 = vld [vmem:[#allocation2 + $0x26] sm:$0x3] }
 0x504   :  { %v2722_v9 = vadd.f32 %v17615_v59, %v2721_v5  ;;  %v13687_v11 = vpop.f32.mrb[31].mxu1  ;;  %16571 = vrcp.f32 %v2728_v1 }
 0x505   :  { %16573 = vrcp.f32 %v2734_v8 }
 0x506   :  { %v11760_v14 = vmul.f32 -1.442695, %v2722_v9  ;;  %16575 = vtanh.f32 %v2652_v52 }
 0x508   :  { %16577 = vpow2.f32 %v11760_v14 }
 0x50a   :  { %v2819_v20 = vpop.f32.mrb[32].mxu0  ;;  %v2891_v26 = vpop.f32.mrb[32].mxu1 }
 0x50b   :  { %v2823_v30 = vadd.f32 %v2819_v20, %v2749_v15  ;;  %v2895_v32 = vadd.f32 %v2891_v26, %v2824_v21  ;;  %v13698_v33 = vpop.f32.mrb[33].mxu0  ;;  %v13709_v34 = vpop.f32.mrb[33].mxu1 }
 0x50d   :  { %v11765_v39 = vmul.f32 -1.442695, %v2823_v30  ;;  %v11766_v40 = vmul.f32 -1.442695, %v2895_v32  ;;  %v2968_v30 = vld [vmem:[#allocation2 + $0x36] sm:$0x3] }
 0x50e   :  { %v16572_v41 = vpop.eup %16571 }
 0x50f   :  { %v16574_v42 = vpop.eup %16573  ;;  %16579 = vpow2.f32 %v11765_v39 }
 0x510   :  { %v16576_v4 = vpop.eup %16575  ;;  %v2744_v22 = vmul.f32 %v16574_v42, %v17705_v53  ;;  %16581 = vpow2.f32 %v11766_v40 }
 0x511   :  { %v2745_v48 = vmul.f32 %v16576_v4, %v16572_v41 }
 0x512   :  { %v16578_v47 = vpop.eup %16577  ;;  %v2963_v50 = vpop.f32.mrb[34].mxu0 }
 0x513   :  { %v2741_v49 = vadd.f32 1.0, %v16578_v47  ;;  %v3035_v51 = vpop.f32.mrb[34].mxu1  ;;  %v17791_v54 = vadd.f32 %v2745_v48, %v2744_v22  ;;  %v13720_v60 = vpop.f32.mrb[35].mxu0  ;;  %v2967_v1 = vadd.f32 %v2963_v50, %v2896_v62 }
 0x514   :  { %v13731_v61 = vpop.f32.mrb[35].mxu1  ;;  %v3039_v32 = vadd.f32 %v3035_v51, %v2968_v30 }
 0x515   :  { %16583 = vrcp.f32 %v2741_v49 }
 0x516   :  { %16585 = vtanh.f32 %v17791_v54  ;;  %v11767_v33 = vmul.f32 -1.442695, %v3039_v32 }
 0x517   :  { %16587 = vtanh.f32 %v2967_v1 }
 0x519   :  { %v16580_v2 = vpop.eup %16579 }
 0x51a   :  { %v16582_v5 = vpop.eup %16581  ;;  %v3043_v8 = vadd.f32 1.0, %v16580_v2 }
 0x51b   :  { %v3049_v52 = vadd.f32 1.0, %v16582_v5 }
 0x51c   :  { %16589 = vrcp.f32 %v3043_v8 }
 0x51d   :  { %16591 = vrcp.f32 %v3049_v52 }
 0x51e   :  { %16593 = vpow2.f32 %v11767_v33 }
 0x51f   :  { %v16584_v53 = vpop.eup %16583 }
 0x520   :  { %v16586_v9 = vpop.eup %16585 }
 0x521   :  { %v2748_v10 = vmul.f32 %v16586_v9, %v16584_v53  ;;  %v16588_v11 = vpop.eup %16587 }
 0x523   :  { %3065 = vrot.lane.b32.xlu1 %v2748_v10, %s17006_s25 }
 0x526   :  { %v16590_v14 = vpop.eup %16589 }
 0x527   :  { %v16592_v15 = vpop.eup %16591  ;;  %v3060_v20 = vmul.f32 %v16590_v14, %v16588_v11  ;;  %v3376_v11 = vld [vmem:[#allocation2 + $0x8] sm:$0x3] }
 0x528   :  { %v3059_v21 = vmul.f32 %v16592_v15, %v17710_v24  ;;  %v16594_v34 = vpop.eup %16593  ;;  %v3451_v15 = vld [vmem:[#allocation2 + $0x18] sm:$0x3] }
 0x529   :  { %v3056_v39 = vadd.f32 1.0, %v16594_v34 }
 0x52a   :  { %v17796_v26 = vadd.f32 %v3060_v20, %v3059_v21 }
 0x52c   :  { %16595 = vtanh.f32 %v17796_v26 }
 0x52d   :  { %16597 = vrcp.f32 %v3056_v39 }
 0x536   :  { %v16596_v40 = vpop.eup %16595 }
 0x537   :  { %v16598_v41 = vpop.eup %16597 }
 0x538   :  { %v3063_v42 = vmul.f32 %v16598_v41, %v16596_v40 }
 0x595   :  { %v3066_v4 = vpop.permute.xlu1 %3065 }
 0x596   :  { %v3068_v22 = vsel %vm62_vm0, %v3063_v42, %v3066_v4 }
 0x597   :  { %13749 = vmatmul.mubr.msk.f32.vlgmr.msra.gmra.mrb[36].mxu0 %vm1136_vm2, %v3068_v22  ;;  %13768 = vmatmul.mubr.msk.f32.vlgmr.msra.gmra.mrb[36].mxu1 %vm1136_vm2, %v3068_v22 }
 0x598   :  { %15589 = vmatpush3.bf16.msra.mxu0 %v17465_v16  ;;  %15601 = vmatpush3.bf16.msra.mxu1 %v17467_v18 }
 0x599   :  { %15590 = vmatprep.subr.bf16.mxu0 %v17003_v57  ;;  %15602 = vmatprep.subr.bf16.mxu1 %v17003_v57 }
 0x59a   :  { %13786 = vmatprep.mubr.msk.f32.mxu0 %vm17004_vm1, %v17005_v3  ;;  %13805 = vmatprep.mubr.msk.f32.mxu1 %vm17004_vm1, %v17005_v3 }
 0x59c   :  { %15592 = vmatpush3.bf16.msra.mxu0 %v17487_v27  ;;  %15604 = vmatpush3.bf16.msra.mxu1 %v17489_v28 }
 0x59d   :  { %15593 = vmatprep.subr.bf16.mxu0 %v17003_v57  ;;  %15605 = vmatprep.subr.bf16.mxu1 %v17003_v57 }
 0x5a0   :  { %15595 = vmatpush3.bf16.msra.mxu0 %v17511_v36  ;;  %15607 = vmatpush3.bf16.msra.mxu1 %v17513_v38 }
 0x5a1   :  { %15596 = vmatprep.subr.bf16.mxu0 %v17003_v57  ;;  %15608 = vmatprep.subr.bf16.mxu1 %v17003_v57 }
 0x5a4   :  { %15598 = vmatpush3.bf16.msra.mxu0 %v17531_v43  ;;  %15610 = vmatpush3.bf16.msra.mxu1 %v17533_v44 }
 0x5a5   :  { %15611 = vmatprep.subr.bf16.mxu0 %v17003_v57  ;;  %15617 = vmatprep.subr.bf16.mxu1 %v17003_v57 }
 0x5a7   :  { %13787 = vmatmul.mubr.msk.f32.vlgmr.msra.gmra.mrb[38].mxu0 %vm1136_vm2, %v3068_v22  ;;  %13806 = vmatmul.mubr.msk.f32.vlgmr.msra.gmra.mrb[38].mxu1 %vm1136_vm2, %v3068_v22 }
 0x5a8   :  { %15613 = vmatpush3.bf16.msra.mxu0 %v17238_v56  ;;  %15619 = vmatpush3.bf16.msra.mxu1 %v17241_v58 }
 0x5a9   :  { %15614 = vmatprep.subr.bf16.mxu0 %v17003_v57  ;;  %15620 = vmatprep.subr.bf16.mxu1 %v17003_v57 }
 0x5aa   :  { %13816 = vmatprep.mubr.msk.f32.mxu0 %vm17004_vm1, %v17005_v3  ;;  %13827 = vmatprep.mubr.msk.f32.mxu1 %vm17004_vm1, %v17005_v3 }
 0x5ac   :  { %15616 = vmatpush3.bf16.msra.mxu0 %v17261_v63  ;;  %15622 = vmatpush3.bf16.msra.mxu1 %v17265_v0 }
 0x5ad   :  { %15623 = vmatprep.subr.bf16.mxu0 %v17003_v57  ;;  %15629 = vmatprep.subr.bf16.mxu1 %v17003_v57 }
 0x5af   :  { %13817 = vmatmul.mubr.msk.f32.vlgmr.msra.gmra.mrb[40].mxu0 %vm62_vm0, %v3063_v42  ;;  %13828 = vmatmul.mubr.msk.f32.vlgmr.msra.gmra.mrb[40].mxu1 %vm62_vm0, %v3063_v42 }
 0x5b0   :  { %15625 = vmatpush3.bf16.msra.mxu0 %v17285_v6  ;;  %15631 = vmatpush3.bf16.msra.mxu1 %v17289_v7 }
 0x5b1   :  { %15626 = vmatprep.subr.bf16.mxu0 %v17003_v57  ;;  %15632 = vmatprep.subr.bf16.mxu1 %v17003_v57 }
 0x5b2   :  { %13838 = vmatprep.mubr.msk.f32.mxu0 %vm17004_vm1, %v17005_v3  ;;  %13849 = vmatprep.mubr.msk.f32.mxu1 %vm17004_vm1, %v17005_v3 }
 0x5b4   :  { %15628 = vmatpush3.bf16.msra.mxu0 %v17307_v12  ;;  %15634 = vmatpush3.bf16.msra.mxu1 %v17311_v13 }
 0x5b5   :  { %15635 = vmatprep.subr.bf16.mxu0 %v17003_v57  ;;  %15647 = vmatprep.subr.bf16.mxu1 %v17003_v57 }
 0x5b7   :  { %13839 = vmatmul.mubr.msk.f32.vlgmr.msra.gmra.mrb[42].mxu0 %vm62_vm0, %v3063_v42  ;;  %13850 = vmatmul.mubr.msk.f32.vlgmr.msra.gmra.mrb[42].mxu1 %vm62_vm0, %v3063_v42 }
 0x5b8   :  { %15637 = vmatpush3.bf16.msra.mxu0 %v17337_v17  ;;  %15649 = vmatpush3.bf16.msra.mxu1 %v17342_v19 }
 0x5b9   :  { %15638 = vmatprep.subr.bf16.mxu0 %v17003_v57  ;;  %15650 = vmatprep.subr.bf16.mxu1 %v17003_v57 }
 0x5ba   :  { %13868 = vmatprep.mubr.msk.f32.mxu0 %vm17004_vm1, %v17005_v3  ;;  %13887 = vmatprep.mubr.msk.f32.mxu1 %vm17004_vm1, %v17005_v3 }
 0x5bc   :  { %15640 = vmatpush3.bf16.msra.mxu0 %v17357_v23  ;;  %15652 = vmatpush3.bf16.msra.mxu1 %v17362_v25 }
 0x5bd   :  { %15641 = vmatprep.subr.bf16.mxu0 %v17003_v57  ;;  %15653 = vmatprep.subr.bf16.mxu1 %v17003_v57 }
 0x5c0   :  { %15643 = vmatpush3.bf16.msra.mxu0 %v17377_v29  ;;  %15655 = vmatpush3.bf16.msra.mxu1 %v17382_v31 }
 0x5c1   :  { %15644 = vmatprep.subr.bf16.mxu0 %v17003_v57  ;;  %15656 = vmatprep.subr.bf16.mxu1 %v17003_v57 }
 0x5c4   :  { %15646 = vmatpush3.bf16.msra.mxu0 %v17397_v35  ;;  %15658 = vmatpush3.bf16.msra.mxu1 %v17402_v37 }
 0x5c5   :  { %15659 = vmatprep.subr.bf16.mxu0 %v17003_v57  ;;  %15671 = vmatprep.subr.bf16.mxu1 %v17003_v57 }
 0x66a   :  { %v3138_v24 = vpop.f32.mrb[36].mxu0  ;;  %v3208_v47 = vpop.f32.mrb[36].mxu1 }
 0x66b   :  { %v3139_v48 = vadd.f32 %v17598_v45, %v3138_v24  ;;  %v3209_v49 = vadd.f32 %v17603_v46, %v3208_v47  ;;  %v13750_v50 = vpop.f32.mrb[37].mxu0  ;;  %v13769_v51 = vpop.f32.mrb[37].mxu1 }
 0x66c   :  { %v3523_v51 = vld [vmem:[#allocation2 + $0x28] sm:$0x3] }
 0x66d   :  { %v11772_v60 = vmul.f32 -1.442695, %v3139_v48  ;;  %v11773_v61 = vmul.f32 -1.442695, %v3209_v49 }
 0x66f   :  { %16599 = vpow2.f32 %v11772_v60 }
 0x670   :  { %16601 = vpow2.f32 %v11773_v61 }
 0x679   :  { %v16600_v62 = vpop.eup %16599 }
 0x67a   :  { %v16602_v1 = vpop.eup %16601  ;;  %v3355_v2 = vadd.f32 1.0, %v16600_v62  ;;  %v3278_v5 = vpop.f32.mrb[38].mxu0 }
 0x67b   :  { %v3348_v8 = vpop.f32.mrb[38].mxu1  ;;  %v3361_v52 = vadd.f32 1.0, %v16602_v1  ;;  %v3279_v53 = vadd.f32 %v17610_v55, %v3278_v5  ;;  %v13788_v10 = vpop.f32.mrb[39].mxu0 }
 0x67c   :  { %v3349_v9 = vadd.f32 %v17615_v59, %v3348_v8  ;;  %v13807_v45 = vpop.f32.mrb[39].mxu1  ;;  %16603 = vrcp.f32 %v3355_v2 }
 0x67d   :  { %16605 = vrcp.f32 %v3361_v52 }
 0x67e   :  { %v11774_v46 = vmul.f32 -1.442695, %v3349_v9  ;;  %16607 = vtanh.f32 %v3279_v53 }
 0x680   :  { %16609 = vpow2.f32 %v11774_v46 }
 0x682   :  { %v3446_v14 = vpop.f32.mrb[40].mxu0  ;;  %v3518_v20 = vpop.f32.mrb[40].mxu1 }
 0x683   :  { %v3450_v21 = vadd.f32 %v3446_v14, %v3376_v11  ;;  %v3522_v30 = vadd.f32 %v3518_v20, %v3451_v15  ;;  %v13818_v32 = vpop.f32.mrb[41].mxu0  ;;  %v13829_v33 = vpop.f32.mrb[41].mxu1  ;;  %v3595_v11 = vld [vmem:[#allocation2 + $0x38] sm:$0x3] }
 0x685   :  { %v11779_v34 = vmul.f32 -1.442695, %v3450_v21  ;;  %v11780_v39 = vmul.f32 -1.442695, %v3522_v30 }
 0x686   :  { %v16604_v55 = vpop.eup %16603 }
 0x687   :  { %v16606_v40 = vpop.eup %16605  ;;  %16611 = vpow2.f32 %v11779_v34 }
 0x688   :  { %v16608_v59 = vpop.eup %16607  ;;  %v3371_v41 = vmul.f32 %v16606_v40, %v17791_v54  ;;  %16613 = vpow2.f32 %v11780_v39  ;;  %v17961_v40 = vld [vmem:[%s19595_s6] ss:$0 sm:$0xff] }
 0x689   :  { %v3372_v4 = vmul.f32 %v16608_v59, %v16604_v55 }
 0x68a   :  { %v16610_v42 = vpop.eup %16609  ;;  %v3590_v24 = vpop.f32.mrb[42].mxu0 }
 0x68b   :  { %v3368_v22 = vadd.f32 1.0, %v16610_v42  ;;  %v3662_v47 = vpop.f32.mrb[42].mxu1  ;;  %v17877_v48 = vadd.f32 %v3372_v4, %v3371_v41  ;;  %v13840_v49 = vpop.f32.mrb[43].mxu0  ;;  %v3594_v60 = vadd.f32 %v3590_v24, %v3523_v51  ;;  %v17967_v41 = vld [vmem:[%s19595_s6 + $0x1] ss:$0 sm:$0xff] }
 0x68c   :  { %v13851_v50 = vpop.f32.mrb[43].mxu1  ;;  %v3666_v14 = vadd.f32 %v3662_v47, %v3595_v11 }
 0x68d   :  { %16615 = vrcp.f32 %v3368_v22 }
 0x68e   :  { %16617 = vtanh.f32 %v17877_v48  ;;  %v11781_v15 = vmul.f32 -1.442695, %v3666_v14 }
 0x68f   :  { %16619 = vtanh.f32 %v3594_v60 }
 0x691   :  { %v16612_v61 = vpop.eup %16611 }
 0x692   :  { %v16614_v62 = vpop.eup %16613  ;;  %v3670_v1 = vadd.f32 1.0, %v16612_v61 }
 0x693   :  { %v3676_v2 = vadd.f32 1.0, %v16614_v62 }
 0x694   :  { %16621 = vrcp.f32 %v3670_v1  ;;  %v17973_v1 = vld [vmem:[%s19595_s6 + $0x2] ss:$0 sm:$0xff] }
 0x695   :  { %16623 = vrcp.f32 %v3676_v2 }
 0x696   :  { %16625 = vpow2.f32 %v11781_v15 }
 0x697   :  { %v16616_v54 = vpop.eup %16615 }
 0x698   :  { %v16618_v5 = vpop.eup %16617 }
 0x699   :  { %v3375_v8 = vmul.f32 %v16618_v5, %v16616_v54  ;;  %v16620_v52 = vpop.eup %16619  ;;  %v17979_v54 = vld [vmem:[%s19595_s6 + $0x3] ss:$0 sm:$0xff] }
 0x69b   :  { %3692 = vrot.lane.b32.xlu1 %v3375_v8, %s17006_s25 }
 0x69e   :  { %v16622_v53 = vpop.eup %16621 }
 0x69f   :  { %v16624_v9 = vpop.eup %16623  ;;  %v3687_v10 = vmul.f32 %v16622_v53, %v16620_v52 }
 0x6a0   :  { %v3686_v45 = vmul.f32 %v16624_v9, %v17796_v26  ;;  %v16626_v20 = vpop.eup %16625  ;;  %v4003_v9 = vld [vmem:[#allocation2 + $0xa] sm:$0x3] }
 0x6a1   :  { %v3683_v21 = vadd.f32 1.0, %v16626_v20 }
 0x6a2   :  { %v17882_v46 = vadd.f32 %v3687_v10, %v3686_v45  ;;  %v4078_v45 = vld [vmem:[#allocation2 + $0x1a] sm:$0x3] }
 0x6a4   :  { %16627 = vtanh.f32 %v17882_v46 }
 0x6a5   :  { %16629 = vrcp.f32 %v3683_v21 }
 0x6ae   :  { %v16628_v30 = vpop.eup %16627 }
 0x6af   :  { %v16630_v32 = vpop.eup %16629 }
 0x6b0   :  { %v3690_v33 = vmul.f32 %v16630_v32, %v16628_v30 }
 0x70d   :  { %v3693_v34 = vpop.permute.xlu1 %3692 }
 0x70e   :  { %v3695_v39 = vsel %vm62_vm0, %v3690_v33, %v3693_v34 }
 0x70f   :  { %13869 = vmatmul.mubr.msk.f32.vlgmr.msra.gmra.mrb[44].mxu0 %vm1136_vm2, %v3695_v39  ;;  %13888 = vmatmul.mubr.msk.f32.vlgmr.msra.gmra.mrb[44].mxu1 %vm1136_vm2, %v3695_v39 }
 0x710   :  { %15661 = vmatpush3.bf16.msra.mxu0 %v17465_v16  ;;  %15673 = vmatpush3.bf16.msra.mxu1 %v17467_v18 }
 0x711   :  { %15662 = vmatprep.subr.bf16.mxu0 %v17003_v57  ;;  %15674 = vmatprep.subr.bf16.mxu1 %v17003_v57 }
 0x712   :  { %13906 = vmatprep.mubr.msk.f32.mxu0 %vm17004_vm1, %v17005_v3  ;;  %13925 = vmatprep.mubr.msk.f32.mxu1 %vm17004_vm1, %v17005_v3 }
 0x714   :  { %15664 = vmatpush3.bf16.msra.mxu0 %v17487_v27  ;;  %15676 = vmatpush3.bf16.msra.mxu1 %v17489_v28 }
 0x715   :  { %15665 = vmatprep.subr.bf16.mxu0 %v17003_v57  ;;  %15677 = vmatprep.subr.bf16.mxu1 %v17003_v57 }
 0x718   :  { %15667 = vmatpush3.bf16.msra.mxu0 %v17511_v36  ;;  %15679 = vmatpush3.bf16.msra.mxu1 %v17513_v38 }
 0x719   :  { %15668 = vmatprep.subr.bf16.mxu0 %v17003_v57  ;;  %15680 = vmatprep.subr.bf16.mxu1 %v17003_v57 }
 0x71c   :  { %15670 = vmatpush3.bf16.msra.mxu0 %v17531_v43  ;;  %15682 = vmatpush3.bf16.msra.mxu1 %v17533_v44 }
 0x71d   :  { %15683 = vmatprep.subr.bf16.mxu0 %v17003_v57  ;;  %15689 = vmatprep.subr.bf16.mxu1 %v17003_v57 }
 0x71f   :  { %13907 = vmatmul.mubr.msk.f32.vlgmr.msra.gmra.mrb[46].mxu0 %vm1136_vm2, %v3695_v39  ;;  %13926 = vmatmul.mubr.msk.f32.vlgmr.msra.gmra.mrb[46].mxu1 %vm1136_vm2, %v3695_v39 }
 0x720   :  { %15685 = vmatpush3.bf16.msra.mxu0 %v17238_v56  ;;  %15691 = vmatpush3.bf16.msra.mxu1 %v17241_v58 }
 0x721   :  { %15686 = vmatprep.subr.bf16.mxu0 %v17003_v57  ;;  %15692 = vmatprep.subr.bf16.mxu1 %v17003_v57 }
 0x722   :  { %13936 = vmatprep.mubr.msk.f32.mxu0 %vm17004_vm1, %v17005_v3  ;;  %13947 = vmatprep.mubr.msk.f32.mxu1 %vm17004_vm1, %v17005_v3 }
 0x724   :  { %15688 = vmatpush3.bf16.msra.mxu0 %v17261_v63  ;;  %15694 = vmatpush3.bf16.msra.mxu1 %v17265_v0 }
 0x725   :  { %15695 = vmatprep.subr.bf16.mxu0 %v17003_v57  ;;  %15701 = vmatprep.subr.bf16.mxu1 %v17003_v57 }
 0x727   :  { %13937 = vmatmul.mubr.msk.f32.vlgmr.msra.gmra.mrb[48].mxu0 %vm62_vm0, %v3690_v33  ;;  %13948 = vmatmul.mubr.msk.f32.vlgmr.msra.gmra.mrb[48].mxu1 %vm62_vm0, %v3690_v33 }
 0x728   :  { %15697 = vmatpush3.bf16.msra.mxu0 %v17285_v6  ;;  %15703 = vmatpush3.bf16.msra.mxu1 %v17289_v7 }
 0x729   :  { %15698 = vmatprep.subr.bf16.mxu0 %v17003_v57  ;;  %15704 = vmatprep.subr.bf16.mxu1 %v17003_v57 }
 0x72a   :  { %13958 = vmatprep.mubr.msk.f32.mxu0 %vm17004_vm1, %v17005_v3  ;;  %13969 = vmatprep.mubr.msk.f32.mxu1 %vm17004_vm1, %v17005_v3 }
 0x72c   :  { %15700 = vmatpush3.bf16.msra.mxu0 %v17307_v12  ;;  %15706 = vmatpush3.bf16.msra.mxu1 %v17311_v13 }
 0x72d   :  { %15707 = vmatprep.subr.bf16.mxu0 %v17003_v57  ;;  %15719 = vmatprep.subr.bf16.mxu1 %v17003_v57 }
 0x72f   :  { %13959 = vmatmul.mubr.msk.f32.vlgmr.msra.gmra.mrb[50].mxu0 %vm62_vm0, %v3690_v33  ;;  %13970 = vmatmul.mubr.msk.f32.vlgmr.msra.gmra.mrb[50].mxu1 %vm62_vm0, %v3690_v33 }
 0x730   :  { %15709 = vmatpush3.bf16.msra.mxu0 %v17337_v17  ;;  %15721 = vmatpush3.bf16.msra.mxu1 %v17342_v19 }
 0x731   :  { %15710 = vmatprep.subr.bf16.mxu0 %v17003_v57  ;;  %15722 = vmatprep.subr.bf16.mxu1 %v17003_v57 }
 0x732   :  { %13988 = vmatprep.mubr.msk.f32.mxu0 %vm17004_vm1, %v17005_v3  ;;  %14007 = vmatprep.mubr.msk.f32.mxu1 %vm17004_vm1, %v17005_v3 }
 0x734   :  { %15712 = vmatpush3.bf16.msra.mxu0 %v17357_v23  ;;  %15724 = vmatpush3.bf16.msra.mxu1 %v17362_v25 }
 0x735   :  { %15713 = vmatprep.subr.bf16.mxu0 %v17003_v57  ;;  %15725 = vmatprep.subr.bf16.mxu1 %v17003_v57 }
 0x738   :  { %15715 = vmatpush3.bf16.msra.mxu0 %v17377_v29  ;;  %15727 = vmatpush3.bf16.msra.mxu1 %v17382_v31 }
 0x739   :  { %15716 = vmatprep.subr.bf16.mxu0 %v17003_v57  ;;  %15728 = vmatprep.subr.bf16.mxu1 %v17003_v57 }
 0x73c   :  { %15718 = vmatpush3.bf16.msra.mxu0 %v17397_v35  ;;  %15730 = vmatpush3.bf16.msra.mxu1 %v17402_v37 }
 0x73d   :  { %15731 = vmatprep.subr.bf16.mxu0 %v17003_v57  ;;  %15743 = vmatprep.subr.bf16.mxu1 %v17003_v57 }
 0x7e2   :  { %v3765_v26 = vpop.f32.mrb[44].mxu0  ;;  %v3835_v55 = vpop.f32.mrb[44].mxu1 }
 0x7e3   :  { %v3766_v59 = vadd.f32 %v17961_v40, %v3765_v26  ;;  %v3836_v42 = vadd.f32 %v17967_v41, %v3835_v55  ;;  %v13870_v4 = vpop.f32.mrb[45].mxu0  ;;  %v13889_v22 = vpop.f32.mrb[45].mxu1 }
 0x7e5   :  { %v11786_v24 = vmul.f32 -1.442695, %v3766_v59  ;;  %v11787_v47 = vmul.f32 -1.442695, %v3836_v42 }
 0x7e7   :  { %16631 = vpow2.f32 %v11786_v24 }
 0x7e8   :  { %16633 = vpow2.f32 %v11787_v47 }
 0x7f1   :  { %v16632_v49 = vpop.eup %16631 }
 0x7f2   :  { %v16634_v50 = vpop.eup %16633  ;;  %v3982_v51 = vadd.f32 1.0, %v16632_v49  ;;  %v3905_v60 = vpop.f32.mrb[46].mxu0 }
 0x7f3   :  { %v3975_v61 = vpop.f32.mrb[46].mxu1  ;;  %v3988_v62 = vadd.f32 1.0, %v16634_v50  ;;  %v3906_v2 = vadd.f32 %v17973_v1, %v3905_v60  ;;  %v13908_v8 = vpop.f32.mrb[47].mxu0  ;;  %v4150_v50 = vld [vmem:[#allocation2 + $0x2a] sm:$0x3] }
 0x7f4   :  { %v3976_v5 = vadd.f32 %v17979_v54, %v3975_v61  ;;  %v13927_v52 = vpop.f32.mrb[47].mxu1  ;;  %16635 = vrcp.f32 %v3982_v51 }
 0x7f5   :  { %16637 = vrcp.f32 %v3988_v62 }
 0x7f6   :  { %v11788_v53 = vmul.f32 -1.442695, %v3976_v5  ;;  %16639 = vtanh.f32 %v3906_v2 }
 0x7f8   :  { %16641 = vpow2.f32 %v11788_v53 }
 0x7fa   :  { %v4073_v10 = vpop.f32.mrb[48].mxu0  ;;  %v4145_v11 = vpop.f32.mrb[48].mxu1 }
 0x7fb   :  { %v4077_v14 = vadd.f32 %v4073_v10, %v4003_v9  ;;  %v4149_v15 = vadd.f32 %v4145_v11, %v4078_v45  ;;  %v13938_v20 = vpop.f32.mrb[49].mxu0  ;;  %v13949_v21 = vpop.f32.mrb[49].mxu1 }
 0x7fd   :  { %v11793_v30 = vmul.f32 -1.442695, %v4077_v14  ;;  %v11794_v32 = vmul.f32 -1.442695, %v4149_v15  ;;  %v4222_v14 = vld [vmem:[#allocation2 + $0x3a] sm:$0x3] }
 0x7fe   :  { %v16636_v33 = vpop.eup %16635 }
 0x7ff   :  { %v16638_v34 = vpop.eup %16637  ;;  %16643 = vpow2.f32 %v11793_v30 }
 0x800   :  { %v16640_v39 = vpop.eup %16639  ;;  %v3998_v26 = vmul.f32 %v16638_v34, %v17877_v48  ;;  %16645 = vpow2.f32 %v11794_v32 }
 0x801   :  { %v3999_v59 = vmul.f32 %v16640_v39, %v16636_v33 }
 0x802   :  { %v16642_v55 = vpop.eup %16641  ;;  %v4217_v4 = vpop.f32.mrb[50].mxu0 }
 0x803   :  { %v3995_v42 = vadd.f32 1.0, %v16642_v55  ;;  %v4289_v22 = vpop.f32.mrb[50].mxu1  ;;  %v17983_v24 = vadd.f32 %v3999_v59, %v3998_v26  ;;  %v13960_v47 = vpop.f32.mrb[51].mxu0  ;;  %v4221_v51 = vadd.f32 %v4217_v4, %v4150_v50 }
 0x804   :  { %v13971_v49 = vpop.f32.mrb[51].mxu1  ;;  %v4293_v15 = vadd.f32 %v4289_v22, %v4222_v14 }
 0x805   :  { %16647 = vrcp.f32 %v3995_v42 }
 0x806   :  { %16649 = vtanh.f32 %v17983_v24  ;;  %v11795_v20 = vmul.f32 -1.442695, %v4293_v15 }
 0x807   :  { %16651 = vtanh.f32 %v4221_v51 }
 0x809   :  { %v16644_v60 = vpop.eup %16643 }
 0x80a   :  { %v16646_v61 = vpop.eup %16645  ;;  %v4297_v62 = vadd.f32 1.0, %v16644_v60 }
 0x80b   :  { %v4303_v2 = vadd.f32 1.0, %v16646_v61 }
 0x80c   :  { %16653 = vrcp.f32 %v4297_v62 }
 0x80d   :  { %16655 = vrcp.f32 %v4303_v2 }
 0x80e   :  { %16657 = vpow2.f32 %v11795_v20 }
 0x80f   :  { %v16648_v48 = vpop.eup %16647 }
 0x810   :  { %v16650_v5 = vpop.eup %16649 }
 0x811   :  { %v4002_v8 = vmul.f32 %v16650_v5, %v16648_v48  ;;  %v16652_v52 = vpop.eup %16651 }
 0x813   :  { %4319 = vrot.lane.b32.xlu0 %v4002_v8, %s17006_s25 }
 0x816   :  { %v16654_v53 = vpop.eup %16653 }
 0x817   :  { %v16656_v9 = vpop.eup %16655  ;;  %v4314_v10 = vmul.f32 %v16654_v53, %v16652_v52 }
 0x818   :  { %v4313_v45 = vmul.f32 %v16656_v9, %v17882_v46  ;;  %v16658_v21 = vpop.eup %16657  ;;  %v4630_v9 = vld [vmem:[#allocation2 + $0xc] sm:$0x3] }
 0x819   :  { %v4310_v30 = vadd.f32 1.0, %v16658_v21 }
 0x81a   :  { %v17988_v11 = vadd.f32 %v4314_v10, %v4313_v45  ;;  %v4705_v45 = vld [vmem:[#allocation2 + $0x1c] sm:$0x3] }
 0x81c   :  { %16659 = vtanh.f32 %v17988_v11 }
 0x81d   :  { %16661 = vrcp.f32 %v4310_v30 }
 0x826   :  { %v16660_v32 = vpop.eup %16659 }
 0x827   :  { %v16662_v33 = vpop.eup %16661 }
 0x828   :  { %v4317_v34 = vmul.f32 %v16662_v33, %v16660_v32 }
 0x885   :  { %v4320_v39 = vpop.permute.xlu0 %4319 }
 0x886   :  { %v4322_v26 = vsel %vm62_vm0, %v4317_v34, %v4320_v39 }
 0x887   :  { %13989 = vmatmul.mubr.msk.f32.vlgmr.msra.gmra.mrb[52].mxu0 %vm1136_vm2, %v4322_v26  ;;  %14008 = vmatmul.mubr.msk.f32.vlgmr.msra.gmra.mrb[52].mxu1 %vm1136_vm2, %v4322_v26 }
 0x888   :  { %15733 = vmatpush3.bf16.msra.mxu0 %v17465_v16  ;;  %15745 = vmatpush3.bf16.msra.mxu1 %v17467_v18 }
 0x889   :  { %15734 = vmatprep.subr.bf16.mxu0 %v17003_v57  ;;  %15746 = vmatprep.subr.bf16.mxu1 %v17003_v57 }
 0x88a   :  { %14026 = vmatprep.mubr.msk.f32.mxu0 %vm17004_vm1, %v17005_v3  ;;  %14045 = vmatprep.mubr.msk.f32.mxu1 %vm17004_vm1, %v17005_v3 }
 0x88c   :  { %15736 = vmatpush3.bf16.msra.mxu0 %v17487_v27  ;;  %15748 = vmatpush3.bf16.msra.mxu1 %v17489_v28 }
 0x88d   :  { %15737 = vmatprep.subr.bf16.mxu0 %v17003_v57  ;;  %15749 = vmatprep.subr.bf16.mxu1 %v17003_v57 }
 0x890   :  { %15739 = vmatpush3.bf16.msra.mxu0 %v17511_v36  ;;  %15751 = vmatpush3.bf16.msra.mxu1 %v17513_v38 }
 0x891   :  { %15740 = vmatprep.subr.bf16.mxu0 %v17003_v57  ;;  %15752 = vmatprep.subr.bf16.mxu1 %v17003_v57 }
 0x894   :  { %15742 = vmatpush3.bf16.msra.mxu0 %v17531_v43  ;;  %15754 = vmatpush3.bf16.msra.mxu1 %v17533_v44 }
 0x895   :  { %15755 = vmatprep.subr.bf16.mxu0 %v17003_v57  ;;  %15761 = vmatprep.subr.bf16.mxu1 %v17003_v57 }
 0x897   :  { %14027 = vmatmul.mubr.msk.f32.vlgmr.msra.gmra.mrb[54].mxu0 %vm1136_vm2, %v4322_v26  ;;  %14046 = vmatmul.mubr.msk.f32.vlgmr.msra.gmra.mrb[54].mxu1 %vm1136_vm2, %v4322_v26 }
 0x898   :  { %15757 = vmatpush3.bf16.msra.mxu0 %v17238_v56  ;;  %15763 = vmatpush3.bf16.msra.mxu1 %v17241_v58 }
 0x899   :  { %15758 = vmatprep.subr.bf16.mxu0 %v17003_v57  ;;  %15764 = vmatprep.subr.bf16.mxu1 %v17003_v57 }
 0x89a   :  { %14056 = vmatprep.mubr.msk.f32.mxu0 %vm17004_vm1, %v17005_v3  ;;  %14067 = vmatprep.mubr.msk.f32.mxu1 %vm17004_vm1, %v17005_v3 }
 0x89c   :  { %15760 = vmatpush3.bf16.msra.mxu0 %v17261_v63  ;;  %15766 = vmatpush3.bf16.msra.mxu1 %v17265_v0 }
 0x89d   :  { %15767 = vmatprep.subr.bf16.mxu0 %v17003_v57  ;;  %15773 = vmatprep.subr.bf16.mxu1 %v17003_v57 }
 0x89f   :  { %14057 = vmatmul.mubr.msk.f32.vlgmr.msra.gmra.mrb[56].mxu0 %vm62_vm0, %v4317_v34  ;;  %14068 = vmatmul.mubr.msk.f32.vlgmr.msra.gmra.mrb[56].mxu1 %vm62_vm0, %v4317_v34 }
 0x8a0   :  { %15769 = vmatpush3.bf16.msra.mxu0 %v17285_v6  ;;  %15775 = vmatpush3.bf16.msra.mxu1 %v17289_v7 }
 0x8a1   :  { %15770 = vmatprep.subr.bf16.mxu0 %v17003_v57  ;;  %15776 = vmatprep.subr.bf16.mxu1 %v17003_v57 }
 0x8a2   :  { %14078 = vmatprep.mubr.msk.f32.mxu0 %vm17004_vm1, %v17005_v3  ;;  %14089 = vmatprep.mubr.msk.f32.mxu1 %vm17004_vm1, %v17005_v3 }
 0x8a4   :  { %15772 = vmatpush3.bf16.msra.mxu0 %v17307_v12  ;;  %15778 = vmatpush3.bf16.msra.mxu1 %v17311_v13 }
 0x8a5   :  { %15779 = vmatprep.subr.bf16.mxu0 %v17003_v57  ;;  %15791 = vmatprep.subr.bf16.mxu1 %v17003_v57 }
 0x8a7   :  { %14079 = vmatmul.mubr.msk.f32.vlgmr.msra.gmra.mrb[58].mxu0 %vm62_vm0, %v4317_v34  ;;  %14090 = vmatmul.mubr.msk.f32.vlgmr.msra.gmra.mrb[58].mxu1 %vm62_vm0, %v4317_v34 }
 0x8a8   :  { %15781 = vmatpush3.bf16.msra.mxu0 %v17337_v17  ;;  %15793 = vmatpush3.bf16.msra.mxu1 %v17342_v19 }
 0x8a9   :  { %15782 = vmatprep.subr.bf16.mxu0 %v17003_v57  ;;  %15794 = vmatprep.subr.bf16.mxu1 %v17003_v57 }
 0x8aa   :  { %14108 = vmatprep.mubr.msk.f32.mxu0 %vm17004_vm1, %v17005_v3  ;;  %14127 = vmatprep.mubr.msk.f32.mxu1 %vm17004_vm1, %v17005_v3 }
 0x8ac   :  { %15784 = vmatpush3.bf16.msra.mxu0 %v17357_v23  ;;  %15796 = vmatpush3.bf16.msra.mxu1 %v17362_v25 }
 0x8ad   :  { %15785 = vmatprep.subr.bf16.mxu0 %v17003_v57  ;;  %15797 = vmatprep.subr.bf16.mxu1 %v17003_v57 }
 0x8b0   :  { %15787 = vmatpush3.bf16.msra.mxu0 %v17377_v29  ;;  %15799 = vmatpush3.bf16.msra.mxu1 %v17382_v31 }
 0x8b1   :  { %15788 = vmatprep.subr.bf16.mxu0 %v17003_v57  ;;  %15800 = vmatprep.subr.bf16.mxu1 %v17003_v57 }
 0x8b4   :  { %15790 = vmatpush3.bf16.msra.mxu0 %v17397_v35  ;;  %15802 = vmatpush3.bf16.msra.mxu1 %v17402_v37 }
 0x8b5   :  { %15803 = vmatprep.subr.bf16.mxu0 %v17003_v57  ;;  %15815 = vmatprep.subr.bf16.mxu1 %v17003_v57 }
 0x95a   :  { %v4392_v46 = vpop.f32.mrb[52].mxu0  ;;  %v4462_v55 = vpop.f32.mrb[52].mxu1 }
 0x95b   :  { %v4393_v59 = vadd.f32 %v17961_v40, %v4392_v46  ;;  %v4463_v42 = vadd.f32 %v17967_v41, %v4462_v55  ;;  %v13990_v4 = vpop.f32.mrb[53].mxu0  ;;  %v14009_v22 = vpop.f32.mrb[53].mxu1 }
 0x95d   :  { %v11800_v47 = vmul.f32 -1.442695, %v4393_v59  ;;  %v11801_v49 = vmul.f32 -1.442695, %v4463_v42 }
 0x95f   :  { %16663 = vpow2.f32 %v11800_v47 }
 0x960   :  { %16665 = vpow2.f32 %v11801_v49 }
 0x969   :  { %v16664_v50 = vpop.eup %16663 }
 0x96a   :  { %v16666_v51 = vpop.eup %16665  ;;  %v4609_v60 = vadd.f32 1.0, %v16664_v50  ;;  %v4532_v61 = vpop.f32.mrb[54].mxu0 }
 0x96b   :  { %v4602_v62 = vpop.f32.mrb[54].mxu1  ;;  %v4615_v2 = vadd.f32 1.0, %v16666_v51  ;;  %v4533_v48 = vadd.f32 %v17973_v1, %v4532_v61  ;;  %v14028_v8 = vpop.f32.mrb[55].mxu0  ;;  %v4777_v51 = vld [vmem:[#allocation2 + $0x2c] sm:$0x3] }
 0x96c   :  { %v4603_v5 = vadd.f32 %v17979_v54, %v4602_v62  ;;  %v14047_v52 = vpop.f32.mrb[55].mxu1  ;;  %16667 = vrcp.f32 %v4609_v60 }
 0x96d   :  { %16669 = vrcp.f32 %v4615_v2 }
 0x96e   :  { %v11802_v53 = vmul.f32 -1.442695, %v4603_v5  ;;  %16671 = vtanh.f32 %v4533_v48 }
 0x970   :  { %16673 = vpow2.f32 %v11802_v53 }
 0x972   :  { %v4700_v10 = vpop.f32.mrb[56].mxu0  ;;  %v4772_v14 = vpop.f32.mrb[56].mxu1 }
 0x973   :  { %v4704_v15 = vadd.f32 %v4700_v10, %v4630_v9  ;;  %v4776_v20 = vadd.f32 %v4772_v14, %v4705_v45  ;;  %v14058_v21 = vpop.f32.mrb[57].mxu0  ;;  %v14069_v30 = vpop.f32.mrb[57].mxu1 }
 0x975   :  { %v11807_v32 = vmul.f32 -1.442695, %v4704_v15  ;;  %v11808_v33 = vmul.f32 -1.442695, %v4776_v20  ;;  %v4849_v15 = vld [vmem:[#allocation2 + $0x3c] sm:$0x3] }
 0x976   :  { %v16668_v34 = vpop.eup %16667 }
 0x977   :  { %v16670_v39 = vpop.eup %16669  ;;  %16675 = vpow2.f32 %v11807_v32 }
 0x978   :  { %v16672_v26 = vpop.eup %16671  ;;  %v4625_v46 = vmul.f32 %v16670_v39, %v17983_v24  ;;  %16677 = vpow2.f32 %v11808_v33 }
 0x979   :  { %v4626_v59 = vmul.f32 %v16672_v26, %v16668_v34 }
 0x97a   :  { %v16674_v55 = vpop.eup %16673  ;;  %v4844_v4 = vpop.f32.mrb[58].mxu0 }
 0x97b   :  { %v4622_v42 = vadd.f32 1.0, %v16674_v55  ;;  %v4916_v22 = vpop.f32.mrb[58].mxu1  ;;  %v18069_v47 = vadd.f32 %v4626_v59, %v4625_v46  ;;  %v14080_v49 = vpop.f32.mrb[59].mxu0  ;;  %v4848_v60 = vadd.f32 %v4844_v4, %v4777_v51 }
 0x97c   :  { %v14091_v50 = vpop.f32.mrb[59].mxu1  ;;  %v4920_v20 = vadd.f32 %v4916_v22, %v4849_v15  ;;  %v5332_v22 = vld [vmem:[#allocation2 + $0x1e] sm:$0x3] }
 0x97d   :  { %16679 = vrcp.f32 %v4622_v42  ;;  %v5257_v42 = vld [vmem:[#allocation2 + $0xe] sm:$0x3] }
 0x97e   :  { %16681 = vtanh.f32 %v18069_v47  ;;  %v11809_v21 = vmul.f32 -1.442695, %v4920_v20 }
 0x97f   :  { %16683 = vtanh.f32 %v4848_v60 }
 0x981   :  { %v16676_v61 = vpop.eup %16675 }
 0x982   :  { %v16678_v62 = vpop.eup %16677  ;;  %v4924_v2 = vadd.f32 1.0, %v16676_v61 }
 0x983   :  { %v4930_v48 = vadd.f32 1.0, %v16678_v62 }
 0x984   :  { %16685 = vrcp.f32 %v4924_v2 }
 0x985   :  { %16687 = vrcp.f32 %v4930_v48 }
 0x986   :  { %16689 = vpow2.f32 %v11809_v21 }
 0x987   :  { %v16680_v24 = vpop.eup %16679 }
 0x988   :  { %v16682_v5 = vpop.eup %16681 }
 0x989   :  { %v4629_v8 = vmul.f32 %v16682_v5, %v16680_v24  ;;  %v16684_v52 = vpop.eup %16683 }
 0x98b   :  { %4946 = vrot.lane.b32.xlu1 %v4629_v8, %s17006_s25 }
 0x98e   :  { %v16686_v53 = vpop.eup %16685 }
 0x98f   :  { %v16688_v9 = vpop.eup %16687  ;;  %v4941_v10 = vmul.f32 %v16686_v53, %v16684_v52 }
 0x990   :  { %v4940_v45 = vmul.f32 %v16688_v9, %v17988_v11  ;;  %v16690_v30 = vpop.eup %16689 }
 0x991   :  { %v4937_v32 = vadd.f32 1.0, %v16690_v30  ;;  %v5404_v30 = vld [vmem:[#allocation2 + $0x2e] sm:$0x3] }
 0x992   :  { %v18074_v14 = vadd.f32 %v4941_v10, %v4940_v45 }
 0x994   :  { %16691 = vtanh.f32 %v18074_v14 }
 0x995   :  { %16693 = vrcp.f32 %v4937_v32 }
 0x99e   :  { %v16692_v33 = vpop.eup %16691 }
 0x99f   :  { %v16694_v34 = vpop.eup %16693 }
 0x9a0   :  { %v4944_v39 = vmul.f32 %v16694_v34, %v16692_v33 }
 0x9fd   :  { %v4947_v26 = vpop.permute.xlu1 %4946 }
 0x9fe   :  { %v4949_v46 = vsel %vm62_vm0, %v4944_v39, %v4947_v26 }
 0x9ff   :  { %14109 = vmatmul.mubr.msk.f32.vlgmr.msra.gmra.mrb[60].mxu0 %vm1136_vm2, %v4949_v46  ;;  %14128 = vmatmul.mubr.msk.f32.vlgmr.msra.gmra.mrb[60].mxu1 %vm1136_vm2, %v4949_v46 }
 0xa00   :  { %15805 = vmatpush3.bf16.msra.mxu0 %v17465_v16  ;;  %15817 = vmatpush3.bf16.msra.mxu1 %v17467_v18 }
 0xa01   :  { %15806 = vmatprep.subr.bf16.mxu0 %v17003_v57  ;;  %15818 = vmatprep.subr.bf16.mxu1 %v17003_v57 }
 0xa02   :  { %14146 = vmatprep.mubr.msk.f32.mxu0 %vm17004_vm1, %v17005_v3  ;;  %14165 = vmatprep.mubr.msk.f32.mxu1 %vm17004_vm1, %v17005_v3 }
 0xa04   :  { %15808 = vmatpush3.bf16.msra.mxu0 %v17487_v27  ;;  %15820 = vmatpush3.bf16.msra.mxu1 %v17489_v28 }
 0xa05   :  { %15809 = vmatprep.subr.bf16.mxu0 %v17003_v57  ;;  %15821 = vmatprep.subr.bf16.mxu1 %v17003_v57 }
 0xa08   :  { %15811 = vmatpush3.bf16.msra.mxu0 %v17511_v36  ;;  %15823 = vmatpush3.bf16.msra.mxu1 %v17513_v38 }
 0xa09   :  { %15812 = vmatprep.subr.bf16.mxu0 %v17003_v57  ;;  %15824 = vmatprep.subr.bf16.mxu1 %v17003_v57 }
 0xa0c   :  { %15814 = vmatpush3.bf16.msra.mxu0 %v17531_v43  ;;  %15826 = vmatpush3.bf16.msra.mxu1 %v17533_v44 }
 0xa0d   :  { %15827 = vmatprep.subr.bf16.mxu0 %v17003_v57  ;;  %15833 = vmatprep.subr.bf16.mxu1 %v17003_v57 }
 0xa0f   :  { %14147 = vmatmul.mubr.msk.f32.vlgmr.msra.gmra.mrb[62].mxu0 %vm1136_vm2, %v4949_v46  ;;  %14166 = vmatmul.mubr.msk.f32.vlgmr.msra.gmra.mrb[62].mxu1 %vm1136_vm2, %v4949_v46 }
 0xa10   :  { %15829 = vmatpush3.bf16.msra.mxu0 %v17238_v56  ;;  %15835 = vmatpush3.bf16.msra.mxu1 %v17241_v58 }
 0xa11   :  { %15830 = vmatprep.subr.bf16.mxu0 %v17003_v57  ;;  %15836 = vmatprep.subr.bf16.mxu1 %v17003_v57 }
 0xa12   :  { %14176 = vmatprep.mubr.msk.f32.mxu0 %vm17004_vm1, %v17005_v3  ;;  %14187 = vmatprep.mubr.msk.f32.mxu1 %vm17004_vm1, %v17005_v3 }
 0xa14   :  { %15832 = vmatpush3.bf16.msra.mxu0 %v17261_v63  ;;  %15838 = vmatpush3.bf16.msra.mxu1 %v17265_v0 }
 0xa15   :  { %15839 = vmatprep.subr.bf16.mxu0 %v17003_v57  ;;  %15845 = vmatprep.subr.bf16.mxu1 %v17003_v57 }
 0xa17   :  { %14177 = vmatmul.mubr.msk.f32.vlgmr.msra.gmra.mrb[64].mxu0 %vm62_vm0, %v4944_v39  ;;  %14188 = vmatmul.mubr.msk.f32.vlgmr.msra.gmra.mrb[64].mxu1 %vm62_vm0, %v4944_v39 }
 0xa18   :  { %15841 = vmatpush3.bf16.msra.mxu0 %v17285_v6  ;;  %15847 = vmatpush3.bf16.msra.mxu1 %v17289_v7 }
 0xa19   :  { %15842 = vmatprep.subr.bf16.mxu0 %v17003_v57  ;;  %15848 = vmatprep.subr.bf16.mxu1 %v17003_v57 }
 0xa1a   :  { %14198 = vmatprep.mubr.msk.f32.mxu0 %vm17004_vm1, %v17005_v3  ;;  %14209 = vmatprep.mubr.msk.f32.mxu1 %vm17004_vm1, %v17005_v3 }
 0xa1c   :  { %15844 = vmatpush3.bf16.msra.mxu0 %v17307_v12  ;;  %15850 = vmatpush3.bf16.msra.mxu1 %v17311_v13 }
 0xa1d   :  { %15851 = vmatprep.subr.bf16.mxu0 %v17003_v57  ;;  %15863 = vmatprep.subr.bf16.mxu1 %v17003_v57 }
 0xa1f   :  { %14199 = vmatmul.mubr.msk.f32.vlgmr.msra.gmra.mrb[66].mxu0 %vm62_vm0, %v4944_v39  ;;  %14210 = vmatmul.mubr.msk.f32.vlgmr.msra.gmra.mrb[66].mxu1 %vm62_vm0, %v4944_v39 }
 0xa20   :  { %15853 = vmatpush3.bf16.msra.mxu0 %v17337_v17  ;;  %15865 = vmatpush3.bf16.msra.mxu1 %v17342_v19 }
 0xa21   :  { %15854 = vmatprep.subr.bf16.mxu0 %v17003_v57  ;;  %15866 = vmatprep.subr.bf16.mxu1 %v17003_v57 }
 0xa22   :  { %14228 = vmatprep.mubr.msk.f32.mxu0 %vm17004_vm1, %v17005_v3  ;;  %14247 = vmatprep.mubr.msk.f32.mxu1 %vm17004_vm1, %v17005_v3 }
 0xa24   :  { %15856 = vmatpush3.bf16.msra.mxu0 %v17357_v23  ;;  %15868 = vmatpush3.bf16.msra.mxu1 %v17362_v25 }
 0xa25   :  { %15857 = vmatprep.subr.bf16.mxu0 %v17003_v57  ;;  %15869 = vmatprep.subr.bf16.mxu1 %v17003_v57 }
 0xa28   :  { %15859 = vmatpush3.bf16.msra.mxu0 %v17377_v29  ;;  %15871 = vmatpush3.bf16.msra.mxu1 %v17382_v31 }
 0xa29   :  { %15860 = vmatprep.subr.bf16.mxu0 %v17003_v57  ;;  %15872 = vmatprep.subr.bf16.mxu1 %v17003_v57 }
 0xa2c   :  { %15862 = vmatpush3.bf16.msra.mxu0 %v17397_v35  ;;  %15874 = vmatpush3.bf16.msra.mxu1 %v17402_v37 }
 0xa2d   :  { %15875 = vmatprep.subr.bf16.mxu0 %v17003_v57  ;;  %15887 = vmatprep.subr.bf16.mxu1 %v17003_v57 }
 0xad2   :  { %v5019_v56 = vpop.f32.mrb[60].mxu0  ;;  %v5089_v58 = vpop.f32.mrb[60].mxu1 }
 0xad3   :  { %v5020_v63 = vadd.f32 %v17961_v40, %v5019_v56  ;;  %v5090_v0 = vadd.f32 %v17967_v41, %v5089_v58  ;;  %v14110_v6 = vpop.f32.mrb[61].mxu0  ;;  %v14129_v7 = vpop.f32.mrb[61].mxu1 }
 0xad5   :  { %v11814_v12 = vmul.f32 -1.442695, %v5020_v63  ;;  %v11815_v13 = vmul.f32 -1.442695, %v5090_v0 }
 0xad7   :  { %16695 = vpow2.f32 %v11814_v12 }
 0xad8   :  { %16697 = vpow2.f32 %v11815_v13  ;;  %v5476_v13 = vld [vmem:[#allocation2 + $0x3e] sm:$0x3] }
 0xae1   :  { %v16696_v17 = vpop.eup %16695 }
 0xae2   :  { %v16698_v19 = vpop.eup %16697  ;;  %v5236_v23 = vadd.f32 1.0, %v16696_v17  ;;  %v5159_v25 = vpop.f32.mrb[62].mxu0 }
 0xae3   :  { %v5229_v29 = vpop.f32.mrb[62].mxu1  ;;  %v5242_v31 = vadd.f32 1.0, %v16698_v19  ;;  %v5160_v35 = vadd.f32 %v17973_v1, %v5159_v25  ;;  %v14148_v11 = vpop.f32.mrb[63].mxu0 }
 0xae4   :  { %v5230_v37 = vadd.f32 %v17979_v54, %v5229_v29  ;;  %v14167_v55 = vpop.f32.mrb[63].mxu1  ;;  %16699 = vrcp.f32 %v5236_v23 }
 0xae5   :  { %16701 = vrcp.f32 %v5242_v31  ;;  %v5888_v55 = vld [vmem:[%s19596_s8 + $0x18] sm:$0xff] }
 0xae6   :  { %v11816_v59 = vmul.f32 -1.442695, %v5230_v37  ;;  %16703 = vtanh.f32 %v5160_v35 }
 0xae8   :  { %16705 = vpow2.f32 %v11816_v59 }
 0xaea   :  { %v5327_v4 = vpop.f32.mrb[64].mxu0  ;;  %v5399_v49 = vpop.f32.mrb[64].mxu1 }
 0xaeb   :  { %v5331_v50 = vadd.f32 %v5327_v4, %v5257_v42  ;;  %v5403_v51 = vadd.f32 %v5399_v49, %v5332_v22  ;;  %v14178_v60 = vpop.f32.mrb[65].mxu0  ;;  %v14189_v61 = vpop.f32.mrb[65].mxu1  ;;  %v11837_v4 = vld [vmem:[%s19596_s8 + $0x40] sm:$0xff]  ;;  %v11838_v22 = vld [vmem:[%s19596_s8 + $0x48] sm:$0xff] }
 0xaec   :  { %v11842_v49 = vld [vmem:[%s19596_s8 + $0x60] sm:$0xff]  ;;  %v11839_v61 = vld [vmem:[%s19596_s8 + $0x50] sm:$0xff] }
 0xaed   :  { %v11821_v62 = vmul.f32 -1.442695, %v5331_v50  ;;  %v11822_v2 = vmul.f32 -1.442695, %v5403_v51  ;;  %v11843_v50 = vld [vmem:[%s19596_s8 + $0x68] sm:$0xff]  ;;  %v18245_v51 = vpack.c.bf16 %v11838_v22, %v11837_v4 }
 0xaee   :  { %v16700_v48 = vpop.eup %16699  ;;  %v18247_v60 = vpack.c.bf16 %v11843_v50, %v11842_v49  ;;  %v5884_v22 = vld [vmem:[#allocation3] sm:$0x3]  ;;  %v5963_v50 = vld [vmem:[#allocation3 + $0x10] sm:$0x3] }
 0xaef   :  { %v16702_v24 = vpop.eup %16701  ;;  %16707 = vpow2.f32 %v11821_v62  ;;  %v11840_v62 = vld [vmem:[%s19596_s8 + $0x58] sm:$0xff] }
 0xaf0   :  { %v16704_v5 = vpop.eup %16703  ;;  %v5252_v8 = vmul.f32 %v16702_v24, %v18069_v47  ;;  %16709 = vpow2.f32 %v11822_v2  ;;  %v11844_v2 = vld [vmem:[%s19596_s8 + $0x70] sm:$0xff]  ;;  %v18269_v24 = vpack.c.bf16 %v11840_v62, %v11839_v61 }
 0xaf1   :  { %v5253_v53 = vmul.f32 %v16704_v5, %v16700_v48  ;;  %v11845_v48 = vld [vmem:[%s19596_s8 + $0x78] sm:$0xff] }
 0xaf2   :  { %v16706_v52 = vpop.eup %16705  ;;  %v5471_v10 = vpop.f32.mrb[66].mxu0  ;;  %v18271_v5 = vpack.c.bf16 %v11845_v48, %v11844_v2 }
 0xaf3   :  { %v5249_v9 = vadd.f32 1.0, %v16706_v52  ;;  %v5543_v45 = vpop.f32.mrb[66].mxu1  ;;  %v18155_v15 = vadd.f32 %v5253_v53, %v5252_v8  ;;  %v14200_v20 = vpop.f32.mrb[67].mxu0  ;;  %v5475_v32 = vadd.f32 %v5471_v10, %v5404_v30  ;;  %v6223_v8 = vld [vmem:[%s19597_s10] sm:$0xff]  ;;  %v6224_v52 = vld [vmem:[%s19597_s10 + $0x8] sm:$0xff]  ;;  %v11854_v30 = vld [vmem:[%s19597_s10 + $0x50] sm:$0xff] }
 0xaf4   :  { %v14211_v21 = vpop.f32.mrb[67].mxu1  ;;  %v5547_v17 = vadd.f32 %v5543_v45, %v5476_v13  ;;  %v11852_v53 = vld [vmem:[%s19597_s10 + $0x40] sm:$0xff]  ;;  %v11853_v10 = vld [vmem:[%s19597_s10 + $0x48] sm:$0xff]  ;;  %v6225_v45 = vld [vmem:[%s19597_s10 + $0x10] sm:$0xff] }
 0xaf5   :  { %16711 = vrcp.f32 %v5249_v9  ;;  %v18300_v9 = vpack.c.bf16 %v6224_v52, %v6223_v8  ;;  %v6226_v20 = vld [vmem:[%s19597_s10 + $0x18] sm:$0xff]  ;;  %v18311_v21 = vpack.c.bf16 %v11853_v10, %v11852_v53 }
 0xaf6   :  { %16713 = vtanh.f32 %v18155_v15  ;;  %v11823_v19 = vmul.f32 -1.442695, %v5547_v17 }
 0xaf7   :  { %16715 = vtanh.f32 %v5475_v32  ;;  %v11855_v32 = vld [vmem:[%s19597_s10 + $0x58] sm:$0xff] }
 0xaf9   :  { %v16708_v33 = vpop.eup %16707 }
 0xafa   :  { %v16710_v34 = vpop.eup %16709  ;;  %v5551_v39 = vadd.f32 1.0, %v16708_v33  ;;  %v18320_v33 = vpack.c.bf16 %v6226_v20, %v6225_v45 }
 0xafb   :  { %v5557_v26 = vadd.f32 1.0, %v16710_v34  ;;  %v18324_v34 = vpack.c.bf16 %v11855_v32, %v11854_v30 }
 0xafc   :  { %16717 = vrcp.f32 %v5551_v39  ;;  %v6227_v39 = vld [vmem:[%s19597_s10 + $0x20] sm:$0xff] }
 0xafd   :  { %16719 = vrcp.f32 %v5557_v26  ;;  %v6228_v26 = vld [vmem:[%s19597_s10 + $0x28] sm:$0xff] }
 0xafe   :  { %16721 = vpow2.f32 %v11823_v19 }
 0xaff   :  { %v16712_v47 = vpop.eup %16711 }
 0xb00   :  { %v16714_v46 = vpop.eup %16713 }
 0xb01   :  { %v5256_v56 = vmul.f32 %v16714_v46, %v16712_v47  ;;  %v16716_v58 = vpop.eup %16715  ;;  %v11856_v47 = vld [vmem:[%s19597_s10 + $0x60] sm:$0xff]  ;;  %v11857_v46 = vld [vmem:[%s19597_s10 + $0x68] sm:$0xff] }
 0xb03   :  { %5573 = vrot.lane.b32.xlu0 %v5256_v56, %s17006_s25  ;;  %v18340_v56 = vpack.c.bf16 %v6228_v26, %v6227_v39 }
 0xb06   :  { %v16718_v63 = vpop.eup %16717 }
 0xb07   :  { %v16720_v0 = vpop.eup %16719  ;;  %v5568_v6 = vmul.f32 %v16718_v63, %v16716_v58  ;;  %v18344_v58 = vpack.c.bf16 %v11857_v46, %v11856_v47  ;;  %v6229_v63 = vld [vmem:[%s19597_s10 + $0x30] sm:$0xff] }
 0xb08   :  { %v5567_v7 = vmul.f32 %v16720_v0, %v18074_v14  ;;  %v16722_v23 = vpop.eup %16721  ;;  %v5887_v14 = vld [vmem:[%s19596_s8 + $0x10] sm:$0xff]  ;;  %v6230_v0 = vld [vmem:[%s19597_s10 + $0x38] sm:$0xff] }
 0xb09   :  { %v5564_v25 = vadd.f32 1.0, %v16722_v23  ;;  %v18221_v59 = vpack.c.bf16 %v5888_v55, %v5887_v14  ;;  %v18360_v13 = vpack.c.bf16 %v6230_v0, %v6229_v63  ;;  %v6040_v0 = vld [vmem:[#allocation3 + $0x20] sm:$0x3] }
 0xb0a   :  { %v18160_v12 = vadd.f32 %v5568_v6, %v5567_v7  ;;  %v11858_v6 = vld [vmem:[%s19597_s10 + $0x70] sm:$0xff]  ;;  %v11859_v7 = vld [vmem:[%s19597_s10 + $0x78] sm:$0xff] }
 0xb0b   :  { %v18364_v17 = vpack.c.bf16 %v11859_v7, %v11858_v6 }
 0xb0c   :  { %16723 = vtanh.f32 %v18160_v12 }
 0xb0d   :  { %16725 = vrcp.f32 %v5564_v25 }
 0xb16   :  { %v16724_v29 = vpop.eup %16723 }
 0xb17   :  { %v16726_v31 = vpop.eup %16725 }
 0xb18   :  { %v18163_v35 = vmul.f32 %v16726_v31, %v16724_v29 }
 0xb75   :  { %v5574_v37 = vpop.permute.xlu0 %5573 }
 0xb76   :  { %v5576_v11 = vsel %vm62_vm0, %v18163_v35, %v5574_v37 }
 0xb77   :  { %14229 = vmatmul.mubr.msk.f32.vlgmr.msra.gmra.mrb[68].mxu0 %vm1136_vm2, %v5576_v11  ;;  %14248 = vmatmul.mubr.msk.f32.vlgmr.msra.gmra.mrb[68].mxu1 %vm1136_vm2, %v5576_v11 }
 0xb78   :  { %15877 = vmatpush3.bf16.msra.mxu0 %v17465_v16  ;;  %15889 = vmatpush3.bf16.msra.mxu1 %v17467_v18  ;;  %v5885_v16 = vld [vmem:[%s19596_s8] sm:$0xff]  ;;  %v5886_v18 = vld [vmem:[%s19596_s8 + $0x8] sm:$0xff] }
 0xb79   :  { %15878 = vmatprep.subr.bf16.mxu0 %v17003_v57  ;;  %15890 = vmatprep.subr.bf16.mxu1 %v17003_v57 }
 0xb7a   :  { %14266 = vmatprep.mubr.msk.f32.mxu0 %vm17004_vm1, %v17005_v3  ;;  %14285 = vmatprep.mubr.msk.f32.mxu1 %vm17004_vm1, %v17005_v3 }
 0xb7c   :  { %15880 = vmatpush3.bf16.msra.mxu0 %v17487_v27  ;;  %15892 = vmatpush3.bf16.msra.mxu1 %v17489_v28  ;;  %v11832_v27 = vld [vmem:[%s19596_s8 + $0x20] sm:$0xff]  ;;  %v11833_v28 = vld [vmem:[%s19596_s8 + $0x28] sm:$0xff] }
 0xb7d   :  { %15881 = vmatprep.subr.bf16.mxu0 %v17003_v57  ;;  %15893 = vmatprep.subr.bf16.mxu1 %v17003_v57 }
 0xb80   :  { %15883 = vmatpush3.bf16.msra.mxu0 %v17511_v36  ;;  %15895 = vmatpush3.bf16.msra.mxu1 %v17513_v38  ;;  %v18199_v36 = vpack.c.bf16 %v5886_v18, %v5885_v16  ;;  %v18201_v38 = vpack.c.bf16 %v11833_v28, %v11832_v27 }
 0xb81   :  { %15884 = vmatprep.subr.bf16.mxu0 %v17003_v57  ;;  %15896 = vmatprep.subr.bf16.mxu1 %v17003_v57 }
 0xb84   :  { %15886 = vmatpush3.bf16.msra.mxu0 %v17531_v43  ;;  %15898 = vmatpush3.bf16.msra.mxu1 %v17533_v44  ;;  %v11834_v43 = vld [vmem:[%s19596_s8 + $0x30] sm:$0xff]  ;;  %v11835_v44 = vld [vmem:[%s19596_s8 + $0x38] sm:$0xff] }
 0xb85   :  { %15899 = vmatprep.subr.bf16.mxu0 %v17003_v57  ;;  %15905 = vmatprep.subr.bf16.mxu1 %v17003_v57  ;;  %v18223_v42 = vpack.c.bf16 %v11835_v44, %v11834_v43 }
 0xb87   :  { %14267 = vmatmul.mubr.msk.f32.vlgmr.msra.gmra.mrb[70].mxu0 %vm1136_vm2, %v5576_v11  ;;  %14286 = vmatmul.mubr.msk.f32.vlgmr.msra.gmra.mrb[70].mxu1 %vm1136_vm2, %v5576_v11 }
 0xb88   :  { %15901 = vmatpush3.bf16.msra.mxu0 %v18199_v36  ;;  %15907 = vmatpush3.bf16.msra.mxu1 %v18201_v38 }
 0xb89   :  { %15902 = vmatprep.subr.bf16.mxu0 %v17003_v57  ;;  %15908 = vmatprep.subr.bf16.mxu1 %v17003_v57 }
 0xb8a   :  { %14296 = vmatprep.mubr.msk.f32.mxu0 %vm17004_vm1, %v17005_v3  ;;  %14307 = vmatprep.mubr.msk.f32.mxu1 %vm17004_vm1, %v17005_v3 }
 0xb8c   :  { %15904 = vmatpush3.bf16.msra.mxu0 %v18221_v59  ;;  %15910 = vmatpush3.bf16.msra.mxu1 %v18223_v42 }
 0xb8d   :  { %15911 = vmatprep.subr.bf16.mxu0 %v17003_v57  ;;  %15917 = vmatprep.subr.bf16.mxu1 %v17003_v57 }
 0xb8f   :  { %14297 = vmatmul.mubr.msk.f32.vlgmr.msra.gmra.mrb[72].mxu0 %vm62_vm0, %v18163_v35  ;;  %14308 = vmatmul.mubr.msk.f32.vlgmr.msra.gmra.mrb[72].mxu1 %vm62_vm0, %v18163_v35 }
 0xb90   :  { %15913 = vmatpush3.bf16.msra.mxu0 %v18245_v51  ;;  %15919 = vmatpush3.bf16.msra.mxu1 %v18247_v60 }
 0xb91   :  { %15914 = vmatprep.subr.bf16.mxu0 %v17003_v57  ;;  %15920 = vmatprep.subr.bf16.mxu1 %v17003_v57 }
 0xb92   :  { %14318 = vmatprep.mubr.msk.f32.mxu0 %vm17004_vm1, %v17005_v3  ;;  %14329 = vmatprep.mubr.msk.f32.mxu1 %vm17004_vm1, %v17005_v3 }
 0xb94   :  { %15916 = vmatpush3.bf16.msra.mxu0 %v18269_v24  ;;  %15922 = vmatpush3.bf16.msra.mxu1 %v18271_v5 }
 0xb95   :  { %15923 = vmatprep.subr.bf16.mxu0 %v17003_v57  ;;  %15935 = vmatprep.subr.bf16.mxu1 %v17003_v57 }
 0xb97   :  { %14319 = vmatmul.mubr.msk.f32.vlgmr.msra.gmra.mrb[74].mxu0 %vm62_vm0, %v18163_v35  ;;  %14330 = vmatmul.mubr.msk.f32.vlgmr.msra.gmra.mrb[74].mxu1 %vm62_vm0, %v18163_v35 }
 0xb98   :  { %14348 = vmatprep.mubr.msk.f32.mxu0 %vm17004_vm1, %v17005_v3  ;;  %14367 = vmatprep.mubr.msk.f32.mxu1 %vm17004_vm1, %v17005_v3 }
 0xb99   :  { %15925 = vmatpush3.bf16.msra.mxu0 %v18300_v9  ;;  %15937 = vmatpush3.bf16.msra.mxu1 %v18311_v21 }
 0xb9a   :  { %15926 = vmatprep.subr.bf16.mxu0 %v17003_v57  ;;  %15938 = vmatprep.subr.bf16.mxu1 %v17003_v57 }
 0xb9d   :  { %15928 = vmatpush3.bf16.msra.mxu0 %v18320_v33  ;;  %15940 = vmatpush3.bf16.msra.mxu1 %v18324_v34 }
 0xb9e   :  { %15929 = vmatprep.subr.bf16.mxu0 %v17003_v57  ;;  %15941 = vmatprep.subr.bf16.mxu1 %v17003_v57 }
 0xba1   :  { %15931 = vmatpush3.bf16.msra.mxu0 %v18340_v56  ;;  %15943 = vmatpush3.bf16.msra.mxu1 %v18344_v58 }
 0xba2   :  { %15932 = vmatprep.subr.bf16.mxu0 %v17003_v57  ;;  %15944 = vmatprep.subr.bf16.mxu1 %v17003_v57 }
 0xba5   :  { %15934 = vmatpush3.bf16.msra.mxu0 %v18360_v13  ;;  %15946 = vmatpush3.bf16.msra.mxu1 %v18364_v17 }
 0xba6   :  { %15947 = vmatprep.subr.bf16.mxu0 %v17003_v57  ;;  %15959 = vmatprep.subr.bf16.mxu1 %v17003_v57 }
 0xc4a   :  { %v5646_v19 = vpop.f32.mrb[68].mxu0  ;;  %v5716_v23 = vpop.f32.mrb[68].mxu1 }
 0xc4b   :  { %v5647_v25 = vadd.f32 %v17961_v40, %v5646_v19  ;;  %v5717_v29 = vadd.f32 %v17967_v41, %v5716_v23  ;;  %v14230_v31 = vpop.f32.mrb[69].mxu0  ;;  %v14249_v35 = vpop.f32.mrb[69].mxu1 }
 0xc4d   :  { %v11828_v37 = vmul.f32 -1.442695, %v5647_v25  ;;  %v11829_v11 = vmul.f32 -1.442695, %v5717_v29 }
 0xc4f   :  { %16727 = vpow2.f32 %v11828_v37 }
 0xc50   :  { %16729 = vpow2.f32 %v11829_v11 }
 0xc59   :  { %v16728_v16 = vpop.eup %16727 }
 0xc5a   :  { %v16730_v18 = vpop.eup %16729  ;;  %v5863_v27 = vadd.f32 1.0, %v16728_v16  ;;  %v5786_v28 = vpop.f32.mrb[70].mxu0 }
 0xc5b   :  { %v5856_v14 = vpop.f32.mrb[70].mxu1  ;;  %v5869_v55 = vadd.f32 1.0, %v16730_v18  ;;  %v5787_v43 = vadd.f32 %v17973_v1, %v5786_v28  ;;  %v14268_v4 = vpop.f32.mrb[71].mxu0  ;;  %v6117_v28 = vld [vmem:[#allocation3 + $0x30] sm:$0x3] }
 0xc5c   :  { %v5857_v44 = vadd.f32 %v17979_v54, %v5856_v14  ;;  %v14287_v40 = vpop.f32.mrb[71].mxu1  ;;  %16731 = vrcp.f32 %v5863_v27  ;;  %v11863_v4 = vld [vmem:[%s19597_s10 + $0x80] sm:$0xff] }
 0xc5d   :  { %16733 = vrcp.f32 %v5869_v55 }
 0xc5e   :  { %v11830_v41 = vmul.f32 -1.442695, %v5857_v44  ;;  %16735 = vtanh.f32 %v5787_v43 }
 0xc60   :  { %16737 = vpow2.f32 %v11830_v41  ;;  %v11874_v41 = vld [vmem:[%s19597_s10 + $0xc0] sm:$0xff] }
 0xc62   :  { %v5958_v49 = vpop.f32.mrb[72].mxu0  ;;  %v6035_v61 = vpop.f32.mrb[72].mxu1 }
 0xc63   :  { %v5962_v62 = vadd.f32 %v5958_v49, %v5884_v22  ;;  %v6039_v2 = vadd.f32 %v6035_v61, %v5963_v50  ;;  %v14298_v48 = vpop.f32.mrb[73].mxu0  ;;  %v14309_v8 = vpop.f32.mrb[73].mxu1  ;;  %v11875_v22 = vld [vmem:[%s19597_s10 + $0xc8] sm:$0xff] }
 0xc64   :  { %v11866_v8 = vld [vmem:[%s19597_s10 + $0x98] sm:$0xff] }
 0xc65   :  { %v11847_v52 = vmul.f32 -1.442695, %v5962_v62  ;;  %v11848_v53 = vmul.f32 -1.442695, %v6039_v2  ;;  %v18400_v62 = vpack.c.bf16 %v11875_v22, %v11874_v41  ;;  %v11865_v2 = vld [vmem:[%s19597_s10 + $0x90] sm:$0xff] }
 0xc66   :  { %v16732_v1 = vpop.eup %16731 }
 0xc67   :  { %v16734_v10 = vpop.eup %16733  ;;  %16739 = vpow2.f32 %v11847_v52  ;;  %v11876_v52 = vld [vmem:[%s19597_s10 + $0xd0] sm:$0xff] }
 0xc68   :  { %v16736_v54 = vpop.eup %16735  ;;  %v5879_v45 = vmul.f32 %v16734_v10, %v18155_v15  ;;  %16741 = vpow2.f32 %v11848_v53  ;;  %v11877_v53 = vld [vmem:[%s19597_s10 + $0xd8] sm:$0xff]  ;;  %v18420_v10 = vpack.c.bf16 %v11866_v8, %v11865_v2 }
 0xc69   :  { %v5880_v30 = vmul.f32 %v16736_v54, %v16732_v1  ;;  %v18422_v54 = vpack.c.bf16 %v11877_v53, %v11876_v52  ;;  %v6677_v52 = vld [vmem:[#allocation3 + $0x12] sm:$0x3] }
 0xc6a   :  { %v16738_v20 = vpop.eup %16737  ;;  %v6112_v39 = vpop.f32.mrb[74].mxu0 }
 0xc6b   :  { %v5876_v32 = vadd.f32 1.0, %v16738_v20  ;;  %v6189_v26 = vpop.f32.mrb[74].mxu1  ;;  %v18376_v47 = vadd.f32 %v5880_v30, %v5879_v45  ;;  %v14320_v46 = vpop.f32.mrb[75].mxu0  ;;  %v6116_v6 = vadd.f32 %v6112_v39, %v6040_v0  ;;  %v11867_v45 = vld [vmem:[%s19597_s10 + $0xa0] sm:$0xff]  ;;  %v11868_v20 = vld [vmem:[%s19597_s10 + $0xa8] sm:$0xff]  ;;  %v11880_v0 = vld [vmem:[%s19597_s10 + $0xf0] sm:$0xff] }
 0xc6c   :  { %v14331_v63 = vpop.f32.mrb[75].mxu1  ;;  %v6193_v14 = vadd.f32 %v6189_v26, %v6117_v28  ;;  %v11878_v30 = vld [vmem:[%s19597_s10 + $0xe0] sm:$0xff]  ;;  %v18444_v39 = vpack.c.bf16 %v11868_v20, %v11867_v45  ;;  %v11869_v46 = vld [vmem:[%s19597_s10 + $0xb0] sm:$0xff] }
 0xc6d   :  { %16743 = vrcp.f32 %v5876_v32  ;;  %v11879_v32 = vld [vmem:[%s19597_s10 + $0xe8] sm:$0xff]  ;;  %v11870_v63 = vld [vmem:[%s19597_s10 + $0xb8] sm:$0xff]  ;;  %v18543_v28 = vld [vmem:[%s19598_s11 + $0x2] ss:$0 sm:$0xff] }
 0xc6e   :  { %16745 = vtanh.f32 %v18376_v47  ;;  %v11849_v55 = vmul.f32 -1.442695, %v6193_v14  ;;  %v18446_v26 = vpack.c.bf16 %v11879_v32, %v11878_v30  ;;  %v18548_v14 = vld [vmem:[%s19598_s11 + $0x3] ss:$0 sm:$0xff] }
 0xc6f   :  { %16747 = vtanh.f32 %v6116_v6  ;;  %v11881_v6 = vld [vmem:[%s19597_s10 + $0xf8] sm:$0xff] }
 0xc71   :  { %v16740_v7 = vpop.eup %16739 }
 0xc72   :  { %v16742_v19 = vpop.eup %16741  ;;  %v6197_v23 = vadd.f32 1.0, %v16740_v7  ;;  %v18464_v7 = vpack.c.bf16 %v11870_v63, %v11869_v46 }
 0xc73   :  { %v6203_v25 = vadd.f32 1.0, %v16742_v19  ;;  %v18466_v19 = vpack.c.bf16 %v11881_v6, %v11880_v0 }
 0xc74   :  { %16749 = vrcp.f32 %v6197_v23  ;;  %v18531_v23 = vld [vmem:[%s19598_s11] ss:$0 sm:$0xff] }
 0xc75   :  { %16751 = vrcp.f32 %v6203_v25  ;;  %v18536_v25 = vld [vmem:[%s19598_s11 + $0x1] ss:$0 sm:$0xff] }
 0xc76   :  { %16753 = vpow2.f32 %v11849_v55 }
 0xc77   :  { %v16744_v15 = vpop.eup %16743 }
 0xc78   :  { %v16746_v29 = vpop.eup %16745 }
 0xc79   :  { %v5883_v31 = vmul.f32 %v16746_v29, %v16744_v15  ;;  %v16748_v35 = vpop.eup %16747 }
 0xc7b   :  { %6219 = vrot.lane.b32.xlu1 %v5883_v31, %s17006_s25 }
 0xc7e   :  { %v16750_v37 = vpop.eup %16749 }
 0xc7f   :  { %v16752_v11 = vpop.eup %16751  ;;  %v6214_v16 = vmul.f32 %v16750_v37, %v16748_v35 }
 0xc80   :  { %v6213_v18 = vmul.f32 %v16752_v11, %v18160_v12  ;;  %v16754_v43 = vpop.eup %16753  ;;  %v11864_v12 = vld [vmem:[%s19597_s10 + $0x88] sm:$0xff] }
 0xc81   :  { %v6210_v44 = vadd.f32 1.0, %v16754_v43  ;;  %v18398_v61 = vpack.c.bf16 %v11864_v12, %v11863_v4 }
 0xc82   :  { %v18381_v27 = vadd.f32 %v6214_v16, %v6213_v18 }
 0xc84   :  { %16755 = vtanh.f32 %v18381_v27 }
 0xc85   :  { %16757 = vrcp.f32 %v6210_v44 }
 0xc8e   :  { %v16756_v40 = vpop.eup %16755 }
 0xc8f   :  { %v16758_v49 = vpop.eup %16757 }
 0xc90   :  { %v18396_v50 = vmul.f32 %v16758_v49, %v16756_v40 }
 0xced   :  { %v6220_v48 = vpop.permute.xlu1 %6219 }
 0xcee   :  { %v6222_v1 = vsel %vm62_vm0, %v18396_v50, %v6220_v48  ;;  %v6598_v48 = vld [vmem:[#allocation3 + $0x2] sm:$0x3] }
 0xcef   :  { %14349 = vmatmul.mubr.msk.f32.vlgmr.msra.gmra.mrb[76].mxu0 %vm1136_vm2, %v6222_v1  ;;  %14368 = vmatmul.mubr.msk.f32.vlgmr.msra.gmra.mrb[76].mxu1 %vm1136_vm2, %v6222_v1 }
 0xcf0   :  { %15949 = vmatpush3.bf16.msra.mxu0 %v18398_v61  ;;  %15961 = vmatpush3.bf16.msra.mxu1 %v18400_v62 }
 0xcf1   :  { %15950 = vmatprep.subr.bf16.mxu0 %v17003_v57  ;;  %15962 = vmatprep.subr.bf16.mxu1 %v17003_v57 }
 0xcf2   :  { %14386 = vmatprep.mubr.msk.f32.mxu0 %vm17004_vm1, %v17005_v3  ;;  %14405 = vmatprep.mubr.msk.f32.mxu1 %vm17004_vm1, %v17005_v3 }
 0xcf4   :  { %15952 = vmatpush3.bf16.msra.mxu0 %v18420_v10  ;;  %15964 = vmatpush3.bf16.msra.mxu1 %v18422_v54 }
 0xcf5   :  { %15953 = vmatprep.subr.bf16.mxu0 %v17003_v57  ;;  %15965 = vmatprep.subr.bf16.mxu1 %v17003_v57 }
 0xcf8   :  { %15955 = vmatpush3.bf16.msra.mxu0 %v18444_v39  ;;  %15967 = vmatpush3.bf16.msra.mxu1 %v18446_v26 }
 0xcf9   :  { %15956 = vmatprep.subr.bf16.mxu0 %v17003_v57  ;;  %15968 = vmatprep.subr.bf16.mxu1 %v17003_v57 }
 0xcfc   :  { %15958 = vmatpush3.bf16.msra.mxu0 %v18464_v7  ;;  %15970 = vmatpush3.bf16.msra.mxu1 %v18466_v19 }
 0xcfd   :  { %15971 = vmatprep.subr.bf16.mxu0 %v17003_v57  ;;  %15977 = vmatprep.subr.bf16.mxu1 %v17003_v57 }
 0xcff   :  { %14387 = vmatmul.mubr.msk.f32.vlgmr.msra.gmra.mrb[78].mxu0 %vm1136_vm2, %v6222_v1  ;;  %14406 = vmatmul.mubr.msk.f32.vlgmr.msra.gmra.mrb[78].mxu1 %vm1136_vm2, %v6222_v1 }
 0xd00   :  { %15973 = vmatpush3.bf16.msra.mxu0 %v18199_v36  ;;  %15979 = vmatpush3.bf16.msra.mxu1 %v18201_v38 }
 0xd01   :  { %15974 = vmatprep.subr.bf16.mxu0 %v17003_v57  ;;  %15980 = vmatprep.subr.bf16.mxu1 %v17003_v57 }
 0xd02   :  { %14416 = vmatprep.mubr.msk.f32.mxu0 %vm17004_vm1, %v17005_v3  ;;  %14427 = vmatprep.mubr.msk.f32.mxu1 %vm17004_vm1, %v17005_v3 }
 0xd04   :  { %15976 = vmatpush3.bf16.msra.mxu0 %v18221_v59  ;;  %15982 = vmatpush3.bf16.msra.mxu1 %v18223_v42 }
 0xd05   :  { %15983 = vmatprep.subr.bf16.mxu0 %v17003_v57  ;;  %15989 = vmatprep.subr.bf16.mxu1 %v17003_v57 }
 0xd07   :  { %14417 = vmatmul.mubr.msk.f32.vlgmr.msra.gmra.mrb[80].mxu0 %vm62_vm0, %v18396_v50  ;;  %14428 = vmatmul.mubr.msk.f32.vlgmr.msra.gmra.mrb[80].mxu1 %vm62_vm0, %v18396_v50 }
 0xd08   :  { %15985 = vmatpush3.bf16.msra.mxu0 %v18245_v51  ;;  %15991 = vmatpush3.bf16.msra.mxu1 %v18247_v60 }
 0xd09   :  { %15986 = vmatprep.subr.bf16.mxu0 %v17003_v57  ;;  %15992 = vmatprep.subr.bf16.mxu1 %v17003_v57 }
 0xd0a   :  { %14438 = vmatprep.mubr.msk.f32.mxu0 %vm17004_vm1, %v17005_v3  ;;  %14449 = vmatprep.mubr.msk.f32.mxu1 %vm17004_vm1, %v17005_v3 }
 0xd0c   :  { %15988 = vmatpush3.bf16.msra.mxu0 %v18269_v24  ;;  %15994 = vmatpush3.bf16.msra.mxu1 %v18271_v5 }
 0xd0d   :  { %15995 = vmatprep.subr.bf16.mxu0 %v17003_v57  ;;  %16007 = vmatprep.subr.bf16.mxu1 %v17003_v57 }
 0xd0f   :  { %14439 = vmatmul.mubr.msk.f32.vlgmr.msra.gmra.mrb[82].mxu0 %vm62_vm0, %v18396_v50  ;;  %14450 = vmatmul.mubr.msk.f32.vlgmr.msra.gmra.mrb[82].mxu1 %vm62_vm0, %v18396_v50 }
 0xd10   :  { %15997 = vmatpush3.bf16.msra.mxu0 %v18300_v9  ;;  %16009 = vmatpush3.bf16.msra.mxu1 %v18311_v21 }
 0xd11   :  { %15998 = vmatprep.subr.bf16.mxu0 %v17003_v57  ;;  %16010 = vmatprep.subr.bf16.mxu1 %v17003_v57 }
 0xd12   :  { %14468 = vmatprep.mubr.msk.f32.mxu0 %vm17004_vm1, %v17005_v3  ;;  %14487 = vmatprep.mubr.msk.f32.mxu1 %vm17004_vm1, %v17005_v3 }
 0xd14   :  { %16000 = vmatpush3.bf16.msra.mxu0 %v18320_v33  ;;  %16012 = vmatpush3.bf16.msra.mxu1 %v18324_v34 }
 0xd15   :  { %16001 = vmatprep.subr.bf16.mxu0 %v17003_v57  ;;  %16013 = vmatprep.subr.bf16.mxu1 %v17003_v57 }
 0xd18   :  { %16003 = vmatpush3.bf16.msra.mxu0 %v18340_v56  ;;  %16015 = vmatpush3.bf16.msra.mxu1 %v18344_v58 }
 0xd19   :  { %16004 = vmatprep.subr.bf16.mxu0 %v17003_v57  ;;  %16016 = vmatprep.subr.bf16.mxu1 %v17003_v57 }
 0xd1c   :  { %16006 = vmatpush3.bf16.msra.mxu0 %v18360_v13  ;;  %16018 = vmatpush3.bf16.msra.mxu1 %v18364_v17 }
 0xd1d   :  { %16019 = vmatprep.subr.bf16.mxu0 %v17003_v57  ;;  %16031 = vmatprep.subr.bf16.mxu1 %v17003_v57 }
 0xdc2   :  { %v6307_v15 = vpop.f32.mrb[76].mxu0  ;;  %v6394_v29 = vpop.f32.mrb[76].mxu1 }
 0xdc3   :  { %v6308_v31 = vadd.f32 %v18531_v23, %v6307_v15  ;;  %v6395_v35 = vadd.f32 %v18536_v25, %v6394_v29  ;;  %v14350_v37 = vpop.f32.mrb[77].mxu0  ;;  %v14369_v11 = vpop.f32.mrb[77].mxu1 }
 0xdc5   :  { %v11885_v16 = vmul.f32 -1.442695, %v6308_v31  ;;  %v11886_v18 = vmul.f32 -1.442695, %v6395_v35 }
 0xdc7   :  { %16759 = vpow2.f32 %v11885_v16 }
 0xdc8   :  { %16761 = vpow2.f32 %v11886_v18 }
 0xdd1   :  { %v16760_v55 = vpop.eup %16759 }
 0xdd2   :  { %v16762_v43 = vpop.eup %16761  ;;  %v6575_v44 = vadd.f32 1.0, %v16760_v55  ;;  %v6481_v4 = vpop.f32.mrb[78].mxu0 }
 0xdd3   :  { %v6568_v40 = vpop.f32.mrb[78].mxu1  ;;  %v6581_v12 = vadd.f32 1.0, %v16762_v43  ;;  %v6482_v41 = vadd.f32 %v18543_v28, %v6481_v4  ;;  %v14388_v49 = vpop.f32.mrb[79].mxu0  ;;  %v6753_v43 = vld [vmem:[#allocation3 + $0x22] sm:$0x3] }
 0xdd4   :  { %v6569_v22 = vadd.f32 %v18548_v14, %v6568_v40  ;;  %v14407_v50 = vpop.f32.mrb[79].mxu1  ;;  %16763 = vrcp.f32 %v6575_v44 }
 0xdd5   :  { %16765 = vrcp.f32 %v6581_v12 }
 0xdd6   :  { %v11887_v2 = vmul.f32 -1.442695, %v6569_v22  ;;  %16767 = vtanh.f32 %v6482_v41 }
 0xdd8   :  { %16769 = vpow2.f32 %v11887_v2 }
 0xdda   :  { %v6672_v8 = vpop.f32.mrb[80].mxu0  ;;  %v6748_v53 = vpop.f32.mrb[80].mxu1 }
 0xddb   :  { %v6676_v1 = vadd.f32 %v6672_v8, %v6598_v48  ;;  %v6752_v45 = vadd.f32 %v6748_v53, %v6677_v52  ;;  %v14418_v20 = vpop.f32.mrb[81].mxu0  ;;  %v14429_v30 = vpop.f32.mrb[81].mxu1 }
 0xddd   :  { %v11904_v32 = vmul.f32 -1.442695, %v6676_v1  ;;  %v11905_v46 = vmul.f32 -1.442695, %v6752_v45  ;;  %v6829_v1 = vld [vmem:[#allocation3 + $0x32] sm:$0x3] }
 0xdde   :  { %v16764_v63 = vpop.eup %16763 }
 0xddf   :  { %v16766_v0 = vpop.eup %16765  ;;  %16771 = vpow2.f32 %v11904_v32 }
 0xde0   :  { %v16768_v6 = vpop.eup %16767  ;;  %v6591_v15 = vmul.f32 %v16766_v0, %v18376_v47  ;;  %16773 = vpow2.f32 %v11905_v46 }
 0xde1   :  { %v6592_v31 = vmul.f32 %v16768_v6, %v16764_v63 }
 0xde2   :  { %v16770_v29 = vpop.eup %16769  ;;  %v6824_v37 = vpop.f32.mrb[82].mxu0 }
 0xde3   :  { %v6588_v35 = vadd.f32 1.0, %v16770_v29  ;;  %v6900_v11 = vpop.f32.mrb[82].mxu1  ;;  %v18553_v16 = vadd.f32 %v6592_v31, %v6591_v15  ;;  %v14440_v18 = vpop.f32.mrb[83].mxu0  ;;  %v6828_v44 = vadd.f32 %v6824_v37, %v6753_v43 }
 0xde4   :  { %v14451_v55 = vpop.f32.mrb[83].mxu1  ;;  %v6904_v45 = vadd.f32 %v6900_v11, %v6829_v1  ;;  %v7381_v11 = vld [vmem:[#allocation3 + $0x14] sm:$0x3] }
 0xde5   :  { %16775 = vrcp.f32 %v6588_v35  ;;  %v7302_v35 = vld [vmem:[#allocation3 + $0x4] sm:$0x3] }
 0xde6   :  { %16777 = vtanh.f32 %v18553_v16  ;;  %v11906_v20 = vmul.f32 -1.442695, %v6904_v45 }
 0xde7   :  { %16779 = vtanh.f32 %v6828_v44 }
 0xde9   :  { %v16772_v4 = vpop.eup %16771 }
 0xdea   :  { %v16774_v40 = vpop.eup %16773  ;;  %v6908_v12 = vadd.f32 1.0, %v16772_v4 }
 0xdeb   :  { %v6914_v41 = vadd.f32 1.0, %v16774_v40 }
 0xdec   :  { %16781 = vrcp.f32 %v6908_v12 }
 0xded   :  { %16783 = vrcp.f32 %v6914_v41 }
 0xdee   :  { %16785 = vpow2.f32 %v11906_v20 }
 0xdef   :  { %v16776_v47 = vpop.eup %16775 }
 0xdf0   :  { %v16778_v22 = vpop.eup %16777 }
 0xdf1   :  { %v6595_v49 = vmul.f32 %v16778_v22, %v16776_v47  ;;  %v16780_v50 = vpop.eup %16779 }
 0xdf3   :  { %6930 = vrot.lane.b32.xlu0 %v6595_v49, %s17006_s25  ;;  %6597 = vst.msk [vmem:[#allocation4] sm:$0x3] %vm6596_vm3, %v6595_v49 }
 0xdf6   :  { %v16782_v2 = vpop.eup %16781 }
 0xdf7   :  { %v16784_v48 = vpop.eup %16783  ;;  %v6925_v8 = vmul.f32 %v16782_v2, %v16780_v50 }
 0xdf8   :  { %v6924_v52 = vmul.f32 %v16784_v48, %v18381_v27  ;;  %v16786_v30 = vpop.eup %16785 }
 0xdf9   :  { %v6921_v32 = vadd.f32 1.0, %v16786_v30  ;;  %v7457_v30 = vld [vmem:[#allocation3 + $0x24] sm:$0x3] }
 0xdfa   :  { %v18559_v53 = vadd.f32 %v6925_v8, %v6924_v52 }
 0xdfc   :  { %16787 = vtanh.f32 %v18559_v53 }
 0xdfd   :  { %16789 = vrcp.f32 %v6921_v32 }
 0xe06   :  { %v16788_v46 = vpop.eup %16787 }
 0xe07   :  { %v16790_v63 = vpop.eup %16789 }
 0xe08   :  { %v6928_v0 = vmul.f32 %v16790_v63, %v16788_v46 }
 0xe65   :  { %v6931_v6 = vpop.permute.xlu0 %6930 }
 0xe66   :  { %v6933_v15 = vsel %vm62_vm0, %v6928_v0, %v6931_v6 }
 0xe67   :  { %14469 = vmatmul.mubr.msk.f32.vlgmr.msra.gmra.mrb[84].mxu0 %vm1136_vm2, %v6933_v15  ;;  %14488 = vmatmul.mubr.msk.f32.vlgmr.msra.gmra.mrb[84].mxu1 %vm1136_vm2, %v6933_v15 }
 0xe68   :  { %16021 = vmatpush3.bf16.msra.mxu0 %v18398_v61  ;;  %16033 = vmatpush3.bf16.msra.mxu1 %v18400_v62 }
 0xe69   :  { %16022 = vmatprep.subr.bf16.mxu0 %v17003_v57  ;;  %16034 = vmatprep.subr.bf16.mxu1 %v17003_v57 }
 0xe6a   :  { %14506 = vmatprep.mubr.msk.f32.mxu0 %vm17004_vm1, %v17005_v3  ;;  %14525 = vmatprep.mubr.msk.f32.mxu1 %vm17004_vm1, %v17005_v3 }
 0xe6c   :  { %16024 = vmatpush3.bf16.msra.mxu0 %v18420_v10  ;;  %16036 = vmatpush3.bf16.msra.mxu1 %v18422_v54 }
 0xe6d   :  { %16025 = vmatprep.subr.bf16.mxu0 %v17003_v57  ;;  %16037 = vmatprep.subr.bf16.mxu1 %v17003_v57 }
 0xe70   :  { %16027 = vmatpush3.bf16.msra.mxu0 %v18444_v39  ;;  %16039 = vmatpush3.bf16.msra.mxu1 %v18446_v26 }
 0xe71   :  { %16028 = vmatprep.subr.bf16.mxu0 %v17003_v57  ;;  %16040 = vmatprep.subr.bf16.mxu1 %v17003_v57 }
 0xe74   :  { %16030 = vmatpush3.bf16.msra.mxu0 %v18464_v7  ;;  %16042 = vmatpush3.bf16.msra.mxu1 %v18466_v19 }
 0xe75   :  { %16043 = vmatprep.subr.bf16.mxu0 %v17003_v57  ;;  %16049 = vmatprep.subr.bf16.mxu1 %v17003_v57 }
 0xe77   :  { %14507 = vmatmul.mubr.msk.f32.vlgmr.msra.gmra.mrb[86].mxu0 %vm1136_vm2, %v6933_v15  ;;  %14526 = vmatmul.mubr.msk.f32.vlgmr.msra.gmra.mrb[86].mxu1 %vm1136_vm2, %v6933_v15 }
 0xe78   :  { %16045 = vmatpush3.bf16.msra.mxu0 %v18199_v36  ;;  %16051 = vmatpush3.bf16.msra.mxu1 %v18201_v38 }
 0xe79   :  { %16046 = vmatprep.subr.bf16.mxu0 %v17003_v57  ;;  %16052 = vmatprep.subr.bf16.mxu1 %v17003_v57 }
 0xe7a   :  { %14536 = vmatprep.mubr.msk.f32.mxu0 %vm17004_vm1, %v17005_v3  ;;  %14547 = vmatprep.mubr.msk.f32.mxu1 %vm17004_vm1, %v17005_v3 }
 0xe7c   :  { %16048 = vmatpush3.bf16.msra.mxu0 %v18221_v59  ;;  %16054 = vmatpush3.bf16.msra.mxu1 %v18223_v42 }
 0xe7d   :  { %16055 = vmatprep.subr.bf16.mxu0 %v17003_v57  ;;  %16061 = vmatprep.subr.bf16.mxu1 %v17003_v57 }
 0xe7f   :  { %14537 = vmatmul.mubr.msk.f32.vlgmr.msra.gmra.mrb[88].mxu0 %vm62_vm0, %v6928_v0  ;;  %14548 = vmatmul.mubr.msk.f32.vlgmr.msra.gmra.mrb[88].mxu1 %vm62_vm0, %v6928_v0 }
 0xe80   :  { %16057 = vmatpush3.bf16.msra.mxu0 %v18245_v51  ;;  %16063 = vmatpush3.bf16.msra.mxu1 %v18247_v60 }
 0xe81   :  { %16058 = vmatprep.subr.bf16.mxu0 %v17003_v57  ;;  %16064 = vmatprep.subr.bf16.mxu1 %v17003_v57 }
 0xe82   :  { %14558 = vmatprep.mubr.msk.f32.mxu0 %vm17004_vm1, %v17005_v3  ;;  %14569 = vmatprep.mubr.msk.f32.mxu1 %vm17004_vm1, %v17005_v3 }
 0xe84   :  { %16060 = vmatpush3.bf16.msra.mxu0 %v18269_v24  ;;  %16066 = vmatpush3.bf16.msra.mxu1 %v18271_v5 }
 0xe85   :  { %16067 = vmatprep.subr.bf16.mxu0 %v17003_v57  ;;  %16079 = vmatprep.subr.bf16.mxu1 %v17003_v57 }
 0xe87   :  { %14559 = vmatmul.mubr.msk.f32.vlgmr.msra.gmra.mrb[90].mxu0 %vm62_vm0, %v6928_v0  ;;  %14570 = vmatmul.mubr.msk.f32.vlgmr.msra.gmra.mrb[90].mxu1 %vm62_vm0, %v6928_v0 }
 0xe88   :  { %16069 = vmatpush3.bf16.msra.mxu0 %v18300_v9  ;;  %16081 = vmatpush3.bf16.msra.mxu1 %v18311_v21 }
 0xe89   :  { %16070 = vmatprep.subr.bf16.mxu0 %v17003_v57  ;;  %16082 = vmatprep.subr.bf16.mxu1 %v17003_v57 }
 0xe8a   :  { %14588 = vmatprep.mubr.msk.f32.mxu0 %vm17004_vm1, %v17005_v3  ;;  %14607 = vmatprep.mubr.msk.f32.mxu1 %vm17004_vm1, %v17005_v3 }
 0xe8c   :  { %16072 = vmatpush3.bf16.msra.mxu0 %v18320_v33  ;;  %16084 = vmatpush3.bf16.msra.mxu1 %v18324_v34 }
 0xe8d   :  { %16073 = vmatprep.subr.bf16.mxu0 %v17003_v57  ;;  %16085 = vmatprep.subr.bf16.mxu1 %v17003_v57 }
 0xe90   :  { %16075 = vmatpush3.bf16.msra.mxu0 %v18340_v56  ;;  %16087 = vmatpush3.bf16.msra.mxu1 %v18344_v58 }
 0xe91   :  { %16076 = vmatprep.subr.bf16.mxu0 %v17003_v57  ;;  %16088 = vmatprep.subr.bf16.mxu1 %v17003_v57 }
 0xe94   :  { %16078 = vmatpush3.bf16.msra.mxu0 %v18360_v13  ;;  %16090 = vmatpush3.bf16.msra.mxu1 %v18364_v17 }
 0xe95   :  { %16091 = vmatprep.subr.bf16.mxu0 %v17003_v57  ;;  %16103 = vmatprep.subr.bf16.mxu1 %v17003_v57 }
 0xf3a   :  { %v7018_v36 = vpop.f32.mrb[84].mxu0  ;;  %v7103_v38 = vpop.f32.mrb[84].mxu1 }
 0xf3b   :  { %v7019_v59 = vadd.f32 %v18531_v23, %v7018_v36  ;;  %v7104_v42 = vadd.f32 %v18536_v25, %v7103_v38  ;;  %v14470_v51 = vpop.f32.mrb[85].mxu0  ;;  %v14489_v60 = vpop.f32.mrb[85].mxu1 }
 0xf3d   :  { %v11942_v24 = vmul.f32 -1.442695, %v7019_v59  ;;  %v11943_v5 = vmul.f32 -1.442695, %v7104_v42 }
 0xf3f   :  { %16791 = vpow2.f32 %v11942_v24 }
 0xf40   :  { %16793 = vpow2.f32 %v11943_v5  ;;  %v7533_v5 = vld [vmem:[#allocation3 + $0x34] sm:$0x3] }
 0xf49   :  { %v16792_v9 = vpop.eup %16791 }
 0xf4a   :  { %v16794_v21 = vpop.eup %16793  ;;  %v7280_v33 = vadd.f32 1.0, %v16792_v9  ;;  %v7188_v34 = vpop.f32.mrb[86].mxu0 }
 0xf4b   :  { %v7273_v56 = vpop.f32.mrb[86].mxu1  ;;  %v7286_v58 = vadd.f32 1.0, %v16794_v21  ;;  %v7189_v13 = vadd.f32 %v18543_v28, %v7188_v34  ;;  %v14508_v27 = vpop.f32.mrb[87].mxu0 }
 0xf4c   :  { %v7274_v17 = vadd.f32 %v18548_v14, %v7273_v56  ;;  %v14527_v29 = vpop.f32.mrb[87].mxu1  ;;  %16795 = vrcp.f32 %v7280_v33 }
 0xf4d   :  { %16797 = vrcp.f32 %v7286_v58  ;;  %v8010_v29 = vld [vmem:[%s19596_s8 + $0x18] sm:$0xff] }
 0xf4e   :  { %v11944_v31 = vmul.f32 -1.442695, %v7274_v17  ;;  %16799 = vtanh.f32 %v7189_v13 }
 0xf50   :  { %16801 = vpow2.f32 %v11944_v31 }
 0xf52   :  { %v7376_v37 = vpop.f32.mrb[88].mxu0  ;;  %v7452_v18 = vpop.f32.mrb[88].mxu1 }
 0xf53   :  { %v7380_v55 = vadd.f32 %v7376_v37, %v7302_v35  ;;  %v7456_v43 = vadd.f32 %v7452_v18, %v7381_v11  ;;  %v14538_v44 = vpop.f32.mrb[89].mxu0  ;;  %v14549_v4 = vpop.f32.mrb[89].mxu1  ;;  %v12008_v37 = vld [vmem:[%s19596_s8 + $0x40] sm:$0xff]  ;;  %v12009_v11 = vld [vmem:[%s19596_s8 + $0x48] sm:$0xff] }
 0xf54   :  { %v12013_v18 = vld [vmem:[%s19596_s8 + $0x60] sm:$0xff]  ;;  %v12010_v4 = vld [vmem:[%s19596_s8 + $0x50] sm:$0xff] }
 0xf55   :  { %v11961_v40 = vmul.f32 -1.442695, %v7380_v55  ;;  %v11962_v12 = vmul.f32 -1.442695, %v7456_v43  ;;  %v12014_v55 = vld [vmem:[%s19596_s8 + $0x68] sm:$0xff]  ;;  %v18731_v43 = vpack.c.bf16 %v12009_v11, %v12008_v37 }
 0xf56   :  { %v16796_v41 = vpop.eup %16795  ;;  %v18733_v44 = vpack.c.bf16 %v12014_v55, %v12013_v18  ;;  %v8006_v11 = vld [vmem:[#allocation3 + $0x6] sm:$0x3]  ;;  %v8085_v55 = vld [vmem:[#allocation3 + $0x16] sm:$0x3] }
 0xf57   :  { %v16798_v47 = vpop.eup %16797  ;;  %16803 = vpow2.f32 %v11961_v40  ;;  %v12011_v40 = vld [vmem:[%s19596_s8 + $0x58] sm:$0xff] }
 0xf58   :  { %v16800_v22 = vpop.eup %16799  ;;  %v7296_v49 = vmul.f32 %v16798_v47, %v18553_v16  ;;  %16805 = vpow2.f32 %v11962_v12  ;;  %v12015_v12 = vld [vmem:[%s19596_s8 + $0x70] sm:$0xff]  ;;  %v18755_v47 = vpack.c.bf16 %v12011_v40, %v12010_v4 }
 0xf59   :  { %v7297_v2 = vmul.f32 %v16800_v22, %v16796_v41  ;;  %v12016_v41 = vld [vmem:[%s19596_s8 + $0x78] sm:$0xff] }
 0xf5a   :  { %v16802_v50 = vpop.eup %16801  ;;  %v7528_v8 = vpop.f32.mrb[90].mxu0  ;;  %v18757_v22 = vpack.c.bf16 %v12016_v41, %v12015_v12 }
 0xf5b   :  { %v7293_v48 = vadd.f32 1.0, %v16802_v50  ;;  %v7604_v52 = vpop.f32.mrb[90].mxu1  ;;  %v18640_v1 = vadd.f32 %v7297_v2, %v7296_v49  ;;  %v14560_v45 = vpop.f32.mrb[91].mxu0  ;;  %v7532_v32 = vadd.f32 %v7528_v8, %v7457_v30  ;;  %v8342_v49 = vld [vmem:[%s19597_s10] sm:$0xff]  ;;  %v8343_v50 = vld [vmem:[%s19597_s10 + $0x8] sm:$0xff]  ;;  %v12025_v30 = vld [vmem:[%s19597_s10 + $0x50] sm:$0xff] }
 0xf5c   :  { %v14571_v20 = vpop.f32.mrb[91].mxu1  ;;  %v7608_v9 = vadd.f32 %v7604_v52, %v7533_v5  ;;  %v12023_v2 = vld [vmem:[%s19597_s10 + $0x40] sm:$0xff]  ;;  %v12024_v8 = vld [vmem:[%s19597_s10 + $0x48] sm:$0xff]  ;;  %v8344_v52 = vld [vmem:[%s19597_s10 + $0x10] sm:$0xff] }
 0xf5d   :  { %16807 = vrcp.f32 %v7293_v48  ;;  %v18786_v48 = vpack.c.bf16 %v8343_v50, %v8342_v49  ;;  %v8345_v45 = vld [vmem:[%s19597_s10 + $0x18] sm:$0xff]  ;;  %v18797_v20 = vpack.c.bf16 %v12024_v8, %v12023_v2 }
 0xf5e   :  { %16809 = vtanh.f32 %v18640_v1  ;;  %v11963_v21 = vmul.f32 -1.442695, %v7608_v9 }
 0xf5f   :  { %16811 = vtanh.f32 %v7532_v32  ;;  %v12026_v32 = vld [vmem:[%s19597_s10 + $0x58] sm:$0xff] }
 0xf61   :  { %v16804_v46 = vpop.eup %16803 }
 0xf62   :  { %v16806_v63 = vpop.eup %16805  ;;  %v7612_v0 = vadd.f32 1.0, %v16804_v46  ;;  %v18806_v46 = vpack.c.bf16 %v8345_v45, %v8344_v52 }
 0xf63   :  { %v7618_v6 = vadd.f32 1.0, %v16806_v63  ;;  %v18810_v63 = vpack.c.bf16 %v12026_v32, %v12025_v30 }
 0xf64   :  { %16813 = vrcp.f32 %v7612_v0  ;;  %v8346_v0 = vld [vmem:[%s19597_s10 + $0x20] sm:$0xff] }
 0xf65   :  { %16815 = vrcp.f32 %v7618_v6  ;;  %v8347_v6 = vld [vmem:[%s19597_s10 + $0x28] sm:$0xff] }
 0xf66   :  { %16817 = vpow2.f32 %v11963_v21 }
 0xf67   :  { %v16808_v16 = vpop.eup %16807 }
 0xf68   :  { %v16810_v15 = vpop.eup %16809 }
 0xf69   :  { %v7300_v36 = vmul.f32 %v16810_v15, %v16808_v16  ;;  %v16812_v38 = vpop.eup %16811  ;;  %v12027_v16 = vld [vmem:[%s19597_s10 + $0x60] sm:$0xff]  ;;  %v12028_v15 = vld [vmem:[%s19597_s10 + $0x68] sm:$0xff] }
 0xf6b   :  { %7634 = vrot.lane.b32.xlu1 %v7300_v36, %s17006_s25  ;;  %7301 = vst.msk [vmem:[#allocation4 + $0x2] sm:$0x3] %vm6596_vm3, %v7300_v36  ;;  %v18826_v36 = vpack.c.bf16 %v8347_v6, %v8346_v0 }
 0xf6e   :  { %v16814_v59 = vpop.eup %16813 }
 0xf6f   :  { %v16816_v42 = vpop.eup %16815  ;;  %v7629_v51 = vmul.f32 %v16814_v59, %v16812_v38  ;;  %v18830_v38 = vpack.c.bf16 %v12028_v15, %v12027_v16  ;;  %v8348_v59 = vld [vmem:[%s19597_s10 + $0x30] sm:$0xff] }
 0xf70   :  { %v7628_v60 = vmul.f32 %v16816_v42, %v18559_v53  ;;  %v16818_v33 = vpop.eup %16817  ;;  %v8009_v53 = vld [vmem:[%s19596_s8 + $0x10] sm:$0xff]  ;;  %v8349_v42 = vld [vmem:[%s19597_s10 + $0x38] sm:$0xff] }
 0xf71   :  { %v7625_v34 = vadd.f32 1.0, %v16818_v33  ;;  %v18707_v31 = vpack.c.bf16 %v8010_v29, %v8009_v53  ;;  %v18846_v5 = vpack.c.bf16 %v8349_v42, %v8348_v59  ;;  %v8161_v42 = vld [vmem:[#allocation3 + $0x26] sm:$0x3] }
 0xf72   :  { %v18646_v24 = vadd.f32 %v7629_v51, %v7628_v60  ;;  %v12029_v51 = vld [vmem:[%s19597_s10 + $0x70] sm:$0xff]  ;;  %v12030_v60 = vld [vmem:[%s19597_s10 + $0x78] sm:$0xff] }
 0xf73   :  { %v18850_v9 = vpack.c.bf16 %v12030_v60, %v12029_v51 }
 0xf74   :  { %16819 = vtanh.f32 %v18646_v24 }
 0xf75   :  { %16821 = vrcp.f32 %v7625_v34 }
 0xf7e   :  { %v16820_v56 = vpop.eup %16819 }
 0xf7f   :  { %v16822_v58 = vpop.eup %16821 }
 0xf80   :  { %v18649_v13 = vmul.f32 %v16822_v58, %v16820_v56 }
 0xfdd   :  { %v7635_v17 = vpop.permute.xlu1 %7634 }
 0xfde   :  { %v7637_v27 = vsel %vm62_vm0, %v18649_v13, %v7635_v17 }
 0xfdf   :  { %14589 = vmatmul.mubr.msk.f32.vlgmr.msra.gmra.mrb[92].mxu0 %vm1136_vm2, %v7637_v27  ;;  %14608 = vmatmul.mubr.msk.f32.vlgmr.msra.gmra.mrb[92].mxu1 %vm1136_vm2, %v7637_v27 }
 0xfe0   :  { %16093 = vmatpush3.bf16.msra.mxu0 %v18398_v61  ;;  %16105 = vmatpush3.bf16.msra.mxu1 %v18400_v62  ;;  %v8007_v61 = vld [vmem:[%s19596_s8] sm:$0xff]  ;;  %v8008_v62 = vld [vmem:[%s19596_s8 + $0x8] sm:$0xff] }
 0xfe1   :  { %16094 = vmatprep.subr.bf16.mxu0 %v17003_v57  ;;  %16106 = vmatprep.subr.bf16.mxu1 %v17003_v57 }
 0xfe2   :  { %14626 = vmatprep.mubr.msk.f32.mxu0 %vm17004_vm1, %v17005_v3  ;;  %14645 = vmatprep.mubr.msk.f32.mxu1 %vm17004_vm1, %v17005_v3 }
 0xfe4   :  { %16096 = vmatpush3.bf16.msra.mxu0 %v18420_v10  ;;  %16108 = vmatpush3.bf16.msra.mxu1 %v18422_v54  ;;  %v12003_v10 = vld [vmem:[%s19596_s8 + $0x20] sm:$0xff]  ;;  %v12004_v54 = vld [vmem:[%s19596_s8 + $0x28] sm:$0xff] }
 0xfe5   :  { %16097 = vmatprep.subr.bf16.mxu0 %v17003_v57  ;;  %16109 = vmatprep.subr.bf16.mxu1 %v17003_v57 }
 0xfe8   :  { %16099 = vmatpush3.bf16.msra.mxu0 %v18444_v39  ;;  %16111 = vmatpush3.bf16.msra.mxu1 %v18446_v26  ;;  %v18685_v39 = vpack.c.bf16 %v8008_v62, %v8007_v61  ;;  %v18687_v26 = vpack.c.bf16 %v12004_v54, %v12003_v10 }
 0xfe9   :  { %16100 = vmatprep.subr.bf16.mxu0 %v17003_v57  ;;  %16112 = vmatprep.subr.bf16.mxu1 %v17003_v57 }
 0xfec   :  { %16102 = vmatpush3.bf16.msra.mxu0 %v18464_v7  ;;  %16114 = vmatpush3.bf16.msra.mxu1 %v18466_v19  ;;  %v12005_v7 = vld [vmem:[%s19596_s8 + $0x30] sm:$0xff]  ;;  %v12006_v19 = vld [vmem:[%s19596_s8 + $0x38] sm:$0xff] }
 0xfed   :  { %16115 = vmatprep.subr.bf16.mxu0 %v17003_v57  ;;  %16121 = vmatprep.subr.bf16.mxu1 %v17003_v57  ;;  %v18709_v35 = vpack.c.bf16 %v12006_v19, %v12005_v7 }
 0xfef   :  { %14627 = vmatmul.mubr.msk.f32.vlgmr.msra.gmra.mrb[94].mxu0 %vm1136_vm2, %v7637_v27  ;;  %14646 = vmatmul.mubr.msk.f32.vlgmr.msra.gmra.mrb[94].mxu1 %vm1136_vm2, %v7637_v27 }
 0xff0   :  { %16117 = vmatpush3.bf16.msra.mxu0 %v18685_v39  ;;  %16123 = vmatpush3.bf16.msra.mxu1 %v18687_v26 }
 0xff1   :  { %16118 = vmatprep.subr.bf16.mxu0 %v17003_v57  ;;  %16124 = vmatprep.subr.bf16.mxu1 %v17003_v57 }
 0xff2   :  { %14656 = vmatprep.mubr.msk.f32.mxu0 %vm17004_vm1, %v17005_v3  ;;  %14667 = vmatprep.mubr.msk.f32.mxu1 %vm17004_vm1, %v17005_v3 }
 0xff4   :  { %16120 = vmatpush3.bf16.msra.mxu0 %v18707_v31  ;;  %16126 = vmatpush3.bf16.msra.mxu1 %v18709_v35 }
 0xff5   :  { %16127 = vmatprep.subr.bf16.mxu0 %v17003_v57  ;;  %16133 = vmatprep.subr.bf16.mxu1 %v17003_v57 }
 0xff7   :  { %14657 = vmatmul.mubr.msk.f32.vlgmr.msra.gmra.mrb[96].mxu0 %vm62_vm0, %v18649_v13  ;;  %14668 = vmatmul.mubr.msk.f32.vlgmr.msra.gmra.mrb[96].mxu1 %vm62_vm0, %v18649_v13 }
 0xff8   :  { %16129 = vmatpush3.bf16.msra.mxu0 %v18731_v43  ;;  %16135 = vmatpush3.bf16.msra.mxu1 %v18733_v44 }
 0xff9   :  { %16130 = vmatprep.subr.bf16.mxu0 %v17003_v57  ;;  %16136 = vmatprep.subr.bf16.mxu1 %v17003_v57 }
 0xffa   :  { %14678 = vmatprep.mubr.msk.f32.mxu0 %vm17004_vm1, %v17005_v3  ;;  %14689 = vmatprep.mubr.msk.f32.mxu1 %vm17004_vm1, %v17005_v3 }
 0xffc   :  { %16132 = vmatpush3.bf16.msra.mxu0 %v18755_v47  ;;  %16138 = vmatpush3.bf16.msra.mxu1 %v18757_v22 }
 0xffd   :  { %16139 = vmatprep.subr.bf16.mxu0 %v17003_v57  ;;  %16151 = vmatprep.subr.bf16.mxu1 %v17003_v57 }
 0xfff   :  { %14679 = vmatmul.mubr.msk.f32.vlgmr.msra.gmra.mrb[98].mxu0 %vm62_vm0, %v18649_v13  ;;  %14690 = vmatmul.mubr.msk.f32.vlgmr.msra.gmra.mrb[98].mxu1 %vm62_vm0, %v18649_v13 }
0x1000   :  { %14708 = vmatprep.mubr.msk.f32.mxu0 %vm17004_vm1, %v17005_v3  ;;  %14727 = vmatprep.mubr.msk.f32.mxu1 %vm17004_vm1, %v17005_v3 }
0x1001   :  { %16141 = vmatpush3.bf16.msra.mxu0 %v18786_v48  ;;  %16153 = vmatpush3.bf16.msra.mxu1 %v18797_v20 }
0x1002   :  { %16142 = vmatprep.subr.bf16.mxu0 %v17003_v57  ;;  %16154 = vmatprep.subr.bf16.mxu1 %v17003_v57 }
0x1005   :  { %16144 = vmatpush3.bf16.msra.mxu0 %v18806_v46  ;;  %16156 = vmatpush3.bf16.msra.mxu1 %v18810_v63 }
0x1006   :  { %16145 = vmatprep.subr.bf16.mxu0 %v17003_v57  ;;  %16157 = vmatprep.subr.bf16.mxu1 %v17003_v57 }
0x1009   :  { %16147 = vmatpush3.bf16.msra.mxu0 %v18826_v36  ;;  %16159 = vmatpush3.bf16.msra.mxu1 %v18830_v38 }
0x100a   :  { %16148 = vmatprep.subr.bf16.mxu0 %v17003_v57  ;;  %16160 = vmatprep.subr.bf16.mxu1 %v17003_v57 }
0x100d   :  { %16150 = vmatpush3.bf16.msra.mxu0 %v18846_v5  ;;  %16162 = vmatpush3.bf16.msra.mxu1 %v18850_v9 }
0x100e   :  { %16163 = vmatprep.subr.bf16.mxu0 %v17003_v57  ;;  %16175 = vmatprep.subr.bf16.mxu1 %v17003_v57 }
0x10b2   :  { %v7722_v21 = vpop.f32.mrb[92].mxu0  ;;  %v7807_v33 = vpop.f32.mrb[92].mxu1 }
0x10b3   :  { %v7723_v34 = vadd.f32 %v18531_v23, %v7722_v21  ;;  %v7808_v56 = vadd.f32 %v18536_v25, %v7807_v33  ;;  %v14590_v58 = vpop.f32.mrb[93].mxu0  ;;  %v14609_v13 = vpop.f32.mrb[93].mxu1 }
0x10b5   :  { %v11999_v17 = vmul.f32 -1.442695, %v7723_v34  ;;  %v12000_v27 = vmul.f32 -1.442695, %v7808_v56 }
0x10b7   :  { %16823 = vpow2.f32 %v11999_v17 }
0x10b8   :  { %16825 = vpow2.f32 %v12000_v27 }
0x10c1   :  { %v16824_v61 = vpop.eup %16823 }
0x10c2   :  { %v16826_v62 = vpop.eup %16825  ;;  %v7984_v10 = vadd.f32 1.0, %v16824_v61  ;;  %v7892_v54 = vpop.f32.mrb[94].mxu0 }
0x10c3   :  { %v7977_v53 = vpop.f32.mrb[94].mxu1  ;;  %v7990_v29 = vadd.f32 1.0, %v16826_v62  ;;  %v7893_v7 = vadd.f32 %v18543_v28, %v7892_v54  ;;  %v14628_v37 = vpop.f32.mrb[95].mxu0  ;;  %v8237_v54 = vld [vmem:[#allocation3 + $0x36] sm:$0x3] }
0x10c4   :  { %v7978_v19 = vadd.f32 %v18548_v14, %v7977_v53  ;;  %v14647_v23 = vpop.f32.mrb[95].mxu1  ;;  %16827 = vrcp.f32 %v7984_v10  ;;  %v12034_v37 = vld [vmem:[%s19597_s10 + $0x80] sm:$0xff] }
0x10c5   :  { %16829 = vrcp.f32 %v7990_v29 }
0x10c6   :  { %v12001_v25 = vmul.f32 -1.442695, %v7978_v19  ;;  %16831 = vtanh.f32 %v7893_v7 }
0x10c8   :  { %16833 = vpow2.f32 %v12001_v25  ;;  %v12045_v25 = vld [vmem:[%s19597_s10 + $0xc0] sm:$0xff] }
0x10ca   :  { %v8080_v18 = vpop.f32.mrb[96].mxu0  ;;  %v8156_v4 = vpop.f32.mrb[96].mxu1 }
0x10cb   :  { %v8084_v40 = vadd.f32 %v8080_v18, %v8006_v11  ;;  %v8160_v12 = vadd.f32 %v8156_v4, %v8085_v55  ;;  %v14658_v41 = vpop.f32.mrb[97].mxu0  ;;  %v14669_v49 = vpop.f32.mrb[97].mxu1  ;;  %v12046_v11 = vld [vmem:[%s19597_s10 + $0xc8] sm:$0xff] }
0x10cc   :  { %v12037_v49 = vld [vmem:[%s19597_s10 + $0x98] sm:$0xff] }
0x10cd   :  { %v12018_v50 = vmul.f32 -1.442695, %v8084_v40  ;;  %v12019_v2 = vmul.f32 -1.442695, %v8160_v12  ;;  %v18887_v40 = vpack.c.bf16 %v12046_v11, %v12045_v25  ;;  %v12036_v12 = vld [vmem:[%s19597_s10 + $0x90] sm:$0xff] }
0x10ce   :  { %v16828_v28 = vpop.eup %16827 }
0x10cf   :  { %v16830_v8 = vpop.eup %16829  ;;  %16835 = vpow2.f32 %v12018_v50  ;;  %v12047_v50 = vld [vmem:[%s19597_s10 + $0xd0] sm:$0xff] }
0x10d0   :  { %v16832_v14 = vpop.eup %16831  ;;  %v8000_v52 = vmul.f32 %v16830_v8, %v18640_v1  ;;  %16837 = vpow2.f32 %v12019_v2  ;;  %v12048_v2 = vld [vmem:[%s19597_s10 + $0xd8] sm:$0xff]  ;;  %v18907_v8 = vpack.c.bf16 %v12037_v49, %v12036_v12 }
0x10d1   :  { %v8001_v30 = vmul.f32 %v16832_v14, %v16828_v28  ;;  %v18909_v14 = vpack.c.bf16 %v12048_v2, %v12047_v50  ;;  %v8789_v50 = vld [vmem:[#allocation3 + $0x18] sm:$0x3] }
0x10d2   :  { %v16834_v45 = vpop.eup %16833  ;;  %v8232_v0 = vpop.f32.mrb[98].mxu0 }
0x10d3   :  { %v7997_v32 = vadd.f32 1.0, %v16834_v45  ;;  %v8308_v6 = vpop.f32.mrb[98].mxu1  ;;  %v18862_v16 = vadd.f32 %v8001_v30, %v8000_v52  ;;  %v14680_v15 = vpop.f32.mrb[99].mxu0  ;;  %v8236_v51 = vadd.f32 %v8232_v0, %v8161_v42  ;;  %v12038_v52 = vld [vmem:[%s19597_s10 + $0xa0] sm:$0xff]  ;;  %v12039_v45 = vld [vmem:[%s19597_s10 + $0xa8] sm:$0xff]  ;;  %v12051_v42 = vld [vmem:[%s19597_s10 + $0xf0] sm:$0xff] }
0x10d4   :  { %v14691_v59 = vpop.f32.mrb[99].mxu1  ;;  %v8312_v53 = vadd.f32 %v8308_v6, %v8237_v54  ;;  %v12049_v30 = vld [vmem:[%s19597_s10 + $0xe0] sm:$0xff]  ;;  %v18931_v0 = vpack.c.bf16 %v12039_v45, %v12038_v52  ;;  %v12040_v15 = vld [vmem:[%s19597_s10 + $0xb0] sm:$0xff] }
0x10d5   :  { %16839 = vrcp.f32 %v7997_v32  ;;  %v12050_v32 = vld [vmem:[%s19597_s10 + $0xe8] sm:$0xff]  ;;  %v12041_v59 = vld [vmem:[%s19597_s10 + $0xb8] sm:$0xff]  ;;  %v19030_v54 = vld [vmem:[%s19598_s11 + $0x2] ss:$0 sm:$0xff] }
0x10d6   :  { %16841 = vtanh.f32 %v18862_v16  ;;  %v12020_v29 = vmul.f32 -1.442695, %v8312_v53  ;;  %v18933_v6 = vpack.c.bf16 %v12050_v32, %v12049_v30  ;;  %v19035_v53 = vld [vmem:[%s19598_s11 + $0x3] ss:$0 sm:$0xff] }
0x10d7   :  { %16843 = vtanh.f32 %v8236_v51  ;;  %v12052_v51 = vld [vmem:[%s19597_s10 + $0xf8] sm:$0xff] }
0x10d9   :  { %v16836_v60 = vpop.eup %16835 }
0x10da   :  { %v16838_v21 = vpop.eup %16837  ;;  %v8316_v33 = vadd.f32 1.0, %v16836_v60  ;;  %v18951_v60 = vpack.c.bf16 %v12041_v59, %v12040_v15 }
0x10db   :  { %v8322_v34 = vadd.f32 1.0, %v16838_v21  ;;  %v18953_v21 = vpack.c.bf16 %v12052_v51, %v12051_v42 }
0x10dc   :  { %16845 = vrcp.f32 %v8316_v33  ;;  %v19018_v33 = vld [vmem:[%s19598_s11] ss:$0 sm:$0xff] }
0x10dd   :  { %16847 = vrcp.f32 %v8322_v34  ;;  %v19023_v34 = vld [vmem:[%s19598_s11 + $0x1] ss:$0 sm:$0xff] }
0x10de   :  { %16849 = vpow2.f32 %v12020_v29 }
0x10df   :  { %v16840_v1 = vpop.eup %16839 }
0x10e0   :  { %v16842_v56 = vpop.eup %16841 }
0x10e1   :  { %v8004_v58 = vmul.f32 %v16842_v56, %v16840_v1  ;;  %v16844_v13 = vpop.eup %16843 }
0x10e3   :  { %8338 = vrot.lane.b32.xlu0 %v8004_v58, %s17006_s25  ;;  %8005 = vst.msk [vmem:[#allocation4 + $0x4] sm:$0x3] %vm6596_vm3, %v8004_v58 }
0x10e6   :  { %v16846_v17 = vpop.eup %16845 }
0x10e7   :  { %v16848_v27 = vpop.eup %16847  ;;  %v8333_v61 = vmul.f32 %v16846_v17, %v16844_v13 }
0x10e8   :  { %v8332_v62 = vmul.f32 %v16848_v27, %v18646_v24  ;;  %v16850_v7 = vpop.eup %16849  ;;  %v12035_v24 = vld [vmem:[%s19597_s10 + $0x88] sm:$0xff] }
0x10e9   :  { %v8329_v19 = vadd.f32 1.0, %v16850_v7  ;;  %v18885_v4 = vpack.c.bf16 %v12035_v24, %v12034_v37 }
0x10ea   :  { %v18868_v10 = vadd.f32 %v8333_v61, %v8332_v62 }
0x10ec   :  { %16851 = vtanh.f32 %v18868_v10 }
0x10ed   :  { %16853 = vrcp.f32 %v8329_v19 }
0x10f6   :  { %v16852_v23 = vpop.eup %16851 }
0x10f7   :  { %v16854_v18 = vpop.eup %16853 }
0x10f8   :  { %v18883_v55 = vmul.f32 %v16854_v18, %v16852_v23 }
0x1155   :  { %v8339_v41 = vpop.permute.xlu0 %8338 }
0x1156   :  { %v8341_v28 = vsel %vm62_vm0, %v18883_v55, %v8339_v41  ;;  %v8710_v41 = vld [vmem:[#allocation3 + $0x8] sm:$0x3] }
0x1157   :  { %14709 = vmatmul.mubr.msk.f32.vlgmr.msra.gmra.mrb[100].mxu0 %vm1136_vm2, %v8341_v28  ;;  %14728 = vmatmul.mubr.msk.f32.vlgmr.msra.gmra.mrb[100].mxu1 %vm1136_vm2, %v8341_v28 }
0x1158   :  { %16165 = vmatpush3.bf16.msra.mxu0 %v18885_v4  ;;  %16177 = vmatpush3.bf16.msra.mxu1 %v18887_v40 }
0x1159   :  { %16166 = vmatprep.subr.bf16.mxu0 %v17003_v57  ;;  %16178 = vmatprep.subr.bf16.mxu1 %v17003_v57 }
0x115a   :  { %14746 = vmatprep.mubr.msk.f32.mxu0 %vm17004_vm1, %v17005_v3  ;;  %14765 = vmatprep.mubr.msk.f32.mxu1 %vm17004_vm1, %v17005_v3 }
0x115c   :  { %16168 = vmatpush3.bf16.msra.mxu0 %v18907_v8  ;;  %16180 = vmatpush3.bf16.msra.mxu1 %v18909_v14 }
0x115d   :  { %16169 = vmatprep.subr.bf16.mxu0 %v17003_v57  ;;  %16181 = vmatprep.subr.bf16.mxu1 %v17003_v57 }
0x1160   :  { %16171 = vmatpush3.bf16.msra.mxu0 %v18931_v0  ;;  %16183 = vmatpush3.bf16.msra.mxu1 %v18933_v6 }
0x1161   :  { %16172 = vmatprep.subr.bf16.mxu0 %v17003_v57  ;;  %16184 = vmatprep.subr.bf16.mxu1 %v17003_v57 }
0x1164   :  { %16174 = vmatpush3.bf16.msra.mxu0 %v18951_v60  ;;  %16186 = vmatpush3.bf16.msra.mxu1 %v18953_v21 }
0x1165   :  { %16187 = vmatprep.subr.bf16.mxu0 %v17003_v57  ;;  %16193 = vmatprep.subr.bf16.mxu1 %v17003_v57 }
0x1167   :  { %14747 = vmatmul.mubr.msk.f32.vlgmr.msra.gmra.mrb[102].mxu0 %vm1136_vm2, %v8341_v28  ;;  %14766 = vmatmul.mubr.msk.f32.vlgmr.msra.gmra.mrb[102].mxu1 %vm1136_vm2, %v8341_v28 }
0x1168   :  { %16189 = vmatpush3.bf16.msra.mxu0 %v18685_v39  ;;  %16195 = vmatpush3.bf16.msra.mxu1 %v18687_v26 }
0x1169   :  { %16190 = vmatprep.subr.bf16.mxu0 %v17003_v57  ;;  %16196 = vmatprep.subr.bf16.mxu1 %v17003_v57 }
0x116a   :  { %14776 = vmatprep.mubr.msk.f32.mxu0 %vm17004_vm1, %v17005_v3  ;;  %14787 = vmatprep.mubr.msk.f32.mxu1 %vm17004_vm1, %v17005_v3 }
0x116c   :  { %16192 = vmatpush3.bf16.msra.mxu0 %v18707_v31  ;;  %16198 = vmatpush3.bf16.msra.mxu1 %v18709_v35 }
0x116d   :  { %16199 = vmatprep.subr.bf16.mxu0 %v17003_v57  ;;  %16205 = vmatprep.subr.bf16.mxu1 %v17003_v57 }
0x116f   :  { %14777 = vmatmul.mubr.msk.f32.vlgmr.msra.gmra.mrb[104].mxu0 %vm62_vm0, %v18883_v55  ;;  %14788 = vmatmul.mubr.msk.f32.vlgmr.msra.gmra.mrb[104].mxu1 %vm62_vm0, %v18883_v55 }
0x1170   :  { %16201 = vmatpush3.bf16.msra.mxu0 %v18731_v43  ;;  %16207 = vmatpush3.bf16.msra.mxu1 %v18733_v44 }
0x1171   :  { %16202 = vmatprep.subr.bf16.mxu0 %v17003_v57  ;;  %16208 = vmatprep.subr.bf16.mxu1 %v17003_v57 }
0x1172   :  { %14798 = vmatprep.mubr.msk.f32.mxu0 %vm17004_vm1, %v17005_v3  ;;  %14809 = vmatprep.mubr.msk.f32.mxu1 %vm17004_vm1, %v17005_v3 }
0x1174   :  { %16204 = vmatpush3.bf16.msra.mxu0 %v18755_v47  ;;  %16210 = vmatpush3.bf16.msra.mxu1 %v18757_v22 }
0x1175   :  { %16211 = vmatprep.subr.bf16.mxu0 %v17003_v57  ;;  %16223 = vmatprep.subr.bf16.mxu1 %v17003_v57 }
0x1177   :  { %14799 = vmatmul.mubr.msk.f32.vlgmr.msra.gmra.mrb[106].mxu0 %vm62_vm0, %v18883_v55  ;;  %14810 = vmatmul.mubr.msk.f32.vlgmr.msra.gmra.mrb[106].mxu1 %vm62_vm0, %v18883_v55 }
0x1178   :  { %16213 = vmatpush3.bf16.msra.mxu0 %v18786_v48  ;;  %16225 = vmatpush3.bf16.msra.mxu1 %v18797_v20 }
0x1179   :  { %16214 = vmatprep.subr.bf16.mxu0 %v17003_v57  ;;  %16226 = vmatprep.subr.bf16.mxu1 %v17003_v57 }
0x117a   :  { %14828 = vmatprep.mubr.msk.f32.mxu0 %vm17004_vm1, %v17005_v3  ;;  %14847 = vmatprep.mubr.msk.f32.mxu1 %vm17004_vm1, %v17005_v3 }
0x117c   :  { %16216 = vmatpush3.bf16.msra.mxu0 %v18806_v46  ;;  %16228 = vmatpush3.bf16.msra.mxu1 %v18810_v63 }
0x117d   :  { %16217 = vmatprep.subr.bf16.mxu0 %v17003_v57  ;;  %16229 = vmatprep.subr.bf16.mxu1 %v17003_v57 }
0x1180   :  { %16219 = vmatpush3.bf16.msra.mxu0 %v18826_v36  ;;  %16231 = vmatpush3.bf16.msra.mxu1 %v18830_v38 }
0x1181   :  { %16220 = vmatprep.subr.bf16.mxu0 %v17003_v57  ;;  %16232 = vmatprep.subr.bf16.mxu1 %v17003_v57 }
0x1184   :  { %16222 = vmatpush3.bf16.msra.mxu0 %v18846_v5  ;;  %16234 = vmatpush3.bf16.msra.mxu1 %v18850_v9 }
0x1185   :  { %16235 = vmatprep.subr.bf16.mxu0 %v17003_v57  ;;  %16247 = vmatprep.subr.bf16.mxu1 %v17003_v57 }
0x122a   :  { %v8426_v1 = vpop.f32.mrb[100].mxu0  ;;  %v8511_v56 = vpop.f32.mrb[100].mxu1 }
0x122b   :  { %v8427_v58 = vadd.f32 %v19018_v33, %v8426_v1  ;;  %v8512_v13 = vadd.f32 %v19023_v34, %v8511_v56  ;;  %v14710_v17 = vpop.f32.mrb[101].mxu0  ;;  %v14729_v27 = vpop.f32.mrb[101].mxu1 }
0x122d   :  { %v12056_v61 = vmul.f32 -1.442695, %v8427_v58  ;;  %v12057_v62 = vmul.f32 -1.442695, %v8512_v13 }
0x122f   :  { %16855 = vpow2.f32 %v12056_v61 }
0x1230   :  { %16857 = vpow2.f32 %v12057_v62 }
0x1239   :  { %v16856_v29 = vpop.eup %16855 }
0x123a   :  { %v16858_v7 = vpop.eup %16857  ;;  %v8688_v19 = vadd.f32 1.0, %v16856_v29  ;;  %v8596_v37 = vpop.f32.mrb[102].mxu0 }
0x123b   :  { %v8681_v23 = vpop.f32.mrb[102].mxu1  ;;  %v8694_v24 = vadd.f32 1.0, %v16858_v7  ;;  %v8597_v25 = vadd.f32 %v19030_v54, %v8596_v37  ;;  %v14748_v18 = vpop.f32.mrb[103].mxu0  ;;  %v8865_v7 = vld [vmem:[#allocation3 + $0x28] sm:$0x3] }
0x123c   :  { %v8682_v11 = vadd.f32 %v19035_v53, %v8681_v23  ;;  %v14767_v55 = vpop.f32.mrb[103].mxu1  ;;  %16859 = vrcp.f32 %v8688_v19 }
0x123d   :  { %16861 = vrcp.f32 %v8694_v24 }
0x123e   :  { %v12058_v12 = vmul.f32 -1.442695, %v8682_v11  ;;  %16863 = vtanh.f32 %v8597_v25 }
0x1240   :  { %16865 = vpow2.f32 %v12058_v12 }
0x1242   :  { %v8784_v49 = vpop.f32.mrb[104].mxu0  ;;  %v8860_v2 = vpop.f32.mrb[104].mxu1 }
0x1243   :  { %v8788_v28 = vadd.f32 %v8784_v49, %v8710_v41  ;;  %v8864_v52 = vadd.f32 %v8860_v2, %v8789_v50  ;;  %v14778_v45 = vpop.f32.mrb[105].mxu0  ;;  %v14789_v30 = vpop.f32.mrb[105].mxu1 }
0x1245   :  { %v12075_v32 = vmul.f32 -1.442695, %v8788_v28  ;;  %v12076_v15 = vmul.f32 -1.442695, %v8864_v52  ;;  %v8941_v28 = vld [vmem:[#allocation3 + $0x38] sm:$0x3] }
0x1246   :  { %v16860_v59 = vpop.eup %16859 }
0x1247   :  { %v16862_v42 = vpop.eup %16861  ;;  %16867 = vpow2.f32 %v12075_v32 }
0x1248   :  { %v16864_v51 = vpop.eup %16863  ;;  %v8704_v1 = vmul.f32 %v16862_v42, %v18862_v16  ;;  %16869 = vpow2.f32 %v12076_v15 }
0x1249   :  { %v8705_v58 = vmul.f32 %v16864_v51, %v16860_v59 }
0x124a   :  { %v16866_v56 = vpop.eup %16865  ;;  %v8936_v17 = vpop.f32.mrb[106].mxu0 }
0x124b   :  { %v8701_v13 = vadd.f32 1.0, %v16866_v56  ;;  %v9012_v27 = vpop.f32.mrb[106].mxu1  ;;  %v19040_v61 = vadd.f32 %v8705_v58, %v8704_v1  ;;  %v14800_v62 = vpop.f32.mrb[107].mxu0  ;;  %v8940_v19 = vadd.f32 %v8936_v17, %v8865_v7 }
0x124c   :  { %v14811_v29 = vpop.f32.mrb[107].mxu1  ;;  %v9016_v52 = vadd.f32 %v9012_v27, %v8941_v28  ;;  %v9493_v27 = vld [vmem:[#allocation3 + $0x1a] sm:$0x3] }
0x124d   :  { %16871 = vrcp.f32 %v8701_v13  ;;  %v9414_v13 = vld [vmem:[#allocation3 + $0xa] sm:$0x3] }
0x124e   :  { %16873 = vtanh.f32 %v19040_v61  ;;  %v12077_v45 = vmul.f32 -1.442695, %v9016_v52 }
0x124f   :  { %16875 = vtanh.f32 %v8940_v19 }
0x1251   :  { %v16868_v37 = vpop.eup %16867 }
0x1252   :  { %v16870_v23 = vpop.eup %16869  ;;  %v9020_v24 = vadd.f32 1.0, %v16868_v37 }
0x1253   :  { %v9026_v25 = vadd.f32 1.0, %v16870_v23 }
0x1254   :  { %16877 = vrcp.f32 %v9020_v24 }
0x1255   :  { %16879 = vrcp.f32 %v9026_v25 }
0x1256   :  { %16881 = vpow2.f32 %v12077_v45 }
0x1257   :  { %v16872_v16 = vpop.eup %16871 }
0x1258   :  { %v16874_v11 = vpop.eup %16873 }
0x1259   :  { %v8708_v18 = vmul.f32 %v16874_v11, %v16872_v16  ;;  %v16876_v55 = vpop.eup %16875 }
0x125b   :  { %9042 = vrot.lane.b32.xlu1 %v8708_v18, %s17006_s25  ;;  %8709 = vst.msk [vmem:[#allocation4 + $0x6] sm:$0x3] %vm6596_vm3, %v8708_v18 }
0x125e   :  { %v16878_v12 = vpop.eup %16877 }
0x125f   :  { %v16880_v41 = vpop.eup %16879  ;;  %v9037_v49 = vmul.f32 %v16878_v12, %v16876_v55 }
0x1260   :  { %v9036_v50 = vmul.f32 %v16880_v41, %v18868_v10  ;;  %v16882_v30 = vpop.eup %16881 }
0x1261   :  { %v9033_v32 = vadd.f32 1.0, %v16882_v30  ;;  %v9569_v30 = vld [vmem:[#allocation3 + $0x2a] sm:$0x3] }
0x1262   :  { %v19046_v2 = vadd.f32 %v9037_v49, %v9036_v50 }
0x1264   :  { %16883 = vtanh.f32 %v19046_v2 }
0x1265   :  { %16885 = vrcp.f32 %v9033_v32 }
0x126e   :  { %v16884_v15 = vpop.eup %16883 }
0x126f   :  { %v16886_v59 = vpop.eup %16885 }
0x1270   :  { %v9040_v42 = vmul.f32 %v16886_v59, %v16884_v15 }
0x12cd   :  { %v9043_v51 = vpop.permute.xlu1 %9042 }
0x12ce   :  { %v9045_v1 = vsel %vm62_vm0, %v9040_v42, %v9043_v51 }
0x12cf   :  { %14829 = vmatmul.mubr.msk.f32.vlgmr.msra.gmra.mrb[108].mxu0 %vm1136_vm2, %v9045_v1  ;;  %14848 = vmatmul.mubr.msk.f32.vlgmr.msra.gmra.mrb[108].mxu1 %vm1136_vm2, %v9045_v1 }
0x12d0   :  { %16237 = vmatpush3.bf16.msra.mxu0 %v18885_v4  ;;  %16249 = vmatpush3.bf16.msra.mxu1 %v18887_v40 }
0x12d1   :  { %16238 = vmatprep.subr.bf16.mxu0 %v17003_v57  ;;  %16250 = vmatprep.subr.bf16.mxu1 %v17003_v57 }
0x12d2   :  { %14866 = vmatprep.mubr.msk.f32.mxu0 %vm17004_vm1, %v17005_v3  ;;  %14885 = vmatprep.mubr.msk.f32.mxu1 %vm17004_vm1, %v17005_v3 }
0x12d4   :  { %16240 = vmatpush3.bf16.msra.mxu0 %v18907_v8  ;;  %16252 = vmatpush3.bf16.msra.mxu1 %v18909_v14 }
0x12d5   :  { %16241 = vmatprep.subr.bf16.mxu0 %v17003_v57  ;;  %16253 = vmatprep.subr.bf16.mxu1 %v17003_v57 }
0x12d8   :  { %16243 = vmatpush3.bf16.msra.mxu0 %v18931_v0  ;;  %16255 = vmatpush3.bf16.msra.mxu1 %v18933_v6 }
0x12d9   :  { %16244 = vmatprep.subr.bf16.mxu0 %v17003_v57  ;;  %16256 = vmatprep.subr.bf16.mxu1 %v17003_v57 }
0x12dc   :  { %16246 = vmatpush3.bf16.msra.mxu0 %v18951_v60  ;;  %16258 = vmatpush3.bf16.msra.mxu1 %v18953_v21 }
0x12dd   :  { %16259 = vmatprep.subr.bf16.mxu0 %v17003_v57  ;;  %16265 = vmatprep.subr.bf16.mxu1 %v17003_v57 }
0x12df   :  { %14867 = vmatmul.mubr.msk.f32.vlgmr.msra.gmra.mrb[110].mxu0 %vm1136_vm2, %v9045_v1  ;;  %14886 = vmatmul.mubr.msk.f32.vlgmr.msra.gmra.mrb[110].mxu1 %vm1136_vm2, %v9045_v1 }
0x12e0   :  { %16261 = vmatpush3.bf16.msra.mxu0 %v18685_v39  ;;  %16267 = vmatpush3.bf16.msra.mxu1 %v18687_v26 }
0x12e1   :  { %16262 = vmatprep.subr.bf16.mxu0 %v17003_v57  ;;  %16268 = vmatprep.subr.bf16.mxu1 %v17003_v57 }
0x12e2   :  { %14896 = vmatprep.mubr.msk.f32.mxu0 %vm17004_vm1, %v17005_v3  ;;  %14907 = vmatprep.mubr.msk.f32.mxu1 %vm17004_vm1, %v17005_v3 }
0x12e4   :  { %16264 = vmatpush3.bf16.msra.mxu0 %v18707_v31  ;;  %16270 = vmatpush3.bf16.msra.mxu1 %v18709_v35 }
0x12e5   :  { %16271 = vmatprep.subr.bf16.mxu0 %v17003_v57  ;;  %16277 = vmatprep.subr.bf16.mxu1 %v17003_v57 }
0x12e7   :  { %14897 = vmatmul.mubr.msk.f32.vlgmr.msra.gmra.mrb[112].mxu0 %vm62_vm0, %v9040_v42  ;;  %14908 = vmatmul.mubr.msk.f32.vlgmr.msra.gmra.mrb[112].mxu1 %vm62_vm0, %v9040_v42 }
0x12e8   :  { %16273 = vmatpush3.bf16.msra.mxu0 %v18731_v43  ;;  %16279 = vmatpush3.bf16.msra.mxu1 %v18733_v44 }
0x12e9   :  { %16274 = vmatprep.subr.bf16.mxu0 %v17003_v57  ;;  %16280 = vmatprep.subr.bf16.mxu1 %v17003_v57 }
0x12ea   :  { %14918 = vmatprep.mubr.msk.f32.mxu0 %vm17004_vm1, %v17005_v3  ;;  %14929 = vmatprep.mubr.msk.f32.mxu1 %vm17004_vm1, %v17005_v3 }
0x12ec   :  { %16276 = vmatpush3.bf16.msra.mxu0 %v18755_v47  ;;  %16282 = vmatpush3.bf16.msra.mxu1 %v18757_v22 }
0x12ed   :  { %16283 = vmatprep.subr.bf16.mxu0 %v17003_v57  ;;  %16295 = vmatprep.subr.bf16.mxu1 %v17003_v57 }
0x12ef   :  { %14919 = vmatmul.mubr.msk.f32.vlgmr.msra.gmra.mrb[114].mxu0 %vm62_vm0, %v9040_v42  ;;  %14930 = vmatmul.mubr.msk.f32.vlgmr.msra.gmra.mrb[114].mxu1 %vm62_vm0, %v9040_v42 }
0x12f0   :  { %16285 = vmatpush3.bf16.msra.mxu0 %v18786_v48  ;;  %16297 = vmatpush3.bf16.msra.mxu1 %v18797_v20 }
0x12f1   :  { %16286 = vmatprep.subr.bf16.mxu0 %v17003_v57  ;;  %16298 = vmatprep.subr.bf16.mxu1 %v17003_v57 }
0x12f2   :  { %14948 = vmatprep.mubr.msk.f32.mxu0 %vm17004_vm1, %v17005_v3  ;;  %14967 = vmatprep.mubr.msk.f32.mxu1 %vm17004_vm1, %v17005_v3 }
0x12f4   :  { %16288 = vmatpush3.bf16.msra.mxu0 %v18806_v46  ;;  %16300 = vmatpush3.bf16.msra.mxu1 %v18810_v63 }
0x12f5   :  { %16289 = vmatprep.subr.bf16.mxu0 %v17003_v57  ;;  %16301 = vmatprep.subr.bf16.mxu1 %v17003_v57 }
0x12f8   :  { %16291 = vmatpush3.bf16.msra.mxu0 %v18826_v36  ;;  %16303 = vmatpush3.bf16.msra.mxu1 %v18830_v38 }
0x12f9   :  { %16292 = vmatprep.subr.bf16.mxu0 %v17003_v57  ;;  %16304 = vmatprep.subr.bf16.mxu1 %v17003_v57 }
0x12fc   :  { %16294 = vmatpush3.bf16.msra.mxu0 %v18846_v5  ;;  %16306 = vmatpush3.bf16.msra.mxu1 %v18850_v9 }
0x12fd   :  { %16307 = vmatprep.subr.bf16.mxu0 %v17003_v57  ;;  %16319 = vmatprep.subr.bf16.mxu1 %v17003_v57 }
0x13a2   :  { %v9130_v39 = vpop.f32.mrb[108].mxu0  ;;  %v9215_v26 = vpop.f32.mrb[108].mxu1 }
0x13a3   :  { %v9131_v31 = vadd.f32 %v19018_v33, %v9130_v39  ;;  %v9216_v35 = vadd.f32 %v19023_v34, %v9215_v26  ;;  %v14830_v43 = vpop.f32.mrb[109].mxu0  ;;  %v14849_v44 = vpop.f32.mrb[109].mxu1 }
0x13a5   :  { %v12113_v47 = vmul.f32 -1.442695, %v9131_v31  ;;  %v12114_v22 = vmul.f32 -1.442695, %v9216_v35 }
0x13a7   :  { %16887 = vpow2.f32 %v12113_v47 }
0x13a8   :  { %16889 = vpow2.f32 %v12114_v22  ;;  %v9645_v22 = vld [vmem:[#allocation3 + $0x3a] sm:$0x3] }
0x13b1   :  { %v16888_v48 = vpop.eup %16887 }
0x13b2   :  { %v16890_v20 = vpop.eup %16889  ;;  %v9392_v46 = vadd.f32 1.0, %v16888_v48  ;;  %v9300_v63 = vpop.f32.mrb[110].mxu0 }
0x13b3   :  { %v9385_v36 = vpop.f32.mrb[110].mxu1  ;;  %v9398_v38 = vadd.f32 1.0, %v16890_v20  ;;  %v9301_v5 = vadd.f32 %v19030_v54, %v9300_v63  ;;  %v14868_v10 = vpop.f32.mrb[111].mxu0 }
0x13b4   :  { %v9386_v9 = vadd.f32 %v19035_v53, %v9385_v36  ;;  %v14887_v56 = vpop.f32.mrb[111].mxu1  ;;  %16891 = vrcp.f32 %v9392_v46 }
0x13b5   :  { %16893 = vrcp.f32 %v9398_v38  ;;  %v10122_v56 = vld [vmem:[%s19596_s8 + $0x18] sm:$0xff] }
0x13b6   :  { %v12115_v58 = vmul.f32 -1.442695, %v9386_v9  ;;  %16895 = vtanh.f32 %v9301_v5 }
0x13b8   :  { %16897 = vpow2.f32 %v12115_v58 }
0x13ba   :  { %v9488_v17 = vpop.f32.mrb[112].mxu0  ;;  %v9564_v62 = vpop.f32.mrb[112].mxu1 }
0x13bb   :  { %v9492_v29 = vadd.f32 %v9488_v17, %v9414_v13  ;;  %v9568_v7 = vadd.f32 %v9564_v62, %v9493_v27  ;;  %v14898_v19 = vpop.f32.mrb[113].mxu0  ;;  %v14909_v37 = vpop.f32.mrb[113].mxu1  ;;  %v12179_v17 = vld [vmem:[%s19596_s8 + $0x40] sm:$0xff]  ;;  %v12180_v27 = vld [vmem:[%s19596_s8 + $0x48] sm:$0xff] }
0x13bc   :  { %v12184_v62 = vld [vmem:[%s19596_s8 + $0x60] sm:$0xff]  ;;  %v12181_v37 = vld [vmem:[%s19596_s8 + $0x50] sm:$0xff] }
0x13bd   :  { %v12132_v23 = vmul.f32 -1.442695, %v9492_v29  ;;  %v12133_v24 = vmul.f32 -1.442695, %v9568_v7  ;;  %v12185_v29 = vld [vmem:[%s19596_s8 + $0x68] sm:$0xff]  ;;  %v19218_v7 = vpack.c.bf16 %v12180_v27, %v12179_v17 }
0x13be   :  { %v16892_v25 = vpop.eup %16891  ;;  %v19220_v19 = vpack.c.bf16 %v12185_v29, %v12184_v62  ;;  %v10118_v27 = vld [vmem:[#allocation3 + $0xc] sm:$0x3]  ;;  %v10197_v29 = vld [vmem:[#allocation3 + $0x1c] sm:$0x3] }
0x13bf   :  { %v16894_v16 = vpop.eup %16893  ;;  %16899 = vpow2.f32 %v12132_v23  ;;  %v12182_v23 = vld [vmem:[%s19596_s8 + $0x58] sm:$0xff] }
0x13c0   :  { %v16896_v11 = vpop.eup %16895  ;;  %v9408_v18 = vmul.f32 %v16894_v16, %v19040_v61  ;;  %16901 = vpow2.f32 %v12133_v24  ;;  %v12186_v24 = vld [vmem:[%s19596_s8 + $0x70] sm:$0xff]  ;;  %v19242_v16 = vpack.c.bf16 %v12182_v23, %v12181_v37 }
0x13c1   :  { %v9409_v12 = vmul.f32 %v16896_v11, %v16892_v25  ;;  %v12187_v25 = vld [vmem:[%s19596_s8 + $0x78] sm:$0xff] }
0x13c2   :  { %v16898_v55 = vpop.eup %16897  ;;  %v9640_v49 = vpop.f32.mrb[114].mxu0  ;;  %v19244_v11 = vpack.c.bf16 %v12187_v25, %v12186_v24 }
0x13c3   :  { %v9405_v41 = vadd.f32 1.0, %v16898_v55  ;;  %v9716_v50 = vpop.f32.mrb[114].mxu1  ;;  %v19127_v28 = vadd.f32 %v9409_v12, %v9408_v18  ;;  %v14920_v52 = vpop.f32.mrb[115].mxu0  ;;  %v9644_v32 = vadd.f32 %v9640_v49, %v9569_v30  ;;  %v10454_v18 = vld [vmem:[%s19597_s10] sm:$0xff]  ;;  %v10455_v55 = vld [vmem:[%s19597_s10 + $0x8] sm:$0xff]  ;;  %v12196_v30 = vld [vmem:[%s19597_s10 + $0x50] sm:$0xff] }
0x13c4   :  { %v14931_v45 = vpop.f32.mrb[115].mxu1  ;;  %v9720_v48 = vadd.f32 %v9716_v50, %v9645_v22  ;;  %v12194_v12 = vld [vmem:[%s19597_s10 + $0x40] sm:$0xff]  ;;  %v12195_v49 = vld [vmem:[%s19597_s10 + $0x48] sm:$0xff]  ;;  %v10456_v50 = vld [vmem:[%s19597_s10 + $0x10] sm:$0xff] }
0x13c5   :  { %16903 = vrcp.f32 %v9405_v41  ;;  %v19273_v41 = vpack.c.bf16 %v10455_v55, %v10454_v18  ;;  %v10457_v52 = vld [vmem:[%s19597_s10 + $0x18] sm:$0xff]  ;;  %v19284_v45 = vpack.c.bf16 %v12195_v49, %v12194_v12 }
0x13c6   :  { %16905 = vtanh.f32 %v19127_v28  ;;  %v12134_v20 = vmul.f32 -1.442695, %v9720_v48 }
0x13c7   :  { %16907 = vtanh.f32 %v9644_v32  ;;  %v12197_v32 = vld [vmem:[%s19597_s10 + $0x58] sm:$0xff] }
0x13c9   :  { %v16900_v15 = vpop.eup %16899 }
0x13ca   :  { %v16902_v59 = vpop.eup %16901  ;;  %v9724_v42 = vadd.f32 1.0, %v16900_v15  ;;  %v19293_v15 = vpack.c.bf16 %v10457_v52, %v10456_v50 }
0x13cb   :  { %v9730_v51 = vadd.f32 1.0, %v16902_v59  ;;  %v19297_v59 = vpack.c.bf16 %v12197_v32, %v12196_v30 }
0x13cc   :  { %16909 = vrcp.f32 %v9724_v42  ;;  %v10458_v42 = vld [vmem:[%s19597_s10 + $0x20] sm:$0xff] }
0x13cd   :  { %16911 = vrcp.f32 %v9730_v51  ;;  %v10459_v51 = vld [vmem:[%s19597_s10 + $0x28] sm:$0xff] }
0x13ce   :  { %16913 = vpow2.f32 %v12134_v20 }
0x13cf   :  { %v16904_v61 = vpop.eup %16903 }
0x13d0   :  { %v16906_v1 = vpop.eup %16905 }
0x13d1   :  { %v9412_v39 = vmul.f32 %v16906_v1, %v16904_v61  ;;  %v16908_v26 = vpop.eup %16907  ;;  %v12198_v61 = vld [vmem:[%s19597_s10 + $0x60] sm:$0xff]  ;;  %v12199_v1 = vld [vmem:[%s19597_s10 + $0x68] sm:$0xff] }
0x13d3   :  { %9746 = vrot.lane.b32.xlu0 %v9412_v39, %s17006_s25  ;;  %9413 = vst.msk [vmem:[#allocation4 + $0x8] sm:$0x3] %vm6596_vm3, %v9412_v39  ;;  %v19313_v39 = vpack.c.bf16 %v10459_v51, %v10458_v42 }
0x13d6   :  { %v16910_v31 = vpop.eup %16909 }
0x13d7   :  { %v16912_v35 = vpop.eup %16911  ;;  %v9741_v43 = vmul.f32 %v16910_v31, %v16908_v26  ;;  %v19317_v26 = vpack.c.bf16 %v12199_v1, %v12198_v61  ;;  %v10460_v31 = vld [vmem:[%s19597_s10 + $0x30] sm:$0xff] }
0x13d8   :  { %v9740_v44 = vmul.f32 %v16912_v35, %v19046_v2  ;;  %v16914_v46 = vpop.eup %16913  ;;  %v10121_v2 = vld [vmem:[%s19596_s8 + $0x10] sm:$0xff]  ;;  %v10461_v35 = vld [vmem:[%s19597_s10 + $0x38] sm:$0xff] }
0x13d9   :  { %v9737_v63 = vadd.f32 1.0, %v16914_v46  ;;  %v19194_v58 = vpack.c.bf16 %v10122_v56, %v10121_v2  ;;  %v19333_v22 = vpack.c.bf16 %v10461_v35, %v10460_v31  ;;  %v10273_v35 = vld [vmem:[#allocation3 + $0x2c] sm:$0x3] }
0x13da   :  { %v19133_v47 = vadd.f32 %v9741_v43, %v9740_v44  ;;  %v12200_v43 = vld [vmem:[%s19597_s10 + $0x70] sm:$0xff]  ;;  %v12201_v44 = vld [vmem:[%s19597_s10 + $0x78] sm:$0xff] }
0x13db   :  { %v19337_v48 = vpack.c.bf16 %v12201_v44, %v12200_v43 }
0x13dc   :  { %16915 = vtanh.f32 %v19133_v47 }
0x13dd   :  { %16917 = vrcp.f32 %v9737_v63 }
0x13e6   :  { %v16916_v36 = vpop.eup %16915 }
0x13e7   :  { %v16918_v38 = vpop.eup %16917 }
0x13e8   :  { %v19136_v5 = vmul.f32 %v16918_v38, %v16916_v36 }
0x1445   :  { %v9747_v9 = vpop.permute.xlu0 %9746 }
0x1446   :  { %v9749_v10 = vsel %vm62_vm0, %v19136_v5, %v9747_v9 }
0x1447   :  { %14949 = vmatmul.mubr.msk.f32.vlgmr.msra.gmra.mrb[116].mxu0 %vm1136_vm2, %v9749_v10  ;;  %14968 = vmatmul.mubr.msk.f32.vlgmr.msra.gmra.mrb[116].mxu1 %vm1136_vm2, %v9749_v10 }
0x1448   :  { %16309 = vmatpush3.bf16.msra.mxu0 %v18885_v4  ;;  %16321 = vmatpush3.bf16.msra.mxu1 %v18887_v40  ;;  %v10119_v4 = vld [vmem:[%s19596_s8] sm:$0xff]  ;;  %v10120_v40 = vld [vmem:[%s19596_s8 + $0x8] sm:$0xff] }
0x1449   :  { %16310 = vmatprep.subr.bf16.mxu0 %v17003_v57  ;;  %16322 = vmatprep.subr.bf16.mxu1 %v17003_v57 }
0x144a   :  { %14986 = vmatprep.mubr.msk.f32.mxu0 %vm17004_vm1, %v17005_v3  ;;  %15005 = vmatprep.mubr.msk.f32.mxu1 %vm17004_vm1, %v17005_v3 }
0x144c   :  { %16312 = vmatpush3.bf16.msra.mxu0 %v18907_v8  ;;  %16324 = vmatpush3.bf16.msra.mxu1 %v18909_v14  ;;  %v12174_v8 = vld [vmem:[%s19596_s8 + $0x20] sm:$0xff]  ;;  %v12175_v14 = vld [vmem:[%s19596_s8 + $0x28] sm:$0xff] }
0x144d   :  { %16313 = vmatprep.subr.bf16.mxu0 %v17003_v57  ;;  %16325 = vmatprep.subr.bf16.mxu1 %v17003_v57 }
0x1450   :  { %16315 = vmatpush3.bf16.msra.mxu0 %v18931_v0  ;;  %16327 = vmatpush3.bf16.msra.mxu1 %v18933_v6  ;;  %v19172_v0 = vpack.c.bf16 %v10120_v40, %v10119_v4  ;;  %v19174_v6 = vpack.c.bf16 %v12175_v14, %v12174_v8 }
0x1451   :  { %16316 = vmatprep.subr.bf16.mxu0 %v17003_v57  ;;  %16328 = vmatprep.subr.bf16.mxu1 %v17003_v57 }
0x1454   :  { %16318 = vmatpush3.bf16.msra.mxu0 %v18951_v60  ;;  %16330 = vmatpush3.bf16.msra.mxu1 %v18953_v21  ;;  %v12176_v60 = vld [vmem:[%s19596_s8 + $0x30] sm:$0xff]  ;;  %v12177_v21 = vld [vmem:[%s19596_s8 + $0x38] sm:$0xff] }
0x1455   :  { %16331 = vmatprep.subr.bf16.mxu0 %v17003_v57  ;;  %16337 = vmatprep.subr.bf16.mxu1 %v17003_v57  ;;  %v19196_v13 = vpack.c.bf16 %v12177_v21, %v12176_v60 }
0x1457   :  { %14987 = vmatmul.mubr.msk.f32.vlgmr.msra.gmra.mrb[118].mxu0 %vm1136_vm2, %v9749_v10  ;;  %15006 = vmatmul.mubr.msk.f32.vlgmr.msra.gmra.mrb[118].mxu1 %vm1136_vm2, %v9749_v10 }
0x1458   :  { %16333 = vmatpush3.bf16.msra.mxu0 %v19172_v0  ;;  %16339 = vmatpush3.bf16.msra.mxu1 %v19174_v6 }
0x1459   :  { %16334 = vmatprep.subr.bf16.mxu0 %v17003_v57  ;;  %16340 = vmatprep.subr.bf16.mxu1 %v17003_v57 }
0x145a   :  { %15016 = vmatprep.mubr.msk.f32.mxu0 %vm17004_vm1, %v17005_v3  ;;  %15027 = vmatprep.mubr.msk.f32.mxu1 %vm17004_vm1, %v17005_v3 }
0x145c   :  { %16336 = vmatpush3.bf16.msra.mxu0 %v19194_v58  ;;  %16342 = vmatpush3.bf16.msra.mxu1 %v19196_v13 }
0x145d   :  { %16343 = vmatprep.subr.bf16.mxu0 %v17003_v57  ;;  %16349 = vmatprep.subr.bf16.mxu1 %v17003_v57 }
0x145f   :  { %15017 = vmatmul.mubr.msk.f32.vlgmr.msra.gmra.mrb[120].mxu0 %vm62_vm0, %v19136_v5  ;;  %15028 = vmatmul.mubr.msk.f32.vlgmr.msra.gmra.mrb[120].mxu1 %vm62_vm0, %v19136_v5 }
0x1460   :  { %16345 = vmatpush3.bf16.msra.mxu0 %v19218_v7  ;;  %16351 = vmatpush3.bf16.msra.mxu1 %v19220_v19 }
0x1461   :  { %16346 = vmatprep.subr.bf16.mxu0 %v17003_v57  ;;  %16352 = vmatprep.subr.bf16.mxu1 %v17003_v57 }
0x1462   :  { %15038 = vmatprep.mubr.msk.f32.mxu0 %vm17004_vm1, %v17005_v3  ;;  %15049 = vmatprep.mubr.msk.f32.mxu1 %vm17004_vm1, %v17005_v3 }
0x1464   :  { %16348 = vmatpush3.bf16.msra.mxu0 %v19242_v16  ;;  %16354 = vmatpush3.bf16.msra.mxu1 %v19244_v11 }
0x1465   :  { %16355 = vmatprep.subr.bf16.mxu0 %v17003_v57  ;;  %16367 = vmatprep.subr.bf16.mxu1 %v17003_v57 }
0x1467   :  { %15039 = vmatmul.mubr.msk.f32.vlgmr.msra.gmra.mrb[122].mxu0 %vm62_vm0, %v19136_v5  ;;  %15050 = vmatmul.mubr.msk.f32.vlgmr.msra.gmra.mrb[122].mxu1 %vm62_vm0, %v19136_v5 }
0x1468   :  { %15068 = vmatprep.mubr.msk.f32.mxu0 %vm17004_vm1, %v17005_v3  ;;  %15087 = vmatprep.mubr.msk.f32.mxu1 %vm17004_vm1, %v17005_v3 }
0x1469   :  { %16357 = vmatpush3.bf16.msra.mxu0 %v19273_v41  ;;  %16369 = vmatpush3.bf16.msra.mxu1 %v19284_v45 }
0x146a   :  { %16358 = vmatprep.subr.bf16.mxu0 %v17003_v57  ;;  %16370 = vmatprep.subr.bf16.mxu1 %v17003_v57 }
0x146d   :  { %16360 = vmatpush3.bf16.msra.mxu0 %v19293_v15  ;;  %16372 = vmatpush3.bf16.msra.mxu1 %v19297_v59 }
0x146e   :  { %16361 = vmatprep.subr.bf16.mxu0 %v17003_v57  ;;  %16373 = vmatprep.subr.bf16.mxu1 %v17003_v57 }
0x1471   :  { %16363 = vmatpush3.bf16.msra.mxu0 %v19313_v39  ;;  %16375 = vmatpush3.bf16.msra.mxu1 %v19317_v26 }
0x1472   :  { %16364 = vmatprep.subr.bf16.mxu0 %v17003_v57  ;;  %16376 = vmatprep.subr.bf16.mxu1 %v17003_v57 }
0x1475   :  { %16366 = vmatpush3.bf16.msra.mxu0 %v19333_v22  ;;  %16378 = vmatpush3.bf16.msra.mxu1 %v19337_v48 }
0x1476   :  { %16379 = vmatprep.subr.bf16.mxu0 %v17003_v57  ;;  %16391 = vmatprep.subr.bf16.mxu1 %v17003_v57 }
0x151a   :  { %v9834_v20 = vpop.f32.mrb[116].mxu0  ;;  %v9919_v46 = vpop.f32.mrb[116].mxu1 }
0x151b   :  { %v9835_v63 = vadd.f32 %v19018_v33, %v9834_v20  ;;  %v9920_v36 = vadd.f32 %v19023_v34, %v9919_v46  ;;  %v14950_v38 = vpop.f32.mrb[117].mxu0  ;;  %v14969_v5 = vpop.f32.mrb[117].mxu1 }
0x151d   :  { %v12170_v9 = vmul.f32 -1.442695, %v9835_v63  ;;  %v12171_v10 = vmul.f32 -1.442695, %v9920_v36 }
0x151f   :  { %16919 = vpow2.f32 %v12170_v9 }
0x1520   :  { %16921 = vpow2.f32 %v12171_v10 }
0x1529   :  { %v16920_v4 = vpop.eup %16919 }
0x152a   :  { %v16922_v40 = vpop.eup %16921  ;;  %v10096_v8 = vadd.f32 1.0, %v16920_v4  ;;  %v10004_v14 = vpop.f32.mrb[118].mxu0 }
0x152b   :  { %v10089_v2 = vpop.f32.mrb[118].mxu1  ;;  %v10102_v56 = vadd.f32 1.0, %v16922_v40  ;;  %v10005_v60 = vadd.f32 %v19030_v54, %v10004_v14  ;;  %v14988_v17 = vpop.f32.mrb[119].mxu0  ;;  %v10349_v14 = vld [vmem:[#allocation3 + $0x3c] sm:$0x3] }
0x152c   :  { %v10090_v21 = vadd.f32 %v19035_v53, %v10089_v2  ;;  %v15007_v33 = vpop.f32.mrb[119].mxu1  ;;  %16923 = vrcp.f32 %v10096_v8  ;;  %v12205_v17 = vld [vmem:[%s19597_s10 + $0x80] sm:$0xff] }
0x152d   :  { %16925 = vrcp.f32 %v10102_v56 }
0x152e   :  { %v12172_v34 = vmul.f32 -1.442695, %v10090_v21  ;;  %16927 = vtanh.f32 %v10005_v60 }
0x1530   :  { %16929 = vpow2.f32 %v12172_v34  ;;  %v12216_v34 = vld [vmem:[%s19597_s10 + $0xc0] sm:$0xff] }
0x1532   :  { %v10192_v62 = vpop.f32.mrb[120].mxu0  ;;  %v10268_v37 = vpop.f32.mrb[120].mxu1 }
0x1533   :  { %v10196_v23 = vadd.f32 %v10192_v62, %v10118_v27  ;;  %v10272_v24 = vadd.f32 %v10268_v37, %v10197_v29  ;;  %v15018_v25 = vpop.f32.mrb[121].mxu0  ;;  %v15029_v18 = vpop.f32.mrb[121].mxu1  ;;  %v12217_v27 = vld [vmem:[%s19597_s10 + $0xc8] sm:$0xff] }
0x1534   :  { %v12208_v18 = vld [vmem:[%s19597_s10 + $0x98] sm:$0xff] }
0x1535   :  { %v12189_v55 = vmul.f32 -1.442695, %v10196_v23  ;;  %v12190_v12 = vmul.f32 -1.442695, %v10272_v24  ;;  %v19374_v23 = vpack.c.bf16 %v12217_v27, %v12216_v34  ;;  %v12207_v24 = vld [vmem:[%s19597_s10 + $0x90] sm:$0xff] }
0x1536   :  { %v16924_v54 = vpop.eup %16923 }
0x1537   :  { %v16926_v49 = vpop.eup %16925  ;;  %16931 = vpow2.f32 %v12189_v55  ;;  %v12218_v55 = vld [vmem:[%s19597_s10 + $0xd0] sm:$0xff] }
0x1538   :  { %v16928_v53 = vpop.eup %16927  ;;  %v10112_v50 = vmul.f32 %v16926_v49, %v19127_v28  ;;  %16933 = vpow2.f32 %v12190_v12  ;;  %v12219_v12 = vld [vmem:[%s19597_s10 + $0xd8] sm:$0xff]  ;;  %v19394_v49 = vpack.c.bf16 %v12208_v18, %v12207_v24 }
0x1539   :  { %v10113_v30 = vmul.f32 %v16928_v53, %v16924_v54  ;;  %v19396_v53 = vpack.c.bf16 %v12219_v12, %v12218_v55  ;;  %v11053_v55 = vld [vmem:[#allocation3 + $0x3e] sm:$0x3] }
0x153a   :  { %v16930_v52 = vpop.eup %16929  ;;  %v10344_v42 = vpop.f32.mrb[122].mxu0 }
0x153b   :  { %v10109_v32 = vadd.f32 1.0, %v16930_v52  ;;  %v10420_v51 = vpop.f32.mrb[122].mxu1  ;;  %v19349_v61 = vadd.f32 %v10113_v30, %v10112_v50  ;;  %v15040_v1 = vpop.f32.mrb[123].mxu0  ;;  %v10348_v43 = vadd.f32 %v10344_v42, %v10273_v35  ;;  %v12209_v50 = vld [vmem:[%s19597_s10 + $0xa0] sm:$0xff]  ;;  %v12210_v52 = vld [vmem:[%s19597_s10 + $0xa8] sm:$0xff]  ;;  %v12222_v35 = vld [vmem:[%s19597_s10 + $0xf0] sm:$0xff] }
0x153c   :  { %v15051_v31 = vpop.f32.mrb[123].mxu1  ;;  %v10424_v2 = vadd.f32 %v10420_v51, %v10349_v14  ;;  %v12220_v30 = vld [vmem:[%s19597_s10 + $0xe0] sm:$0xff]  ;;  %v19418_v42 = vpack.c.bf16 %v12210_v52, %v12209_v50  ;;  %v12211_v1 = vld [vmem:[%s19597_s10 + $0xb0] sm:$0xff] }
0x153d   :  { %16935 = vrcp.f32 %v10109_v32  ;;  %v12221_v32 = vld [vmem:[%s19597_s10 + $0xe8] sm:$0xff]  ;;  %v12212_v31 = vld [vmem:[%s19597_s10 + $0xb8] sm:$0xff] }
0x153e   :  { %16937 = vtanh.f32 %v19349_v61  ;;  %v12191_v56 = vmul.f32 -1.442695, %v10424_v2  ;;  %v19420_v51 = vpack.c.bf16 %v12221_v32, %v12220_v30  ;;  %v10977_v32 = vld [vmem:[#allocation3 + $0x2e] sm:$0x3] }
0x153f   :  { %16939 = vtanh.f32 %v10348_v43  ;;  %v12223_v43 = vld [vmem:[%s19597_s10 + $0xf8] sm:$0xff] }
0x1541   :  { %v16932_v44 = vpop.eup %16931 }
0x1542   :  { %v16934_v20 = vpop.eup %16933  ;;  %v10428_v46 = vadd.f32 1.0, %v16932_v44  ;;  %v19438_v44 = vpack.c.bf16 %v12212_v31, %v12211_v1 }
0x1543   :  { %v10434_v63 = vadd.f32 1.0, %v16934_v20  ;;  %v19440_v20 = vpack.c.bf16 %v12223_v43, %v12222_v35 }
0x1544   :  { %16941 = vrcp.f32 %v10428_v46 }
0x1545   :  { %16943 = vrcp.f32 %v10434_v63 }
0x1546   :  { %16945 = vpow2.f32 %v12191_v56 }
0x1547   :  { %v16936_v28 = vpop.eup %16935 }
0x1548   :  { %v16938_v36 = vpop.eup %16937 }
0x1549   :  { %v10116_v38 = vmul.f32 %v16938_v36, %v16936_v28  ;;  %v16940_v5 = vpop.eup %16939 }
0x154b   :  { %10450 = vrot.lane.b32.xlu1 %v10116_v38, %s17006_s25  ;;  %10117 = vst.msk [vmem:[#allocation4 + $0xa] sm:$0x3] %vm6596_vm3, %v10116_v38 }
0x154e   :  { %v16942_v9 = vpop.eup %16941 }
0x154f   :  { %v16944_v10 = vpop.eup %16943  ;;  %v10445_v4 = vmul.f32 %v16942_v9, %v16940_v5 }
0x1550   :  { %v10444_v40 = vmul.f32 %v16944_v10, %v19133_v47  ;;  %v16946_v60 = vpop.eup %16945  ;;  %v12206_v47 = vld [vmem:[%s19597_s10 + $0x88] sm:$0xff] }
0x1551   :  { %v10441_v21 = vadd.f32 1.0, %v16946_v60  ;;  %v19372_v37 = vpack.c.bf16 %v12206_v47, %v12205_v17  ;;  %v10822_v10 = vld [vmem:[#allocation3 + $0xe] sm:$0x3] }
0x1552   :  { %v19355_v8 = vadd.f32 %v10445_v4, %v10444_v40  ;;  %v10901_v40 = vld [vmem:[#allocation3 + $0x1e] sm:$0x3] }
0x1554   :  { %16947 = vtanh.f32 %v19355_v8 }
0x1555   :  { %16949 = vrcp.f32 %v10441_v21 }
0x155e   :  { %v16948_v33 = vpop.eup %16947 }
0x155f   :  { %v16950_v62 = vpop.eup %16949 }
0x1560   :  { %v19370_v29 = vmul.f32 %v16950_v62, %v16948_v33 }
0x15bd   :  { %v10451_v25 = vpop.permute.xlu1 %10450 }
0x15be   :  { %v10453_v54 = vsel %vm62_vm0, %v19370_v29, %v10451_v25 }
0x15bf   :  { %15069 = vmatmul.mubr.msk.f32.vlgmr.msra.gmra.mrb[124].mxu0 %vm1136_vm2, %v10453_v54  ;;  %15088 = vmatmul.mubr.msk.f32.vlgmr.msra.gmra.mrb[124].mxu1 %vm1136_vm2, %v10453_v54 }
0x15c0   :  { %16381 = vmatpush3.bf16.msra.mxu0 %v19372_v37  ;;  %16393 = vmatpush3.bf16.msra.mxu1 %v19374_v23 }
0x15c1   :  { %16382 = vmatprep.subr.bf16.mxu0 %v17003_v57  ;;  %16394 = vmatprep.subr.bf16.mxu1 %v17003_v57 }
0x15c2   :  { %15106 = vmatprep.mubr.msk.f32.mxu0 %vm17004_vm1, %v17005_v3  ;;  %15125 = vmatprep.mubr.msk.f32.mxu1 %vm17004_vm1, %v17005_v3 }
0x15c4   :  { %16384 = vmatpush3.bf16.msra.mxu0 %v19394_v49  ;;  %16396 = vmatpush3.bf16.msra.mxu1 %v19396_v53 }
0x15c5   :  { %16385 = vmatprep.subr.bf16.mxu0 %v17003_v57  ;;  %16397 = vmatprep.subr.bf16.mxu1 %v17003_v57 }
0x15c8   :  { %16387 = vmatpush3.bf16.msra.mxu0 %v19418_v42  ;;  %16399 = vmatpush3.bf16.msra.mxu1 %v19420_v51 }
0x15c9   :  { %16388 = vmatprep.subr.bf16.mxu0 %v17003_v57  ;;  %16400 = vmatprep.subr.bf16.mxu1 %v17003_v57 }
0x15cc   :  { %16390 = vmatpush3.bf16.msra.mxu0 %v19438_v44  ;;  %16402 = vmatpush3.bf16.msra.mxu1 %v19440_v20 }
0x15cd   :  { %16403 = vmatprep.subr.bf16.mxu0 %v17003_v57  ;;  %16409 = vmatprep.subr.bf16.mxu1 %v17003_v57 }
0x15cf   :  { %15107 = vmatmul.mubr.msk.f32.vlgmr.msra.gmra.mrb[126].mxu0 %vm1136_vm2, %v10453_v54  ;;  %15126 = vmatmul.mubr.msk.f32.vlgmr.msra.gmra.mrb[126].mxu1 %vm1136_vm2, %v10453_v54 }
0x15d0   :  { %16405 = vmatpush3.bf16.msra.mxu0 %v19172_v0  ;;  %16411 = vmatpush3.bf16.msra.mxu1 %v19174_v6  ;;  %v19505_v0 = vld [vmem:[%s19598_s11] ss:$0 sm:$0xff]  ;;  %v19510_v6 = vld [vmem:[%s19598_s11 + $0x1] ss:$0 sm:$0xff] }
0x15d1   :  { %16406 = vmatprep.subr.bf16.mxu0 %v17003_v57  ;;  %16412 = vmatprep.subr.bf16.mxu1 %v17003_v57 }
0x15d2   :  { %15136 = vmatprep.mubr.msk.f32.mxu0 %vm17004_vm1, %v17005_v3  ;;  %15147 = vmatprep.mubr.msk.f32.mxu1 %vm17004_vm1, %v17005_v3 }
0x15d4   :  { %16408 = vmatpush3.bf16.msra.mxu0 %v19194_v58  ;;  %16414 = vmatpush3.bf16.msra.mxu1 %v19196_v13 }
0x15d5   :  { %16415 = vmatprep.subr.bf16.mxu0 %v17003_v57  ;;  %16421 = vmatprep.subr.bf16.mxu1 %v17003_v57 }
0x15d7   :  { %15137 = vmatmul.mubr.msk.f32.vlgmr.msra.gmra.mrb[128].mxu0 %vm62_vm0, %v19370_v29  ;;  %15148 = vmatmul.mubr.msk.f32.vlgmr.msra.gmra.mrb[128].mxu1 %vm62_vm0, %v19370_v29 }
0x15d8   :  { %16417 = vmatpush3.bf16.msra.mxu0 %v19218_v7  ;;  %16423 = vmatpush3.bf16.msra.mxu1 %v19220_v19 }
0x15d9   :  { %16418 = vmatprep.subr.bf16.mxu0 %v17003_v57  ;;  %16424 = vmatprep.subr.bf16.mxu1 %v17003_v57 }
0x15da   :  { %15158 = vmatprep.mubr.msk.f32.mxu0 %vm17004_vm1, %v17005_v3  ;;  %15169 = vmatprep.mubr.msk.f32.mxu1 %vm17004_vm1, %v17005_v3 }
0x15dc   :  { %16420 = vmatpush3.bf16.msra.mxu0 %v19242_v16  ;;  %16426 = vmatpush3.bf16.msra.mxu1 %v19244_v11 }
0x15dd   :  { %16427 = vmatprep.subr.bf16.mxu0 %v17003_v57  ;;  %16439 = vmatprep.subr.bf16.mxu1 %v17003_v57 }
0x15df   :  { %15159 = vmatmul.mubr.msk.f32.vlgmr.msra.gmra.mrb[130].mxu0 %vm62_vm0, %v19370_v29  ;;  %15170 = vmatmul.mubr.msk.f32.vlgmr.msra.gmra.mrb[130].mxu1 %vm62_vm0, %v19370_v29 }
0x15e0   :  { %16429 = vmatpush3.bf16.msra.mxu0 %v19273_v41  ;;  %16441 = vmatpush3.bf16.msra.mxu1 %v19284_v45 }
0x15e1   :  { %16430 = vmatprep.subr.bf16.mxu0 %v17003_v57  ;;  %16442 = vmatprep.subr.bf16.mxu1 %v17003_v57 }
0x15e2   :  { %15188 = vmatprep.mubr.msk.f32.mxu0 %vm17004_vm1, %v17005_v3  ;;  %15207 = vmatprep.mubr.msk.f32.mxu1 %vm17004_vm1, %v17005_v3 }
0x15e4   :  { %16432 = vmatpush3.bf16.msra.mxu0 %v19293_v15  ;;  %16444 = vmatpush3.bf16.msra.mxu1 %v19297_v59  ;;  %v19517_v15 = vld [vmem:[%s19598_s11 + $0x2] ss:$0 sm:$0xff]  ;;  %v19522_v59 = vld [vmem:[%s19598_s11 + $0x3] ss:$0 sm:$0xff] }
0x15e5   :  { %16433 = vmatprep.subr.bf16.mxu0 %v17003_v57  ;;  %16445 = vmatprep.subr.bf16.mxu1 %v17003_v57 }
0x15e8   :  { %16435 = vmatpush3.bf16.msra.mxu0 %v19313_v39  ;;  %16447 = vmatpush3.bf16.msra.mxu1 %v19317_v26 }
0x15e9   :  { %16436 = vmatprep.subr.bf16.mxu0 %v17003_v57  ;;  %16448 = vmatprep.subr.bf16.mxu1 %v17003_v57 }
0x15ec   :  { %16438 = vmatpush3.bf16.msra.mxu0 %v19333_v22  ;;  %16450 = vmatpush3.bf16.msra.mxu1 %v19337_v48 }
0x15ed   :  { %16451 = vmatprep.subr.bf16.mxu0 %v17003_v57  ;;  %16463 = vmatprep.subr.bf16.mxu1 %v17003_v57 }
0x1692   :  { %v10538_v58 = vpop.f32.mrb[124].mxu0  ;;  %v10623_v13 = vpop.f32.mrb[124].mxu1 }
0x1693   :  { %v10539_v7 = vadd.f32 %v19505_v0, %v10538_v58  ;;  %v10624_v19 = vadd.f32 %v19510_v6, %v10623_v13  ;;  %v15070_v16 = vpop.f32.mrb[125].mxu0  ;;  %v15089_v11 = vpop.f32.mrb[125].mxu1 }
0x1695   :  { %v12227_v41 = vmul.f32 -1.442695, %v10539_v7  ;;  %v12228_v45 = vmul.f32 -1.442695, %v10624_v19 }
0x1697   :  { %16951 = vpow2.f32 %v12227_v41 }
0x1698   :  { %16953 = vpow2.f32 %v12228_v45 }
0x16a1   :  { %v16952_v39 = vpop.eup %16951 }
0x16a2   :  { %v16954_v26 = vpop.eup %16953  ;;  %v10800_v22 = vadd.f32 1.0, %v16952_v39  ;;  %v10708_v48 = vpop.f32.mrb[126].mxu0 }
0x16a3   :  { %v10793_v46 = vpop.f32.mrb[126].mxu1  ;;  %v10806_v63 = vadd.f32 1.0, %v16954_v26  ;;  %v10709_v28 = vadd.f32 %v19517_v15, %v10708_v48  ;;  %v15108_v38 = vpop.f32.mrb[127].mxu0 }
0x16a4   :  { %v10794_v36 = vadd.f32 %v19522_v59, %v10793_v46  ;;  %v15127_v5 = vpop.f32.mrb[127].mxu1  ;;  %16955 = vrcp.f32 %v10800_v22 }
0x16a5   :  { %16957 = vrcp.f32 %v10806_v63 }
0x16a6   :  { %v12229_v9 = vmul.f32 -1.442695, %v10794_v36  ;;  %16959 = vtanh.f32 %v10709_v28 }
0x16a8   :  { %16961 = vpow2.f32 %v12229_v9 }
0x16aa   :  { %v10896_v4 = vpop.f32.mrb[128].mxu0  ;;  %v10972_v14 = vpop.f32.mrb[128].mxu1 }
0x16ab   :  { %v10900_v2 = vadd.f32 %v10896_v4, %v10822_v10  ;;  %v10976_v56 = vadd.f32 %v10972_v14, %v10901_v40  ;;  %v15138_v60 = vpop.f32.mrb[129].mxu0  ;;  %v15149_v21 = vpop.f32.mrb[129].mxu1 }
0x16ad   :  { %v12246_v17 = vmul.f32 -1.442695, %v10900_v2  ;;  %v12247_v33 = vmul.f32 -1.442695, %v10976_v56 }
0x16ae   :  { %v16956_v47 = vpop.eup %16955 }
0x16af   :  { %v16958_v34 = vpop.eup %16957  ;;  %16963 = vpow2.f32 %v12246_v17 }
0x16b0   :  { %v16960_v27 = vpop.eup %16959  ;;  %v10816_v62 = vmul.f32 %v16958_v34, %v19349_v61  ;;  %16965 = vpow2.f32 %v12247_v33 }
0x16b1   :  { %v10817_v24 = vmul.f32 %v16960_v27, %v16956_v47 }
0x16b2   :  { %v16962_v29 = vpop.eup %16961  ;;  %v11048_v18 = vpop.f32.mrb[130].mxu0 }
0x16b3   :  { %v10813_v25 = vadd.f32 1.0, %v16962_v29  ;;  %v11124_v12 = vpop.f32.mrb[130].mxu1  ;;  %v19527_v54 = vadd.f32 %v10817_v24, %v10816_v62  ;;  %v15160_v52 = vpop.f32.mrb[131].mxu0  ;;  %v11052_v31 = vadd.f32 %v11048_v18, %v10977_v32 }
0x16b4   :  { %v11128_v50 = vadd.f32 %v11124_v12, %v11053_v55  ;;  %v15171_v30 = vpop.f32.mrb[131].mxu1  ;;  %v12287_v52 = vld [vmem:[%s19600_s13] ss:$0 sm:$0xff] }
0x16b5   :  { %16967 = vrcp.f32 %v10813_v25 }
0x16b6   :  { %v12248_v1 = vmul.f32 -1.442695, %v11128_v50  ;;  %16969 = vtanh.f32 %v19527_v54 }
0x16b8   :  { %16971 = vpow2.f32 %v12248_v1 }
0x16b9   :  { %v16964_v35 = vpop.eup %16963  ;;  %16973 = vtanh.f32 %v11052_v31 }
0x16ba   :  { %v16966_v61 = vpop.eup %16965  ;;  %v11132_v43 = vadd.f32 1.0, %v16964_v35 }
0x16bb   :  { %v11138_v58 = vadd.f32 1.0, %v16966_v61 }
0x16bc   :  { %16975 = vrcp.f32 %v11132_v43 }
0x16bd   :  { %16977 = vrcp.f32 %v11138_v58 }
0x16bf   :  { %v16968_v13 = vpop.eup %16967 }
0x16c0   :  { %v16970_v7 = vpop.eup %16969 }
0x16c1   :  { %v10820_v19 = vmul.f32 %v16970_v7, %v16968_v13 }
0x16c2   :  { %v16972_v16 = vpop.eup %16971 }
0x16c3   :  { %11154 = vrot.lane.b32.xlu0 %v10820_v19, %s17006_s25  ;;  %10821 = vst.msk [vmem:[#allocation4 + $0xc] sm:$0x3] %vm6596_vm3, %v10820_v19  ;;  %v16974_v11 = vpop.eup %16973  ;;  %v11145_v26 = vadd.f32 1.0, %v16972_v16 }
0x16c5   :  { %16979 = vrcp.f32 %v11145_v26 }
0x16c6   :  { %v16976_v41 = vpop.eup %16975 }
0x16c7   :  { %v16978_v45 = vpop.eup %16977  ;;  %v11149_v39 = vmul.f32 %v16976_v41, %v16974_v11 }
0x16c8   :  { %v11148_v22 = vmul.f32 %v16978_v45, %v19355_v8  ;;  %v11528_v8 = vld [vmem:[%s19599_s12] sm:$0xff] }
0x16ca   :  { %v11150_v48 = vadd.f32 %v11149_v39, %v11148_v22 }
0x16cc   :  { %16981 = vtanh.f32 %v11150_v48 }
0x16cf   :  { %v16980_v46 = vpop.eup %16979 }
0x16d6   :  { %v16982_v63 = vpop.eup %16981 }
0x16d7   :  { %v11152_v28 = vmul.f32 %v16982_v63, %v16980_v46 }
0x1735   :  { %v11155_v36 = vpop.permute.xlu0 %11154 }
0x1736   :  { %v11157_v38 = vsel %vm62_vm0, %v11152_v28, %v11155_v36 }
0x1737   :  { %15189 = vmatmul.mubr.msk.f32.vlgmr.msra.gmra.mrb[132].mxu0 %vm1136_vm2, %v11157_v38  ;;  %15208 = vmatmul.mubr.msk.f32.vlgmr.msra.gmra.mrb[132].mxu1 %vm1136_vm2, %v11157_v38 }
0x1738   :  { %16453 = vmatpush3.bf16.msra.mxu0 %v19372_v37  ;;  %16465 = vmatpush3.bf16.msra.mxu1 %v19374_v23  ;;  %v11529_v37 = vld [vmem:[%s19599_s12 + $0x8] sm:$0xff]  ;;  %v11530_v23 = vld [vmem:[%s19599_s12 + $0x10] sm:$0xff] }
0x1739   :  { %16454 = vmatprep.subr.bf16.mxu0 %v17003_v57  ;;  %16466 = vmatprep.subr.bf16.mxu1 %v17003_v57 }
0x173a   :  { %15226 = vmatprep.mubr.msk.f32.mxu0 %vm17004_vm1, %v17005_v3  ;;  %15245 = vmatprep.mubr.msk.f32.mxu1 %vm17004_vm1, %v17005_v3  ;;  %v11526_v3 = vld [vmem:[#allocation4] sm:$0xff] }
0x173c   :  { %16456 = vmatpush3.bf16.msra.mxu0 %v19394_v49  ;;  %16468 = vmatpush3.bf16.msra.mxu1 %v19396_v53  ;;  %v11531_v49 = vld [vmem:[%s19599_s12 + $0x18] sm:$0xff] }
0x173d   :  { %16457 = vmatprep.subr.bf16.mxu0 %v17003_v57  ;;  %16469 = vmatprep.subr.bf16.mxu1 %v17003_v57  ;;  %v16479_v53 = vpack.c.bf16 %v11531_v49, %v11530_v23 }
0x1740   :  { %16459 = vmatpush3.bf16.msra.mxu0 %v19418_v42  ;;  %16471 = vmatpush3.bf16.msra.mxu1 %v19420_v51 }
0x1741   :  { %16460 = vmatprep.subr.bf16.mxu0 %v17003_v57  ;;  %16472 = vmatprep.subr.bf16.mxu1 %v17003_v57  ;;  %v16475_v57 = vpack.c.bf16 %v11529_v37, %v11528_v8 }
0x1744   :  { %16462 = vmatpush3.bf16.msra.mxu0 %v19438_v44  ;;  %16474 = vmatpush3.bf16.msra.mxu1 %v19440_v20 }
0x1745   :  { %16476 = vmatprep.subr.bf16.mxu0 %v16475_v57 }
0x1747   :  { %15227 = vmatmul.mubr.msk.f32.vlgmr.msra.gmra.mrb[134].mxu0 %vm1136_vm2, %v11157_v38  ;;  %15246 = vmatmul.mubr.msk.f32.vlgmr.msra.gmra.mrb[134].mxu1 %vm1136_vm2, %v11157_v38 }
0x1748   :  { %15256 = vmatprep.mubr.msk.f32.mxu0 %vm62_vm0, %v11526_v3  ;;  %16478 = vmatpush3.bf16.msra.mxu0 %v16475_v57 }
0x1749   :  { %16480 = vmatprep.subr.bf16.mxu0 %v16479_v53 }
0x174c   :  { %16482 = vmatpush3.bf16.msra.mxu0 %v16479_v53 }
0x180a   :  { %v11242_v42 = vpop.f32.mrb[132].mxu0  ;;  %v11327_v51 = vpop.f32.mrb[132].mxu1 }
0x180b   :  { %v11243_v44 = vadd.f32 %v19505_v0, %v11242_v42  ;;  %v11328_v20 = vadd.f32 %v19510_v6, %v11327_v51  ;;  %v15190_v5 = vpop.f32.mrb[133].mxu0  ;;  %v15209_v9 = vpop.f32.mrb[133].mxu1 }
0x180d   :  { %v12284_v10 = vmul.f32 -1.442695, %v11243_v44  ;;  %v12285_v4 = vmul.f32 -1.442695, %v11328_v20 }
0x180f   :  { %16983 = vpow2.f32 %v12284_v10 }
0x1810   :  { %16985 = vpow2.f32 %v12285_v4 }
0x1819   :  { %v16984_v40 = vpop.eup %16983 }
0x181a   :  { %v16986_v14 = vpop.eup %16985  ;;  %v11504_v2 = vadd.f32 1.0, %v16984_v40  ;;  %v11412_v56 = vpop.f32.mrb[134].mxu0 }
0x181b   :  { %v11497_v60 = vpop.f32.mrb[134].mxu1  ;;  %v11510_v21 = vadd.f32 1.0, %v16986_v14  ;;  %v11413_v17 = vadd.f32 %v19517_v15, %v11412_v56  ;;  %v15228_v47 = vpop.f32.mrb[135].mxu0 }
0x181c   :  { %v11498_v33 = vadd.f32 %v19522_v59, %v11497_v60  ;;  %v15247_v0 = vpop.f32.mrb[135].mxu1  ;;  %16987 = vrcp.f32 %v11504_v2 }
0x181d   :  { %16989 = vrcp.f32 %v11510_v21 }
0x181e   :  { %v12286_v6 = vmul.f32 -1.442695, %v11498_v33  ;;  %16991 = vtanh.f32 %v11413_v17 }
0x1820   :  { %16993 = vpow2.f32 %v12286_v6 }
0x1826   :  { %v16988_v34 = vpop.eup %16987 }
0x1827   :  { %v16990_v27 = vpop.eup %16989 }
0x1828   :  { %v16992_v62 = vpop.eup %16991  ;;  %v11520_v29 = vmul.f32 %v16990_v27, %v19527_v54 }
0x1829   :  { %v11521_v25 = vmul.f32 %v16992_v62, %v16988_v34 }
0x182a   :  { %v16994_v24 = vpop.eup %16993 }
0x182b   :  { %v11517_v18 = vadd.f32 1.0, %v16994_v24  ;;  %v11522_v55 = vadd.f32 %v11521_v25, %v11520_v29 }
0x182d   :  { %16995 = vrcp.f32 %v11517_v18 }
0x182e   :  { %16997 = vtanh.f32 %v11522_v55 }
0x1837   :  { %v16996_v15 = vpop.eup %16995 }
0x1838   :  { %v16998_v59 = vpop.eup %16997 }
0x1839   :  { %v11524_v12 = vmul.f32 %v16998_v59, %v16996_v15 }
0x183b   :  { %11525 = vst.msk [vmem:[#allocation4 + $0xe] sm:$0x3] %vm6596_vm3, %v11524_v12 }
0x1842   :  { %v11527_v50 = vld [vmem:[#allocation4 + $0x8] sm:$0xff] }
0x1843   :  { %15257 = vmatmul.mubr.msk.f32.vlgmr.msra.gmra.mrb[136].mxu0 %vm62_vm0, %v11527_v50 }
0x1916   :  { %v15258_v30 = vpop.f32.mrb[136].mxu0 }
0x1917   :  { %v11617_v54 = vadd.f32 %v15258_v30, %v12287_v52  ;;  %v11611_v32 = vpop.f32.mrb[137].mxu0 }
0x1918   :  { %v11612_v1 = vadd.f32 %v12287_v52, %v11611_v32 }
0x1919   :  { %11621 = vst.msk [vmem:[%s19601_s14 + $0x8] sm:$0xff] %vm62_vm0, %v11617_v54 }
0x191a   :  { %11620 = vst.msk [vmem:[%s19601_s14] sm:$0xff] %vm62_vm0, %v11612_v1 }

</bundles_post_ra>
